<compile_context>
chip_gen: v7x
topology: tpu7x:2x2x1
jax: 0.10.0
libtpu: 0.0.40
codegen_flags: <defaults>
</compile_context>

<pallas_src>
import math

import numpy as np
import jax
import jax.numpy as jnp
from jax.experimental import pallas as pl
from jax.experimental.pallas import tpu as pltpu


_MARGIN = 128   # zero lanes on each side of a block's layer-0 canvas


def _round_up(n, m):
    return ((n + m - 1) // m) * m


def _build_decoder_kernel(grid_side, flat, spb, layer_cfgs, l0_kp):
    """Fused decoder: layer 0 gather/im2col, layers 1.. scatter/col2im.

    layer_cfgs[i] = (cin, cout, mp) with mp = round_up(cout, 8).
    Ref order: (x_canvas, masks, w_0..w_{L-1}, b_0..b_{L-1}, out, im2col_scratch)
    """
    nl = len(layer_cfgs)
    n = spb * flat
    off = _MARGIN
    # gather shift of tap (ky, kx): out[q] reads in[q + (1-ky)*g + (1-kx)]
    shifts = [(1 - ky) * grid_side + (1 - kx)
              for ky in range(3) for kx in range(3)]

    def kernel(*refs):
        x_ref = refs[0]                              # (1, cin0, off + n + off)
        m_ref = refs[1]                              # (nl, n) region masks
        w_refs = refs[2:2 + nl]
        b_refs = refs[2 + nl:2 + 2 * nl]
        o_ref = refs[2 + 2 * nl]                     # (cout_last, n)
        a_ref = refs[3 + 2 * nl]                     # (l0_kp, n) layer-0 im2col

        # ---- layer 0: gather / in-kernel im2col on the zero-margined canvas ----
        cin0, cout0, _ = layer_cfgs[0]
        kdim0 = 9 * cin0
        zs = (kdim0 // 8) * 8
        if zs < l0_kp:
            # zero only the padded contraction rows; the real rows are fully
            # overwritten by the gather below.
            a_ref[zs:, :] = jnp.zeros((l0_kp - zs, n), jnp.float32)
        for idx, s in enumerate(shifts):
            a_ref[idx * cin0:(idx + 1) * cin0, :] = \
                x_ref[0, :, off + s:off + s + n]
        # NOTE: default MXU precision matched the f32 reference within 5e-4 on
        # the tested chip; pass precision=jax.lax.Precision.HIGHEST here if
        # exact cross-generation parity is required.
        acc = jnp.dot(w_refs[0][...], a_ref[...],
                      preferred_element_type=jnp.float32)
        h = jnp.maximum(acc[:cout0, :] + b_refs[0][...], 0.0) * m_ref[0:1, :]

        # ---- layers 1..: scatter / col2im (matmul per tap + circular lane roll) ----
        for li in range(1, nl):
            _, cout, _ = layer_cfgs[li]
            acc = None
            for idx, s in enumerate(shifts):
                r = jnp.dot(w_refs[li][idx], h,
                            preferred_element_type=jnp.float32)[:cout, :]
                if s != 0:
                    # tap (ky,kx) contributes at canvas offset -s; circular
                    # wrap only ever picks up zero (masked-margin) rows.
                    r = pltpu.roll(r, (-s) % n, axis=1)
                acc = r if acc is None else acc + r
            h = jnp.maximum(acc + b_refs[li][...], 0.0) * m_ref[li:li + 1, :]

        o_ref[...] = h

    return kernel


class PallasDecoder:
    """Forward-pass equivalent of the torch Decoder, fused + batched in Pallas."""

    def __init__(self, encoder_output_elems, output_shape_side_len,
                 filters=(1, 64, 32, 1), key=None):
        self.encoder_output_elems = encoder_output_elems
        side = math.sqrt(encoder_output_elems)
        assert side.is_integer()
        self.encoder_output_side_len = int(side)
        self.output_shape_side_len = output_shape_side_len
        self.filters = list(filters)
        assert self.filters[0] == 1, "torch Decoder reshapes its input to 1 channel"
        self.num_conv_layers = len(filters) - 1

        # TODO(synk): the torch module solves (K, P, S) per layer with sympy at
        # __init__ time; that host-side symbolic search has no Pallas
        # equivalent, so its K=3 / P=0 / S=1 solution is hard-coded here and
        # re-verified with the ConvTranspose shape check below.
        self.kernel_sizes = [(3, 3)] * self.num_conv_layers
        self.paddings = [(0, 0)] * self.num_conv_layers
        self.strides = [(1, 1)] * self.num_conv_layers
        assert self._check_parameters(), (
            "output_shape_side_len must equal encoder_side + 2*num_layers "
            "for the K=3/P=0/S=1 solution")

        # --- deterministic parameter init (torch-like uniform +-1/sqrt(fan)) ---
        if key is None:
            key = jax.random.PRNGKey(0)
        self.params = []
        for i in range(self.num_conv_layers):
            cin, cout = self.filters[i], self.filters[i + 1]
            k = self.kernel_sizes[i][0]
            key, kw, kb = jax.random.split(key, 3)
            bound = 1.0 / math.sqrt(cin * k * k)
            w = jax.random.uniform(kw, (cin, cout, k, k), jnp.float32,
                                   minval=-bound, maxval=bound)
            b = jax.random.uniform(kb, (cout,), jnp.float32,
                                   minval=-bound, maxval=bound)
            self.params.append((w, b))

        # --- fused-kernel geometry + precomputed flattened/padded weights ---
        e = self.encoder_output_side_len
        o = self.output_shape_side_len
        nl = self.num_conv_layers
        self.grid_side = o + 2          # >=1 zero cell around every region
        self.flat = self.grid_side * self.grid_side
        self._input_lo = nl + 1         # input square start on the canvas
        self._regions = []
        for i in range(nl):
            lo = nl - i
            self._regions.append((lo, lo + e + 2 * (i + 1)))

        self._layer_cfgs = []
        self._w_mats, self._b_mats = [], []
        self._l0_kp = _round_up(9 * self.filters[0], 8)
        for i, (w, b) in enumerate(self.params):
            cin, cout = self.filters[i], self.filters[i + 1]
            mp = _round_up(cout, 8)
            if i == 0:
                # gather form: (Cout_pad, 9*Cin_pad), cols ordered (ky, kx, ci)
                kdim = 9 * cin
                wm = jnp.transpose(w, (1, 2, 3, 0)).reshape(cout, kdim)
                wm = jnp.pad(wm, ((0, mp - cout), (0, self._l0_kp - kdim)))
            else:
                # scatter form: (9, Cout_pad, Cin), taps ordered (ky, kx)
                wm = jnp.transpose(w, (2, 3, 1, 0)).reshape(9, cout, cin)
                wm = jnp.pad(wm, ((0, 0), (0, mp - cout), (0, 0)))
            self._w_mats.append(wm)
            self._b_mats.append(b.reshape(cout, 1))
            self._layer_cfgs.append((cin, cout, mp))

        self._fwd_cache = {}

    def _check_parameters(self):
        d = self.encoder_output_side_len
        for i in range(self.num_conv_layers):
            k = self.kernel_sizes[i][0]
            s = self.strides[i][0]
            p = self.paddings[i][0]
            d = (d - 1) * s - 2 * p + k          # ConvTranspose2d output size
        return d == self.output_shape_side_len

    def _build_fwd(self, batch):
        nl = self.num_conv_layers
        g, flat = self.grid_side, self.flat
        e, o = self.encoder_output_side_len, self.output_shape_side_len
        spb = max(d for d in (4, 2, 1) if batch % d == 0)  # samples / grid block
        nblk = batch // spb
        n = spb * flat
        pad_len = _MARGIN + n + _MARGIN
        cin0 = self.filters[0]
        cout_last = self.filters[-1]
        lo_in = self._input_lo
        lo_out = self._regions[-1][0]

        # per-layer output-region masks, tiled over the samples of one block
        masks_np = np.zeros((nl, n), np.float32)
        for i, (lo, hi) in enumerate(self._regions):
            m = np.zeros((g, g), np.float32)
            m[lo:hi, lo:hi] = 1.0
            masks_np[i] = np.tile(m.reshape(-1), spb)
        masks = jnp.asarray(masks_np)

        kernel = _build_decoder_kernel(g, flat, spb, self._layer_cfgs,
                                       self._l0_kp)

        in_specs = [
            pl.BlockSpec((1, cin0, pad_len), lambda i: (i, 0, 0)),   # canvas block
            pl.BlockSpec((nl, n), lambda i: (0, 0)),                 # masks (resident)
        ]
        for li, wm in enumerate(self._w_mats):
            if li == 0:
                in_specs.append(pl.BlockSpec(wm.shape, lambda i: (0, 0)))
            else:
                in_specs.append(pl.BlockSpec(wm.shape, lambda i: (0, 0, 0)))
        for bm in self._b_mats:
            in_specs.append(pl.BlockSpec(bm.shape, lambda i: (0, 0)))

        flops = 2 * batch * flat * sum(
            (self._l0_kp * c[2] if i == 0 else 9 * c[2] * c[0])
            for i, c in enumerate(self._layer_cfgs))
        bytes_accessed = 4 * (nblk * cin0 * pad_len + nl * n
                              + sum(int(np.prod(w.shape)) for w in self._w_mats)
                              + sum(int(np.prod(b.shape)) for b in self._b_mats)
                              + cout_last * batch * flat)

        fwd = pl.pallas_call(
            kernel,
            out_shape=jax.ShapeDtypeStruct((cout_last, batch * flat),
                                           jnp.float32),
            grid=(nblk,),
            in_specs=in_specs,
            out_specs=pl.BlockSpec((cout_last, n), lambda i: (0, i)),
            scratch_shapes=[pltpu.VMEM((self._l0_kp, n), jnp.float32)],
            compiler_params=pltpu.CompilerParams(
                dimension_semantics=("parallel",)),   # shards blocks on v7x 2 TCs
            cost_estimate=pl.CostEstimate(flops=int(flops), transcendentals=0,
                                          bytes_accessed=int(bytes_accessed)),
        )

        w_mats, b_mats = self._w_mats, self._b_mats

        def run(x):                                   # x: (batch, elems) f32
            cv = x.reshape(batch, e, e)
            cv = jnp.pad(cv, ((0, 0),
                              (lo_in, g - lo_in - e),
                              (lo_in, g - lo_in - e)))
            cv = cv.reshape(nblk, 1, n)               # samples side by side on lanes
            cv = jnp.pad(cv, ((0, 0), (0, 0), (_MARGIN, _MARGIN)))
            out = fwd(cv, masks, *w_mats, *b_mats)    # (cout_last, batch*flat)
            out = out.reshape(cout_last, batch, g, g).transpose(1, 0, 2, 3)
            out = out[:, :, lo_out:lo_out + o, lo_out:lo_out + o]
            return out.reshape(-1, o, o)

        return jax.jit(run)

    def __call__(self, x):
        x = jnp.asarray(x, jnp.float32)
        assert x.size % self.encoder_output_elems == 0
        batch = x.size // self.encoder_output_elems
        x = x.reshape(batch, self.encoder_output_elems)
        if batch not in self._fwd_cache:
            self._fwd_cache[batch] = self._build_fwd(batch)
        return self._fwd_cache[batch](x)


# -----------------------------------------------------------------------------
# Pure-JAX reference: scatter-form ConvTranspose2d(stride=1, pad=0) + ReLU,
# written directly from the PyTorch definition.
# -----------------------------------------------------------------------------
def _reference_forward(dec, x):
    e, o = dec.encoder_output_side_len, dec.output_shape_side_len

    def single(xs):
        h = xs.reshape(1, e, e).astype(jnp.float32)
        for (w, b) in dec.params:                     # w: (Cin, Cout, K, K)
            cin, cout, kk, _ = w.shape
            _, hh, ww = h.shape
            out = jnp.zeros((cout, hh + kk - 1, ww + kk - 1), jnp.float32)
            for ky in range(kk):
                for kx in range(kk):
                    contrib = jnp.einsum('io,ihw->ohw', w[:, :, ky, kx], h,
                                         precision=jax.lax.Precision.HIGHEST)
                    out = out.at[:, ky:ky + hh, kx:kx + ww].add(contrib)
            h = jax.nn.relu(out + b[:, None, None])
        return h.reshape(-1, o, o)

    xs = jnp.asarray(x, jnp.float32).reshape(-1, e * e)
    return jnp.concatenate([single(xs[i]) for i in range(xs.shape[0])], axis=0)


if __name__ == "__main__":
    key = jax.random.PRNGKey(0)
    k_param, k_x = jax.random.split(key)

    encoder_output_elems = 64        # encoder output is 8x8
    output_shape_side_len = 14       # 8 -> 10 -> 12 -> 14 (K=3, S=1, P=0)
    batch = 8                        # patches decoded per fused/batched call

    dec = PallasDecoder(encoder_output_elems, output_shape_side_len,
                        filters=(1, 64, 32, 1), key=k_param)

    x = jax.random.normal(k_x, (batch, encoder_output_elems), dtype=jnp.float32)

    y = jax.block_until_ready(dec(x))
    assert y.shape == (batch, output_shape_side_len, output_shape_side_len), y.shape

    y_ref = jax.block_until_ready(_reference_forward(dec, x))
    err = float(jnp.max(jnp.abs(y - y_ref)))
    assert err < 1e-3, err

    print("KERNEL_OK")
</pallas_src>

<mosaic_0001>
module attributes {stable_mosaic.version = 11 : i64} {
  func.func @kernel(%arg0: i32, %arg1: memref<1x1x1280xf32, #tpu.memory_space<vmem>>, %arg2: memref<3x1024xf32, #tpu.memory_space<vmem>>, %arg3: memref<64x16xf32, #tpu.memory_space<vmem>>, %arg4: memref<9x32x64xf32, #tpu.memory_space<vmem>>, %arg5: memref<9x8x32xf32, #tpu.memory_space<vmem>>, %arg6: memref<64x1xf32, #tpu.memory_space<vmem>>, %arg7: memref<32x1xf32, #tpu.memory_space<vmem>>, %arg8: memref<1x1xf32, #tpu.memory_space<vmem>>, %arg9: memref<1x1024xf32, #tpu.memory_space<vmem>>, %arg10: memref<16x1024xf32, #tpu.memory_space<vmem>>) attributes {dimension_semantics = [#tpu.dimension_semantics<parallel>], iteration_bounds = array<i64: 2>, scalar_prefetch = 0 : i64, scratch_operands = 1 : i64, tpu.core_type = #tpu.core_type<tc>, window_params = [{transform_indices = @transform_0, window_bounds = array<i64: 1, 1, 1280>}, {pipeline_mode = #tpu.pipeline_mode<synchronous>, transform_indices = @transform_1, window_bounds = array<i64: 3, 1024>}, {pipeline_mode = #tpu.pipeline_mode<synchronous>, transform_indices = @transform_2, window_bounds = array<i64: 64, 16>}, {pipeline_mode = #tpu.pipeline_mode<synchronous>, transform_indices = @transform_3, window_bounds = array<i64: 9, 32, 64>}, {pipeline_mode = #tpu.pipeline_mode<synchronous>, transform_indices = @transform_4, window_bounds = array<i64: 9, 8, 32>}, {pipeline_mode = #tpu.pipeline_mode<synchronous>, transform_indices = @transform_5, window_bounds = array<i64: 64, 1>}, {pipeline_mode = #tpu.pipeline_mode<synchronous>, transform_indices = @transform_6, window_bounds = array<i64: 32, 1>}, {pipeline_mode = #tpu.pipeline_mode<synchronous>, transform_indices = @transform_7, window_bounds = array<i64: 1, 1>}, {transform_indices = @transform_8, window_bounds = array<i64: 1, 1024>}]} {
    %cst = arith.constant 0.000000e+00 : f32
    %0 = vector.broadcast %cst : f32 to vector<8x1024xf32>
    %c8 = arith.constant 8 : index
    %c0 = arith.constant 0 : index
    %1 = vector.load %arg10[%c8, %c0] : memref<16x1024xf32, #tpu.memory_space<vmem>>, vector<8x1024xf32>
    tpu.vector_store %arg10[%c8, %c0], %0 {strides = array<i32>} : memref<16x1024xf32, #tpu.memory_space<vmem>>, vector<8x1024xf32>,
    %c0_0 = arith.constant 0 : index
    %c0_1 = arith.constant 0 : index
    %c145 = arith.constant 145 : index
    %2 = vector.load %arg1[%c0_0, %c0_1, %c145] : memref<1x1x1280xf32, #tpu.memory_space<vmem>>, vector<1x1x1024xf32>
    %3 = vector.shape_cast %2 : vector<1x1x1024xf32> to vector<1x1024xf32>
    %c0_2 = arith.constant 0 : index
    %c0_3 = arith.constant 0 : index
    %4 = vector.load %arg10[%c0_2, %c0_3] : memref<16x1024xf32, #tpu.memory_space<vmem>>, vector<1x1024xf32>
    tpu.vector_store %arg10[%c0_2, %c0_3], %3 {strides = array<i32>} : memref<16x1024xf32, #tpu.memory_space<vmem>>, vector<1x1024xf32>,
    %c0_4 = arith.constant 0 : index
    %c0_5 = arith.constant 0 : index
    %c144 = arith.constant 144 : index
    %5 = vector.load %arg1[%c0_4, %c0_5, %c144] : memref<1x1x1280xf32, #tpu.memory_space<vmem>>, vector<1x1x1024xf32>
    %6 = vector.shape_cast %5 : vector<1x1x1024xf32> to vector<1x1024xf32>
    %c1 = arith.constant 1 : index
    %c0_6 = arith.constant 0 : index
    %7 = vector.load %arg10[%c1, %c0_6] : memref<16x1024xf32, #tpu.memory_space<vmem>>, vector<1x1024xf32>
    tpu.vector_store %arg10[%c1, %c0_6], %6 {strides = array<i32>} : memref<16x1024xf32, #tpu.memory_space<vmem>>, vector<1x1024xf32>,
    %c0_7 = arith.constant 0 : index
    %c0_8 = arith.constant 0 : index
    %c143 = arith.constant 143 : index
    %8 = vector.load %arg1[%c0_7, %c0_8, %c143] : memref<1x1x1280xf32, #tpu.memory_space<vmem>>, vector<1x1x1024xf32>
    %9 = vector.shape_cast %8 : vector<1x1x1024xf32> to vector<1x1024xf32>
    %c2 = arith.constant 2 : index
    %c0_9 = arith.constant 0 : index
    %10 = vector.load %arg10[%c2, %c0_9] : memref<16x1024xf32, #tpu.memory_space<vmem>>, vector<1x1024xf32>
    tpu.vector_store %arg10[%c2, %c0_9], %9 {strides = array<i32>} : memref<16x1024xf32, #tpu.memory_space<vmem>>, vector<1x1024xf32>,
    %c0_10 = arith.constant 0 : index
    %c0_11 = arith.constant 0 : index
    %c129 = arith.constant 129 : index
    %11 = vector.load %arg1[%c0_10, %c0_11, %c129] : memref<1x1x1280xf32, #tpu.memory_space<vmem>>, vector<1x1x1024xf32>
    %12 = vector.shape_cast %11 : vector<1x1x1024xf32> to vector<1x1024xf32>
    %c3 = arith.constant 3 : index
    %c0_12 = arith.constant 0 : index
    %13 = vector.load %arg10[%c3, %c0_12] : memref<16x1024xf32, #tpu.memory_space<vmem>>, vector<1x1024xf32>
    tpu.vector_store %arg10[%c3, %c0_12], %12 {strides = array<i32>} : memref<16x1024xf32, #tpu.memory_space<vmem>>, vector<1x1024xf32>,
    %c0_13 = arith.constant 0 : index
    %c0_14 = arith.constant 0 : index
    %c128 = arith.constant 128 : index
    %14 = vector.load %arg1[%c0_13, %c0_14, %c128] : memref<1x1x1280xf32, #tpu.memory_space<vmem>>, vector<1x1x1024xf32>
    %15 = vector.shape_cast %14 : vector<1x1x1024xf32> to vector<1x1024xf32>
    %c4 = arith.constant 4 : index
    %c0_15 = arith.constant 0 : index
    %16 = vector.load %arg10[%c4, %c0_15] : memref<16x1024xf32, #tpu.memory_space<vmem>>, vector<1x1024xf32>
    tpu.vector_store %arg10[%c4, %c0_15], %15 {strides = array<i32>} : memref<16x1024xf32, #tpu.memory_space<vmem>>, vector<1x1024xf32>,
    %c0_16 = arith.constant 0 : index
    %c0_17 = arith.constant 0 : index
    %c127 = arith.constant 127 : index
    %17 = vector.load %arg1[%c0_16, %c0_17, %c127] : memref<1x1x1280xf32, #tpu.memory_space<vmem>>, vector<1x1x1024xf32>
    %18 = vector.shape_cast %17 : vector<1x1x1024xf32> to vector<1x1024xf32>
    %c5 = arith.constant 5 : index
    %c0_18 = arith.constant 0 : index
    %19 = vector.load %arg10[%c5, %c0_18] : memref<16x1024xf32, #tpu.memory_space<vmem>>, vector<1x1024xf32>
    tpu.vector_store %arg10[%c5, %c0_18], %18 {strides = array<i32>} : memref<16x1024xf32, #tpu.memory_space<vmem>>, vector<1x1024xf32>,
    %c0_19 = arith.constant 0 : index
    %c0_20 = arith.constant 0 : index
    %c113 = arith.constant 113 : index
    %20 = vector.load %arg1[%c0_19, %c0_20, %c113] : memref<1x1x1280xf32, #tpu.memory_space<vmem>>, vector<1x1x1024xf32>
    %21 = vector.shape_cast %20 : vector<1x1x1024xf32> to vector<1x1024xf32>
    %c6 = arith.constant 6 : index
    %c0_21 = arith.constant 0 : index
    %22 = vector.load %arg10[%c6, %c0_21] : memref<16x1024xf32, #tpu.memory_space<vmem>>, vector<1x1024xf32>
    tpu.vector_store %arg10[%c6, %c0_21], %21 {strides = array<i32>} : memref<16x1024xf32, #tpu.memory_space<vmem>>, vector<1x1024xf32>,
    %c0_22 = arith.constant 0 : index
    %c0_23 = arith.constant 0 : index
    %c112 = arith.constant 112 : index
    %23 = vector.load %arg1[%c0_22, %c0_23, %c112] : memref<1x1x1280xf32, #tpu.memory_space<vmem>>, vector<1x1x1024xf32>
    %24 = vector.shape_cast %23 : vector<1x1x1024xf32> to vector<1x1024xf32>
    %c7 = arith.constant 7 : index
    %c0_24 = arith.constant 0 : index
    %25 = vector.load %arg10[%c7, %c0_24] : memref<16x1024xf32, #tpu.memory_space<vmem>>, vector<1x1024xf32>
    tpu.vector_store %arg10[%c7, %c0_24], %24 {strides = array<i32>} : memref<16x1024xf32, #tpu.memory_space<vmem>>, vector<1x1024xf32>,
    %c0_25 = arith.constant 0 : index
    %c0_26 = arith.constant 0 : index
    %c111 = arith.constant 111 : index
    %26 = vector.load %arg1[%c0_25, %c0_26, %c111] : memref<1x1x1280xf32, #tpu.memory_space<vmem>>, vector<1x1x1024xf32>
    %27 = vector.shape_cast %26 : vector<1x1x1024xf32> to vector<1x1024xf32>
    %c8_27 = arith.constant 8 : index
    %c0_28 = arith.constant 0 : index
    %28 = vector.load %arg10[%c8_27, %c0_28] : memref<16x1024xf32, #tpu.memory_space<vmem>>, vector<1x1024xf32>
    tpu.vector_store %arg10[%c8_27, %c0_28], %27 {strides = array<i32>} : memref<16x1024xf32, #tpu.memory_space<vmem>>, vector<1x1024xf32>,
    %c0_29 = arith.constant 0 : index
    %c0_30 = arith.constant 0 : index
    %29 = vector.load %arg3[%c0_29, %c0_30] : memref<64x16xf32, #tpu.memory_space<vmem>>, vector<64x16xf32>
    %c0_31 = arith.constant 0 : index
    %c0_32 = arith.constant 0 : index
    %30 = vector.load %arg10[%c0_31, %c0_32] : memref<16x1024xf32, #tpu.memory_space<vmem>>, vector<16x1024xf32>
    %cst_33 = arith.constant dense<0.000000e+00> : vector<64x1024xf32>
    %31 = tpu.matmul %29, %30, %cst_33 {dimension_numbers = #tpu.dot_dimension_numbers<[1], [0], [0], [1], [0, 0, 1, 1], [], []>} : vector<64x16xf32>, vector<16x1024xf32>, vector<64x1024xf32> -> vector<64x1024xf32>
    %c0_34 = arith.constant 0 : index
    %c0_35 = arith.constant 0 : index
    %32 = vector.load %arg6[%c0_34, %c0_35] : memref<64x1xf32, #tpu.memory_space<vmem>>, vector<64x1xf32>
    %33 = vector.broadcast %32 : vector<64x1xf32> to vector<64x1024xf32>
    %34 = arith.addf %31, %33 : vector<64x1024xf32>
    %cst_36 = arith.constant 0.000000e+00 : f32
    %35 = vector.broadcast %cst_36 : f32 to vector<64x1024xf32>
    %36 = arith.maximumf %34, %35 : vector<64x1024xf32>
    %c0_37 = arith.constant 0 : index
    %c0_38 = arith.constant 0 : index
    %37 = vector.load %arg2[%c0_37, %c0_38] : memref<3x1024xf32, #tpu.memory_space<vmem>>, vector<1x1024xf32>
    %38 = vector.broadcast %37 : vector<1x1024xf32> to vector<64x1024xf32>
    %39 = arith.mulf %36, %38 : vector<64x1024xf32>
    %c0_39 = arith.constant 0 : index
    %c0_40 = arith.constant 0 : index
    %c0_41 = arith.constant 0 : index
    %40 = vector.load %arg4[%c0_39, %c0_40, %c0_41] : memref<9x32x64xf32, #tpu.memory_space<vmem>>, vector<1x32x64xf32>
    %41 = vector.shape_cast %40 : vector<1x32x64xf32> to vector<32x64xf32>
    %cst_42 = arith.constant dense<0.000000e+00> : vector<32x1024xf32>
    %42 = tpu.matmul %41, %39, %cst_42 {dimension_numbers = #tpu.dot_dimension_numbers<[1], [0], [0], [1], [0, 0, 1, 1], [], []>} : vector<32x64xf32>, vector<64x1024xf32>, vector<32x1024xf32> -> vector<32x1024xf32>
    %c1007_i32 = arith.constant 1007 : i32
    %43 = tpu.dynamic_rotate %42 by %c1007_i32 dim 1 : vector<32x1024xf32>, i32 -> vector<32x1024xf32>
    %c1_43 = arith.constant 1 : index
    %c0_44 = arith.constant 0 : index
    %c0_45 = arith.constant 0 : index
    %44 = vector.load %arg4[%c1_43, %c0_44, %c0_45] : memref<9x32x64xf32, #tpu.memory_space<vmem>>, vector<1x32x64xf32>
    %45 = vector.shape_cast %44 : vector<1x32x64xf32> to vector<32x64xf32>
    %cst_46 = arith.constant dense<0.000000e+00> : vector<32x1024xf32>
    %46 = tpu.matmul %45, %39, %cst_46 {dimension_numbers = #tpu.dot_dimension_numbers<[1], [0], [0], [1], [0, 0, 1, 1], [], []>} : vector<32x64xf32>, vector<64x1024xf32>, vector<32x1024xf32> -> vector<32x1024xf32>
    %c1008_i32 = arith.constant 1008 : i32
    %47 = tpu.dynamic_rotate %46 by %c1008_i32 dim 1 : vector<32x1024xf32>, i32 -> vector<32x1024xf32>
    %48 = arith.addf %43, %47 : vector<32x1024xf32>
    %c2_47 = arith.constant 2 : index
    %c0_48 = arith.constant 0 : index
    %c0_49 = arith.constant 0 : index
    %49 = vector.load %arg4[%c2_47, %c0_48, %c0_49] : memref<9x32x64xf32, #tpu.memory_space<vmem>>, vector<1x32x64xf32>
    %50 = vector.shape_cast %49 : vector<1x32x64xf32> to vector<32x64xf32>
    %cst_50 = arith.constant dense<0.000000e+00> : vector<32x1024xf32>
    %51 = tpu.matmul %50, %39, %cst_50 {dimension_numbers = #tpu.dot_dimension_numbers<[1], [0], [0], [1], [0, 0, 1, 1], [], []>} : vector<32x64xf32>, vector<64x1024xf32>, vector<32x1024xf32> -> vector<32x1024xf32>
    %c1009_i32 = arith.constant 1009 : i32
    %52 = tpu.dynamic_rotate %51 by %c1009_i32 dim 1 : vector<32x1024xf32>, i32 -> vector<32x1024xf32>
    %53 = arith.addf %48, %52 : vector<32x1024xf32>
    %c3_51 = arith.constant 3 : index
    %c0_52 = arith.constant 0 : index
    %c0_53 = arith.constant 0 : index
    %54 = vector.load %arg4[%c3_51, %c0_52, %c0_53] : memref<9x32x64xf32, #tpu.memory_space<vmem>>, vector<1x32x64xf32>
    %55 = vector.shape_cast %54 : vector<1x32x64xf32> to vector<32x64xf32>
    %cst_54 = arith.constant dense<0.000000e+00> : vector<32x1024xf32>
    %56 = tpu.matmul %55, %39, %cst_54 {dimension_numbers = #tpu.dot_dimension_numbers<[1], [0], [0], [1], [0, 0, 1, 1], [], []>} : vector<32x64xf32>, vector<64x1024xf32>, vector<32x1024xf32> -> vector<32x1024xf32>
    %c1023_i32 = arith.constant 1023 : i32
    %57 = tpu.dynamic_rotate %56 by %c1023_i32 dim 1 : vector<32x1024xf32>, i32 -> vector<32x1024xf32>
    %58 = arith.addf %53, %57 : vector<32x1024xf32>
    %c4_55 = arith.constant 4 : index
    %c0_56 = arith.constant 0 : index
    %c0_57 = arith.constant 0 : index
    %59 = vector.load %arg4[%c4_55, %c0_56, %c0_57] : memref<9x32x64xf32, #tpu.memory_space<vmem>>, vector<1x32x64xf32>
    %60 = vector.shape_cast %59 : vector<1x32x64xf32> to vector<32x64xf32>
    %cst_58 = arith.constant dense<0.000000e+00> : vector<32x1024xf32>
    %61 = tpu.matmul %60, %39, %cst_58 {dimension_numbers = #tpu.dot_dimension_numbers<[1], [0], [0], [1], [0, 0, 1, 1], [], []>} : vector<32x64xf32>, vector<64x1024xf32>, vector<32x1024xf32> -> vector<32x1024xf32>
    %62 = arith.addf %58, %61 : vector<32x1024xf32>
    %c5_59 = arith.constant 5 : index
    %c0_60 = arith.constant 0 : index
    %c0_61 = arith.constant 0 : index
    %63 = vector.load %arg4[%c5_59, %c0_60, %c0_61] : memref<9x32x64xf32, #tpu.memory_space<vmem>>, vector<1x32x64xf32>
    %64 = vector.shape_cast %63 : vector<1x32x64xf32> to vector<32x64xf32>
    %cst_62 = arith.constant dense<0.000000e+00> : vector<32x1024xf32>
    %65 = tpu.matmul %64, %39, %cst_62 {dimension_numbers = #tpu.dot_dimension_numbers<[1], [0], [0], [1], [0, 0, 1, 1], [], []>} : vector<32x64xf32>, vector<64x1024xf32>, vector<32x1024xf32> -> vector<32x1024xf32>
    %c1_i32 = arith.constant 1 : i32
    %66 = tpu.dynamic_rotate %65 by %c1_i32 dim 1 : vector<32x1024xf32>, i32 -> vector<32x1024xf32>
    %67 = arith.addf %62, %66 : vector<32x1024xf32>
    %c6_63 = arith.constant 6 : index
    %c0_64 = arith.constant 0 : index
    %c0_65 = arith.constant 0 : index
    %68 = vector.load %arg4[%c6_63, %c0_64, %c0_65] : memref<9x32x64xf32, #tpu.memory_space<vmem>>, vector<1x32x64xf32>
    %69 = vector.shape_cast %68 : vector<1x32x64xf32> to vector<32x64xf32>
    %cst_66 = arith.constant dense<0.000000e+00> : vector<32x1024xf32>
    %70 = tpu.matmul %69, %39, %cst_66 {dimension_numbers = #tpu.dot_dimension_numbers<[1], [0], [0], [1], [0, 0, 1, 1], [], []>} : vector<32x64xf32>, vector<64x1024xf32>, vector<32x1024xf32> -> vector<32x1024xf32>
    %c15_i32 = arith.constant 15 : i32
    %71 = tpu.dynamic_rotate %70 by %c15_i32 dim 1 : vector<32x1024xf32>, i32 -> vector<32x1024xf32>
    %72 = arith.addf %67, %71 : vector<32x1024xf32>
    %c7_67 = arith.constant 7 : index
    %c0_68 = arith.constant 0 : index
    %c0_69 = arith.constant 0 : index
    %73 = vector.load %arg4[%c7_67, %c0_68, %c0_69] : memref<9x32x64xf32, #tpu.memory_space<vmem>>, vector<1x32x64xf32>
    %74 = vector.shape_cast %73 : vector<1x32x64xf32> to vector<32x64xf32>
    %cst_70 = arith.constant dense<0.000000e+00> : vector<32x1024xf32>
    %75 = tpu.matmul %74, %39, %cst_70 {dimension_numbers = #tpu.dot_dimension_numbers<[1], [0], [0], [1], [0, 0, 1, 1], [], []>} : vector<32x64xf32>, vector<64x1024xf32>, vector<32x1024xf32> -> vector<32x1024xf32>
    %c16_i32 = arith.constant 16 : i32
    %76 = tpu.dynamic_rotate %75 by %c16_i32 dim 1 : vector<32x1024xf32>, i32 -> vector<32x1024xf32>
    %77 = arith.addf %72, %76 : vector<32x1024xf32>
    %c8_71 = arith.constant 8 : index
    %c0_72 = arith.constant 0 : index
    %c0_73 = arith.constant 0 : index
    %78 = vector.load %arg4[%c8_71, %c0_72, %c0_73] : memref<9x32x64xf32, #tpu.memory_space<vmem>>, vector<1x32x64xf32>
    %79 = vector.shape_cast %78 : vector<1x32x64xf32> to vector<32x64xf32>
    %cst_74 = arith.constant dense<0.000000e+00> : vector<32x1024xf32>
    %80 = tpu.matmul %79, %39, %cst_74 {dimension_numbers = #tpu.dot_dimension_numbers<[1], [0], [0], [1], [0, 0, 1, 1], [], []>} : vector<32x64xf32>, vector<64x1024xf32>, vector<32x1024xf32> -> vector<32x1024xf32>
    %c17_i32 = arith.constant 17 : i32
    %81 = tpu.dynamic_rotate %80 by %c17_i32 dim 1 : vector<32x1024xf32>, i32 -> vector<32x1024xf32>
    %82 = arith.addf %77, %81 : vector<32x1024xf32>
    %c0_75 = arith.constant 0 : index
    %c0_76 = arith.constant 0 : index
    %83 = vector.load %arg7[%c0_75, %c0_76] : memref<32x1xf32, #tpu.memory_space<vmem>>, vector<32x1xf32>
    %84 = vector.broadcast %83 : vector<32x1xf32> to vector<32x1024xf32>
    %85 = arith.addf %82, %84 : vector<32x1024xf32>
    %cst_77 = arith.constant 0.000000e+00 : f32
    %86 = vector.broadcast %cst_77 : f32 to vector<32x1024xf32>
    %87 = arith.maximumf %85, %86 : vector<32x1024xf32>
    %c1_78 = arith.constant 1 : index
    %c0_79 = arith.constant 0 : index
    %88 = vector.load %arg2[%c1_78, %c0_79] : memref<3x1024xf32, #tpu.memory_space<vmem>>, vector<1x1024xf32>
    %89 = vector.broadcast %88 : vector<1x1024xf32> to vector<32x1024xf32>
    %90 = arith.mulf %87, %89 : vector<32x1024xf32>
    %c0_80 = arith.constant 0 : index
    %c0_81 = arith.constant 0 : index
    %c0_82 = arith.constant 0 : index
    %91 = vector.load %arg5[%c0_80, %c0_81, %c0_82] : memref<9x8x32xf32, #tpu.memory_space<vmem>>, vector<1x8x32xf32>
    %92 = vector.shape_cast %91 : vector<1x8x32xf32> to vector<8x32xf32>
    %cst_83 = arith.constant dense<0.000000e+00> : vector<8x1024xf32>
    %93 = tpu.matmul %92, %90, %cst_83 {dimension_numbers = #tpu.dot_dimension_numbers<[1], [0], [0], [1], [0, 0, 1, 1], [], []>} : vector<8x32xf32>, vector<32x1024xf32>, vector<8x1024xf32> -> vector<8x1024xf32>
    %94 = vector.extract_strided_slice %93 {offsets = [0, 0], sizes = [1, 1024], strides = [1, 1]} : vector<8x1024xf32> to vector<1x1024xf32>
    %c1007_i32_84 = arith.constant 1007 : i32
    %95 = tpu.dynamic_rotate %94 by %c1007_i32_84 dim 1 : vector<1x1024xf32>, i32 -> vector<1x1024xf32>
    %c1_85 = arith.constant 1 : index
    %c0_86 = arith.constant 0 : index
    %c0_87 = arith.constant 0 : index
    %96 = vector.load %arg5[%c1_85, %c0_86, %c0_87] : memref<9x8x32xf32, #tpu.memory_space<vmem>>, vector<1x8x32xf32>
    %97 = vector.shape_cast %96 : vector<1x8x32xf32> to vector<8x32xf32>
    %cst_88 = arith.constant dense<0.000000e+00> : vector<8x1024xf32>
    %98 = tpu.matmul %97, %90, %cst_88 {dimension_numbers = #tpu.dot_dimension_numbers<[1], [0], [0], [1], [0, 0, 1, 1], [], []>} : vector<8x32xf32>, vector<32x1024xf32>, vector<8x1024xf32> -> vector<8x1024xf32>
    %99 = vector.extract_strided_slice %98 {offsets = [0, 0], sizes = [1, 1024], strides = [1, 1]} : vector<8x1024xf32> to vector<1x1024xf32>
    %c1008_i32_89 = arith.constant 1008 : i32
    %100 = tpu.dynamic_rotate %99 by %c1008_i32_89 dim 1 : vector<1x1024xf32>, i32 -> vector<1x1024xf32>
    %101 = arith.addf %95, %100 : vector<1x1024xf32>
    %c2_90 = arith.constant 2 : index
    %c0_91 = arith.constant 0 : index
    %c0_92 = arith.constant 0 : index
    %102 = vector.load %arg5[%c2_90, %c0_91, %c0_92] : memref<9x8x32xf32, #tpu.memory_space<vmem>>, vector<1x8x32xf32>
    %103 = vector.shape_cast %102 : vector<1x8x32xf32> to vector<8x32xf32>
    %cst_93 = arith.constant dense<0.000000e+00> : vector<8x1024xf32>
    %104 = tpu.matmul %103, %90, %cst_93 {dimension_numbers = #tpu.dot_dimension_numbers<[1], [0], [0], [1], [0, 0, 1, 1], [], []>} : vector<8x32xf32>, vector<32x1024xf32>, vector<8x1024xf32> -> vector<8x1024xf32>
    %105 = vector.extract_strided_slice %104 {offsets = [0, 0], sizes = [1, 1024], strides = [1, 1]} : vector<8x1024xf32> to vector<1x1024xf32>
    %c1009_i32_94 = arith.constant 1009 : i32
    %106 = tpu.dynamic_rotate %105 by %c1009_i32_94 dim 1 : vector<1x1024xf32>, i32 -> vector<1x1024xf32>
    %107 = arith.addf %101, %106 : vector<1x1024xf32>
    %c3_95 = arith.constant 3 : index
    %c0_96 = arith.constant 0 : index
    %c0_97 = arith.constant 0 : index
    %108 = vector.load %arg5[%c3_95, %c0_96, %c0_97] : memref<9x8x32xf32, #tpu.memory_space<vmem>>, vector<1x8x32xf32>
    %109 = vector.shape_cast %108 : vector<1x8x32xf32> to vector<8x32xf32>
    %cst_98 = arith.constant dense<0.000000e+00> : vector<8x1024xf32>
    %110 = tpu.matmul %109, %90, %cst_98 {dimension_numbers = #tpu.dot_dimension_numbers<[1], [0], [0], [1], [0, 0, 1, 1], [], []>} : vector<8x32xf32>, vector<32x1024xf32>, vector<8x1024xf32> -> vector<8x1024xf32>
    %111 = vector.extract_strided_slice %110 {offsets = [0, 0], sizes = [1, 1024], strides = [1, 1]} : vector<8x1024xf32> to vector<1x1024xf32>
    %c1023_i32_99 = arith.constant 1023 : i32
    %112 = tpu.dynamic_rotate %111 by %c1023_i32_99 dim 1 : vector<1x1024xf32>, i32 -> vector<1x1024xf32>
    %113 = arith.addf %107, %112 : vector<1x1024xf32>
    %c4_100 = arith.constant 4 : index
    %c0_101 = arith.constant 0 : index
    %c0_102 = arith.constant 0 : index
    %114 = vector.load %arg5[%c4_100, %c0_101, %c0_102] : memref<9x8x32xf32, #tpu.memory_space<vmem>>, vector<1x8x32xf32>
    %115 = vector.shape_cast %114 : vector<1x8x32xf32> to vector<8x32xf32>
    %cst_103 = arith.constant dense<0.000000e+00> : vector<8x1024xf32>
    %116 = tpu.matmul %115, %90, %cst_103 {dimension_numbers = #tpu.dot_dimension_numbers<[1], [0], [0], [1], [0, 0, 1, 1], [], []>} : vector<8x32xf32>, vector<32x1024xf32>, vector<8x1024xf32> -> vector<8x1024xf32>
    %117 = vector.extract_strided_slice %116 {offsets = [0, 0], sizes = [1, 1024], strides = [1, 1]} : vector<8x1024xf32> to vector<1x1024xf32>
    %118 = arith.addf %113, %117 : vector<1x1024xf32>
    %c5_104 = arith.constant 5 : index
    %c0_105 = arith.constant 0 : index
    %c0_106 = arith.constant 0 : index
    %119 = vector.load %arg5[%c5_104, %c0_105, %c0_106] : memref<9x8x32xf32, #tpu.memory_space<vmem>>, vector<1x8x32xf32>
    %120 = vector.shape_cast %119 : vector<1x8x32xf32> to vector<8x32xf32>
    %cst_107 = arith.constant dense<0.000000e+00> : vector<8x1024xf32>
    %121 = tpu.matmul %120, %90, %cst_107 {dimension_numbers = #tpu.dot_dimension_numbers<[1], [0], [0], [1], [0, 0, 1, 1], [], []>} : vector<8x32xf32>, vector<32x1024xf32>, vector<8x1024xf32> -> vector<8x1024xf32>
    %122 = vector.extract_strided_slice %121 {offsets = [0, 0], sizes = [1, 1024], strides = [1, 1]} : vector<8x1024xf32> to vector<1x1024xf32>
    %c1_i32_108 = arith.constant 1 : i32
    %123 = tpu.dynamic_rotate %122 by %c1_i32_108 dim 1 : vector<1x1024xf32>, i32 -> vector<1x1024xf32>
    %124 = arith.addf %118, %123 : vector<1x1024xf32>
    %c6_109 = arith.constant 6 : index
    %c0_110 = arith.constant 0 : index
    %c0_111 = arith.constant 0 : index
    %125 = vector.load %arg5[%c6_109, %c0_110, %c0_111] : memref<9x8x32xf32, #tpu.memory_space<vmem>>, vector<1x8x32xf32>
    %126 = vector.shape_cast %125 : vector<1x8x32xf32> to vector<8x32xf32>
    %cst_112 = arith.constant dense<0.000000e+00> : vector<8x1024xf32>
    %127 = tpu.matmul %126, %90, %cst_112 {dimension_numbers = #tpu.dot_dimension_numbers<[1], [0], [0], [1], [0, 0, 1, 1], [], []>} : vector<8x32xf32>, vector<32x1024xf32>, vector<8x1024xf32> -> vector<8x1024xf32>
    %128 = vector.extract_strided_slice %127 {offsets = [0, 0], sizes = [1, 1024], strides = [1, 1]} : vector<8x1024xf32> to vector<1x1024xf32>
    %c15_i32_113 = arith.constant 15 : i32
    %129 = tpu.dynamic_rotate %128 by %c15_i32_113 dim 1 : vector<1x1024xf32>, i32 -> vector<1x1024xf32>
    %130 = arith.addf %124, %129 : vector<1x1024xf32>
    %c7_114 = arith.constant 7 : index
    %c0_115 = arith.constant 0 : index
    %c0_116 = arith.constant 0 : index
    %131 = vector.load %arg5[%c7_114, %c0_115, %c0_116] : memref<9x8x32xf32, #tpu.memory_space<vmem>>, vector<1x8x32xf32>
    %132 = vector.shape_cast %131 : vector<1x8x32xf32> to vector<8x32xf32>
    %cst_117 = arith.constant dense<0.000000e+00> : vector<8x1024xf32>
    %133 = tpu.matmul %132, %90, %cst_117 {dimension_numbers = #tpu.dot_dimension_numbers<[1], [0], [0], [1], [0, 0, 1, 1], [], []>} : vector<8x32xf32>, vector<32x1024xf32>, vector<8x1024xf32> -> vector<8x1024xf32>
    %134 = vector.extract_strided_slice %133 {offsets = [0, 0], sizes = [1, 1024], strides = [1, 1]} : vector<8x1024xf32> to vector<1x1024xf32>
    %c16_i32_118 = arith.constant 16 : i32
    %135 = tpu.dynamic_rotate %134 by %c16_i32_118 dim 1 : vector<1x1024xf32>, i32 -> vector<1x1024xf32>
    %136 = arith.addf %130, %135 : vector<1x1024xf32>
    %c8_119 = arith.constant 8 : index
    %c0_120 = arith.constant 0 : index
    %c0_121 = arith.constant 0 : index
    %137 = vector.load %arg5[%c8_119, %c0_120, %c0_121] : memref<9x8x32xf32, #tpu.memory_space<vmem>>, vector<1x8x32xf32>
    %138 = vector.shape_cast %137 : vector<1x8x32xf32> to vector<8x32xf32>
    %cst_122 = arith.constant dense<0.000000e+00> : vector<8x1024xf32>
    %139 = tpu.matmul %138, %90, %cst_122 {dimension_numbers = #tpu.dot_dimension_numbers<[1], [0], [0], [1], [0, 0, 1, 1], [], []>} : vector<8x32xf32>, vector<32x1024xf32>, vector<8x1024xf32> -> vector<8x1024xf32>
    %140 = vector.extract_strided_slice %139 {offsets = [0, 0], sizes = [1, 1024], strides = [1, 1]} : vector<8x1024xf32> to vector<1x1024xf32>
    %c17_i32_123 = arith.constant 17 : i32
    %141 = tpu.dynamic_rotate %140 by %c17_i32_123 dim 1 : vector<1x1024xf32>, i32 -> vector<1x1024xf32>
    %142 = arith.addf %136, %141 : vector<1x1024xf32>
    %c0_124 = arith.constant 0 : index
    %c0_125 = arith.constant 0 : index
    %143 = vector.load %arg8[%c0_124, %c0_125] : memref<1x1xf32, #tpu.memory_space<vmem>>, vector<1x1xf32>
    %144 = vector.broadcast %143 : vector<1x1xf32> to vector<1x1024xf32>
    %145 = arith.addf %142, %144 : vector<1x1024xf32>
    %cst_126 = arith.constant 0.000000e+00 : f32
    %146 = vector.broadcast %cst_126 : f32 to vector<1x1024xf32>
    %147 = arith.maximumf %145, %146 : vector<1x1024xf32>
    %c2_127 = arith.constant 2 : index
    %c0_128 = arith.constant 0 : index
    %148 = vector.load %arg2[%c2_127, %c0_128] : memref<3x1024xf32, #tpu.memory_space<vmem>>, vector<1x1024xf32>
    %149 = arith.mulf %147, %148 : vector<1x1024xf32>
    %c0_129 = arith.constant 0 : index
    %c0_130 = arith.constant 0 : index
    %150 = vector.load %arg9[%c0_129, %c0_130] : memref<1x1024xf32, #tpu.memory_space<vmem>>, vector<1x1024xf32>
    tpu.vector_store %arg9[%c0_129, %c0_130], %149 {strides = array<i32>} : memref<1x1024xf32, #tpu.memory_space<vmem>>, vector<1x1024xf32>,
    return
  }
  func.func @transform_0(%arg0: i32) -> (i32, i32, i32) {
    %c0_i32 = arith.constant 0 : i32
    %c0_i32_0 = arith.constant 0 : i32
    %c0_i32_1 = arith.constant 0 : i32
    return %arg0, %c0_i32, %c0_i32_0 : i32, i32, i32
  }
  func.func @transform_1(%arg0: i32) -> (i32, i32) {
    %c0_i32 = arith.constant 0 : i32
    %c0_i32_0 = arith.constant 0 : i32
    %c0_i32_1 = arith.constant 0 : i32
    return %c0_i32, %c0_i32_0 : i32, i32
  }
  func.func @transform_2(%arg0: i32) -> (i32, i32) {
    %c0_i32 = arith.constant 0 : i32
    %c0_i32_0 = arith.constant 0 : i32
    %c0_i32_1 = arith.constant 0 : i32
    return %c0_i32, %c0_i32_0 : i32, i32
  }
  func.func @transform_3(%arg0: i32) -> (i32, i32, i32) {
    %c0_i32 = arith.constant 0 : i32
    %c0_i32_0 = arith.constant 0 : i32
    %c0_i32_1 = arith.constant 0 : i32
    %c0_i32_2 = arith.constant 0 : i32
    return %c0_i32, %c0_i32_0, %c0_i32_1 : i32, i32, i32
  }
  func.func @transform_4(%arg0: i32) -> (i32, i32, i32) {
    %c0_i32 = arith.constant 0 : i32
    %c0_i32_0 = arith.constant 0 : i32
    %c0_i32_1 = arith.constant 0 : i32
    %c0_i32_2 = arith.constant 0 : i32
    return %c0_i32, %c0_i32_0, %c0_i32_1 : i32, i32, i32
  }
  func.func @transform_5(%arg0: i32) -> (i32, i32) {
    %c0_i32 = arith.constant 0 : i32
    %c0_i32_0 = arith.constant 0 : i32
    %c0_i32_1 = arith.constant 0 : i32
    return %c0_i32, %c0_i32_0 : i32, i32
  }
  func.func @transform_6(%arg0: i32) -> (i32, i32) {
    %c0_i32 = arith.constant 0 : i32
    %c0_i32_0 = arith.constant 0 : i32
    %c0_i32_1 = arith.constant 0 : i32
    return %c0_i32, %c0_i32_0 : i32, i32
  }
  func.func @transform_7(%arg0: i32) -> (i32, i32) {
    %c0_i32 = arith.constant 0 : i32
    %c0_i32_0 = arith.constant 0 : i32
    %c0_i32_1 = arith.constant 0 : i32
    return %c0_i32, %c0_i32_0 : i32, i32
  }
  func.func @transform_8(%arg0: i32) -> (i32, i32) {
    %c0_i32 = arith.constant 0 : i32
    %c0_i32_0 = arith.constant 0 : i32
    return %c0_i32, %arg0 : i32, i32
  }
}

</mosaic_0001>

<bundles_post_ra>
// kernel: run.1
= control target key start
LH: loop header
LB: loop body
LE: loop exit
PB: predicated region body
PF: predicated region fallthrough
CT: control target
= control target key end

     0   :  { %s15147_s0 = inlined_call_operand.vmem [shape: f32[2,1,1280], index: 0, kind: input, shape index: {}]   ;;  %s15148_s1 = inlined_call_operand.hbm [shape: f32[3,1024], index: 1, kind: input, shape index: {}]   ;;  %s15149_s2 = inlined_call_operand.hbm [shape: f32[64,16], index: 2, kind: input, shape index: {}]   ;;  %s15150_s3 = inlined_call_operand.vmem [shape: f32[9,32,64], index: 3, kind: input, shape index: {}]   ;;  %s15151_s4 = inlined_call_operand.vmem [shape: f32[9,8,32], index: 4, kind: input, shape index: {}]   ;;  %s15152_s5 = inlined_call_operand.vmem [shape: f32[64,1], index: 5, kind: input, shape index: {}]   ;;  %s15153_s6 = inlined_call_operand.vmem [shape: f32[32,1], index: 6, kind: input, shape index: {}]   ;;  %s15154_s7 = inlined_call_operand.<no memory space> [shape: f32[1,1], index: 7, kind: input, shape index: {}]   ;;  %s15155_s8 = inlined_call_operand.vmem [shape: f32[1,2048], index: 8, kind: output, shape index: {}]  }
   0x1   :  { %v13_v0 = vstv %s15154_s7 }
   0x2   :  { %14 = vst [vmem:[#allocation3] sm:$0x1] %v13_v0 }
   0x3   :  { %15 = vsyncpa [#allocation5], 0 }
   0x4   :  { %16 = vsyncpa [#allocation7], 0  ;;  %s10141_s29 = smov 0  }
   0x5 LB: > { %s10147_s30 = sadd.s32 4294967295, %s10076_s29   ;;  %p8819_p0 = scmp.ge.s32.totalorder %s10076_s29, 1  ;;  %s10076_s29 = sphi %s10141_s29, %s22_s29  }
   0x6   : > { %p226_p1 = scmp.lt.s32.totalorder %s10076_s29, 3  ;;  %p15156_p2 = scmp.eq.s32.totalorder %s10147_s30, 0 }
   0x7   : > { %s10078_s7 = smov [#allocation4]   ;;  %s10079_s11 = smov [#allocation6]  }
   0x8   : > { %s239_s9 = sshll.u32 %s10078_s7, 4  ;;  %p10152_p3 = pnand %p8819_p0, %p226_p1  ;;  %s240_s9 = int_to_ptr.vmem [resolvable:$true] %s239_s9 }
   0x9   : > { %s249_s12 = sshll.u32 %s10079_s11, 4  ;;  %s10006_s16 = scalar_lea.hbm %s15148_s1, 512  ;;  %s10164_s12 = int_to_ptr.vmem [resolvable:$true] %s249_s12 }
   0xa   : > { %s15408_s10 = scalar_select %p10152_p3, 1, 0 }
   0xb   : > { %p9970_p4 = pneg %p10152_p3  ;;  %p10007_p6 = scmp.ne.s32.totalorder %s15148_s1, %s10006_s16 }
   0xc   : > { %p10013_p10 = scmp.lt.u32.totalorder %s10006_s16, %s15148_s1 }
   0xd   : > { %p10160_p5 = pnand %p15156_p2, %p9970_p4 }
   0xf   : > { %p10008_p7 = pneg %p10160_p5 }
  0x11   : > { %p10009_p8 = pnand %p10008_p7, %p10007_p6 }
  0x13   : > { %p10010_p9 = pneg %p10009_p8 }
  0x15   : > { %p10015_p11 = pnand %p10013_p10, %p10010_p9 }
  0x17   : > { %10018 = shalt.err (!%p10015_p11)
}
  0x18   : > { %s10019_s21 = scalar_lea.vmem %s240_s9, 512  ;;  %p10027_p1 = scmp.lt.s32.totalorder %s240_s9, %s240_s9 }
  0x19   : > { %p10020_p12 = scmp.ne.s32.totalorder %s240_s9, %s10019_s21  ;;  %p10028_p4 = scmp.lt.s32.totalorder %s10019_s21, %s10019_s21 }
  0x1b   : > { %p10022_p13 = pnand %p10020_p12, %p10008_p7  ;;  %p10029_p2 = por %p10028_p4, %p10027_p1 }
  0x1d   : > { %p10023_p0 = pneg %p10022_p13 }
  0x1f   : > { %p10030_p3 = pnand %p10029_p2, %p10023_p0 }
  0x21   : > { %10033 = shalt.err (!%p10030_p3)
}
  0x22   : > { %9973 = dma.hbm_to_vmem [thread:$0]  (!%p10160_p5), %s15148_s1, 512, %s240_s9, [#allocation5]  }
  0x23   : > { %s10034_s26 = scalar_lea.hbm %s15149_s2, 1024 }
  0x24   : > { %p10035_p6 = scmp.ne.s32.totalorder %s15149_s2, %s10034_s26  ;;  %p10041_p3 = scmp.lt.u32.totalorder %s10034_s26, %s15149_s2 }
  0x26   : > { %p10037_p8 = pnand %p10035_p6, %p10008_p7 }
  0x28   : > { %p10038_p2 = pneg %p10037_p8 }
  0x2a   : > { %p10043_p9 = pnand %p10041_p3, %p10038_p2 }
  0x2c   : > { %10046 = shalt.err (!%p10043_p9)
}
  0x2d   : > { %s10047_s9 = scalar_lea.vmem %s10164_s12, 1024  ;;  %p10055_p13 = scmp.lt.s32.totalorder %s10164_s12, %s10164_s12 }
  0x2e   : > { %p10048_p10 = scmp.ne.s32.totalorder %s10164_s12, %s10047_s9  ;;  %p10056_p0 = scmp.lt.s32.totalorder %s10047_s9, %s10047_s9 }
  0x30   : > { %p10050_p11 = pnand %p10048_p10, %p10008_p7  ;;  %p10057_p1 = por %p10056_p0, %p10055_p13 }
  0x32   : > { %p10051_p12 = pneg %p10050_p11 }
  0x34   : > { %p10058_p4 = pnand %p10057_p1, %p10051_p12 }
  0x36   : > { %10061 = shalt.err (!%p10058_p4)
}
  0x37   : > { %s10080_s14 = smov 128   ;;  %s10081_s15 = smov 8  }
  0x38   : > { %9976 = dma.hbm_to_vmem [thread:$0]  (!%p10160_p5), %s15149_s2, 1024, %s10164_s12, [#allocation7], %s10080_s14, %s10080_s14, %s10081_s15  }
  0x39   : > { %p15410_p6 = scmp.ne.s32.totalorder %s15408_s10, 0 }
  0x3b   : > { %287 = sbr.rel (%p15410_p6) target bundleno = 1847 (0x737), region = 52 }
  0x42   : > { %p15411_p7 = scmp.eq.s32.totalorder %s10147_s30, 0 }
  0x44   : > { %10067 = dma.done.wait (%p15411_p7), [#allocation5], 512   ;;  %p15412_p8 = pmov %p15411_p7 }
  0x45   : > { %p15413_p2 = pmov %p15411_p7 }
  0x46   : > { %10069 = vsyncadd (%p15412_p8), [#allocation5], 4294966784 }
  0x47   : > { %10071 = dma.done.wait (%p15413_p2), [#allocation7], 1024   ;;  %p15414_p3 = pmov %p15413_p2 }
  0x48   : > { %p323_p9 = scmp.lt.s32.totalorder %s10147_s30, 1  ;;  %s10082_s20 = smov 112   ;;  %v15162_v8 = vmov 0.0   ;;  %v505_v12 = vld [vmem:[%s15152_s5 + $0x8] sm:$0xff]  ;;  %v504_v13 = vld [vmem:[%s15152_s5] sm:$0xff]  ;;  %v10091_v14 = vmov 0  }
  0x49   : > { %10073 = vsyncadd (%p15414_p3), [#allocation7], 4294966272  ;;  %s10083_s21 = smov 111   ;;  %s10084_s22 = smov 113   ;;  %332 = vst [vmem:[#allocation2 + $0x40] sm:$0xff] %v15162_v8  ;;  %640 = vmatprep.mubr.f32.mxu0 %v15162_v8  ;;  %753 = vmatprep.mubr.f32.mxu1 %v15162_v8  ;;  %v506_v15 = vld [vmem:[%s15152_s5 + $0x10] sm:$0xff] }
  0x4a   : > { %s324_s13 = scalar_select %p323_p9, %s10147_s30, 1  ;;  %333 = vst [vmem:[#allocation2 + $0x48] sm:$0xff] %v15162_v8  ;;  %334 = vst [vmem:[#allocation2 + $0x50] sm:$0xff] %v15162_v8  ;;  %10005 = vset.pattern.permute.xlu1 %v10091_v14  ;;  %10004 = vset.pattern.permute.xlu0 %v10091_v14  ;;  %v507_v16 = vld [vmem:[%s15152_s5 + $0x18] sm:$0xff]  ;;  %v508_v17 = vld [vmem:[%s15152_s5 + $0x20] sm:$0xff]  ;;  %vm350_vm0 = vcmask 1046528  }
  0x4b   : > { %s10085_s23 = smov 127   ;;  %s10086_s24 = smov 1   ;;  %335 = vst [vmem:[#allocation2 + $0x58] sm:$0xff] %v15162_v8  ;;  %336 = vst [vmem:[#allocation2 + $0x60] sm:$0xff] %v15162_v8  ;;  %v509_v18 = vld [vmem:[%s15152_s5 + $0x28] sm:$0xff]  ;;  %v510_v19 = vld [vmem:[%s15152_s5 + $0x30] sm:$0xff] }
  0x4c   : > { %s9961_s12 = smul.u32 10, %s324_s13  ;;  %337 = vst [vmem:[#allocation2 + $0x68] sm:$0xff] %v15162_v8  ;;  %338 = vst [vmem:[#allocation2 + $0x70] sm:$0xff] %v15162_v8  ;;  %s10088_s25 = smov 15   ;;  %v511_v20 = vld [vmem:[%s15152_s5 + $0x38] sm:$0xff]  ;;  %v5589_v21 = vld [vmem:[%s15153_s6] sm:$0xff] }
  0x4d   : > { %339 = vst [vmem:[#allocation2 + $0x78] sm:$0xff] %v15162_v8  ;;  %s10089_s26 = smov 16   ;;  %s10090_s27 = smov 17   ;;  %v5590_v22 = vld [vmem:[%s15153_s6 + $0x8] sm:$0xff]  ;;  %v5591_v23 = vld [vmem:[%s15153_s6 + $0x10] sm:$0xff]  ;;  %v5592_v24 = vld [vmem:[%s15153_s6 + $0x18] sm:$0xff] }
  0x4e   : > { %s10228_s19 = scalar_lea.vmem %s15147_s0, %s9961_s12  ;;  %vm368_vm1 = vcmask 916480   ;;  %vm352_vm2 = vcmask 908288   ;;  %vm385_vm3 = vcmask 924672   ;;  %vm402_vm4 = vcmask 1039360  }
  0x4f   : > { %v357_v1 = vld [vmem:[%s10228_s19 + $0x1] sm:$0xff]  ;;  %v358_v2 = vld [vmem:[%s10228_s19 + $0x9] sm:$0x1]  ;;  %vm423_vm5 = vcmask 7168   ;;  %vm440_vm6 = vcmask 121856   ;;  %vm457_vm7 = vcmask 130048  }
  0x50   : > { %361 = vrot.lane.b32.xlu1 %v357_v1, %s10082_s20  ;;  %344 = vrot.lane.b32.xlu0 %v357_v1, %s10083_s21  ;;  %410 = vst [vmem:[#allocation2 + $0x4] ss:$8 sm:$0xf] %v357_v1  ;;  %411 = vst [vmem:[#allocation2 + $0x4] ss:$8 sm:$0xf0] %v357_v1 }
  0x51   : > { %v341_v3 = vld [vmem:[%s10228_s19 + $0x9] sm:$0x1]  ;;  %v413_v6 = vld [vmem:[%s10228_s19 + $0x8] sm:$0x1]  ;;  %v412_v7 = vld [vmem:[%s10228_s19] sm:$0xff]  ;;  %vm474_vm8 = vcmask 138240  }
  0x52   : > { %v375_v4 = vld [vmem:[%s10228_s19 + $0x9] sm:$0x1]  ;;  %v430_v9 = vld [vmem:[%s10228_s19 + $0x8] sm:$0x1]  ;;  %vm1202_vm9 = vcmask 523264  }
  0x53   : > { %v392_v5 = vld [vmem:[%s10228_s19 + $0x9] sm:$0x1]  ;;  %v447_v10 = vld [vmem:[%s10228_s19 + $0x8] sm:$0x1] }
  0x54   : > { %363 = vrot.lane.b32.xlu1 %v358_v2, %s10082_s20  ;;  %346 = vrot.lane.b32.xlu0 %v341_v3, %s10083_s21  ;;  %v464_v11 = vld [vmem:[%s10228_s19 + $0x8] sm:$0x1] }
  0x58   : > { %380 = vrot.lane.b32.xlu1 %v375_v4, %s10084_s22  ;;  %378 = vrot.lane.b32.xlu0 %v357_v1, %s10084_s22 }
  0x5c   : > { %397 = vrot.lane.b32.xlu1 %v392_v5, %s10085_s23  ;;  %395 = vrot.lane.b32.xlu0 %v357_v1, %s10085_s23 }
  0x60   : > { %418 = vrot.lane.b32.xlu1 %v413_v6, %s10086_s24  ;;  %416 = vrot.lane.b32.xlu0 %v412_v7, %s10086_s24 }
  0x64   : > { %435 = vrot.lane.b32.xlu1 %v430_v9, %s10088_s25  ;;  %433 = vrot.lane.b32.xlu0 %v412_v7, %s10088_s25 }
  0x68   : > { %452 = vrot.lane.b32.xlu1 %v447_v10, %s10089_s26  ;;  %450 = vrot.lane.b32.xlu0 %v412_v7, %s10089_s26 }
  0x6c   : > { %469 = vrot.lane.b32.xlu1 %v464_v11, %s10090_s27  ;;  %467 = vrot.lane.b32.xlu0 %v412_v7, %s10090_s27 }
  0x70   : > { %519 = vperm.xlu1 %10005, %v505_v12   ;;  %514 = vperm.xlu0 %10004, %v504_v13  }
  0x74   : > { %524 = vperm.xlu1 %10005, %v506_v15   ;;  %529 = vperm.xlu0 %10004, %v507_v16  }
  0x78   : > { %534 = vperm.xlu1 %10005, %v508_v17   ;;  %539 = vperm.xlu0 %10004, %v509_v18  }
  0x7c   : > { %544 = vperm.xlu1 %10005, %v510_v19   ;;  %549 = vperm.xlu0 %10004, %v511_v20  }
  0x80   : > { %5595 = vperm.xlu1 %10005, %v5589_v21   ;;  %5600 = vperm.xlu0 %10004, %v5590_v22  }
  0x84   : > { %5605 = vperm.xlu1 %10005, %v5591_v23   ;;  %5610 = vperm.xlu0 %10004, %v5592_v24  }
  0xc2   : > { %v362_v25 = vpop.permute.xlu1 %361  ;;  %v345_v26 = vpop.permute.xlu0 %344 }
  0xc3   : > { %v365_v29 = vrot.slane %v362_v25, 1  ;;  %v348_v30 = vrot.slane %v345_v26, 1 }
  0xc6   : > { %v364_v27 = vpop.permute.xlu1 %363  ;;  %v347_v28 = vpop.permute.xlu0 %346 }
  0xc7   : > { %v366_v31 = vrot.slane %v364_v27, 1  ;;  %v349_v32 = vrot.slane %v347_v28, 1 }
  0xc9   : > { %v367_v33 = vsel %vm350_vm0, %v365_v29, %v366_v31  ;;  %v351_v34 = vsel %vm350_vm0, %v348_v30, %v349_v32  ;;  %v480_v30 = vld [vmem:[#allocation6] sm:$0xff] }
  0xca   : > { %v369_v35 = vsel %vm368_vm1, %v362_v25, %v367_v33  ;;  %v353_v36 = vsel %vm352_vm2, %v345_v26, %v351_v34  ;;  %v381_v37 = vpop.permute.xlu1 %380  ;;  %v379_v38 = vpop.permute.xlu0 %378  ;;  %vm5753_vm2 = vcmask 261120  }
  0xcb   : > { %372 = vst [vmem:[#allocation2 + $0x1] ss:$8 sm:$0xf] %v369_v35  ;;  %373 = vst [vmem:[#allocation2 + $0x1] ss:$8 sm:$0xf0] %v369_v35 }
  0xcc   : > { %355 = vst [vmem:[#allocation2] ss:$8 sm:$0xf] %v353_v36  ;;  %356 = vst [vmem:[#allocation2] ss:$8 sm:$0xf0] %v353_v36 }
  0xcd   : > { %v383_v39 = vrot.slane %v381_v37, 1  ;;  %v382_v40 = vrot.slane %v379_v38, 1  ;;  %v481_v35 = vld [vmem:[#allocation6 + $0x8] sm:$0xff]  ;;  %v482_v36 = vld [vmem:[#allocation6 + $0x10] sm:$0xff]  ;;  %v483_v37 = vld [vmem:[#allocation6 + $0x18] sm:$0xff] }
  0xce   : > { %v398_v43 = vpop.permute.xlu1 %397  ;;  %v396_v44 = vpop.permute.xlu0 %395 }
  0xcf   : > { %v384_v41 = vsel %vm350_vm0, %v382_v40, %v383_v39  ;;  %v400_v45 = vrot.slane %v398_v43, 1  ;;  %v399_v46 = vrot.slane %v396_v44, 1  ;;  %v485_v39 = vld [vmem:[#allocation6 + $0x28] sm:$0xff]  ;;  %v486_v40 = vld [vmem:[#allocation6 + $0x30] sm:$0xff] }
  0xd0   : > { %v386_v42 = vsel %vm385_vm3, %v379_v38, %v384_v41  ;;  %v484_v38 = vld [vmem:[#allocation6 + $0x20] sm:$0xff]  ;;  %v487_v41 = vld [vmem:[#allocation6 + $0x38] sm:$0xff] }
  0xd1   : > { %389 = vst [vmem:[#allocation2 + $0x2] ss:$8 sm:$0xf] %v386_v42  ;;  %390 = vst [vmem:[#allocation2 + $0x2] ss:$8 sm:$0xf0] %v386_v42  ;;  %v401_v47 = vsel %vm350_vm0, %v399_v46, %v400_v45  ;;  %v15158_v42 = vlaneseq }
  0xd2   : > { %v403_v48 = vsel %vm402_vm4, %v396_v44, %v401_v47  ;;  %v419_v49 = vpop.permute.xlu1 %418  ;;  %v417_v50 = vpop.permute.xlu0 %416 }
  0xd3   : > { %406 = vst [vmem:[#allocation2 + $0x3] ss:$8 sm:$0xf] %v403_v48  ;;  %407 = vst [vmem:[#allocation2 + $0x3] ss:$8 sm:$0xf0] %v403_v48 }
  0xd4   : > { %v421_v51 = vrot.slane %v419_v49, 1  ;;  %v420_v52 = vrot.slane %v417_v50, 1  ;;  %v10376_v43 = vshrl.u32 %v15158_v42, 7  ;;  %v10388_v49 = vld [vmem:[#allocation4] ss:$4 sm:$0xff] }
  0xd6   : > { %v422_v53 = vsel %vm350_vm0, %v420_v52, %v421_v51  ;;  %v436_v55 = vpop.permute.xlu1 %435  ;;  %v434_v56 = vpop.permute.xlu0 %433  ;;  %15415 = vst [vmem:[#allocation10_spill] sm:$0xff] %v10376_v43  ;;  %v10383_v46 = vsub.s32 0, %v10376_v43  ;;  %v10386_v47 = vsub.s32 2, %v10376_v43  ;;  %v10394_v52 = vsub.s32 3, %v10376_v43 }
  0xd7   : > { %v424_v54 = vsel %vm423_vm5, %v417_v50, %v422_v53  ;;  %v438_v57 = vrot.slane %v436_v55, 1  ;;  %v437_v58 = vrot.slane %v434_v56, 1  ;;  %v10391_v50 = vsub.s32 1, %v10376_v43 }
  0xd8   : > { %427 = vst [vmem:[#allocation2 + $0x5] ss:$8 sm:$0xf] %v424_v54  ;;  %428 = vst [vmem:[#allocation2 + $0x5] ss:$8 sm:$0xf0] %v424_v54 }
  0xd9   : > { %v439_v59 = vsel %vm350_vm0, %v437_v58, %v438_v57  ;;  %15416 = vst [vmem:[#allocation11_spill] sm:$0xff] %v10383_v46  ;;  %15417 = vst [vmem:[#allocation12_spill] sm:$0xff] %v10386_v47 }
  0xda   : > { %v441_v60 = vsel %vm440_vm6, %v434_v56, %v439_v59  ;;  %v453_v61 = vpop.permute.xlu1 %452  ;;  %v451_v62 = vpop.permute.xlu0 %450  ;;  %15418 = vst [vmem:[#allocation13_spill] sm:$0xff] %v10391_v50  ;;  %15419 = vst [vmem:[#allocation14_spill] sm:$0xff] %v10394_v52 }
  0xdb   : > { %444 = vst [vmem:[#allocation2 + $0x6] ss:$8 sm:$0xf] %v441_v60  ;;  %445 = vst [vmem:[#allocation2 + $0x6] ss:$8 sm:$0xf0] %v441_v60  ;;  %v10402_v60 = vrot.slane %v10388_v49, %v10383_v46 }
  0xdc   : > { %v455_v63 = vrot.slane %v453_v61, 1  ;;  %v454_v0 = vrot.slane %v451_v62, 1 }
  0xde   : > { %v456_v1 = vsel %vm350_vm0, %v454_v0, %v455_v63  ;;  %v470_v3 = vpop.permute.xlu1 %469  ;;  %v468_v4 = vpop.permute.xlu0 %467  ;;  %v10410_v0 = vrot.slane %v10388_v49, %v10391_v50 }
  0xdf   : > { %v458_v2 = vsel %vm457_vm7, %v451_v62, %v456_v1  ;;  %v472_v5 = vrot.slane %v470_v3, 1  ;;  %v471_v6 = vrot.slane %v468_v4, 1  ;;  %v10406_v62 = vrot.slane %v10388_v49, %v10386_v47 }
  0xe0   : > { %461 = vst [vmem:[#allocation2 + $0x7] ss:$8 sm:$0xf] %v458_v2  ;;  %462 = vst [vmem:[#allocation2 + $0x7] ss:$8 sm:$0xf0] %v458_v2  ;;  %v10414_v2 = vrot.slane %v10388_v49, %v10394_v52 }
  0xe1   : > { %v473_v7 = vsel %vm350_vm0, %v471_v6, %v472_v5 }
  0xe2   : > { %v475_v9 = vsel %vm474_vm8, %v468_v4, %v473_v7 }
  0xe3   : > { %478 = vst [vmem:[#allocation2 + $0x40] ss:$8 sm:$0xf] %v475_v9  ;;  %479 = vst [vmem:[#allocation2 + $0x40] ss:$8 sm:$0xf0] %v475_v9 }
  0xe7   : > { %v489_v10 = vld [vmem:[#allocation2 + $0x8] sm:$0xff]  ;;  %v491_v11 = vld [vmem:[#allocation2 + $0x18] sm:$0xff]  ;;  %v488_v12 = vld [vmem:[#allocation2] sm:$0xff] }
  0xe8   : > { %v490_v13 = vld [vmem:[#allocation2 + $0x10] sm:$0xff]  ;;  %v493_v24 = vld [vmem:[#allocation2 + $0x28] sm:$0xff]  ;;  %v495_v25 = vld [vmem:[#allocation2 + $0x38] sm:$0xff] }
  0xe9   : > { %v492_v31 = vld [vmem:[#allocation2 + $0x20] sm:$0xff]  ;;  %v494_v32 = vld [vmem:[#allocation2 + $0x30] sm:$0xff] }
  0xea   : > { %v497_v14 = vld [vmem:[#allocation2 + $0x48] sm:$0xff]  ;;  %v499_v15 = vld [vmem:[#allocation2 + $0x58] sm:$0xff]  ;;  %v496_v16 = vld [vmem:[#allocation2 + $0x40] sm:$0xff] }
  0xeb   : > { %v9081_v17 = vpack.c.bf16 %v497_v14, %v489_v10  ;;  %v9085_v18 = vpack.c.bf16 %v499_v15, %v491_v11  ;;  %v9083_v19 = vpack.c.bf16 %v496_v16, %v488_v12  ;;  %v498_v20 = vld [vmem:[#allocation2 + $0x50] sm:$0xff]  ;;  %v501_v21 = vld [vmem:[#allocation2 + $0x68] sm:$0xff]  ;;  %v503_v22 = vld [vmem:[#allocation2 + $0x78] sm:$0xff] }
  0xec   : > { %v9087_v23 = vpack.c.bf16 %v498_v20, %v490_v13  ;;  %v9089_v26 = vpack.c.bf16 %v501_v21, %v493_v24  ;;  %v9093_v27 = vpack.c.bf16 %v503_v22, %v495_v25  ;;  %v500_v28 = vld [vmem:[#allocation2 + $0x60] sm:$0xff]  ;;  %v502_v29 = vld [vmem:[#allocation2 + $0x70] sm:$0xff] }
  0xed   : > { %9082 = vmatprep.subr.bf16.mxu0 %v9081_v17  ;;  %9086 = vmatprep.subr.bf16.mxu1 %v9085_v18  ;;  %v9091_v33 = vpack.c.bf16 %v500_v28, %v492_v31  ;;  %v9095_v34 = vpack.c.bf16 %v502_v29, %v494_v32 }
  0xee   : > { %9084 = vmatpush1.bf16.msra.mxu0 %v9083_v19  ;;  %9088 = vmatpush1.bf16.msra.mxu1 %v9087_v23 }
  0xef   : > { %9090 = vmatprep.subr.bf16.mxu0 %v9089_v26  ;;  %9094 = vmatprep.subr.bf16.mxu1 %v9093_v27  ;;  %v10378_v44 = vpop.permute.xlu1 %519  ;;  %v10380_v45 = vpop.permute.xlu0 %514 }
  0xf1   : > { %8827 = vmatmul.mubr.msk.f32.vlgmr.msra.gmra.mrb[0].mxu0 %vm457_vm7, %v480_v30  ;;  %8835 = vmatmul.mubr.msk.f32.vlgmr.msra.gmra.mrb[0].mxu1 %vm457_vm7, %v480_v30 }
  0xf2   : > { %9092 = vmatpush1.bf16.msra.mxu0 %v9091_v33  ;;  %9096 = vmatpush1.bf16.msra.mxu1 %v9095_v34 }
  0xf3   : > { %646 = vmatprep.mubr.f32.mxu0 %v15162_v8  ;;  %759 = vmatprep.mubr.f32.mxu1 %v15162_v8  ;;  %v10420_v12 = vpop.permute.xlu1 %524  ;;  %v10434_v33 = vpop.permute.xlu0 %529 }
  0xf5   : > { %8828 = vmatmul.mubr.msk.f32.gmra.mrb[2].mxu0 %vm457_vm7, %v481_v35  ;;  %8836 = vmatmul.mubr.msk.f32.gmra.mrb[2].mxu1 %vm457_vm7, %v481_v35 }
  0xf6   : > { %652 = vmatprep.mubr.f32.mxu0 %v15162_v8  ;;  %765 = vmatprep.mubr.f32.mxu1 %v15162_v8 }
  0xf9   : > { %8829 = vmatmul.mubr.msk.f32.gmra.mrb[4].mxu0 %vm457_vm7, %v482_v36  ;;  %8837 = vmatmul.mubr.msk.f32.gmra.mrb[4].mxu1 %vm457_vm7, %v482_v36 }
  0xfa   : > { %658 = vmatprep.mubr.f32.mxu0 %v15162_v8  ;;  %771 = vmatprep.mubr.f32.mxu1 %v15162_v8 }
  0xfd   : > { %8830 = vmatmul.mubr.msk.f32.gmra.mrb[6].mxu0 %vm457_vm7, %v483_v37  ;;  %8838 = vmatmul.mubr.msk.f32.gmra.mrb[6].mxu1 %vm457_vm7, %v483_v37 }
  0xfe   : > { %664 = vmatprep.mubr.f32.mxu0 %v15162_v8  ;;  %777 = vmatprep.mubr.f32.mxu1 %v15162_v8 }
 0x101   : > { %8831 = vmatmul.mubr.msk.f32.gmra.mrb[8].mxu0 %vm457_vm7, %v484_v38  ;;  %8839 = vmatmul.mubr.msk.f32.gmra.mrb[8].mxu1 %vm457_vm7, %v484_v38 }
 0x102   : > { %670 = vmatprep.mubr.f32.mxu0 %v15162_v8  ;;  %783 = vmatprep.mubr.f32.mxu1 %v15162_v8 }
 0x105   : > { %8832 = vmatmul.mubr.msk.f32.gmra.mrb[10].mxu0 %vm457_vm7, %v485_v39  ;;  %8840 = vmatmul.mubr.msk.f32.gmra.mrb[10].mxu1 %vm457_vm7, %v485_v39 }
 0x106   : > { %676 = vmatprep.mubr.f32.mxu0 %v15162_v8  ;;  %789 = vmatprep.mubr.f32.mxu1 %v15162_v8 }
 0x109   : > { %8833 = vmatmul.mubr.msk.f32.gmra.mrb[12].mxu0 %vm457_vm7, %v486_v40  ;;  %8841 = vmatmul.mubr.msk.f32.gmra.mrb[12].mxu1 %vm457_vm7, %v486_v40 }
 0x10a   : > { %682 = vmatprep.mubr.f32.mxu0 %v15162_v8  ;;  %795 = vmatprep.mubr.f32.mxu1 %v15162_v8 }
 0x10d   : > { %8834 = vmatmul.mubr.msk.f32.gmra.mrb[14].mxu0 %vm457_vm7, %v487_v41  ;;  %8842 = vmatmul.mubr.msk.f32.gmra.mrb[14].mxu1 %vm457_vm7, %v487_v41 }
 0x10e   : > { %866 = vmatprep.mubr.f32.mxu0 %v15162_v8  ;;  %979 = vmatprep.mubr.f32.mxu1 %v15162_v8 }
 0x111   : > { %8843 = vmatmul.mubr.msk.f32.vlgmr.msra.gmra.mrb[16].mxu0 %vm457_vm7, %v480_v30  ;;  %8851 = vmatmul.mubr.msk.f32.vlgmr.msra.gmra.mrb[16].mxu1 %vm457_vm7, %v480_v30 }
 0x112   : > { %872 = vmatprep.mubr.f32.mxu0 %v15162_v8  ;;  %985 = vmatprep.mubr.f32.mxu1 %v15162_v8 }
 0x115   : > { %8844 = vmatmul.mubr.msk.f32.gmra.mrb[18].mxu0 %vm457_vm7, %v481_v35  ;;  %8852 = vmatmul.mubr.msk.f32.gmra.mrb[18].mxu1 %vm457_vm7, %v481_v35 }
 0x116   : > { %878 = vmatprep.mubr.f32.mxu0 %v15162_v8  ;;  %991 = vmatprep.mubr.f32.mxu1 %v15162_v8 }
 0x119   : > { %8845 = vmatmul.mubr.msk.f32.gmra.mrb[20].mxu0 %vm457_vm7, %v482_v36  ;;  %8853 = vmatmul.mubr.msk.f32.gmra.mrb[20].mxu1 %vm457_vm7, %v482_v36 }
 0x11a   : > { %884 = vmatprep.mubr.f32.mxu0 %v15162_v8  ;;  %997 = vmatprep.mubr.f32.mxu1 %v15162_v8 }
 0x11d   : > { %8846 = vmatmul.mubr.msk.f32.gmra.mrb[22].mxu0 %vm457_vm7, %v483_v37  ;;  %8854 = vmatmul.mubr.msk.f32.gmra.mrb[22].mxu1 %vm457_vm7, %v483_v37 }
 0x11e   : > { %890 = vmatprep.mubr.f32.mxu0 %v15162_v8  ;;  %1003 = vmatprep.mubr.f32.mxu1 %v15162_v8 }
 0x121   : > { %8847 = vmatmul.mubr.msk.f32.gmra.mrb[24].mxu0 %vm457_vm7, %v484_v38  ;;  %8855 = vmatmul.mubr.msk.f32.gmra.mrb[24].mxu1 %vm457_vm7, %v484_v38 }
 0x122   : > { %896 = vmatprep.mubr.f32.mxu0 %v15162_v8  ;;  %1009 = vmatprep.mubr.f32.mxu1 %v15162_v8 }
 0x125   : > { %8848 = vmatmul.mubr.msk.f32.gmra.mrb[26].mxu0 %vm457_vm7, %v485_v39  ;;  %8856 = vmatmul.mubr.msk.f32.gmra.mrb[26].mxu1 %vm457_vm7, %v485_v39 }
 0x126   : > { %902 = vmatprep.mubr.f32.mxu0 %v15162_v8  ;;  %1015 = vmatprep.mubr.f32.mxu1 %v15162_v8 }
 0x129   : > { %8849 = vmatmul.mubr.msk.f32.gmra.mrb[28].mxu0 %vm457_vm7, %v486_v40  ;;  %8857 = vmatmul.mubr.msk.f32.gmra.mrb[28].mxu1 %vm457_vm7, %v486_v40 }
 0x12a   : > { %908 = vmatprep.mubr.f32.mxu0 %v15162_v8  ;;  %1021 = vmatprep.mubr.f32.mxu1 %v15162_v8 }
 0x12d   : > { %8850 = vmatmul.mubr.msk.f32.gmra.mrb[30].mxu0 %vm457_vm7, %v487_v41  ;;  %8858 = vmatmul.mubr.msk.f32.gmra.mrb[30].mxu1 %vm457_vm7, %v487_v41 }
 0x12e   : > { %1279 = vmatprep.mubr.f32.mxu0 %v15162_v8  ;;  %1368 = vmatprep.mubr.f32.mxu1 %v15162_v8 }
 0x1c4   : > { %v642_v48 = vpop.f32.mrb[0].mxu0  ;;  %v755_v51 = vpop.f32.mrb[0].mxu1 }
 0x1c5   : > { %v643_v53 = vadd.f32 %v642_v48, %v10380_v45  ;;  %v644_v54 = vpop.f32.mrb[1].mxu0  ;;  %v756_v55 = vadd.f32 %v755_v51, %v10380_v45  ;;  %v757_v56 = vpop.f32.mrb[1].mxu1 }
 0x1c6   : > { %v645_v57 = vadd.f32 %v644_v54, %v10380_v45  ;;  %v758_v58 = vadd.f32 %v757_v56, %v10380_v45 }
 0x1c7   : > { %v1028_v59 = vmax.f32 %v643_v53, 0.0  ;;  %v1030_v61 = vmax.f32 %v756_v55, 0.0 }
 0x1c8   : > { %v1029_v63 = vmax.f32 %v645_v57, 0.0  ;;  %v1031_v1 = vmax.f32 %v758_v58, 0.0  ;;  %v648_v3 = vpop.f32.mrb[2].mxu0  ;;  %v761_v4 = vpop.f32.mrb[2].mxu1 }
 0x1c9   : > { %v649_v5 = vadd.f32 %v648_v3, %v10378_v44  ;;  %v762_v6 = vadd.f32 %v761_v4, %v10378_v44  ;;  %v650_v7 = vpop.f32.mrb[3].mxu0  ;;  %v763_v9 = vpop.f32.mrb[3].mxu1  ;;  %v1134_v13 = vmul.f32 %v10402_v60, %v1028_v59  ;;  %v1136_v14 = vmul.f32 %v10406_v62, %v1030_v61 }
 0x1ca   : > { %v651_v10 = vadd.f32 %v650_v7, %v10378_v44  ;;  %v764_v11 = vadd.f32 %v763_v9, %v10378_v44  ;;  %v1135_v17 = vmul.f32 %v10410_v0, %v1029_v63  ;;  %v1137_v18 = vmul.f32 %v10414_v2, %v1031_v1  ;;  %v10449_v59 = vpop.permute.xlu1 %534 }
 0x1cb   : > { %v1036_v15 = vmax.f32 %v649_v5, 0.0  ;;  %v1038_v16 = vmax.f32 %v762_v6, 0.0 }
 0x1cc   : > { %v1037_v19 = vmax.f32 %v651_v10, 0.0  ;;  %v1039_v20 = vmax.f32 %v764_v11, 0.0  ;;  %v654_v21 = vpop.f32.mrb[4].mxu0  ;;  %v767_v22 = vpop.f32.mrb[4].mxu1 }
 0x1cd   : > { %v1142_v23 = vmul.f32 %v10402_v60, %v1036_v15  ;;  %v1144_v24 = vmul.f32 %v10406_v62, %v1038_v16  ;;  %v655_v25 = vadd.f32 %v654_v21, %v10420_v12  ;;  %v768_v26 = vadd.f32 %v767_v22, %v10420_v12  ;;  %v656_v27 = vpop.f32.mrb[5].mxu0  ;;  %v769_v28 = vpop.f32.mrb[5].mxu1 }
 0x1ce   : > { %v1143_v29 = vmul.f32 %v10410_v0, %v1037_v19  ;;  %v1145_v30 = vmul.f32 %v10414_v2, %v1039_v20  ;;  %v657_v31 = vadd.f32 %v656_v27, %v10420_v12  ;;  %v770_v32 = vadd.f32 %v769_v28, %v10420_v12  ;;  %v10466_v22 = vpop.permute.xlu0 %539 }
 0x1cf   : > { %v10436_v34 = vpack.c.bf16 %v1142_v23, %v1134_v13  ;;  %v10438_v35 = vpack.c.bf16 %v1144_v24, %v1136_v14  ;;  %v1044_v36 = vmax.f32 %v655_v25, 0.0  ;;  %v1046_v37 = vmax.f32 %v768_v26, 0.0 }
 0x1d0   : > { %v10440_v38 = vpack.c.bf16 %v1143_v29, %v1135_v17  ;;  %v10442_v39 = vpack.c.bf16 %v1145_v30, %v1137_v18  ;;  %v1045_v40 = vmax.f32 %v657_v31, 0.0  ;;  %v1047_v41 = vmax.f32 %v770_v32, 0.0  ;;  %v660_v48 = vpop.f32.mrb[6].mxu0  ;;  %v773_v51 = vpop.f32.mrb[6].mxu1 }
 0x1d1   : > { %v661_v53 = vadd.f32 %v660_v48, %v10434_v33  ;;  %v774_v54 = vadd.f32 %v773_v51, %v10434_v33  ;;  %v662_v55 = vpop.f32.mrb[7].mxu0  ;;  %v775_v56 = vpop.f32.mrb[7].mxu1  ;;  %v1150_v61 = vmul.f32 %v10402_v60, %v1044_v36  ;;  %v1152_v63 = vmul.f32 %v10406_v62, %v1046_v37 }
 0x1d2   : > { %v663_v57 = vadd.f32 %v662_v55, %v10434_v33  ;;  %v776_v58 = vadd.f32 %v775_v56, %v10434_v33  ;;  %9098 = vmatprep.subr.bf16.mxu0 %v10440_v38  ;;  %9114 = vmatprep.subr.bf16.mxu1 %v10442_v39  ;;  %v1151_v4 = vmul.f32 %v10410_v0, %v1045_v40  ;;  %v10479_v48 = vsub.s32 4, %v10376_v43 }
 0x1d3   : > { %v1052_v1 = vmax.f32 %v661_v53, 0.0  ;;  %v1054_v3 = vmax.f32 %v774_v54, 0.0  ;;  %9100 = vmatpush1.bf16.msra.mxu0 %v10436_v34  ;;  %v1153_v5 = vmul.f32 %v10414_v2, %v1047_v41  ;;  %9116 = vmatpush1.bf16.msra.mxu1 %v10438_v35  ;;  %v10482_v51 = vsub.s32 6, %v10376_v43 }
 0x1d4   : > { %v1053_v6 = vmax.f32 %v663_v57, 0.0  ;;  %v1055_v7 = vmax.f32 %v776_v58, 0.0  ;;  %v666_v9 = vpop.f32.mrb[8].mxu0  ;;  %v779_v10 = vpop.f32.mrb[8].mxu1  ;;  %15420 = vst [vmem:[#allocation15_spill] sm:$0xff] %v10479_v48  ;;  %v10488_v55 = vsub.s32 5, %v10376_v43 }
 0x1d5   : > { %v1158_v11 = vmul.f32 %v10402_v60, %v1052_v1  ;;  %v1160_v13 = vmul.f32 %v10406_v62, %v1054_v3  ;;  %v667_v14 = vadd.f32 %v666_v9, %v10449_v59  ;;  %v780_v15 = vadd.f32 %v779_v10, %v10449_v59  ;;  %v668_v16 = vpop.f32.mrb[9].mxu0  ;;  %v781_v17 = vpop.f32.mrb[9].mxu1  ;;  %15421 = vst [vmem:[#allocation16_spill] sm:$0xff] %v10482_v51 }
 0x1d6   : > { %v1159_v18 = vmul.f32 %v10410_v0, %v1053_v6  ;;  %v1161_v19 = vmul.f32 %v10414_v2, %v1055_v7  ;;  %v669_v20 = vadd.f32 %v668_v16, %v10449_v59  ;;  %v782_v21 = vadd.f32 %v781_v17, %v10449_v59  ;;  %15422 = vst [vmem:[#allocation17_spill] sm:$0xff] %v10488_v55  ;;  %v10493_v57 = vpop.permute.xlu1 %544 }
 0x1d7   : > { %v10468_v23 = vpack.c.bf16 %v1158_v11, %v1150_v61  ;;  %v10470_v24 = vpack.c.bf16 %v1160_v13, %v1152_v63  ;;  %v1060_v25 = vmax.f32 %v667_v14, 0.0  ;;  %v1062_v26 = vmax.f32 %v780_v15, 0.0 }
 0x1d8   : > { %v10472_v27 = vpack.c.bf16 %v1159_v18, %v1151_v4  ;;  %v10474_v28 = vpack.c.bf16 %v1161_v19, %v1153_v5  ;;  %v1061_v29 = vmax.f32 %v669_v20, 0.0  ;;  %v1063_v30 = vmax.f32 %v782_v21, 0.0  ;;  %v672_v31 = vpop.f32.mrb[10].mxu0  ;;  %v785_v32 = vpop.f32.mrb[10].mxu1 }
 0x1d9   : > { %v673_v36 = vadd.f32 %v672_v31, %v10466_v22  ;;  %v786_v37 = vadd.f32 %v785_v32, %v10466_v22  ;;  %v674_v40 = vpop.f32.mrb[11].mxu0  ;;  %v787_v41 = vpop.f32.mrb[11].mxu1  ;;  %v10491_v56 = vsub.s32 7, %v10376_v43  ;;  %v1166_v58 = vmul.f32 %v10402_v60, %v1060_v25 }
 0x1da   : > { %v675_v53 = vadd.f32 %v674_v40, %v10466_v22  ;;  %v788_v54 = vadd.f32 %v787_v41, %v10466_v22  ;;  %9102 = vmatprep.subr.bf16.mxu0 %v10472_v27  ;;  %v1168_v61 = vmul.f32 %v10406_v62, %v1062_v26  ;;  %9118 = vmatprep.subr.bf16.mxu1 %v10474_v28  ;;  %v10510_v21 = vpop.permute.xlu0 %549 }
 0x1db   : > { %15423 = vst [vmem:[#allocation18_spill] sm:$0xff] %v10491_v56  ;;  %v1068_v63 = vmax.f32 %v673_v36, 0.0  ;;  %v1070_v1 = vmax.f32 %v786_v37, 0.0  ;;  %9104 = vmatpush1.bf16.msra.mxu0 %v10468_v23  ;;  %v1167_v3 = vmul.f32 %v10410_v0, %v1061_v29  ;;  %v1169_v4 = vmul.f32 %v10414_v2, %v1063_v30  ;;  %9120 = vmatpush1.bf16.msra.mxu1 %v10470_v24 }
 0x1dc   : > { %v1069_v5 = vmax.f32 %v675_v53, 0.0  ;;  %v1071_v6 = vmax.f32 %v788_v54, 0.0  ;;  %v678_v7 = vpop.f32.mrb[12].mxu0  ;;  %v791_v9 = vpop.f32.mrb[12].mxu1 }
 0x1dd   : > { %v1174_v10 = vmul.f32 %v10402_v60, %v1068_v63  ;;  %v1176_v11 = vmul.f32 %v10406_v62, %v1070_v1  ;;  %v679_v13 = vadd.f32 %v678_v7, %v10493_v57  ;;  %v792_v14 = vadd.f32 %v791_v9, %v10493_v57  ;;  %v680_v15 = vpop.f32.mrb[13].mxu0  ;;  %v793_v16 = vpop.f32.mrb[13].mxu1 }
 0x1de   : > { %v1175_v17 = vmul.f32 %v10410_v0, %v1069_v5  ;;  %v1177_v18 = vmul.f32 %v10414_v2, %v1071_v6  ;;  %v681_v19 = vadd.f32 %v680_v15, %v10493_v57  ;;  %v794_v20 = vadd.f32 %v793_v16, %v10493_v57 }
 0x1df   : > { %v10512_v25 = vpack.c.bf16 %v1174_v10, %v1166_v58  ;;  %v10514_v26 = vpack.c.bf16 %v1176_v11, %v1168_v61  ;;  %v1076_v29 = vmax.f32 %v679_v13, 0.0  ;;  %v1078_v30 = vmax.f32 %v792_v14, 0.0 }
 0x1e0   : > { %v10516_v31 = vpack.c.bf16 %v1175_v17, %v1167_v3  ;;  %v10518_v32 = vpack.c.bf16 %v1177_v18, %v1169_v4  ;;  %v1077_v36 = vmax.f32 %v681_v19, 0.0  ;;  %v1079_v37 = vmax.f32 %v794_v20, 0.0  ;;  %v684_v40 = vpop.f32.mrb[14].mxu0  ;;  %v797_v41 = vpop.f32.mrb[14].mxu1 }
 0x1e1   : > { %v685_v53 = vadd.f32 %v684_v40, %v10510_v21  ;;  %v798_v54 = vadd.f32 %v797_v41, %v10510_v21  ;;  %v686_v63 = vpop.f32.mrb[15].mxu0  ;;  %v799_v1 = vpop.f32.mrb[15].mxu1  ;;  %v10524_v58 = vrot.slane %v10388_v49, %v10479_v48  ;;  %v10528_v61 = vrot.slane %v10388_v49, %v10482_v51 }
 0x1e2   : > { %v687_v3 = vadd.f32 %v686_v63, %v10510_v21  ;;  %v800_v4 = vadd.f32 %v799_v1, %v10510_v21  ;;  %9106 = vmatprep.subr.bf16.mxu0 %v10516_v31  ;;  %v10535_v5 = vrot.slane %v10388_v49, %v10488_v55  ;;  %v10539_v6 = vrot.slane %v10388_v49, %v10491_v56 }
 0x1e3   : > { %v1182_v7 = vmul.f32 %v10402_v60, %v1076_v29  ;;  %v1184_v9 = vmul.f32 %v10406_v62, %v1078_v30  ;;  %v1084_v10 = vmax.f32 %v685_v53, 0.0  ;;  %v1086_v11 = vmax.f32 %v798_v54, 0.0  ;;  %9122 = vmatprep.subr.bf16.mxu1 %v10518_v32  ;;  %9108 = vmatpush1.bf16.msra.mxu0 %v10512_v25 }
 0x1e4   : > { %v1183_v13 = vmul.f32 %v10410_v0, %v1077_v36  ;;  %v1185_v14 = vmul.f32 %v10414_v2, %v1079_v37  ;;  %v1085_v15 = vmax.f32 %v687_v3, 0.0  ;;  %v1087_v16 = vmax.f32 %v800_v4, 0.0  ;;  %9124 = vmatpush1.bf16.msra.mxu1 %v10514_v26  ;;  %v868_v49 = vpop.f32.mrb[16].mxu0  ;;  %v981_v17 = vpop.f32.mrb[16].mxu1 }
 0x1e5   : > { %v1190_v18 = vmul.f32 %v10402_v60, %v1084_v10  ;;  %v1192_v19 = vmul.f32 %v10406_v62, %v1086_v11  ;;  %v869_v20 = vadd.f32 %v868_v49, %v10380_v45  ;;  %v982_v29 = vadd.f32 %v981_v17, %v10380_v45  ;;  %v870_v30 = vpop.f32.mrb[17].mxu0  ;;  %v983_v40 = vpop.f32.mrb[17].mxu1 }
 0x1e6   : > { %v1191_v36 = vmul.f32 %v10410_v0, %v1085_v15  ;;  %v1193_v37 = vmul.f32 %v10414_v2, %v1087_v16  ;;  %v871_v41 = vadd.f32 %v870_v30, %v10380_v45  ;;  %v984_v53 = vadd.f32 %v983_v40, %v10380_v45 }
 0x1e7   : > { %v10556_v54 = vpack.c.bf16 %v1190_v18, %v1182_v7  ;;  %v10558_v63 = vpack.c.bf16 %v1192_v19, %v1184_v9  ;;  %v1032_v60 = vmax.f32 %v869_v20, 0.0  ;;  %v1034_v62 = vmax.f32 %v982_v29, 0.0  ;;  %v10576_v18 = vld [vmem:[%s15150_s3] sm:$0xff] }
 0x1e8   : > { %v10560_v1 = vpack.c.bf16 %v1191_v36, %v1183_v13  ;;  %v10562_v3 = vpack.c.bf16 %v1193_v37, %v1185_v14  ;;  %v1033_v4 = vmax.f32 %v871_v41, 0.0  ;;  %v1035_v10 = vmax.f32 %v984_v53, 0.0  ;;  %v874_v11 = vpop.f32.mrb[18].mxu0  ;;  %v987_v0 = vpop.f32.mrb[18].mxu1 }
 0x1e9   : > { %v875_v2 = vadd.f32 %v874_v11, %v10378_v44  ;;  %v988_v15 = vadd.f32 %v987_v0, %v10378_v44  ;;  %v876_v16 = vpop.f32.mrb[19].mxu0  ;;  %v989_v45 = vpop.f32.mrb[19].mxu1  ;;  %v1138_v13 = vmul.f32 %v10524_v58, %v1032_v60  ;;  %v1140_v14 = vmul.f32 %v10528_v61, %v1034_v62 }
 0x1ea   : > { %v877_v7 = vadd.f32 %v876_v16, %v10378_v44  ;;  %v990_v9 = vadd.f32 %v989_v45, %v10378_v44  ;;  %9110 = vmatprep.subr.bf16.mxu0 %v10560_v1  ;;  %9126 = vmatprep.subr.bf16.mxu1 %v10562_v3  ;;  %v1139_v44 = vmul.f32 %v10535_v5, %v1033_v4 }
 0x1eb   : > { %v1040_v49 = vmax.f32 %v875_v2, 0.0  ;;  %v1042_v17 = vmax.f32 %v988_v15, 0.0  ;;  %9112 = vmatpush1.bf16.msra.mxu0 %v10556_v54  ;;  %v1141_v19 = vmul.f32 %v10539_v6, %v1035_v10  ;;  %9128 = vmatpush1.bf16.msra.mxu1 %v10558_v63 }
 0x1ec   : > { %v1041_v20 = vmax.f32 %v877_v7, 0.0  ;;  %v1043_v29 = vmax.f32 %v990_v9, 0.0  ;;  %v880_v30 = vpop.f32.mrb[20].mxu0  ;;  %v993_v40 = vpop.f32.mrb[20].mxu1  ;;  %v10599_v7 = vld [vmem:[%s15150_s3 + $0x8] sm:$0xff] }
 0x1ed   : > { %v1146_v36 = vmul.f32 %v10524_v58, %v1040_v49  ;;  %v1148_v37 = vmul.f32 %v10528_v61, %v1042_v17  ;;  %v881_v41 = vadd.f32 %v880_v30, %v10420_v12  ;;  %v994_v53 = vadd.f32 %v993_v40, %v10420_v12  ;;  %v882_v60 = vpop.f32.mrb[21].mxu0  ;;  %v995_v62 = vpop.f32.mrb[21].mxu1 }
 0x1ee   : > { %v1147_v4 = vmul.f32 %v10535_v5, %v1041_v20  ;;  %v1149_v10 = vmul.f32 %v10539_v6, %v1043_v29  ;;  %v883_v11 = vadd.f32 %v882_v60, %v10420_v12  ;;  %v996_v0 = vadd.f32 %v995_v62, %v10420_v12  ;;  %8859 = vmatmul.mubr.msk.f32.vlgmr.msra.gmra.mrb[32].mxu0 %vm1202_vm9, %v10576_v18 }
 0x1ef   : > { %v10591_v2 = vpack.c.bf16 %v1146_v36, %v1138_v13  ;;  %v10593_v15 = vpack.c.bf16 %v1148_v37, %v1140_v14  ;;  %v1048_v16 = vmax.f32 %v881_v41, 0.0  ;;  %v1050_v45 = vmax.f32 %v994_v53, 0.0  ;;  %1285 = vmatprep.mubr.f32.mxu0 %v15162_v8  ;;  %8863 = vmatmul.mubr.msk.f32.vlgmr.msra.gmra.mrb[32].mxu1 %vm1202_vm9, %v10576_v18 }
 0x1f0   : > { %v10603_v12 = vpack.c.bf16 %v1147_v4, %v1139_v44  ;;  %v10605_v9 = vpack.c.bf16 %v1149_v10, %v1141_v19  ;;  %v1049_v13 = vmax.f32 %v883_v11, 0.0  ;;  %v1051_v49 = vmax.f32 %v996_v0, 0.0  ;;  %v886_v14 = vpop.f32.mrb[22].mxu0  ;;  %v999_v17 = vpop.f32.mrb[22].mxu1  ;;  %1374 = vmatprep.mubr.f32.mxu1 %v15162_v8  ;;  %v10625_v0 = vld [vmem:[%s15150_s3 + $0x10] sm:$0xff] }
 0x1f1   : > { %v887_v20 = vadd.f32 %v886_v14, %v10434_v33  ;;  %v1000_v29 = vadd.f32 %v999_v17, %v10434_v33  ;;  %v888_v30 = vpop.f32.mrb[23].mxu0  ;;  %v1001_v40 = vpop.f32.mrb[23].mxu1  ;;  %v1154_v44 = vmul.f32 %v10524_v58, %v1048_v16  ;;  %v1156_v19 = vmul.f32 %v10528_v61, %v1050_v45 }
 0x1f2   : > { %v889_v36 = vadd.f32 %v888_v30, %v10434_v33  ;;  %v1002_v37 = vadd.f32 %v1001_v40, %v10434_v33  ;;  %8860 = vmatmul.mubr.msk.f32.gmra.mrb[34].mxu0 %vm1202_vm9, %v10599_v7  ;;  %9130 = vmatprep.subr.bf16.mxu0 %v10603_v12  ;;  %v1155_v60 = vmul.f32 %v10535_v5, %v1049_v13 }
 0x1f3   : > { %v1056_v41 = vmax.f32 %v887_v20, 0.0  ;;  %v1058_v53 = vmax.f32 %v1000_v29, 0.0  ;;  %9146 = vmatprep.subr.bf16.mxu1 %v10605_v9  ;;  %v1157_v62 = vmul.f32 %v10539_v6, %v1051_v49  ;;  %9132 = vmatpush1.bf16.msra.mxu0 %v10591_v2 }
 0x1f4   : > { %v1057_v4 = vmax.f32 %v889_v36, 0.0  ;;  %v1059_v10 = vmax.f32 %v1002_v37, 0.0  ;;  %9148 = vmatpush1.bf16.msra.mxu1 %v10593_v15  ;;  %v892_v33 = vpop.f32.mrb[24].mxu0  ;;  %v1005_v11 = vpop.f32.mrb[24].mxu1  ;;  %1291 = vmatprep.mubr.f32.mxu0 %v15162_v8 }
 0x1f5   : > { %v1162_v16 = vmul.f32 %v10524_v58, %v1056_v41  ;;  %v1164_v45 = vmul.f32 %v10528_v61, %v1058_v53  ;;  %v893_v13 = vadd.f32 %v892_v33, %v10449_v59  ;;  %v1006_v49 = vadd.f32 %v1005_v11, %v10449_v59  ;;  %v894_v14 = vpop.f32.mrb[25].mxu0  ;;  %v1007_v17 = vpop.f32.mrb[25].mxu1  ;;  %8864 = vmatmul.mubr.msk.f32.gmra.mrb[34].mxu1 %vm1202_vm9, %v10599_v7 }
 0x1f6   : > { %v1163_v20 = vmul.f32 %v10535_v5, %v1057_v4  ;;  %v1165_v29 = vmul.f32 %v10539_v6, %v1059_v10  ;;  %v895_v30 = vadd.f32 %v894_v14, %v10449_v59  ;;  %v1008_v40 = vadd.f32 %v1007_v17, %v10449_v59  ;;  %8861 = vmatmul.mubr.msk.f32.gmra.mrb[36].mxu0 %vm1202_vm9, %v10625_v0 }
 0x1f7   : > { %v10638_v36 = vpack.c.bf16 %v1162_v16, %v1154_v44  ;;  %v10640_v37 = vpack.c.bf16 %v1164_v45, %v1156_v19  ;;  %v1064_v41 = vmax.f32 %v893_v13, 0.0  ;;  %v1066_v53 = vmax.f32 %v1006_v49, 0.0  ;;  %1380 = vmatprep.mubr.f32.mxu1 %v15162_v8  ;;  %1297 = vmatprep.mubr.f32.mxu0 %v15162_v8  ;;  %v10655_v13 = vld [vmem:[%s15150_s3 + $0x18] sm:$0xff] }
 0x1f8   : > { %v10645_v4 = vpack.c.bf16 %v1163_v20, %v1155_v60  ;;  %v10647_v10 = vpack.c.bf16 %v1165_v29, %v1157_v62  ;;  %v1065_v33 = vmax.f32 %v895_v30, 0.0  ;;  %v1067_v11 = vmax.f32 %v1008_v40, 0.0  ;;  %v898_v59 = vpop.f32.mrb[26].mxu0  ;;  %v1011_v14 = vpop.f32.mrb[26].mxu1 }
 0x1f9   : > { %v899_v44 = vadd.f32 %v898_v59, %v10466_v22  ;;  %v1012_v19 = vadd.f32 %v1011_v14, %v10466_v22  ;;  %v900_v16 = vpop.f32.mrb[27].mxu0  ;;  %v1013_v45 = vpop.f32.mrb[27].mxu1  ;;  %8865 = vmatmul.mubr.msk.f32.gmra.mrb[36].mxu1 %vm1202_vm9, %v10625_v0  ;;  %v1170_v49 = vmul.f32 %v10524_v58, %v1064_v41  ;;  %v1172_v17 = vmul.f32 %v10528_v61, %v1066_v53 }
 0x1fa   : > { %v901_v60 = vadd.f32 %v900_v16, %v10466_v22  ;;  %v1014_v62 = vadd.f32 %v1013_v45, %v10466_v22  ;;  %9134 = vmatprep.subr.bf16.mxu0 %v10645_v4  ;;  %9150 = vmatprep.subr.bf16.mxu1 %v10647_v10  ;;  %v1171_v30 = vmul.f32 %v10535_v5, %v1065_v33 }
 0x1fb   : > { %v1072_v20 = vmax.f32 %v899_v44, 0.0  ;;  %v1074_v29 = vmax.f32 %v1012_v19, 0.0  ;;  %9136 = vmatpush1.bf16.msra.mxu0 %v10638_v36  ;;  %v1173_v40 = vmul.f32 %v10539_v6, %v1067_v11  ;;  %9152 = vmatpush1.bf16.msra.mxu1 %v10640_v37 }
 0x1fc   : > { %v1073_v59 = vmax.f32 %v901_v60, 0.0  ;;  %v1075_v14 = vmax.f32 %v1014_v62, 0.0  ;;  %v904_v22 = vpop.f32.mrb[28].mxu0  ;;  %v1017_v16 = vpop.f32.mrb[28].mxu1  ;;  %8862 = vmatmul.mubr.msk.f32.gmra.mrb[38].mxu0 %vm1202_vm9, %v10655_v13  ;;  %1386 = vmatprep.mubr.f32.mxu1 %v15162_v8 }
 0x1fd   : > { %v1178_v41 = vmul.f32 %v10524_v58, %v1072_v20  ;;  %v1180_v53 = vmul.f32 %v10528_v61, %v1074_v29  ;;  %v905_v44 = vadd.f32 %v904_v22, %v10493_v57  ;;  %v1018_v19 = vadd.f32 %v1017_v16, %v10493_v57  ;;  %v906_v33 = vpop.f32.mrb[29].mxu0  ;;  %v1019_v45 = vpop.f32.mrb[29].mxu1  ;;  %8866 = vmatmul.mubr.msk.f32.gmra.mrb[38].mxu1 %vm1202_vm9, %v10655_v13 }
 0x1fe   : > { %v1179_v11 = vmul.f32 %v10535_v5, %v1073_v59  ;;  %v1181_v60 = vmul.f32 %v10539_v6, %v1075_v14  ;;  %v907_v62 = vadd.f32 %v906_v33, %v10493_v57  ;;  %v1020_v42 = vadd.f32 %v1019_v45, %v10493_v57  ;;  %1457 = vmatprep.mubr.f32.mxu0 %v15162_v8 }
 0x1ff   : > { %v10682_v20 = vpack.c.bf16 %v1178_v41, %v1170_v49  ;;  %v10684_v29 = vpack.c.bf16 %v1180_v53, %v1172_v17  ;;  %1546 = vmatprep.mubr.f32.mxu1 %v15162_v8  ;;  %v1080_v33 = vmax.f32 %v905_v44, 0.0  ;;  %v1082_v43 = vmax.f32 %v1018_v19, 0.0 }
 0x200   : > { %v10688_v22 = vpack.c.bf16 %v1179_v11, %v1171_v30  ;;  %v10690_v59 = vpack.c.bf16 %v1181_v60, %v1173_v40  ;;  %v910_v14 = vpop.f32.mrb[30].mxu0  ;;  %v1023_v16 = vpop.f32.mrb[30].mxu1  ;;  %v1081_v17 = vmax.f32 %v907_v62, 0.0  ;;  %v1083_v53 = vmax.f32 %v1020_v42, 0.0 }
 0x201   : > { %v911_v57 = vadd.f32 %v910_v14, %v10510_v21  ;;  %v1024_v45 = vadd.f32 %v1023_v16, %v10510_v21  ;;  %v912_v49 = vpop.f32.mrb[31].mxu0  ;;  %v1025_v41 = vpop.f32.mrb[31].mxu1  ;;  %v1186_v11 = vmul.f32 %v10524_v58, %v1080_v33  ;;  %v1188_v42 = vmul.f32 %v10528_v61, %v1082_v43 }
 0x202   : > { %v913_v51 = vadd.f32 %v912_v49, %v10510_v21  ;;  %v1026_v8 = vadd.f32 %v1025_v41, %v10510_v21  ;;  %9138 = vmatprep.subr.bf16.mxu0 %v10688_v22  ;;  %9154 = vmatprep.subr.bf16.mxu1 %v10690_v59  ;;  %v1187_v62 = vmul.f32 %v10535_v5, %v1081_v17  ;;  %v15424_v43 = vmov 0.0   ;;  %v8915_v49 = vld [vmem:[%s15150_s3 + $0x60] sm:$0xff]  ;;  %v8916_v41 = vld [vmem:[%s15150_s3 + $0x68] sm:$0xff]  ;;  %v8917_v17 = vld [vmem:[%s15150_s3 + $0x70] sm:$0xff] }
 0x203   : > { %v1088_v30 = vmax.f32 %v911_v57, 0.0  ;;  %v1090_v40 = vmax.f32 %v1024_v45, 0.0  ;;  %9140 = vmatpush1.bf16.msra.mxu0 %v10682_v20  ;;  %9156 = vmatpush1.bf16.msra.mxu1 %v10684_v29  ;;  %v1189_v14 = vmul.f32 %v10539_v6, %v1083_v53  ;;  %v8918_v53 = vld [vmem:[%s15150_s3 + $0x78] sm:$0xff] }
 0x204   : > { %v1089_v44 = vmax.f32 %v913_v51, 0.0  ;;  %v1091_v19 = vmax.f32 %v1026_v8, 0.0 }
 0x205   : > { %v1194_v60 = vmul.f32 %v10524_v58, %v1088_v30  ;;  %v1196_v21 = vmul.f32 %v10528_v61, %v1090_v40  ;;  %v8875_v58 = vld [vmem:[%s15150_s3 + $0x20] sm:$0xff]  ;;  %v8876_v61 = vld [vmem:[%s15150_s3 + $0x28] sm:$0xff] }
 0x206   : > { %v1195_v16 = vmul.f32 %v10535_v5, %v1089_v44  ;;  %v1197_v57 = vmul.f32 %v10539_v6, %v1091_v19  ;;  %v8877_v5 = vld [vmem:[%s15150_s3 + $0x30] sm:$0xff]  ;;  %v8878_v6 = vld [vmem:[%s15150_s3 + $0x38] sm:$0xff]  ;;  %v8935_v30 = vld [vmem:[%s15150_s3 + $0x80] sm:$0xff] }
 0x207   : > { %v10708_v51 = vpack.c.bf16 %v1194_v60, %v1186_v11  ;;  %v10710_v8 = vpack.c.bf16 %v1196_v21, %v1188_v42  ;;  %v8936_v40 = vld [vmem:[%s15150_s3 + $0x88] sm:$0xff]  ;;  %v8937_v44 = vld [vmem:[%s15150_s3 + $0x90] sm:$0xff]  ;;  %v8938_v19 = vld [vmem:[%s15150_s3 + $0x98] sm:$0xff] }
 0x208   : > { %v10712_v45 = vpack.c.bf16 %v1195_v16, %v1187_v62  ;;  %v10714_v33 = vpack.c.bf16 %v1197_v57, %v1189_v14  ;;  %v8955_v11 = vld [vmem:[%s15150_s3 + $0xa0] sm:$0xff]  ;;  %v8956_v42 = vld [vmem:[%s15150_s3 + $0xa8] sm:$0xff]  ;;  %v8957_v60 = vld [vmem:[%s15150_s3 + $0xb0] sm:$0xff] }
 0x209   : > { %v8958_v21 = vld [vmem:[%s15150_s3 + $0xb8] sm:$0xff]  ;;  %v11141_v62 = vld [vmem:[%s15150_s3 + $0xc0] sm:$0xff]  ;;  %v11156_v14 = vld [vmem:[%s15150_s3 + $0xc8] sm:$0xff] }
 0x20a   : > { %9142 = vmatprep.subr.bf16.mxu0 %v10712_v45  ;;  %9158 = vmatprep.subr.bf16.mxu1 %v10714_v33 }
 0x20b   : > { %9144 = vmatpush1.bf16.msra.mxu0 %v10708_v51  ;;  %9160 = vmatpush1.bf16.msra.mxu1 %v10710_v8 }
 0x20c   : > { %9162 = vmatprep.subr.bf16.mxu0 %v10440_v38  ;;  %9178 = vmatprep.subr.bf16.mxu1 %v10442_v39 }
 0x20e   : > { %8867 = vmatmul.mubr.msk.f32.vlgmr.msra.gmra.mrb[40].mxu0 %vm1202_vm9, %v10576_v18  ;;  %8871 = vmatmul.mubr.msk.f32.vlgmr.msra.gmra.mrb[40].mxu1 %vm1202_vm9, %v10576_v18  ;;  %v8895_v18 = vld [vmem:[%s15150_s3 + $0x40] sm:$0xff] }
 0x20f   : > { %9164 = vmatpush1.bf16.msra.mxu0 %v10436_v34  ;;  %9180 = vmatpush1.bf16.msra.mxu1 %v10438_v35 }
 0x210   : > { %9166 = vmatprep.subr.bf16.mxu0 %v10472_v27  ;;  %9182 = vmatprep.subr.bf16.mxu1 %v10474_v28 }
 0x211   : > { %1463 = vmatprep.mubr.f32.mxu0 %v15424_v43  ;;  %1552 = vmatprep.mubr.f32.mxu1 %v15424_v43 }
 0x212   : > { %8868 = vmatmul.mubr.msk.f32.gmra.mrb[42].mxu0 %vm1202_vm9, %v10599_v7  ;;  %8872 = vmatmul.mubr.msk.f32.gmra.mrb[42].mxu1 %vm1202_vm9, %v10599_v7  ;;  %v8896_v7 = vld [vmem:[%s15150_s3 + $0x48] sm:$0xff] }
 0x213   : > { %9168 = vmatpush1.bf16.msra.mxu0 %v10468_v23  ;;  %9184 = vmatpush1.bf16.msra.mxu1 %v10470_v24 }
 0x214   : > { %9170 = vmatprep.subr.bf16.mxu0 %v10516_v31  ;;  %9186 = vmatprep.subr.bf16.mxu1 %v10518_v32 }
 0x215   : > { %1469 = vmatprep.mubr.f32.mxu0 %v15424_v43  ;;  %1558 = vmatprep.mubr.f32.mxu1 %v15424_v43 }
 0x216   : > { %8869 = vmatmul.mubr.msk.f32.gmra.mrb[44].mxu0 %vm1202_vm9, %v10625_v0  ;;  %8873 = vmatmul.mubr.msk.f32.gmra.mrb[44].mxu1 %vm1202_vm9, %v10625_v0  ;;  %v8897_v0 = vld [vmem:[%s15150_s3 + $0x50] sm:$0xff] }
 0x217   : > { %9172 = vmatpush1.bf16.msra.mxu0 %v10512_v25  ;;  %9188 = vmatpush1.bf16.msra.mxu1 %v10514_v26 }
 0x218   : > { %9174 = vmatprep.subr.bf16.mxu0 %v10560_v1  ;;  %9190 = vmatprep.subr.bf16.mxu1 %v10562_v3 }
 0x219   : > { %1475 = vmatprep.mubr.f32.mxu0 %v15424_v43  ;;  %1564 = vmatprep.mubr.f32.mxu1 %v15424_v43 }
 0x21a   : > { %8870 = vmatmul.mubr.msk.f32.gmra.mrb[46].mxu0 %vm1202_vm9, %v10655_v13  ;;  %8874 = vmatmul.mubr.msk.f32.gmra.mrb[46].mxu1 %vm1202_vm9, %v10655_v13  ;;  %v8898_v13 = vld [vmem:[%s15150_s3 + $0x58] sm:$0xff] }
 0x21b   : > { %9176 = vmatpush1.bf16.msra.mxu0 %v10556_v54  ;;  %9192 = vmatpush1.bf16.msra.mxu1 %v10558_v63 }
 0x21c   : > { %9194 = vmatprep.subr.bf16.mxu0 %v10603_v12  ;;  %9210 = vmatprep.subr.bf16.mxu1 %v10605_v9 }
 0x21d   : > { %1751 = vmatprep.mubr.f32.mxu0 %v15424_v43  ;;  %1840 = vmatprep.mubr.f32.mxu1 %v15424_v43 }
 0x21e   : > { %8879 = vmatmul.mubr.msk.f32.vlgmr.msra.gmra.mrb[48].mxu0 %vm1202_vm9, %v8875_v58  ;;  %8883 = vmatmul.mubr.msk.f32.vlgmr.msra.gmra.mrb[48].mxu1 %vm1202_vm9, %v8875_v58 }
 0x21f   : > { %9196 = vmatpush1.bf16.msra.mxu0 %v10591_v2  ;;  %9212 = vmatpush1.bf16.msra.mxu1 %v10593_v15 }
 0x220   : > { %9198 = vmatprep.subr.bf16.mxu0 %v10645_v4  ;;  %9214 = vmatprep.subr.bf16.mxu1 %v10647_v10 }
 0x221   : > { %1757 = vmatprep.mubr.f32.mxu0 %v15424_v43  ;;  %1846 = vmatprep.mubr.f32.mxu1 %v15424_v43 }
 0x222   : > { %8880 = vmatmul.mubr.msk.f32.gmra.mrb[50].mxu0 %vm1202_vm9, %v8876_v61  ;;  %8884 = vmatmul.mubr.msk.f32.gmra.mrb[50].mxu1 %vm1202_vm9, %v8876_v61 }
 0x223   : > { %9200 = vmatpush1.bf16.msra.mxu0 %v10638_v36  ;;  %9216 = vmatpush1.bf16.msra.mxu1 %v10640_v37 }
 0x224   : > { %9202 = vmatprep.subr.bf16.mxu0 %v10688_v22  ;;  %9218 = vmatprep.subr.bf16.mxu1 %v10690_v59 }
 0x225   : > { %1763 = vmatprep.mubr.f32.mxu0 %v15424_v43  ;;  %1852 = vmatprep.mubr.f32.mxu1 %v15424_v43 }
 0x226   : > { %8881 = vmatmul.mubr.msk.f32.gmra.mrb[52].mxu0 %vm1202_vm9, %v8877_v5  ;;  %8885 = vmatmul.mubr.msk.f32.gmra.mrb[52].mxu1 %vm1202_vm9, %v8877_v5 }
 0x227   : > { %9204 = vmatpush1.bf16.msra.mxu0 %v10682_v20  ;;  %9220 = vmatpush1.bf16.msra.mxu1 %v10684_v29 }
 0x228   : > { %9206 = vmatprep.subr.bf16.mxu0 %v10712_v45  ;;  %9222 = vmatprep.subr.bf16.mxu1 %v10714_v33 }
 0x229   : > { %1769 = vmatprep.mubr.f32.mxu0 %v15424_v43  ;;  %1858 = vmatprep.mubr.f32.mxu1 %v15424_v43 }
 0x22a   : > { %8882 = vmatmul.mubr.msk.f32.gmra.mrb[54].mxu0 %vm1202_vm9, %v8878_v6  ;;  %8886 = vmatmul.mubr.msk.f32.gmra.mrb[54].mxu1 %vm1202_vm9, %v8878_v6 }
 0x22b   : > { %9208 = vmatpush1.bf16.msra.mxu0 %v10708_v51  ;;  %9224 = vmatpush1.bf16.msra.mxu1 %v10710_v8 }
 0x22c   : > { %9226 = vmatprep.subr.bf16.mxu0 %v10440_v38  ;;  %9242 = vmatprep.subr.bf16.mxu1 %v10442_v39 }
 0x22d   : > { %1929 = vmatprep.mubr.f32.mxu0 %v15424_v43  ;;  %2018 = vmatprep.mubr.f32.mxu1 %v15424_v43 }
 0x22e   : > { %8887 = vmatmul.mubr.msk.f32.vlgmr.msra.gmra.mrb[56].mxu0 %vm1202_vm9, %v8875_v58  ;;  %8891 = vmatmul.mubr.msk.f32.vlgmr.msra.gmra.mrb[56].mxu1 %vm1202_vm9, %v8875_v58 }
 0x22f   : > { %9228 = vmatpush1.bf16.msra.mxu0 %v10436_v34  ;;  %9244 = vmatpush1.bf16.msra.mxu1 %v10438_v35 }
 0x230   : > { %9230 = vmatprep.subr.bf16.mxu0 %v10472_v27  ;;  %9246 = vmatprep.subr.bf16.mxu1 %v10474_v28 }
 0x231   : > { %1935 = vmatprep.mubr.f32.mxu0 %v15424_v43  ;;  %2024 = vmatprep.mubr.f32.mxu1 %v15424_v43 }
 0x232   : > { %8888 = vmatmul.mubr.msk.f32.gmra.mrb[58].mxu0 %vm1202_vm9, %v8876_v61  ;;  %8892 = vmatmul.mubr.msk.f32.gmra.mrb[58].mxu1 %vm1202_vm9, %v8876_v61 }
 0x233   : > { %9232 = vmatpush1.bf16.msra.mxu0 %v10468_v23  ;;  %9248 = vmatpush1.bf16.msra.mxu1 %v10470_v24 }
 0x234   : > { %9234 = vmatprep.subr.bf16.mxu0 %v10516_v31  ;;  %9250 = vmatprep.subr.bf16.mxu1 %v10518_v32 }
 0x235   : > { %1941 = vmatprep.mubr.f32.mxu0 %v15424_v43  ;;  %2030 = vmatprep.mubr.f32.mxu1 %v15424_v43 }
 0x236   : > { %8889 = vmatmul.mubr.msk.f32.gmra.mrb[60].mxu0 %vm1202_vm9, %v8877_v5  ;;  %8893 = vmatmul.mubr.msk.f32.gmra.mrb[60].mxu1 %vm1202_vm9, %v8877_v5  ;;  %v8977_v5 = vld [vmem:[%s15150_s3 + $0xd0] sm:$0xff] }
 0x237   : > { %9236 = vmatpush1.bf16.msra.mxu0 %v10512_v25  ;;  %9252 = vmatpush1.bf16.msra.mxu1 %v10514_v26 }
 0x238   : > { %9238 = vmatprep.subr.bf16.mxu0 %v10560_v1  ;;  %9254 = vmatprep.subr.bf16.mxu1 %v10562_v3 }
 0x239   : > { %1947 = vmatprep.mubr.f32.mxu0 %v15424_v43  ;;  %2036 = vmatprep.mubr.f32.mxu1 %v15424_v43 }
 0x23a   : > { %8890 = vmatmul.mubr.msk.f32.gmra.mrb[62].mxu0 %vm1202_vm9, %v8878_v6  ;;  %8894 = vmatmul.mubr.msk.f32.gmra.mrb[62].mxu1 %vm1202_vm9, %v8878_v6 }
 0x23b   : > { %9240 = vmatpush1.bf16.msra.mxu0 %v10556_v54  ;;  %9256 = vmatpush1.bf16.msra.mxu1 %v10558_v63 }
 0x23c   : > { %9258 = vmatprep.subr.bf16.mxu0 %v10603_v12  ;;  %9274 = vmatprep.subr.bf16.mxu1 %v10605_v9 }
 0x23d   : > { %2253 = vmatprep.mubr.f32.mxu0 %v15424_v43  ;;  %2342 = vmatprep.mubr.f32.mxu1 %v15424_v43 }
 0x23e   : > { %8899 = vmatmul.mubr.msk.f32.vlgmr.msra.gmra.mrb[64].mxu0 %vm1202_vm9, %v8895_v18  ;;  %8903 = vmatmul.mubr.msk.f32.vlgmr.msra.gmra.mrb[64].mxu1 %vm1202_vm9, %v8895_v18 }
 0x23f   : > { %9260 = vmatpush1.bf16.msra.mxu0 %v10591_v2  ;;  %9276 = vmatpush1.bf16.msra.mxu1 %v10593_v15 }
 0x240   : > { %9262 = vmatprep.subr.bf16.mxu0 %v10645_v4  ;;  %9278 = vmatprep.subr.bf16.mxu1 %v10647_v10 }
 0x241   : > { %2259 = vmatprep.mubr.f32.mxu0 %v15424_v43  ;;  %2348 = vmatprep.mubr.f32.mxu1 %v15424_v43 }
 0x242   : > { %8900 = vmatmul.mubr.msk.f32.gmra.mrb[66].mxu0 %vm1202_vm9, %v8896_v7  ;;  %8904 = vmatmul.mubr.msk.f32.gmra.mrb[66].mxu1 %vm1202_vm9, %v8896_v7 }
 0x243   : > { %9264 = vmatpush1.bf16.msra.mxu0 %v10638_v36  ;;  %9280 = vmatpush1.bf16.msra.mxu1 %v10640_v37 }
 0x244   : > { %9266 = vmatprep.subr.bf16.mxu0 %v10688_v22  ;;  %9282 = vmatprep.subr.bf16.mxu1 %v10690_v59 }
 0x245   : > { %2265 = vmatprep.mubr.f32.mxu0 %v15424_v43  ;;  %2354 = vmatprep.mubr.f32.mxu1 %v15424_v43 }
 0x246   : > { %8901 = vmatmul.mubr.msk.f32.gmra.mrb[68].mxu0 %vm1202_vm9, %v8897_v0  ;;  %8905 = vmatmul.mubr.msk.f32.gmra.mrb[68].mxu1 %vm1202_vm9, %v8897_v0 }
 0x247   : > { %9268 = vmatpush1.bf16.msra.mxu0 %v10682_v20  ;;  %9284 = vmatpush1.bf16.msra.mxu1 %v10684_v29 }
 0x248   : > { %9270 = vmatprep.subr.bf16.mxu0 %v10712_v45  ;;  %9286 = vmatprep.subr.bf16.mxu1 %v10714_v33 }
 0x249   : > { %2271 = vmatprep.mubr.f32.mxu0 %v15424_v43  ;;  %2360 = vmatprep.mubr.f32.mxu1 %v15424_v43 }
 0x24a   : > { %8902 = vmatmul.mubr.msk.f32.gmra.mrb[70].mxu0 %vm1202_vm9, %v8898_v13  ;;  %8906 = vmatmul.mubr.msk.f32.gmra.mrb[70].mxu1 %vm1202_vm9, %v8898_v13 }
 0x24b   : > { %9272 = vmatpush1.bf16.msra.mxu0 %v10708_v51  ;;  %9288 = vmatpush1.bf16.msra.mxu1 %v10710_v8 }
 0x24c   : > { %9290 = vmatprep.subr.bf16.mxu0 %v10440_v38  ;;  %9306 = vmatprep.subr.bf16.mxu1 %v10442_v39 }
 0x24d   : > { %2431 = vmatprep.mubr.f32.mxu0 %v15424_v43  ;;  %2520 = vmatprep.mubr.f32.mxu1 %v15424_v43 }
 0x24e   : > { %8907 = vmatmul.mubr.msk.f32.vlgmr.msra.gmra.mrb[72].mxu0 %vm1202_vm9, %v8895_v18  ;;  %8911 = vmatmul.mubr.msk.f32.vlgmr.msra.gmra.mrb[72].mxu1 %vm1202_vm9, %v8895_v18 }
 0x24f   : > { %9292 = vmatpush1.bf16.msra.mxu0 %v10436_v34  ;;  %9308 = vmatpush1.bf16.msra.mxu1 %v10438_v35 }
 0x250   : > { %9294 = vmatprep.subr.bf16.mxu0 %v10472_v27  ;;  %9310 = vmatprep.subr.bf16.mxu1 %v10474_v28 }
 0x251   : > { %2437 = vmatprep.mubr.f32.mxu0 %v15424_v43  ;;  %2526 = vmatprep.mubr.f32.mxu1 %v15424_v43 }
 0x252   : > { %8908 = vmatmul.mubr.msk.f32.gmra.mrb[74].mxu0 %vm1202_vm9, %v8896_v7  ;;  %8912 = vmatmul.mubr.msk.f32.gmra.mrb[74].mxu1 %vm1202_vm9, %v8896_v7 }
 0x253   : > { %9296 = vmatpush1.bf16.msra.mxu0 %v10468_v23  ;;  %9312 = vmatpush1.bf16.msra.mxu1 %v10470_v24 }
 0x254   : > { %9298 = vmatprep.subr.bf16.mxu0 %v10516_v31  ;;  %9314 = vmatprep.subr.bf16.mxu1 %v10518_v32 }
 0x255   : > { %2443 = vmatprep.mubr.f32.mxu0 %v15424_v43  ;;  %2532 = vmatprep.mubr.f32.mxu1 %v15424_v43 }
 0x256   : > { %8909 = vmatmul.mubr.msk.f32.gmra.mrb[76].mxu0 %vm1202_vm9, %v8897_v0  ;;  %8913 = vmatmul.mubr.msk.f32.gmra.mrb[76].mxu1 %vm1202_vm9, %v8897_v0 }
 0x257   : > { %9300 = vmatpush1.bf16.msra.mxu0 %v10512_v25  ;;  %9316 = vmatpush1.bf16.msra.mxu1 %v10514_v26 }
 0x258   : > { %9302 = vmatprep.subr.bf16.mxu0 %v10560_v1  ;;  %9318 = vmatprep.subr.bf16.mxu1 %v10562_v3 }
 0x259   : > { %2449 = vmatprep.mubr.f32.mxu0 %v15424_v43  ;;  %2538 = vmatprep.mubr.f32.mxu1 %v15424_v43 }
 0x25a   : > { %8910 = vmatmul.mubr.msk.f32.gmra.mrb[78].mxu0 %vm1202_vm9, %v8898_v13  ;;  %8914 = vmatmul.mubr.msk.f32.gmra.mrb[78].mxu1 %vm1202_vm9, %v8898_v13  ;;  %v8978_v13 = vld [vmem:[%s15150_s3 + $0xd8] sm:$0xff] }
 0x25b   : > { %9304 = vmatpush1.bf16.msra.mxu0 %v10556_v54  ;;  %9320 = vmatpush1.bf16.msra.mxu1 %v10558_v63 }
 0x25c   : > { %9322 = vmatprep.subr.bf16.mxu0 %v10603_v12  ;;  %9338 = vmatprep.subr.bf16.mxu1 %v10605_v9 }
 0x25d   : > { %2755 = vmatprep.mubr.f32.mxu0 %v15424_v43  ;;  %2844 = vmatprep.mubr.f32.mxu1 %v15424_v43 }
 0x25e   : > { %8919 = vmatmul.mubr.msk.f32.vlgmr.msra.gmra.mrb[80].mxu0 %vm1202_vm9, %v8915_v49  ;;  %8923 = vmatmul.mubr.msk.f32.vlgmr.msra.gmra.mrb[80].mxu1 %vm1202_vm9, %v8915_v49 }
 0x25f   : > { %9324 = vmatpush1.bf16.msra.mxu0 %v10591_v2  ;;  %9340 = vmatpush1.bf16.msra.mxu1 %v10593_v15 }
 0x260   : > { %9326 = vmatprep.subr.bf16.mxu0 %v10645_v4  ;;  %9342 = vmatprep.subr.bf16.mxu1 %v10647_v10 }
 0x261   : > { %2761 = vmatprep.mubr.f32.mxu0 %v15424_v43  ;;  %2850 = vmatprep.mubr.f32.mxu1 %v15424_v43 }
 0x262   : > { %8920 = vmatmul.mubr.msk.f32.gmra.mrb[82].mxu0 %vm1202_vm9, %v8916_v41  ;;  %8924 = vmatmul.mubr.msk.f32.gmra.mrb[82].mxu1 %vm1202_vm9, %v8916_v41 }
 0x263   : > { %9328 = vmatpush1.bf16.msra.mxu0 %v10638_v36  ;;  %9344 = vmatpush1.bf16.msra.mxu1 %v10640_v37 }
 0x264   : > { %9330 = vmatprep.subr.bf16.mxu0 %v10688_v22  ;;  %9346 = vmatprep.subr.bf16.mxu1 %v10690_v59 }
 0x265   : > { %2767 = vmatprep.mubr.f32.mxu0 %v15424_v43  ;;  %2856 = vmatprep.mubr.f32.mxu1 %v15424_v43 }
 0x266   : > { %8921 = vmatmul.mubr.msk.f32.gmra.mrb[84].mxu0 %vm1202_vm9, %v8917_v17  ;;  %8925 = vmatmul.mubr.msk.f32.gmra.mrb[84].mxu1 %vm1202_vm9, %v8917_v17 }
 0x267   : > { %9332 = vmatpush1.bf16.msra.mxu0 %v10682_v20  ;;  %9348 = vmatpush1.bf16.msra.mxu1 %v10684_v29 }
 0x268   : > { %9334 = vmatprep.subr.bf16.mxu0 %v10712_v45  ;;  %9350 = vmatprep.subr.bf16.mxu1 %v10714_v33 }
 0x269   : > { %2773 = vmatprep.mubr.f32.mxu0 %v15424_v43  ;;  %2862 = vmatprep.mubr.f32.mxu1 %v15424_v43 }
 0x26a   : > { %8922 = vmatmul.mubr.msk.f32.gmra.mrb[86].mxu0 %vm1202_vm9, %v8918_v53  ;;  %8926 = vmatmul.mubr.msk.f32.gmra.mrb[86].mxu1 %vm1202_vm9, %v8918_v53 }
 0x26b   : > { %9336 = vmatpush1.bf16.msra.mxu0 %v10708_v51  ;;  %9352 = vmatpush1.bf16.msra.mxu1 %v10710_v8 }
 0x26c   : > { %9354 = vmatprep.subr.bf16.mxu0 %v10440_v38  ;;  %9370 = vmatprep.subr.bf16.mxu1 %v10442_v39 }
 0x26d   : > { %2933 = vmatprep.mubr.f32.mxu0 %v15424_v43  ;;  %3022 = vmatprep.mubr.f32.mxu1 %v15424_v43 }
 0x26e   : > { %8927 = vmatmul.mubr.msk.f32.vlgmr.msra.gmra.mrb[88].mxu0 %vm1202_vm9, %v8915_v49  ;;  %8931 = vmatmul.mubr.msk.f32.vlgmr.msra.gmra.mrb[88].mxu1 %vm1202_vm9, %v8915_v49 }
 0x26f   : > { %9356 = vmatpush1.bf16.msra.mxu0 %v10436_v34  ;;  %9372 = vmatpush1.bf16.msra.mxu1 %v10438_v35 }
 0x270   : > { %9358 = vmatprep.subr.bf16.mxu0 %v10472_v27  ;;  %9374 = vmatprep.subr.bf16.mxu1 %v10474_v28 }
 0x271   : > { %2939 = vmatprep.mubr.f32.mxu0 %v15424_v43  ;;  %3028 = vmatprep.mubr.f32.mxu1 %v15424_v43 }
 0x272   : > { %8928 = vmatmul.mubr.msk.f32.gmra.mrb[90].mxu0 %vm1202_vm9, %v8916_v41  ;;  %8932 = vmatmul.mubr.msk.f32.gmra.mrb[90].mxu1 %vm1202_vm9, %v8916_v41 }
 0x273   : > { %9360 = vmatpush1.bf16.msra.mxu0 %v10468_v23  ;;  %9376 = vmatpush1.bf16.msra.mxu1 %v10470_v24 }
 0x274   : > { %9362 = vmatprep.subr.bf16.mxu0 %v10516_v31  ;;  %9378 = vmatprep.subr.bf16.mxu1 %v10518_v32 }
 0x275   : > { %2945 = vmatprep.mubr.f32.mxu0 %v15424_v43  ;;  %3034 = vmatprep.mubr.f32.mxu1 %v15424_v43 }
 0x276   : > { %8929 = vmatmul.mubr.msk.f32.gmra.mrb[92].mxu0 %vm1202_vm9, %v8917_v17  ;;  %8933 = vmatmul.mubr.msk.f32.gmra.mrb[92].mxu1 %vm1202_vm9, %v8917_v17 }
 0x277   : > { %9364 = vmatpush1.bf16.msra.mxu0 %v10512_v25  ;;  %9380 = vmatpush1.bf16.msra.mxu1 %v10514_v26 }
 0x278   : > { %9366 = vmatprep.subr.bf16.mxu0 %v10560_v1  ;;  %9382 = vmatprep.subr.bf16.mxu1 %v10562_v3 }
 0x279   : > { %2951 = vmatprep.mubr.f32.mxu0 %v15424_v43  ;;  %3040 = vmatprep.mubr.f32.mxu1 %v15424_v43 }
 0x27a   : > { %8930 = vmatmul.mubr.msk.f32.gmra.mrb[94].mxu0 %vm1202_vm9, %v8918_v53  ;;  %8934 = vmatmul.mubr.msk.f32.gmra.mrb[94].mxu1 %vm1202_vm9, %v8918_v53 }
 0x27b   : > { %9368 = vmatpush1.bf16.msra.mxu0 %v10556_v54  ;;  %9384 = vmatpush1.bf16.msra.mxu1 %v10558_v63 }
 0x27c   : > { %9386 = vmatprep.subr.bf16.mxu0 %v10603_v12  ;;  %9402 = vmatprep.subr.bf16.mxu1 %v10605_v9 }
 0x27d   : > { %3257 = vmatprep.mubr.f32.mxu0 %v15424_v43  ;;  %3346 = vmatprep.mubr.f32.mxu1 %v15424_v43 }
 0x27e   : > { %8939 = vmatmul.mubr.msk.f32.vlgmr.msra.gmra.mrb[96].mxu0 %vm1202_vm9, %v8935_v30  ;;  %8943 = vmatmul.mubr.msk.f32.vlgmr.msra.gmra.mrb[96].mxu1 %vm1202_vm9, %v8935_v30 }
 0x27f   : > { %9388 = vmatpush1.bf16.msra.mxu0 %v10591_v2  ;;  %9404 = vmatpush1.bf16.msra.mxu1 %v10593_v15 }
 0x280   : > { %9390 = vmatprep.subr.bf16.mxu0 %v10645_v4  ;;  %9406 = vmatprep.subr.bf16.mxu1 %v10647_v10 }
 0x281   : > { %3263 = vmatprep.mubr.f32.mxu0 %v15424_v43  ;;  %3352 = vmatprep.mubr.f32.mxu1 %v15424_v43 }
 0x282   : > { %8940 = vmatmul.mubr.msk.f32.gmra.mrb[98].mxu0 %vm1202_vm9, %v8936_v40  ;;  %8944 = vmatmul.mubr.msk.f32.gmra.mrb[98].mxu1 %vm1202_vm9, %v8936_v40 }
 0x283   : > { %9392 = vmatpush1.bf16.msra.mxu0 %v10638_v36  ;;  %9408 = vmatpush1.bf16.msra.mxu1 %v10640_v37 }
 0x284   : > { %9394 = vmatprep.subr.bf16.mxu0 %v10688_v22  ;;  %9410 = vmatprep.subr.bf16.mxu1 %v10690_v59 }
 0x285   : > { %3269 = vmatprep.mubr.f32.mxu0 %v15424_v43  ;;  %3358 = vmatprep.mubr.f32.mxu1 %v15424_v43 }
 0x286   : > { %8941 = vmatmul.mubr.msk.f32.gmra.mrb[100].mxu0 %vm1202_vm9, %v8937_v44  ;;  %8945 = vmatmul.mubr.msk.f32.gmra.mrb[100].mxu1 %vm1202_vm9, %v8937_v44 }
 0x287   : > { %9396 = vmatpush1.bf16.msra.mxu0 %v10682_v20  ;;  %9412 = vmatpush1.bf16.msra.mxu1 %v10684_v29 }
 0x288   : > { %9398 = vmatprep.subr.bf16.mxu0 %v10712_v45  ;;  %9414 = vmatprep.subr.bf16.mxu1 %v10714_v33 }
 0x289   : > { %3275 = vmatprep.mubr.f32.mxu0 %v15424_v43  ;;  %3364 = vmatprep.mubr.f32.mxu1 %v15424_v43 }
 0x28a   : > { %8942 = vmatmul.mubr.msk.f32.gmra.mrb[102].mxu0 %vm1202_vm9, %v8938_v19  ;;  %8946 = vmatmul.mubr.msk.f32.gmra.mrb[102].mxu1 %vm1202_vm9, %v8938_v19 }
 0x28b   : > { %9400 = vmatpush1.bf16.msra.mxu0 %v10708_v51  ;;  %9416 = vmatpush1.bf16.msra.mxu1 %v10710_v8 }
 0x28c   : > { %9418 = vmatprep.subr.bf16.mxu0 %v10440_v38  ;;  %9434 = vmatprep.subr.bf16.mxu1 %v10442_v39 }
 0x28d   : > { %3435 = vmatprep.mubr.f32.mxu0 %v15424_v43  ;;  %3524 = vmatprep.mubr.f32.mxu1 %v15424_v43 }
 0x28e   : > { %8947 = vmatmul.mubr.msk.f32.vlgmr.msra.gmra.mrb[104].mxu0 %vm1202_vm9, %v8935_v30  ;;  %8951 = vmatmul.mubr.msk.f32.vlgmr.msra.gmra.mrb[104].mxu1 %vm1202_vm9, %v8935_v30 }
 0x28f   : > { %9420 = vmatpush1.bf16.msra.mxu0 %v10436_v34  ;;  %9436 = vmatpush1.bf16.msra.mxu1 %v10438_v35 }
 0x290   : > { %9422 = vmatprep.subr.bf16.mxu0 %v10472_v27  ;;  %9438 = vmatprep.subr.bf16.mxu1 %v10474_v28 }
 0x291   : > { %3441 = vmatprep.mubr.f32.mxu0 %v15424_v43  ;;  %3530 = vmatprep.mubr.f32.mxu1 %v15424_v43 }
 0x292   : > { %8948 = vmatmul.mubr.msk.f32.gmra.mrb[106].mxu0 %vm1202_vm9, %v8936_v40  ;;  %8952 = vmatmul.mubr.msk.f32.gmra.mrb[106].mxu1 %vm1202_vm9, %v8936_v40 }
 0x293   : > { %9424 = vmatpush1.bf16.msra.mxu0 %v10468_v23  ;;  %9440 = vmatpush1.bf16.msra.mxu1 %v10470_v24 }
 0x294   : > { %9426 = vmatprep.subr.bf16.mxu0 %v10516_v31  ;;  %9442 = vmatprep.subr.bf16.mxu1 %v10518_v32 }
 0x295   : > { %3447 = vmatprep.mubr.f32.mxu0 %v15424_v43  ;;  %3536 = vmatprep.mubr.f32.mxu1 %v15424_v43 }
 0x296   : > { %8949 = vmatmul.mubr.msk.f32.gmra.mrb[108].mxu0 %vm1202_vm9, %v8937_v44  ;;  %8953 = vmatmul.mubr.msk.f32.gmra.mrb[108].mxu1 %vm1202_vm9, %v8937_v44 }
 0x297   : > { %9428 = vmatpush1.bf16.msra.mxu0 %v10512_v25  ;;  %9444 = vmatpush1.bf16.msra.mxu1 %v10514_v26 }
 0x298   : > { %9430 = vmatprep.subr.bf16.mxu0 %v10560_v1  ;;  %9446 = vmatprep.subr.bf16.mxu1 %v10562_v3 }
 0x299   : > { %3453 = vmatprep.mubr.f32.mxu0 %v15424_v43  ;;  %3542 = vmatprep.mubr.f32.mxu1 %v15424_v43 }
 0x29a   : > { %8950 = vmatmul.mubr.msk.f32.gmra.mrb[110].mxu0 %vm1202_vm9, %v8938_v19  ;;  %8954 = vmatmul.mubr.msk.f32.gmra.mrb[110].mxu1 %vm1202_vm9, %v8938_v19 }
 0x29b   : > { %9432 = vmatpush1.bf16.msra.mxu0 %v10556_v54  ;;  %9448 = vmatpush1.bf16.msra.mxu1 %v10558_v63 }
 0x29c   : > { %9450 = vmatprep.subr.bf16.mxu0 %v10603_v12  ;;  %9466 = vmatprep.subr.bf16.mxu1 %v10605_v9 }
 0x29d   : > { %3662 = vmatprep.mubr.f32.mxu0 %v15424_v43  ;;  %3751 = vmatprep.mubr.f32.mxu1 %v15424_v43 }
 0x29e   : > { %8959 = vmatmul.mubr.msk.f32.vlgmr.msra.gmra.mrb[112].mxu0 %vm1202_vm9, %v8955_v11  ;;  %8963 = vmatmul.mubr.msk.f32.vlgmr.msra.gmra.mrb[112].mxu1 %vm1202_vm9, %v8955_v11 }
 0x29f   : > { %9452 = vmatpush1.bf16.msra.mxu0 %v10591_v2  ;;  %9468 = vmatpush1.bf16.msra.mxu1 %v10593_v15 }
 0x2a0   : > { %9454 = vmatprep.subr.bf16.mxu0 %v10645_v4  ;;  %9470 = vmatprep.subr.bf16.mxu1 %v10647_v10 }
 0x2a1   : > { %3668 = vmatprep.mubr.f32.mxu0 %v15424_v43  ;;  %3757 = vmatprep.mubr.f32.mxu1 %v15424_v43 }
 0x2a2   : > { %8960 = vmatmul.mubr.msk.f32.gmra.mrb[114].mxu0 %vm1202_vm9, %v8956_v42  ;;  %8964 = vmatmul.mubr.msk.f32.gmra.mrb[114].mxu1 %vm1202_vm9, %v8956_v42 }
 0x2a3   : > { %9456 = vmatpush1.bf16.msra.mxu0 %v10638_v36  ;;  %9472 = vmatpush1.bf16.msra.mxu1 %v10640_v37 }
 0x2a4   : > { %9458 = vmatprep.subr.bf16.mxu0 %v10688_v22  ;;  %9474 = vmatprep.subr.bf16.mxu1 %v10690_v59 }
 0x2a5   : > { %3674 = vmatprep.mubr.f32.mxu0 %v15424_v43  ;;  %3763 = vmatprep.mubr.f32.mxu1 %v15424_v43 }
 0x2a6   : > { %8961 = vmatmul.mubr.msk.f32.gmra.mrb[116].mxu0 %vm1202_vm9, %v8957_v60  ;;  %8965 = vmatmul.mubr.msk.f32.gmra.mrb[116].mxu1 %vm1202_vm9, %v8957_v60 }
 0x2a7   : > { %9460 = vmatpush1.bf16.msra.mxu0 %v10682_v20  ;;  %9476 = vmatpush1.bf16.msra.mxu1 %v10684_v29 }
 0x2a8   : > { %9462 = vmatprep.subr.bf16.mxu0 %v10712_v45  ;;  %9478 = vmatprep.subr.bf16.mxu1 %v10714_v33 }
 0x2a9   : > { %3680 = vmatprep.mubr.f32.mxu0 %v15424_v43  ;;  %3769 = vmatprep.mubr.f32.mxu1 %v15424_v43 }
 0x2aa   : > { %8962 = vmatmul.mubr.msk.f32.gmra.mrb[118].mxu0 %vm1202_vm9, %v8958_v21  ;;  %8966 = vmatmul.mubr.msk.f32.gmra.mrb[118].mxu1 %vm1202_vm9, %v8958_v21 }
 0x2ab   : > { %9464 = vmatpush1.bf16.msra.mxu0 %v10708_v51  ;;  %9480 = vmatpush1.bf16.msra.mxu1 %v10710_v8 }
 0x2ac   : > { %9482 = vmatprep.subr.bf16.mxu0 %v10440_v38  ;;  %9498 = vmatprep.subr.bf16.mxu1 %v10442_v39 }
 0x2ad   : > { %3840 = vmatprep.mubr.f32.mxu0 %v15424_v43  ;;  %3929 = vmatprep.mubr.f32.mxu1 %v15424_v43 }
 0x2ae   : > { %8967 = vmatmul.mubr.msk.f32.vlgmr.msra.gmra.mrb[120].mxu0 %vm1202_vm9, %v8955_v11  ;;  %8971 = vmatmul.mubr.msk.f32.vlgmr.msra.gmra.mrb[120].mxu1 %vm1202_vm9, %v8955_v11 }
 0x2af   : > { %9484 = vmatpush1.bf16.msra.mxu0 %v10436_v34  ;;  %9500 = vmatpush1.bf16.msra.mxu1 %v10438_v35 }
 0x2b0   : > { %9486 = vmatprep.subr.bf16.mxu0 %v10472_v27  ;;  %9502 = vmatprep.subr.bf16.mxu1 %v10474_v28 }
 0x2b1   : > { %3846 = vmatprep.mubr.f32.mxu0 %v15424_v43  ;;  %3935 = vmatprep.mubr.f32.mxu1 %v15424_v43 }
 0x2b2   : > { %8968 = vmatmul.mubr.msk.f32.gmra.mrb[122].mxu0 %vm1202_vm9, %v8956_v42  ;;  %8972 = vmatmul.mubr.msk.f32.gmra.mrb[122].mxu1 %vm1202_vm9, %v8956_v42 }
 0x2b3   : > { %9488 = vmatpush1.bf16.msra.mxu0 %v10468_v23  ;;  %9504 = vmatpush1.bf16.msra.mxu1 %v10470_v24 }
 0x2b4   : > { %9490 = vmatprep.subr.bf16.mxu0 %v10516_v31  ;;  %9506 = vmatprep.subr.bf16.mxu1 %v10518_v32 }
 0x2b5   : > { %3852 = vmatprep.mubr.f32.mxu0 %v15424_v43  ;;  %3941 = vmatprep.mubr.f32.mxu1 %v15424_v43 }
 0x2b6   : > { %8969 = vmatmul.mubr.msk.f32.gmra.mrb[124].mxu0 %vm1202_vm9, %v8957_v60  ;;  %8973 = vmatmul.mubr.msk.f32.gmra.mrb[124].mxu1 %vm1202_vm9, %v8957_v60  ;;  %v11243_v60 = vld [vmem:[%s15150_s3 + $0xe0] sm:$0xff] }
 0x2b7   : > { %9492 = vmatpush1.bf16.msra.mxu0 %v10512_v25  ;;  %9508 = vmatpush1.bf16.msra.mxu1 %v10514_v26 }
 0x2b8   : > { %9494 = vmatprep.subr.bf16.mxu0 %v10560_v1  ;;  %9510 = vmatprep.subr.bf16.mxu1 %v10562_v3 }
 0x2b9   : > { %3858 = vmatprep.mubr.f32.mxu0 %v15424_v43  ;;  %3947 = vmatprep.mubr.f32.mxu1 %v15424_v43 }
 0x2ba   : > { %8970 = vmatmul.mubr.msk.f32.gmra.mrb[126].mxu0 %vm1202_vm9, %v8958_v21  ;;  %8974 = vmatmul.mubr.msk.f32.gmra.mrb[126].mxu1 %vm1202_vm9, %v8958_v21 }
 0x2bb   : > { %9496 = vmatpush1.bf16.msra.mxu0 %v10556_v54  ;;  %9512 = vmatpush1.bf16.msra.mxu1 %v10558_v63 }
 0x2bc   : > { %9514 = vmatprep.subr.bf16.mxu0 %v10603_v12  ;;  %9530 = vmatprep.subr.bf16.mxu1 %v10605_v9 }
 0x2bd   : > { %4164 = vmatprep.mubr.f32.mxu0 %v15424_v43  ;;  %4253 = vmatprep.mubr.f32.mxu1 %v15424_v43 }
 0x2be   : > { %8979 = vmatmul.mubr.msk.f32.vlgmr.msra.gmra.mrb[128].mxu0 %vm1202_vm9, %v11141_v62  ;;  %8983 = vmatmul.mubr.msk.f32.vlgmr.msra.gmra.mrb[128].mxu1 %vm1202_vm9, %v11141_v62 }
 0x2bf   : > { %9516 = vmatpush1.bf16.msra.mxu0 %v10591_v2  ;;  %9532 = vmatpush1.bf16.msra.mxu1 %v10593_v15 }
 0x2c0   : > { %9518 = vmatprep.subr.bf16.mxu0 %v10645_v4  ;;  %9534 = vmatprep.subr.bf16.mxu1 %v10647_v10 }
 0x2c1   : > { %v1281_v16 = vpop.f32.mrb[32].mxu0  ;;  %4170 = vmatprep.mubr.f32.mxu0 %v15424_v43  ;;  %4259 = vmatprep.mubr.f32.mxu1 %v15424_v43 }
 0x2c2   : > { %1571 = vrot.lane.b32.xlu1 %v1281_v16, %s10083_s21  ;;  %v1283_v57 = vpop.f32.mrb[33].mxu0  ;;  %8980 = vmatmul.mubr.msk.f32.gmra.mrb[130].mxu0 %vm1202_vm9, %v11156_v14  ;;  %v1370_v58 = vpop.f32.mrb[32].mxu1 }
 0x2c3   : > { %8984 = vmatmul.mubr.msk.f32.gmra.mrb[130].mxu1 %vm1202_vm9, %v11156_v14  ;;  %9520 = vmatpush1.bf16.msra.mxu0 %v10638_v36  ;;  %v1372_v61 = vpop.f32.mrb[33].mxu1 }
 0x2c4   : > { %9536 = vmatpush1.bf16.msra.mxu1 %v10640_v37  ;;  %9522 = vmatprep.subr.bf16.mxu0 %v10688_v22 }
 0x2c5   : > { %9538 = vmatprep.subr.bf16.mxu1 %v10690_v59  ;;  %v1287_v6 = vpop.f32.mrb[34].mxu0  ;;  %4176 = vmatprep.mubr.f32.mxu0 %v15424_v43 }
 0x2c6   : > { %4265 = vmatprep.mubr.f32.mxu1 %v15424_v43  ;;  %1587 = vrot.lane.b32.xlu1 %v1370_v58, %s10083_s21  ;;  %v1289_v18 = vpop.f32.mrb[35].mxu0 }
 0x2c7   : > { %1573 = vrot.lane.b32.xlu0 %v1287_v6, %s10083_s21  ;;  %8981 = vmatmul.mubr.msk.f32.gmra.mrb[132].mxu0 %vm1202_vm9, %v8977_v5 }
 0x2c8   : > { %8985 = vmatmul.mubr.msk.f32.gmra.mrb[132].mxu1 %vm1202_vm9, %v8977_v5  ;;  %9524 = vmatpush1.bf16.msra.mxu0 %v10682_v20  ;;  %v1376_v7 = vpop.f32.mrb[34].mxu1 }
 0x2c9   : > { %9540 = vmatpush1.bf16.msra.mxu1 %v10684_v29  ;;  %9526 = vmatprep.subr.bf16.mxu0 %v10712_v45  ;;  %v1378_v0 = vpop.f32.mrb[35].mxu1  ;;  %v1293_v49 = vpop.f32.mrb[36].mxu0 }
 0x2ca   : > { %9542 = vmatprep.subr.bf16.mxu1 %v10714_v33  ;;  %4182 = vmatprep.mubr.f32.mxu0 %v15424_v43  ;;  %v1295_v41 = vpop.f32.mrb[37].mxu0 }
 0x2cb   : > { %4271 = vmatprep.mubr.f32.mxu1 %v15424_v43  ;;  %1579 = vrot.lane.b32.xlu1 %v1283_v57, %s10083_s21 }
 0x2cc   : > { %1589 = vrot.lane.b32.xlu0 %v1376_v7, %s10083_s21  ;;  %8982 = vmatmul.mubr.msk.f32.gmra.mrb[134].mxu0 %vm1202_vm9, %v8978_v13  ;;  %v1382_v17 = vpop.f32.mrb[36].mxu1 }
 0x2cd   : > { %8986 = vmatmul.mubr.msk.f32.gmra.mrb[134].mxu1 %vm1202_vm9, %v8978_v13  ;;  %9528 = vmatpush1.bf16.msra.mxu0 %v10708_v51  ;;  %v1384_v53 = vpop.f32.mrb[37].mxu1 }
 0x2ce   : > { %9544 = vmatpush1.bf16.msra.mxu1 %v10710_v8  ;;  %9546 = vmatprep.subr.bf16.mxu0 %v10440_v38 }
 0x2cf   : > { %9562 = vmatprep.subr.bf16.mxu1 %v10442_v39  ;;  %4342 = vmatprep.mubr.f32.mxu0 %v15424_v43  ;;  %v1299_v30 = vpop.f32.mrb[38].mxu0 }
 0x2d0   : > { %4431 = vmatprep.mubr.f32.mxu1 %v15424_v43  ;;  %1595 = vrot.lane.b32.xlu1 %v1372_v61, %s10083_s21  ;;  %v1301_v40 = vpop.f32.mrb[39].mxu0  ;;  %v1388_v44 = vpop.f32.mrb[38].mxu1  ;;  %v11264_v61 = vld [vmem:[%s15150_s3 + $0xe8] sm:$0xff] }
 0x2d1   : > { %1581 = vrot.lane.b32.xlu0 %v1289_v18, %s10083_s21  ;;  %8987 = vmatmul.mubr.msk.f32.vlgmr.msra.gmra.mrb[136].mxu0 %vm1202_vm9, %v11141_v62  ;;  %v1390_v19 = vpop.f32.mrb[39].mxu1 }
 0x2d2   : > { %8991 = vmatmul.mubr.msk.f32.vlgmr.msra.gmra.mrb[136].mxu1 %vm1202_vm9, %v11141_v62  ;;  %9548 = vmatpush1.bf16.msra.mxu0 %v10436_v34 }
 0x2d3   : > { %9564 = vmatpush1.bf16.msra.mxu1 %v10438_v35  ;;  %9550 = vmatprep.subr.bf16.mxu0 %v10472_v27 }
 0x2d4   : > { %9566 = vmatprep.subr.bf16.mxu1 %v10474_v28  ;;  %4348 = vmatprep.mubr.f32.mxu0 %v15424_v43 }
 0x2d5   : > { %4437 = vmatprep.mubr.f32.mxu1 %v15424_v43  ;;  %1597 = vrot.lane.b32.xlu0 %v1378_v0, %s10083_s21  ;;  %v11289_v0 = vld [vmem:[%s15150_s3 + $0xf0] sm:$0xff] }
 0x2d6   : > { %1575 = vrot.lane.b32.xlu1 %v1293_v49, %s10083_s21  ;;  %8988 = vmatmul.mubr.msk.f32.gmra.mrb[138].mxu0 %vm1202_vm9, %v11156_v14 }
 0x2d7   : > { %8992 = vmatmul.mubr.msk.f32.gmra.mrb[138].mxu1 %vm1202_vm9, %v11156_v14  ;;  %9552 = vmatpush1.bf16.msra.mxu0 %v10468_v23 }
 0x2d8   : > { %9568 = vmatpush1.bf16.msra.mxu1 %v10470_v24  ;;  %9554 = vmatprep.subr.bf16.mxu0 %v10516_v31 }
 0x2d9   : > { %9570 = vmatprep.subr.bf16.mxu1 %v10518_v32  ;;  %4354 = vmatprep.mubr.f32.mxu0 %v15424_v43 }
 0x2da   : > { %4443 = vmatprep.mubr.f32.mxu1 %v15424_v43  ;;  %1591 = vrot.lane.b32.xlu1 %v1382_v17, %s10083_s21 }
 0x2db   : > { %1577 = vrot.lane.b32.xlu0 %v1299_v30, %s10083_s21  ;;  %8989 = vmatmul.mubr.msk.f32.gmra.mrb[140].mxu0 %vm1202_vm9, %v8977_v5 }
 0x2dc   : > { %8993 = vmatmul.mubr.msk.f32.gmra.mrb[140].mxu1 %vm1202_vm9, %v8977_v5  ;;  %9556 = vmatpush1.bf16.msra.mxu0 %v10512_v25 }
 0x2dd   : > { %9572 = vmatpush1.bf16.msra.mxu1 %v10514_v26  ;;  %9558 = vmatprep.subr.bf16.mxu0 %v10560_v1 }
 0x2de   : > { %9574 = vmatprep.subr.bf16.mxu1 %v10562_v3  ;;  %4360 = vmatprep.mubr.f32.mxu0 %v15424_v43 }
 0x2df   : > { %4449 = vmatprep.mubr.f32.mxu1 %v15424_v43  ;;  %1583 = vrot.lane.b32.xlu1 %v1295_v41, %s10083_s21 }
 0x2e0   : > { %1593 = vrot.lane.b32.xlu0 %v1388_v44, %s10083_s21  ;;  %8990 = vmatmul.mubr.msk.f32.gmra.mrb[142].mxu0 %vm1202_vm9, %v8978_v13 }
 0x2e1   : > { %8994 = vmatmul.mubr.msk.f32.gmra.mrb[142].mxu1 %vm1202_vm9, %v8978_v13  ;;  %9560 = vmatpush1.bf16.msra.mxu0 %v10556_v54  ;;  %v1459_v11 = vpop.f32.mrb[40].mxu0  ;;  %v1548_v42 = vpop.f32.mrb[40].mxu1 }
 0x2e2   : > { %9576 = vmatpush1.bf16.msra.mxu1 %v10558_v63  ;;  %9578 = vmatprep.subr.bf16.mxu0 %v10603_v12  ;;  %v1461_v21 = vpop.f32.mrb[41].mxu0  ;;  %v11245_v62 = vpop.f32.mrb[41].mxu1 }
 0x2e3   : > { %9594 = vmatprep.subr.bf16.mxu1 %v10605_v9  ;;  %4666 = vmatprep.mubr.f32.mxu0 %v15424_v43 }
 0x2e4   : > { %4755 = vmatprep.mubr.f32.mxu1 %v15424_v43  ;;  %1599 = vrot.lane.b32.xlu1 %v1384_v53, %s10083_s21  ;;  %v11314_v53 = vld [vmem:[%s15150_s3 + $0xf8] sm:$0xff] }
 0x2e5   : > { %1585 = vrot.lane.b32.xlu0 %v1301_v40, %s10083_s21  ;;  %8999 = vmatmul.mubr.msk.f32.vlgmr.msra.gmra.mrb[144].mxu0 %vm1202_vm9, %v11243_v60  ;;  %v1465_v14 = vpop.f32.mrb[42].mxu0  ;;  %v1554_v16 = vpop.f32.mrb[42].mxu1 }
 0x2e6   : > { %9003 = vmatmul.mubr.msk.f32.vlgmr.msra.gmra.mrb[144].mxu1 %vm1202_vm9, %v11243_v60  ;;  %9580 = vmatpush1.bf16.msra.mxu0 %v10591_v2  ;;  %v1467_v57 = vpop.f32.mrb[43].mxu0  ;;  %v11257_v58 = vpop.f32.mrb[43].mxu1 }
 0x2e7   : > { %9596 = vmatpush1.bf16.msra.mxu1 %v10593_v15  ;;  %9582 = vmatprep.subr.bf16.mxu0 %v10645_v4 }
 0x2e8   : > { %9598 = vmatprep.subr.bf16.mxu1 %v10647_v10  ;;  %4672 = vmatprep.mubr.f32.mxu0 %v15424_v43 }
 0x2e9   : > { %4761 = vmatprep.mubr.f32.mxu1 %v15424_v43  ;;  %1601 = vrot.lane.b32.xlu0 %v1390_v19, %s10083_s21  ;;  %v11270_v5 = vpop.f32.mrb[44].mxu0  ;;  %v11272_v6 = vpop.f32.mrb[44].mxu1 }
 0x2ea   : > { %1603 = vrot.lane.b32.xlu1 %v1459_v11, %s10083_s21  ;;  %9000 = vmatmul.mubr.msk.f32.gmra.mrb[146].mxu0 %vm1202_vm9, %v11264_v61  ;;  %v11277_v18 = vpop.f32.mrb[45].mxu0  ;;  %v11279_v7 = vpop.f32.mrb[45].mxu1 }
 0x2eb   : > { %9004 = vmatmul.mubr.msk.f32.gmra.mrb[146].mxu1 %vm1202_vm9, %v11264_v61  ;;  %9584 = vmatpush1.bf16.msra.mxu0 %v10638_v36 }
 0x2ec   : > { %9600 = vmatpush1.bf16.msra.mxu1 %v10640_v37  ;;  %9586 = vmatprep.subr.bf16.mxu0 %v10688_v22 }
 0x2ed   : > { %9602 = vmatprep.subr.bf16.mxu1 %v10690_v59  ;;  %4678 = vmatprep.mubr.f32.mxu0 %v15424_v43  ;;  %v11293_v13 = vpop.f32.mrb[46].mxu0  ;;  %v11295_v49 = vpop.f32.mrb[46].mxu1 }
 0x2ee   : > { %4767 = vmatprep.mubr.f32.mxu1 %v15424_v43  ;;  %1619 = vrot.lane.b32.xlu1 %v1548_v42, %s10083_s21  ;;  %v11299_v41 = vpop.f32.mrb[47].mxu0  ;;  %v11301_v17 = vpop.f32.mrb[47].mxu1 }
 0x2ef   : > { %1605 = vrot.lane.b32.xlu0 %v1465_v14, %s10083_s21  ;;  %9001 = vmatmul.mubr.msk.f32.gmra.mrb[148].mxu0 %vm1202_vm9, %v11289_v0 }
 0x2f0   : > { %9005 = vmatmul.mubr.msk.f32.gmra.mrb[148].mxu1 %vm1202_vm9, %v11289_v0  ;;  %9588 = vmatpush1.bf16.msra.mxu0 %v10682_v20 }
 0x2f1   : > { %9604 = vmatpush1.bf16.msra.mxu1 %v10684_v29  ;;  %9590 = vmatprep.subr.bf16.mxu0 %v10712_v45  ;;  %v11316_v30 = vpop.f32.mrb[48].mxu0  ;;  %v11318_v40 = vpop.f32.mrb[48].mxu1 }
 0x2f2   : > { %9606 = vmatprep.subr.bf16.mxu1 %v10714_v33  ;;  %4684 = vmatprep.mubr.f32.mxu0 %v15424_v43  ;;  %v11322_v44 = vpop.f32.mrb[49].mxu0  ;;  %v11324_v19 = vpop.f32.mrb[49].mxu1 }
 0x2f3   : > { %4773 = vmatprep.mubr.f32.mxu1 %v15424_v43  ;;  %1611 = vrot.lane.b32.xlu1 %v1461_v21, %s10083_s21 }
 0x2f4   : > { %1621 = vrot.lane.b32.xlu0 %v1554_v16, %s10083_s21  ;;  %9002 = vmatmul.mubr.msk.f32.gmra.mrb[150].mxu0 %vm1202_vm9, %v11314_v53 }
 0x2f5   : > { %9006 = vmatmul.mubr.msk.f32.gmra.mrb[150].mxu1 %vm1202_vm9, %v11314_v53  ;;  %9592 = vmatpush1.bf16.msra.mxu0 %v10708_v51  ;;  %v11334_v11 = vpop.f32.mrb[50].mxu0  ;;  %v11336_v42 = vpop.f32.mrb[50].mxu1 }
 0x2f6   : > { %9608 = vmatpush1.bf16.msra.mxu1 %v10710_v8  ;;  %9610 = vmatprep.subr.bf16.mxu0 %v10440_v38  ;;  %v11340_v14 = vpop.f32.mrb[51].mxu0  ;;  %v11342_v21 = vpop.f32.mrb[51].mxu1 }
 0x2f7   : > { %9626 = vmatprep.subr.bf16.mxu1 %v10442_v39  ;;  %4844 = vmatprep.mubr.f32.mxu0 %v15424_v43 }
 0x2f8   : > { %4933 = vmatprep.mubr.f32.mxu1 %v15424_v43  ;;  %1627 = vrot.lane.b32.xlu1 %v11245_v62, %s10083_s21 }
 0x2f9   : > { %1613 = vrot.lane.b32.xlu0 %v1467_v57, %s10083_s21  ;;  %9007 = vmatmul.mubr.msk.f32.vlgmr.msra.gmra.mrb[152].mxu0 %vm1202_vm9, %v11243_v60  ;;  %v11352_v16 = vpop.f32.mrb[52].mxu0  ;;  %v11354_v38 = vpop.f32.mrb[52].mxu1 }
 0x2fa   : > { %9011 = vmatmul.mubr.msk.f32.vlgmr.msra.gmra.mrb[152].mxu1 %vm1202_vm9, %v11243_v60  ;;  %9612 = vmatpush1.bf16.msra.mxu0 %v10436_v34  ;;  %v11359_v39 = vpop.f32.mrb[53].mxu0  ;;  %v11361_v55 = vpop.f32.mrb[53].mxu1 }
 0x2fb   : > { %9628 = vmatpush1.bf16.msra.mxu1 %v10438_v35  ;;  %9614 = vmatprep.subr.bf16.mxu0 %v10472_v27 }
 0x2fc   : > { %9630 = vmatprep.subr.bf16.mxu1 %v10474_v28  ;;  %4850 = vmatprep.mubr.f32.mxu0 %v15424_v43 }
 0x2fd   : > { %4939 = vmatprep.mubr.f32.mxu1 %v15424_v43  ;;  %1629 = vrot.lane.b32.xlu0 %v11257_v58, %s10083_s21  ;;  %v11370_v60 = vpop.f32.mrb[54].mxu0  ;;  %v11372_v34 = vpop.f32.mrb[54].mxu1 }
 0x2fe   : > { %1607 = vrot.lane.b32.xlu1 %v11270_v5, %s10083_s21  ;;  %9008 = vmatmul.mubr.msk.f32.gmra.mrb[154].mxu0 %vm1202_vm9, %v11264_v61  ;;  %v11378_v35 = vpop.f32.mrb[55].mxu0  ;;  %v11380_v27 = vpop.f32.mrb[55].mxu1 }
 0x2ff   : > { %9012 = vmatmul.mubr.msk.f32.gmra.mrb[154].mxu1 %vm1202_vm9, %v11264_v61  ;;  %9616 = vmatpush1.bf16.msra.mxu0 %v10468_v23 }
 0x300   : > { %9632 = vmatpush1.bf16.msra.mxu1 %v10470_v24  ;;  %9618 = vmatprep.subr.bf16.mxu0 %v10516_v31 }
 0x301   : > { %9634 = vmatprep.subr.bf16.mxu1 %v10518_v32  ;;  %4856 = vmatprep.mubr.f32.mxu0 %v15424_v43  ;;  %v11389_v28 = vpop.f32.mrb[56].mxu0  ;;  %v11391_v62 = vpop.f32.mrb[56].mxu1 }
 0x302   : > { %4945 = vmatprep.mubr.f32.mxu1 %v15424_v43  ;;  %1623 = vrot.lane.b32.xlu1 %v11272_v6, %s10083_s21  ;;  %v11396_v57 = vpop.f32.mrb[57].mxu0  ;;  %v11398_v23 = vpop.f32.mrb[57].mxu1 }
 0x303   : > { %1609 = vrot.lane.b32.xlu0 %v11293_v13, %s10083_s21  ;;  %9009 = vmatmul.mubr.msk.f32.gmra.mrb[156].mxu0 %vm1202_vm9, %v11289_v0 }
 0x304   : > { %9013 = vmatmul.mubr.msk.f32.gmra.mrb[156].mxu1 %vm1202_vm9, %v11289_v0  ;;  %9620 = vmatpush1.bf16.msra.mxu0 %v10512_v25 }
 0x305   : > { %9636 = vmatpush1.bf16.msra.mxu1 %v10514_v26  ;;  %9622 = vmatprep.subr.bf16.mxu0 %v10560_v1  ;;  %v11409_v24 = vpop.f32.mrb[58].mxu0  ;;  %v11411_v31 = vpop.f32.mrb[58].mxu1  ;;  %v11438_v1 = vld [vmem:[%s15150_s3 + $0x100] sm:$0xff] }
 0x306   : > { %9638 = vmatprep.subr.bf16.mxu1 %v10562_v3  ;;  %4862 = vmatprep.mubr.f32.mxu0 %v15424_v43  ;;  %v11415_v32 = vpop.f32.mrb[59].mxu0  ;;  %v11417_v58 = vpop.f32.mrb[59].mxu1 }
 0x307   : > { %4951 = vmatprep.mubr.f32.mxu1 %v15424_v43  ;;  %1615 = vrot.lane.b32.xlu1 %v11277_v18, %s10083_s21 }
 0x308   : > { %1625 = vrot.lane.b32.xlu0 %v11295_v49, %s10083_s21  ;;  %9010 = vmatmul.mubr.msk.f32.gmra.mrb[158].mxu0 %vm1202_vm9, %v11314_v53 }
 0x309   : > { %9014 = vmatmul.mubr.msk.f32.gmra.mrb[158].mxu1 %vm1202_vm9, %v11314_v53  ;;  %9624 = vmatpush1.bf16.msra.mxu0 %v10556_v54  ;;  %v11429_v25 = vpop.f32.mrb[60].mxu0  ;;  %v11431_v26 = vpop.f32.mrb[60].mxu1 }
 0x30a   : > { %9640 = vmatpush1.bf16.msra.mxu1 %v10558_v63  ;;  %9642 = vmatprep.subr.bf16.mxu0 %v10603_v12  ;;  %v11440_v3 = vpop.f32.mrb[61].mxu0  ;;  %v11442_v61 = vpop.f32.mrb[61].mxu1 }
 0x30b   : > { %9658 = vmatprep.subr.bf16.mxu1 %v10605_v9  ;;  %5168 = vmatprep.mubr.f32.mxu0 %v15424_v43 }
 0x30c   : > { %5257 = vmatprep.mubr.f32.mxu1 %v15424_v43  ;;  %1631 = vrot.lane.b32.xlu1 %v11279_v7, %s10083_s21 }
 0x30d   : > { %1617 = vrot.lane.b32.xlu0 %v11299_v41, %s10083_s21  ;;  %9019 = vmatmul.mubr.msk.f32.vlgmr.msra.gmra.mrb[160].mxu0 %vm1202_vm9, %v11438_v1  ;;  %v11453_v54 = vpop.f32.mrb[62].mxu0  ;;  %v11455_v63 = vpop.f32.mrb[62].mxu1 }
 0x30e   : > { %9023 = vmatmul.mubr.msk.f32.vlgmr.msra.gmra.mrb[160].mxu1 %vm1202_vm9, %v11438_v1  ;;  %9644 = vmatpush1.bf16.msra.mxu0 %v10591_v2  ;;  %v11460_v12 = vpop.f32.mrb[63].mxu0  ;;  %v11462_v9 = vpop.f32.mrb[63].mxu1 }
 0x30f   : > { %9660 = vmatpush1.bf16.msra.mxu1 %v10593_v15  ;;  %9646 = vmatprep.subr.bf16.mxu0 %v10645_v4 }
 0x310   : > { %9662 = vmatprep.subr.bf16.mxu1 %v10647_v10  ;;  %2043 = vrot.lane.b32.xlu1 %v11316_v30, %s10082_s20  ;;  %v11551_v30 = vpop.permute.xlu1 %5595 }
 0x311   : > { %1633 = vrot.lane.b32.xlu0 %v11301_v17, %s10083_s21  ;;  %v11471_v5 = vpop.f32.mrb[64].mxu0  ;;  %v11473_v6 = vpop.f32.mrb[64].mxu1  ;;  %5174 = vmatprep.mubr.f32.mxu0 %v15424_v43  ;;  %15425 = vst [vmem:[#allocation19_spill] sm:$0xff] %v11551_v30 }
 0x312   : > { %9648 = vmatpush1.bf16.msra.mxu0 %v10638_v36  ;;  %v11477_v2 = vpop.f32.mrb[65].mxu0  ;;  %v11479_v15 = vpop.f32.mrb[65].mxu1  ;;  %5263 = vmatprep.mubr.f32.mxu1 %v15424_v43 }
 0x313   : > { %9664 = vmatpush1.bf16.msra.mxu1 %v10640_v37  ;;  %9650 = vmatprep.subr.bf16.mxu0 %v10688_v22 }
 0x314   : > { %9666 = vmatprep.subr.bf16.mxu1 %v10690_v59  ;;  %2059 = vrot.lane.b32.xlu1 %v11318_v40, %s10082_s20 }
 0x315   : > { %2045 = vrot.lane.b32.xlu0 %v11334_v11, %s10082_s20  ;;  %v11489_v4 = vpop.f32.mrb[66].mxu0  ;;  %v11491_v36 = vpop.f32.mrb[66].mxu1 }
 0x316   : > { %9652 = vmatpush1.bf16.msra.mxu0 %v10682_v20  ;;  %v11494_v10 = vpop.f32.mrb[67].mxu0  ;;  %v11496_v18 = vpop.f32.mrb[67].mxu1 }
 0x317   : > { %9668 = vmatpush1.bf16.msra.mxu1 %v10684_v29  ;;  %9654 = vmatprep.subr.bf16.mxu0 %v10712_v45 }
 0x318   : > { %9670 = vmatprep.subr.bf16.mxu1 %v10714_v33  ;;  %2051 = vrot.lane.b32.xlu1 %v11322_v44, %s10082_s20 }
 0x319   : > { %2061 = vrot.lane.b32.xlu0 %v11336_v42, %s10082_s20  ;;  %v11505_v37 = vpop.f32.mrb[68].mxu0  ;;  %v11507_v22 = vpop.f32.mrb[68].mxu1 }
 0x31a   : > { %9656 = vmatpush1.bf16.msra.mxu0 %v10708_v51  ;;  %v11510_v20 = vpop.f32.mrb[69].mxu0  ;;  %v11512_v59 = vpop.f32.mrb[69].mxu1 }
 0x31b   : > { %9672 = vmatpush1.bf16.msra.mxu1 %v10710_v8  ;;  %v11565_v42 = vpop.permute.xlu0 %5600 }
 0x31c   : > { %2067 = vrot.lane.b32.xlu1 %v11324_v19, %s10082_s20  ;;  %15426 = vst [vmem:[#allocation20_spill] sm:$0xff] %v11565_v42 }
 0x31d   : > { %2053 = vrot.lane.b32.xlu0 %v11340_v14, %s10082_s20  ;;  %v11519_v29 = vpop.f32.mrb[70].mxu0  ;;  %v11521_v45 = vpop.f32.mrb[70].mxu1 }
 0x31e   : > { %v11523_v33 = vpop.f32.mrb[71].mxu0  ;;  %v11525_v7 = vpop.f32.mrb[71].mxu1 }
 0x31f   : > { %v11593_v42 = vpop.permute.xlu0 %5610 }
 0x320   : > { %2047 = vrot.lane.b32.xlu1 %v11352_v16, %s10082_s20  ;;  %15428 = vst [vmem:[#allocation22_spill] sm:$0xff] %v11593_v42 }
 0x321   : > { %2069 = vrot.lane.b32.xlu0 %v11342_v21, %s10082_s20  ;;  %v11531_v51 = vpop.f32.mrb[72].mxu0  ;;  %v11533_v8 = vpop.f32.mrb[72].mxu1 }
 0x322   : > { %v11535_v0 = vpop.f32.mrb[73].mxu0  ;;  %v11537_v13 = vpop.f32.mrb[73].mxu1 }
 0x324   : > { %2063 = vrot.lane.b32.xlu1 %v11354_v38, %s10082_s20 }
 0x325   : > { %2049 = vrot.lane.b32.xlu0 %v11370_v60, %s10082_s20  ;;  %v11543_v49 = vpop.f32.mrb[74].mxu0  ;;  %v11545_v41 = vpop.f32.mrb[74].mxu1 }
 0x326   : > { %v11547_v17 = vpop.f32.mrb[75].mxu0  ;;  %v11549_v53 = vpop.f32.mrb[75].mxu1 }
 0x328   : > { %2055 = vrot.lane.b32.xlu1 %v11359_v39, %s10082_s20  ;;  %v11579_v39 = vpop.permute.xlu1 %5605 }
 0x329   : > { %2065 = vrot.lane.b32.xlu0 %v11372_v34, %s10082_s20  ;;  %v11557_v40 = vpop.f32.mrb[76].mxu0  ;;  %v11559_v44 = vpop.f32.mrb[76].mxu1  ;;  %15427 = vst [vmem:[#allocation21_spill] sm:$0xff] %v11579_v39 }
 0x32a   : > { %v11561_v19 = vpop.f32.mrb[77].mxu0  ;;  %v11563_v11 = vpop.f32.mrb[77].mxu1 }
 0x32c   : > { %2071 = vrot.lane.b32.xlu1 %v11361_v55, %s10082_s20 }
 0x32d   : > { %2057 = vrot.lane.b32.xlu0 %v11378_v35, %s10082_s20  ;;  %v11571_v14 = vpop.f32.mrb[78].mxu0  ;;  %v11573_v21 = vpop.f32.mrb[78].mxu1 }
 0x32e   : > { %v11575_v16 = vpop.f32.mrb[79].mxu0  ;;  %v11577_v38 = vpop.f32.mrb[79].mxu1 }
 0x330   : > { %2075 = vrot.lane.b32.xlu1 %v11389_v28, %s10082_s20 }
 0x331   : > { %2073 = vrot.lane.b32.xlu0 %v11380_v27, %s10082_s20  ;;  %v11585_v55 = vpop.f32.mrb[80].mxu1  ;;  %v11587_v60 = vpop.f32.mrb[80].mxu0 }
 0x332   : > { %v11589_v34 = vpop.f32.mrb[81].mxu0  ;;  %v11591_v35 = vpop.f32.mrb[81].mxu1 }
 0x334   : > { %2091 = vrot.lane.b32.xlu1 %v11391_v62, %s10082_s20  ;;  %v11597_v39 = vpop.permute.xlu1 %1571 }
 0x335   : > { %15429 = vst [vmem:[#allocation23_spill] sm:$0xff] %v11597_v39  ;;  %2077 = vrot.lane.b32.xlu0 %v11409_v24, %s10082_s20  ;;  %v11601_v28 = vpop.f32.mrb[82].mxu1  ;;  %v11603_v27 = vpop.f32.mrb[82].mxu0 }
 0x336   : > { %v11605_v30 = vpop.f32.mrb[83].mxu0  ;;  %v11607_v56 = vpop.f32.mrb[83].mxu1 }
 0x338   : > { %2083 = vrot.lane.b32.xlu1 %v11396_v57, %s10082_s20  ;;  %v11611_v42 = vpop.permute.xlu1 %1587 }
 0x339   : > { %15430 = vst [vmem:[#allocation24_spill] sm:$0xff] %v11611_v42  ;;  %2093 = vrot.lane.b32.xlu0 %v11411_v31, %s10082_s20  ;;  %v11615_v62 = vpop.permute.xlu0 %1573  ;;  %v11617_v46 = vpop.f32.mrb[84].mxu0 }
 0x33a   : > { %15431 = vst [vmem:[#allocation25_spill] sm:$0xff] %v11615_v62  ;;  %v11619_v24 = vpop.f32.mrb[85].mxu0  ;;  %v11621_v48 = vpop.f32.mrb[84].mxu1 }
 0x33b   : > { %v11623_v52 = vpop.f32.mrb[85].mxu1 }
 0x33c   : > { %2099 = vrot.lane.b32.xlu1 %v11398_v23, %s10082_s20  ;;  %v11646_v23 = vld [vmem:[%s15150_s3 + $0x108] sm:$0xff] }
 0x33d   : > { %2085 = vrot.lane.b32.xlu0 %v11415_v32, %s10082_s20  ;;  %v11629_v57 = vpop.permute.xlu1 %1579  ;;  %v11631_v47 = vpop.f32.mrb[86].mxu0  ;;  %9020 = vmatmul.mubr.msk.f32.gmra.mrb[162].mxu0 %vm1202_vm9, %v11646_v23 }
 0x33e   : > { %15432 = vst [vmem:[#allocation26_spill] sm:$0xff] %v11629_v57  ;;  %v11633_v31 = vpop.permute.xlu0 %1589  ;;  %v11635_v50 = vpop.f32.mrb[87].mxu0  ;;  %9024 = vmatmul.mubr.msk.f32.gmra.mrb[162].mxu1 %vm1202_vm9, %v11646_v23  ;;  %5180 = vmatprep.mubr.f32.mxu0 %v15424_v43 }
 0x33f   : > { %15433 = vst [vmem:[#allocation27_spill] sm:$0xff] %v11633_v31  ;;  %v11637_v62 = vpop.f32.mrb[86].mxu1  ;;  %5269 = vmatprep.mubr.f32.mxu1 %v15424_v43 }
 0x340   : > { %2079 = vrot.lane.b32.xlu1 %v11429_v25, %s10082_s20  ;;  %v11641_v39 = vpop.f32.mrb[87].mxu1 }
 0x341   : > { %15434 = vst [vmem:[#allocation28_spill] sm:$0xff] %v11641_v39  ;;  %2101 = vrot.lane.b32.xlu0 %v11417_v58, %s10082_s20  ;;  %v11650_v32 = vpop.f32.mrb[88].mxu0  ;;  %v11652_v31 = vpop.f32.mrb[88].mxu1 }
 0x342   : > { %15435 = vst [vmem:[#allocation29_spill] sm:$0xff] %v11650_v32  ;;  %15436 = vst [vmem:[#allocation30_spill] sm:$0xff] %v11652_v31  ;;  %v11656_v57 = vpop.permute.xlu1 %1595  ;;  %v11658_v25 = vpop.f32.mrb[89].mxu0 }
 0x343   : > { %15437 = vst [vmem:[#allocation31_spill] sm:$0xff] %v11656_v57  ;;  %15438 = vst [vmem:[#allocation32_spill] sm:$0xff] %v11658_v25  ;;  %v11663_v42 = vpop.permute.xlu0 %1581  ;;  %v11665_v39 = vpop.f32.mrb[89].mxu1 }
 0x344   : > { %15439 = vst [vmem:[#allocation33_spill] sm:$0xff] %v11663_v42  ;;  %15440 = vst [vmem:[#allocation34_spill] sm:$0xff] %v11665_v39  ;;  %2095 = vrot.lane.b32.xlu1 %v11431_v26, %s10082_s20 }
 0x345   : > { %2081 = vrot.lane.b32.xlu0 %v11453_v54, %s10082_s20  ;;  %v11672_v58 = vpop.f32.mrb[90].mxu0  ;;  %v11674_v57 = vpop.f32.mrb[90].mxu1 }
 0x346   : > { %15441 = vst [vmem:[#allocation35_spill] sm:$0xff] %v11674_v57  ;;  %v11676_v25 = vpop.f32.mrb[91].mxu0  ;;  %v11678_v31 = vpop.f32.mrb[91].mxu1 }
 0x347   : > { %v11680_v32 = vpop.permute.xlu0 %1597 }
 0x348   : > { %15442 = vst [vmem:[#allocation36_spill] sm:$0xff] %v11680_v32  ;;  %2087 = vrot.lane.b32.xlu1 %v11440_v3, %s10082_s20  ;;  %v11684_v42 = vpop.permute.xlu1 %1575  ;;  %v9017_v3 = vld [vmem:[%s15150_s3 + $0x110] sm:$0xff] }
 0x349   : > { %15443 = vst [vmem:[#allocation37_spill] sm:$0xff] %v11684_v42  ;;  %2097 = vrot.lane.b32.xlu0 %v11455_v63, %s10082_s20  ;;  %v11688_v26 = vpop.f32.mrb[92].mxu0  ;;  %v11690_v54 = vpop.f32.mrb[92].mxu1  ;;  %9021 = vmatmul.mubr.msk.f32.gmra.mrb[164].mxu0 %vm1202_vm9, %v9017_v3 }
 0x34a   : > { %v11692_v39 = vpop.f32.mrb[93].mxu0  ;;  %v11694_v57 = vpop.f32.mrb[93].mxu1  ;;  %5186 = vmatprep.mubr.f32.mxu0 %v15424_v43  ;;  %9025 = vmatmul.mubr.msk.f32.gmra.mrb[164].mxu1 %vm1202_vm9, %v9017_v3 }
 0x34b   : > { %15444 = vst [vmem:[#allocation38_spill] sm:$0xff] %v11692_v39  ;;  %15445 = vst [vmem:[#allocation39_spill] sm:$0xff] %v11694_v57  ;;  %5275 = vmatprep.mubr.f32.mxu1 %v15424_v43 }
 0x34c   : > { %2103 = vrot.lane.b32.xlu1 %v11442_v61, %s10082_s20  ;;  %v11698_v32 = vpop.permute.xlu1 %1591 }
 0x34d   : > { %15446 = vst [vmem:[#allocation40_spill] sm:$0xff] %v11698_v32  ;;  %2089 = vrot.lane.b32.xlu0 %v11460_v12, %s10082_s20  ;;  %v11705_v63 = vpop.permute.xlu0 %1577  ;;  %v11707_v42 = vpop.f32.mrb[94].mxu0  ;;  %v9018_v12 = vld [vmem:[%s15150_s3 + $0x118] sm:$0xff] }
 0x34e   : > { %15447 = vst [vmem:[#allocation41_spill] sm:$0xff] %v11705_v63  ;;  %v11710_v39 = vpop.f32.mrb[95].mxu0  ;;  %v11712_v57 = vpop.f32.mrb[94].mxu1  ;;  %9022 = vmatmul.mubr.msk.f32.gmra.mrb[166].mxu0 %vm1202_vm9, %v9018_v12  ;;  %9026 = vmatmul.mubr.msk.f32.gmra.mrb[166].mxu1 %vm1202_vm9, %v9018_v12 }
 0x34f   : > { %15448 = vst [vmem:[#allocation42_spill] sm:$0xff] %v11710_v39  ;;  %v11716_v61 = vpop.f32.mrb[95].mxu1  ;;  %5346 = vmatprep.mubr.f32.mxu0 %v15424_v43  ;;  %5435 = vmatprep.mubr.f32.mxu1 %v15424_v43 }
 0x350   : > { %15449 = vst [vmem:[#allocation43_spill] sm:$0xff] %v11716_v61  ;;  %2545 = vrot.lane.b32.xlu1 %v11471_v5, %s10084_s22 }
 0x351   : > { %2105 = vrot.lane.b32.xlu0 %v11462_v9, %s10082_s20  ;;  %v11726_v63 = vpop.permute.xlu1 %1583  ;;  %v11728_v32 = vpop.f32.mrb[96].mxu0 }
 0x352   : > { %15450 = vst [vmem:[#allocation44_spill] sm:$0xff] %v11726_v63  ;;  %15451 = vst [vmem:[#allocation45_spill] sm:$0xff] %v11728_v32  ;;  %v11731_v39 = vpop.permute.xlu0 %1593  ;;  %v11733_v61 = vpop.f32.mrb[97].mxu0  ;;  %9027 = vmatmul.mubr.msk.f32.vlgmr.msra.gmra.mrb[168].mxu0 %vm1202_vm9, %v11438_v1  ;;  %9031 = vmatmul.mubr.msk.f32.vlgmr.msra.gmra.mrb[168].mxu1 %vm1202_vm9, %v11438_v1  ;;  %v15528_v63 = vld [vmem:[#allocation28_spill] sm:$0xff] }
 0x353   : > { %15452 = vst [vmem:[#allocation46_spill] sm:$0xff] %v11731_v39  ;;  %15453 = vst [vmem:[#allocation47_spill] sm:$0xff] %v11733_v61  ;;  %v11737_v5 = vpop.f32.mrb[96].mxu1  ;;  %5352 = vmatprep.mubr.f32.mxu0 %v15424_v43  ;;  %5441 = vmatprep.mubr.f32.mxu1 %v15424_v43 }
 0x354   : > { %15454 = vst [vmem:[#allocation48_spill] sm:$0xff] %v11737_v5  ;;  %2561 = vrot.lane.b32.xlu1 %v11473_v6, %s10084_s22  ;;  %v11742_v9 = vpop.f32.mrb[97].mxu1 }
 0x355   : > { %15455 = vst [vmem:[#allocation49_spill] sm:$0xff] %v11742_v9  ;;  %2547 = vrot.lane.b32.xlu0 %v11489_v4, %s10084_s22  ;;  %v11746_v32 = vpop.f32.mrb[98].mxu0  ;;  %v11748_v39 = vpop.f32.mrb[98].mxu1 }
 0x356   : > { %15456 = vst [vmem:[#allocation50_spill] sm:$0xff] %v11746_v32  ;;  %15457 = vst [vmem:[#allocation51_spill] sm:$0xff] %v11748_v39  ;;  %v11752_v61 = vpop.permute.xlu1 %1599  ;;  %v11754_v5 = vpop.f32.mrb[99].mxu0  ;;  %9028 = vmatmul.mubr.msk.f32.gmra.mrb[170].mxu0 %vm1202_vm9, %v11646_v23  ;;  %9032 = vmatmul.mubr.msk.f32.gmra.mrb[170].mxu1 %vm1202_vm9, %v11646_v23 }
 0x357   : > { %15458 = vst [vmem:[#allocation52_spill] sm:$0xff] %v11752_v61  ;;  %15459 = vst [vmem:[#allocation53_spill] sm:$0xff] %v11754_v5  ;;  %v11759_v6 = vpop.permute.xlu0 %1585  ;;  %v11761_v9 = vpop.f32.mrb[99].mxu1  ;;  %5358 = vmatprep.mubr.f32.mxu0 %v15424_v43  ;;  %5447 = vmatprep.mubr.f32.mxu1 %v15424_v43 }
 0x358   : > { %15460 = vst [vmem:[#allocation54_spill] sm:$0xff] %v11759_v6  ;;  %15461 = vst [vmem:[#allocation55_spill] sm:$0xff] %v11761_v9  ;;  %2553 = vrot.lane.b32.xlu1 %v11477_v2, %s10084_s22 }
 0x359   : > { %2563 = vrot.lane.b32.xlu0 %v11491_v36, %s10084_s22  ;;  %v11768_v4 = vpop.f32.mrb[100].mxu0  ;;  %v11770_v32 = vpop.f32.mrb[100].mxu1 }
 0x35a   : > { %15462 = vst [vmem:[#allocation56_spill] sm:$0xff] %v11768_v4  ;;  %15463 = vst [vmem:[#allocation57_spill] sm:$0xff] %v11770_v32  ;;  %v11774_v1 = vpop.f32.mrb[101].mxu0  ;;  %v11776_v39 = vpop.f32.mrb[101].mxu1  ;;  %9029 = vmatmul.mubr.msk.f32.gmra.mrb[172].mxu0 %vm1202_vm9, %v9017_v3  ;;  %9033 = vmatmul.mubr.msk.f32.gmra.mrb[172].mxu1 %vm1202_vm9, %v9017_v3 }
 0x35b   : > { %15464 = vst [vmem:[#allocation58_spill] sm:$0xff] %v11774_v1  ;;  %15465 = vst [vmem:[#allocation59_spill] sm:$0xff] %v11776_v39  ;;  %v11781_v2 = vpop.permute.xlu0 %1601  ;;  %5364 = vmatprep.mubr.f32.mxu0 %v15424_v43  ;;  %5453 = vmatprep.mubr.f32.mxu1 %v15424_v43 }
 0x35c   : > { %15466 = vst [vmem:[#allocation60_spill] sm:$0xff] %v11781_v2  ;;  %2569 = vrot.lane.b32.xlu1 %v11479_v15, %s10084_s22  ;;  %v11786_v36 = vpop.permute.xlu1 %1603 }
 0x35d   : > { %15467 = vst [vmem:[#allocation61_spill] sm:$0xff] %v11786_v36  ;;  %2555 = vrot.lane.b32.xlu0 %v11494_v10, %s10084_s22  ;;  %v11790_v9 = vpop.f32.mrb[102].mxu0  ;;  %v11792_v39 = vpop.f32.mrb[102].mxu1 }
 0x35e   : > { %15468 = vst [vmem:[#allocation62_spill] sm:$0xff] %v11790_v9  ;;  %15469 = vst [vmem:[#allocation63_spill] sm:$0xff] %v11792_v39  ;;  %v11795_v23 = vpop.f32.mrb[103].mxu0  ;;  %v11797_v32 = vpop.f32.mrb[103].mxu1  ;;  %9030 = vmatmul.mubr.msk.f32.gmra.mrb[174].mxu0 %vm1202_vm9, %v9018_v12  ;;  %9034 = vmatmul.mubr.msk.f32.gmra.mrb[174].mxu1 %vm1202_vm9, %v9018_v12 }
 0x35f   : > { %15470 = vst [vmem:[#allocation64_spill] sm:$0xff] %v11795_v23  ;;  %15471 = vst [vmem:[#allocation65_spill] sm:$0xff] %v11797_v32  ;;  %5821 = vmatprep.mubr.f32.mxu0 %v15424_v43  ;;  %5892 = vmatprep.mubr.f32.mxu1 %v15424_v43 }
 0x360   : > { %2549 = vrot.lane.b32.xlu1 %v11505_v37, %s10084_s22  ;;  %v11804_v15 = vpop.permute.xlu1 %1619 }
 0x361   : > { %15472 = vst [vmem:[#allocation66_spill] sm:$0xff] %v11804_v15  ;;  %2571 = vrot.lane.b32.xlu0 %v11496_v18, %s10084_s22  ;;  %v11808_v10 = vpop.permute.xlu0 %1605  ;;  %v11810_v39 = vpop.f32.mrb[104].mxu0 }
 0x362   : > { %15473 = vst [vmem:[#allocation67_spill] sm:$0xff] %v11808_v10  ;;  %15474 = vst [vmem:[#allocation68_spill] sm:$0xff] %v11810_v39  ;;  %v11813_v32 = vpop.f32.mrb[105].mxu0  ;;  %v11815_v9 = vpop.f32.mrb[104].mxu1 }
 0x363   : > { %15475 = vst [vmem:[#allocation69_spill] sm:$0xff] %v11813_v32  ;;  %15476 = vst [vmem:[#allocation70_spill] sm:$0xff] %v11815_v9  ;;  %v11819_v37 = vpop.f32.mrb[105].mxu1 }
 0x364   : > { %15477 = vst [vmem:[#allocation71_spill] sm:$0xff] %v11819_v37  ;;  %2565 = vrot.lane.b32.xlu1 %v11507_v22, %s10084_s22 }
 0x365   : > { %2551 = vrot.lane.b32.xlu0 %v11519_v29, %s10084_s22  ;;  %v11826_v18 = vpop.permute.xlu1 %1611  ;;  %v11828_v3 = vpop.f32.mrb[106].mxu0 }
 0x366   : > { %15478 = vst [vmem:[#allocation72_spill] sm:$0xff] %v11826_v18  ;;  %15479 = vst [vmem:[#allocation73_spill] sm:$0xff] %v11828_v3  ;;  %v11830_v32 = vpop.permute.xlu0 %1621  ;;  %v11832_v9 = vpop.f32.mrb[107].mxu0 }
 0x367   : > { %15480 = vst [vmem:[#allocation74_spill] sm:$0xff] %v11830_v32  ;;  %15481 = vst [vmem:[#allocation75_spill] sm:$0xff] %v11832_v9  ;;  %v11834_v12 = vpop.f32.mrb[106].mxu1 }
 0x368   : > { %15482 = vst [vmem:[#allocation76_spill] sm:$0xff] %v11834_v12  ;;  %2557 = vrot.lane.b32.xlu1 %v11510_v20, %s10084_s22  ;;  %v11838_v43 = vpop.f32.mrb[107].mxu1 }
 0x369   : > { %15483 = vst [vmem:[#allocation77_spill] sm:$0xff] %v11838_v43  ;;  %2567 = vrot.lane.b32.xlu0 %v11521_v45, %s10084_s22  ;;  %v11842_v22 = vpop.f32.mrb[108].mxu0  ;;  %v11844_v29 = vpop.f32.mrb[108].mxu1 }
 0x36a   : > { %15484 = vst [vmem:[#allocation78_spill] sm:$0xff] %v11842_v22  ;;  %15485 = vst [vmem:[#allocation79_spill] sm:$0xff] %v11844_v29  ;;  %v11846_v37 = vpop.permute.xlu1 %1627  ;;  %v11848_v3 = vpop.f32.mrb[109].mxu0 }
 0x36b   : > { %15486 = vst [vmem:[#allocation80_spill] sm:$0xff] %v11846_v37  ;;  %15487 = vst [vmem:[#allocation81_spill] sm:$0xff] %v11848_v3  ;;  %v11850_v39 = vpop.permute.xlu0 %1613  ;;  %v11852_v9 = vpop.f32.mrb[109].mxu1 }
 0x36c   : > { %15488 = vst [vmem:[#allocation82_spill] sm:$0xff] %v11850_v39  ;;  %15489 = vst [vmem:[#allocation83_spill] sm:$0xff] %v11852_v9  ;;  %2573 = vrot.lane.b32.xlu1 %v11512_v59, %s10084_s22 }
 0x36d   : > { %2559 = vrot.lane.b32.xlu0 %v11523_v33, %s10084_s22  ;;  %v11858_v20 = vpop.f32.mrb[110].mxu0  ;;  %v11860_v45 = vpop.f32.mrb[110].mxu1 }
 0x36e   : > { %15490 = vst [vmem:[#allocation84_spill] sm:$0xff] %v11858_v20  ;;  %15491 = vst [vmem:[#allocation85_spill] sm:$0xff] %v11860_v45  ;;  %v11862_v22 = vpop.f32.mrb[111].mxu0  ;;  %v11864_v29 = vpop.f32.mrb[111].mxu1 }
 0x36f   : > { %15492 = vst [vmem:[#allocation86_spill] sm:$0xff] %v11862_v22  ;;  %15493 = vst [vmem:[#allocation87_spill] sm:$0xff] %v11864_v29  ;;  %v11866_v12 = vpop.permute.xlu0 %1629 }
 0x370   : > { %15494 = vst [vmem:[#allocation88_spill] sm:$0xff] %v11866_v12  ;;  %2577 = vrot.lane.b32.xlu1 %v11531_v51, %s10084_s22  ;;  %v11870_v3 = vpop.permute.xlu1 %1607 }
 0x371   : > { %15495 = vst [vmem:[#allocation89_spill] sm:$0xff] %v11870_v3  ;;  %2575 = vrot.lane.b32.xlu0 %v11525_v7, %s10084_s22  ;;  %v11874_v59 = vpop.f32.mrb[112].mxu0  ;;  %v11876_v33 = vpop.f32.mrb[112].mxu1 }
 0x372   : > { %v11878_v20 = vpop.f32.mrb[113].mxu0  ;;  %v11880_v45 = vpop.f32.mrb[113].mxu1 }
 0x374   : > { %2593 = vrot.lane.b32.xlu1 %v11533_v8, %s10084_s22  ;;  %v11884_v22 = vpop.permute.xlu1 %1623 }
 0x375   : > { %15496 = vst [vmem:[#allocation90_spill] sm:$0xff] %v11884_v22  ;;  %2579 = vrot.lane.b32.xlu0 %v11543_v49, %s10084_s22  ;;  %v11888_v51 = vpop.permute.xlu0 %1609  ;;  %v11890_v29 = vpop.f32.mrb[114].mxu0 }
 0x376   : > { %15497 = vst [vmem:[#allocation91_spill] sm:$0xff] %v11888_v51  ;;  %v11892_v7 = vpop.f32.mrb[115].mxu0  ;;  %v11894_v9 = vpop.f32.mrb[114].mxu1 }
 0x377   : > { %v11896_v43 = vpop.f32.mrb[115].mxu1 }
 0x378   : > { %2585 = vrot.lane.b32.xlu1 %v11535_v0, %s10084_s22 }
 0x379   : > { %2595 = vrot.lane.b32.xlu0 %v11545_v41, %s10084_s22  ;;  %v11902_v8 = vpop.permute.xlu1 %1615  ;;  %v11904_v23 = vpop.f32.mrb[116].mxu0 }
 0x37a   : > { %15498 = vst [vmem:[#allocation92_spill] sm:$0xff] %v11902_v8  ;;  %v11906_v49 = vpop.permute.xlu0 %1625  ;;  %v11908_v4 = vpop.f32.mrb[117].mxu0 }
 0x37b   : > { %15499 = vst [vmem:[#allocation93_spill] sm:$0xff] %v11906_v49  ;;  %v11910_v1 = vpop.f32.mrb[116].mxu1 }
 0x37c   : > { %2601 = vrot.lane.b32.xlu1 %v11537_v13, %s10084_s22  ;;  %v11914_v5 = vpop.f32.mrb[117].mxu1 }
 0x37d   : > { %2587 = vrot.lane.b32.xlu0 %v11547_v17, %s10084_s22  ;;  %v11918_v0 = vpop.f32.mrb[118].mxu0  ;;  %v11920_v41 = vpop.f32.mrb[118].mxu1 }
 0x37e   : > { %v11922_v8 = vpop.permute.xlu1 %1631  ;;  %v11924_v22 = vpop.f32.mrb[119].mxu0 }
 0x37f   : > { %15500 = vst [vmem:[#allocation94_spill] sm:$0xff] %v11922_v8  ;;  %v11926_v49 = vpop.permute.xlu0 %1617  ;;  %v11928_v51 = vpop.f32.mrb[119].mxu1 }
 0x380   : > { %15501 = vst [vmem:[#allocation95_spill] sm:$0xff] %v11926_v49  ;;  %2581 = vrot.lane.b32.xlu1 %v11557_v40, %s10084_s22 }
 0x381   : > { %2603 = vrot.lane.b32.xlu0 %v11549_v53, %s10084_s22  ;;  %v11934_v13 = vpop.f32.mrb[120].mxu0  ;;  %v11936_v17 = vpop.f32.mrb[120].mxu1 }
 0x382   : > { %v11938_v3 = vpop.permute.xlu1 %2043  ;;  %v11940_v12 = vpop.f32.mrb[121].mxu0 }
 0x383   : > { %15502 = vst [vmem:[#allocation96_spill] sm:$0xff] %v11938_v3  ;;  %v11942_v8 = vpop.permute.xlu0 %1633  ;;  %v11944_v39 = vpop.f32.mrb[121].mxu1 }
 0x384   : > { %15503 = vst [vmem:[#allocation97_spill] sm:$0xff] %v11942_v8  ;;  %2597 = vrot.lane.b32.xlu1 %v11559_v44, %s10084_s22 }
 0x385   : > { %2583 = vrot.lane.b32.xlu0 %v11571_v14, %s10084_s22  ;;  %v11950_v40 = vpop.f32.mrb[122].mxu0  ;;  %v11952_v53 = vpop.f32.mrb[122].mxu1 }
 0x386   : > { %v11954_v49 = vpop.permute.xlu1 %2059  ;;  %v11956_v32 = vpop.f32.mrb[123].mxu0 }
 0x387   : > { %15504 = vst [vmem:[#allocation98_spill] sm:$0xff] %v11954_v49  ;;  %v11958_v3 = vpop.permute.xlu0 %2045  ;;  %v11960_v37 = vpop.f32.mrb[123].mxu1 }
 0x388   : > { %15505 = vst [vmem:[#allocation99_spill] sm:$0xff] %v11958_v3  ;;  %2589 = vrot.lane.b32.xlu1 %v11561_v19, %s10084_s22 }
 0x389   : > { %2599 = vrot.lane.b32.xlu0 %v11573_v21, %s10084_s22  ;;  %v11966_v44 = vpop.f32.mrb[124].mxu0  ;;  %v11968_v14 = vpop.f32.mrb[124].mxu1 }
 0x38a   : > { %v11970_v8 = vpop.permute.xlu1 %2051  ;;  %v11972_v18 = vpop.f32.mrb[125].mxu0 }
 0x38b   : > { %15506 = vst [vmem:[#allocation100_spill] sm:$0xff] %v11970_v8  ;;  %v11974_v49 = vpop.permute.xlu0 %2061  ;;  %v11976_v15 = vpop.f32.mrb[125].mxu1 }
 0x38c   : > { %15507 = vst [vmem:[#allocation101_spill] sm:$0xff] %v11974_v49  ;;  %2605 = vrot.lane.b32.xlu1 %v11563_v11, %s10084_s22 }
 0x38d   : > { %2591 = vrot.lane.b32.xlu0 %v11575_v16, %s10084_s22  ;;  %v11982_v19 = vpop.f32.mrb[126].mxu0  ;;  %v11984_v21 = vpop.f32.mrb[126].mxu1 }
 0x38e   : > { %v11986_v3 = vpop.permute.xlu1 %2067  ;;  %v11988_v10 = vpop.f32.mrb[127].mxu0 }
 0x38f   : > { %15508 = vst [vmem:[#allocation102_spill] sm:$0xff] %v11986_v3  ;;  %v11990_v8 = vpop.permute.xlu0 %2053  ;;  %v11992_v36 = vpop.f32.mrb[127].mxu1 }
 0x390   : > { %15509 = vst [vmem:[#allocation103_spill] sm:$0xff] %v11990_v8  ;;  %3063 = vrot.lane.b32.xlu1 %v11585_v55, %s10085_s23 }
 0x391   : > { %2607 = vrot.lane.b32.xlu0 %v11577_v38, %s10084_s22  ;;  %v11998_v11 = vpop.f32.mrb[128].mxu0  ;;  %v12008_v8 = vpop.f32.mrb[128].mxu1 }
 0x392   : > { %v12000_v16 = vpop.permute.xlu1 %2047  ;;  %v12002_v49 = vpop.f32.mrb[129].mxu0 }
 0x393   : > { %15510 = vst [vmem:[#allocation104_spill] sm:$0xff] %v12000_v16  ;;  %v12004_v2 = vpop.permute.xlu0 %2069  ;;  %v12014_v3 = vpop.f32.mrb[129].mxu1 }
 0x394   : > { %15511 = vst [vmem:[#allocation105_spill] sm:$0xff] %v12004_v2  ;;  %3047 = vrot.lane.b32.xlu1 %v11587_v60, %s10085_s23 }
 0x395   : > { %3065 = vrot.lane.b32.xlu0 %v11601_v28, %s10085_s23  ;;  %v12012_v55 = vpop.f32.mrb[130].mxu0 }
 0x396   : > { %v12016_v38 = vpop.permute.xlu1 %2063  ;;  %v12018_v6 = vpop.f32.mrb[131].mxu0 }
 0x397   : > { %15512 = vst [vmem:[#allocation106_spill] sm:$0xff] %v12016_v38  ;;  %v12020_v16 = vpop.permute.xlu0 %2049  ;;  %v12022_v61 = vpop.f32.mrb[130].mxu1 }
 0x398   : > { %15513 = vst [vmem:[#allocation107_spill] sm:$0xff] %v12020_v16  ;;  %3055 = vrot.lane.b32.xlu1 %v11589_v34, %s10085_s23  ;;  %v12028_v60 = vpop.f32.mrb[131].mxu1 }
 0x399   : > { %3049 = vrot.lane.b32.xlu0 %v11603_v27, %s10085_s23 }
 0x39a   : > { %v12030_v28 = vpop.permute.xlu1 %2055  ;;  %v12044_v34 = vpop.f32.mrb[132].mxu0 }
 0x39b   : > { %15514 = vst [vmem:[#allocation108_spill] sm:$0xff] %v12030_v28  ;;  %v12032_v2 = vpop.permute.xlu0 %2065  ;;  %v12048_v27 = vpop.f32.mrb[133].mxu0 }
 0x39c   : > { %15515 = vst [vmem:[#allocation109_spill] sm:$0xff] %v12032_v2  ;;  %3071 = vrot.lane.b32.xlu1 %v11591_v35, %s10085_s23 }
 0x39d   : > { %3057 = vrot.lane.b32.xlu0 %v11605_v30, %s10085_s23 }
 0x39e   : > { %v12038_v16 = vpop.permute.xlu1 %2071 }
 0x39f   : > { %15516 = vst [vmem:[#allocation110_spill] sm:$0xff] %v12038_v16  ;;  %v12040_v38 = vpop.permute.xlu0 %2057  ;;  %v12056_v30 = vpop.f32.mrb[134].mxu0 }
 0x3a0   : > { %15517 = vst [vmem:[#allocation111_spill] sm:$0xff] %v12040_v38  ;;  %3067 = vrot.lane.b32.xlu1 %v11621_v48, %s10085_s23  ;;  %v12058_v38 = vpop.f32.mrb[132].mxu1  ;;  %v12062_v48 = vpop.f32.mrb[135].mxu0 }
 0x3a1   : > { %3073 = vrot.lane.b32.xlu0 %v11607_v56, %s10085_s23  ;;  %v12064_v16 = vpop.f32.mrb[133].mxu1 }
 0x3a2   : > { %v12050_v2 = vpop.permute.xlu1 %2075 }
 0x3a3   : > { %15518 = vst [vmem:[#allocation112_spill] sm:$0xff] %v12050_v2  ;;  %v12052_v35 = vpop.permute.xlu0 %2073  ;;  %v12072_v2 = vpop.f32.mrb[134].mxu1 }
 0x3a4   : > { %15519 = vst [vmem:[#allocation113_spill] sm:$0xff] %v12052_v35  ;;  %3051 = vrot.lane.b32.xlu1 %v11617_v46, %s10085_s23  ;;  %v12076_v46 = vpop.f32.mrb[135].mxu1 }
 0x3a5   : > { %3069 = vrot.lane.b32.xlu0 %v11637_v62, %s10085_s23  ;;  %15522 = vst [vmem:[#allocation116_spill] sm:$0xff] %v12076_v46 }
 0x3a6   : > { %v12066_v56 = vpop.permute.xlu1 %2091 }
 0x3a7   : > { %15520 = vst [vmem:[#allocation114_spill] sm:$0xff] %v12066_v56  ;;  %v12068_v28 = vpop.permute.xlu0 %2077 }
 0x3a8   : > { %15521 = vst [vmem:[#allocation115_spill] sm:$0xff] %v12068_v28  ;;  %3059 = vrot.lane.b32.xlu1 %v11619_v24, %s10085_s23  ;;  %v15527_v28 = vld [vmem:[#allocation29_spill] sm:$0xff] }
 0x3a9   : > { %3053 = vrot.lane.b32.xlu0 %v11631_v47, %s10085_s23  ;;  %v12092_v47 = vpop.f32.mrb[136].mxu0 }
 0x3aa   : > { %v12078_v35 = vpop.permute.xlu1 %2083 }
 0x3ab   : > { %15523 = vst [vmem:[#allocation117_spill] sm:$0xff] %v12078_v35  ;;  %v12080_v62 = vpop.permute.xlu0 %2093  ;;  %v12096_v35 = vpop.f32.mrb[137].mxu0 }
 0x3ac   : > { %15524 = vst [vmem:[#allocation118_spill] sm:$0xff] %v12080_v62  ;;  %3075 = vrot.lane.b32.xlu1 %v11623_v52, %s10085_s23  ;;  %15529 = vst [vmem:[#allocation29_spill] sm:$0xff] %v12096_v35 }
 0x3ad   : > { %3061 = vrot.lane.b32.xlu0 %v11635_v50, %s10085_s23  ;;  %v15532_v50 = vld [vmem:[#allocation30_spill] sm:$0xff] }
 0x3ae   : > { %v12086_v56 = vpop.permute.xlu1 %2099 }
 0x3af   : > { %15525 = vst [vmem:[#allocation119_spill] sm:$0xff] %v12086_v56  ;;  %v12088_v24 = vpop.permute.xlu0 %2085  ;;  %v12104_v56 = vpop.f32.mrb[138].mxu0 }
 0x3b0   : > { %15526 = vst [vmem:[#allocation120_spill] sm:$0xff] %v12088_v24  ;;  %3079 = vrot.lane.b32.xlu1 %v15527_v28, %s10085_s23  ;;  %15533 = vst [vmem:[#allocation30_spill] sm:$0xff] %v12104_v56  ;;  %v12106_v24 = vpop.f32.mrb[136].mxu1  ;;  %v12110_v28 = vpop.f32.mrb[139].mxu0 }
 0x3b1   : > { %3077 = vrot.lane.b32.xlu0 %v15528_v63, %s10085_s23  ;;  %15534 = vst [vmem:[#allocation122_spill] sm:$0xff] %v12106_v24  ;;  %15535 = vst [vmem:[#allocation123_spill] sm:$0xff] %v12110_v28  ;;  %v12112_v46 = vpop.f32.mrb[137].mxu1  ;;  %v15542_v28 = vld [vmem:[#allocation34_spill] sm:$0xff] }
 0x3b2   : > { %v12098_v62 = vpop.permute.xlu1 %2079 }
 0x3b3   : > { %15530 = vst [vmem:[#allocation28_spill] sm:$0xff] %v12098_v62  ;;  %v12100_v52 = vpop.permute.xlu0 %2101  ;;  %v15538_v62 = vld [vmem:[#allocation32_spill] sm:$0xff] }
 0x3b4   : > { %15531 = vst [vmem:[#allocation121_spill] sm:$0xff] %v12100_v52  ;;  %3095 = vrot.lane.b32.xlu1 %v15532_v50, %s10085_s23  ;;  %v12120_v52 = vpop.f32.mrb[138].mxu1  ;;  %v15539_v50 = vld [vmem:[#allocation35_spill] sm:$0xff] }
 0x3b5   : > { %3081 = vrot.lane.b32.xlu0 %v11672_v58, %s10085_s23  ;;  %v12124_v56 = vpop.f32.mrb[139].mxu1 }
 0x3b6   : > { %v12114_v63 = vpop.permute.xlu1 %2095 }
 0x3b7   : > { %15536 = vst [vmem:[#allocation124_spill] sm:$0xff] %v12114_v63  ;;  %v12116_v35 = vpop.permute.xlu0 %2081 }
 0x3b8   : > { %15537 = vst [vmem:[#allocation125_spill] sm:$0xff] %v12116_v35  ;;  %3087 = vrot.lane.b32.xlu1 %v15538_v62, %s10085_s23 }
 0x3b9   : > { %3097 = vrot.lane.b32.xlu0 %v15539_v50, %s10085_s23  ;;  %v12140_v50 = vpop.f32.mrb[140].mxu0 }
 0x3ba   : > { %v12126_v24 = vpop.permute.xlu1 %2087 }
 0x3bb   : > { %15540 = vst [vmem:[#allocation32_spill] sm:$0xff] %v12126_v24  ;;  %v12128_v58 = vpop.permute.xlu0 %2097  ;;  %v12144_v24 = vpop.f32.mrb[141].mxu0 }
 0x3bc   : > { %15541 = vst [vmem:[#allocation35_spill] sm:$0xff] %v12128_v58  ;;  %3103 = vrot.lane.b32.xlu1 %v15542_v28, %s10085_s23  ;;  %15545 = vst [vmem:[#allocation127_spill] sm:$0xff] %v12144_v24 }
 0x3bd   : > { %3089 = vrot.lane.b32.xlu0 %v11676_v25, %s10085_s23  ;;  %v12152_v25 = vpop.f32.mrb[142].mxu0 }
 0x3be   : > { %v12134_v63 = vpop.permute.xlu1 %2103 }
 0x3bf   : > { %15543 = vst [vmem:[#allocation34_spill] sm:$0xff] %v12134_v63  ;;  %v12136_v62 = vpop.permute.xlu0 %2089 }
 0x3c0   : > { %15544 = vst [vmem:[#allocation126_spill] sm:$0xff] %v12136_v62  ;;  %3083 = vrot.lane.b32.xlu1 %v11688_v26, %s10085_s23  ;;  %v12154_v62 = vpop.f32.mrb[140].mxu1  ;;  %v12158_v26 = vpop.f32.mrb[143].mxu0 }
 0x3c1   : > { %3105 = vrot.lane.b32.xlu0 %v11678_v31, %s10085_s23  ;;  %15548 = vst [vmem:[#allocation130_spill] sm:$0xff] %v12158_v26  ;;  %v12160_v63 = vpop.f32.mrb[141].mxu1  ;;  %v15555_v26 = vld [vmem:[#allocation39_spill] sm:$0xff] }
 0x3c2   : > { %v12146_v58 = vpop.permute.xlu1 %2545 }
 0x3c3   : > { %15546 = vst [vmem:[#allocation128_spill] sm:$0xff] %v12146_v58  ;;  %v12148_v28 = vpop.permute.xlu0 %2105  ;;  %v12166_v58 = vpop.f32.mrb[142].mxu1 }
 0x3c4   : > { %15547 = vst [vmem:[#allocation129_spill] sm:$0xff] %v12148_v28  ;;  %3099 = vrot.lane.b32.xlu1 %v11690_v54, %s10085_s23  ;;  %15551 = vst [vmem:[#allocation133_spill] sm:$0xff] %v12166_v58  ;;  %v15552_v28 = vld [vmem:[#allocation38_spill] sm:$0xff]  ;;  %v12172_v54 = vpop.f32.mrb[143].mxu1 }
 0x3c5   : > { %3085 = vrot.lane.b32.xlu0 %v11707_v42, %s10085_s23 }
 0x3c6   : > { %v12162_v31 = vpop.permute.xlu1 %2561 }
 0x3c7   : > { %15549 = vst [vmem:[#allocation131_spill] sm:$0xff] %v12162_v31  ;;  %v12164_v35 = vpop.permute.xlu0 %2547  ;;  %v15556_v31 = vld [vmem:[#allocation42_spill] sm:$0xff] }
 0x3c8   : > { %15550 = vst [vmem:[#allocation132_spill] sm:$0xff] %v12164_v35  ;;  %3091 = vrot.lane.b32.xlu1 %v15552_v28, %s10085_s23  ;;  %v15559_v28 = vld [vmem:[#allocation43_spill] sm:$0xff] }
 0x3c9   : > { %3101 = vrot.lane.b32.xlu0 %v11712_v57, %s10085_s23  ;;  %v12188_v57 = vpop.f32.mrb[144].mxu0 }
 0x3ca   : > { %v12174_v24 = vpop.permute.xlu1 %2553 }
 0x3cb   : > { %15553 = vst [vmem:[#allocation38_spill] sm:$0xff] %v12174_v24  ;;  %v12176_v42 = vpop.permute.xlu0 %2563  ;;  %v12192_v24 = vpop.f32.mrb[145].mxu0 }
 0x3cc   : > { %15554 = vst [vmem:[#allocation134_spill] sm:$0xff] %v12176_v42  ;;  %3107 = vrot.lane.b32.xlu1 %v15555_v26, %s10085_s23  ;;  %15560 = vst [vmem:[#allocation43_spill] sm:$0xff] %v12192_v24 }
 0x3cd   : > { %3093 = vrot.lane.b32.xlu0 %v15556_v31, %s10085_s23  ;;  %v12200_v31 = vpop.f32.mrb[146].mxu0 }
 0x3ce   : > { %v12182_v35 = vpop.permute.xlu1 %2569 }
 0x3cf   : > { %15557 = vst [vmem:[#allocation39_spill] sm:$0xff] %v12182_v35  ;;  %v12184_v58 = vpop.permute.xlu0 %2555 }
 0x3d0   : > { %15558 = vst [vmem:[#allocation42_spill] sm:$0xff] %v12184_v58  ;;  %3954 = vrot.lane.b32.xlu1 %v11874_v59, %s10086_s24  ;;  %v12202_v58 = vpop.f32.mrb[144].mxu1  ;;  %v12206_v59 = vpop.f32.mrb[147].mxu0 }
 0x3d1   : > { %3109 = vrot.lane.b32.xlu0 %v15559_v28, %s10085_s23  ;;  %v12208_v35 = vpop.f32.mrb[145].mxu1 }
 0x3d2   : > { %v12194_v42 = vpop.permute.xlu1 %2549 }
 0x3d3   : > { %15561 = vst [vmem:[#allocation135_spill] sm:$0xff] %v12194_v42  ;;  %v12196_v26 = vpop.permute.xlu0 %2571  ;;  %v12214_v42 = vpop.f32.mrb[146].mxu1 }
 0x3d4   : > { %15562 = vst [vmem:[#allocation136_spill] sm:$0xff] %v12196_v26  ;;  %3970 = vrot.lane.b32.xlu1 %v11876_v33, %s10086_s24  ;;  %v12220_v33 = vpop.f32.mrb[147].mxu1 }
 0x3d5   : > { %3956 = vrot.lane.b32.xlu0 %v11890_v29, %s10086_s24 }
 0x3d6   : > { %v12210_v28 = vpop.permute.xlu1 %2565 }
 0x3d7   : > { %15563 = vst [vmem:[#allocation137_spill] sm:$0xff] %v12210_v28  ;;  %v12212_v24 = vpop.permute.xlu0 %2551 }
 0x3d8   : > { %15564 = vst [vmem:[#allocation138_spill] sm:$0xff] %v12212_v24  ;;  %3962 = vrot.lane.b32.xlu1 %v11878_v20, %s10086_s24 }
 0x3d9   : > { %3972 = vrot.lane.b32.xlu0 %v11894_v9, %s10086_s24  ;;  %v12236_v9 = vpop.f32.mrb[148].mxu0 }
 0x3da   : > { %v12222_v26 = vpop.permute.xlu1 %2557  ;;  %v12240_v20 = vpop.f32.mrb[149].mxu0 }
 0x3db   : > { %15565 = vst [vmem:[#allocation139_spill] sm:$0xff] %v12222_v26  ;;  %v12224_v29 = vpop.permute.xlu0 %2567 }
 0x3dc   : > { %15566 = vst [vmem:[#allocation140_spill] sm:$0xff] %v12224_v29  ;;  %3978 = vrot.lane.b32.xlu1 %v11880_v45, %s10086_s24 }
 0x3dd   : > { %3964 = vrot.lane.b32.xlu0 %v11892_v7, %s10086_s24  ;;  %v12248_v7 = vpop.f32.mrb[150].mxu0 }
 0x3de   : > { %v12230_v24 = vpop.permute.xlu1 %2573 }
 0x3df   : > { %15567 = vst [vmem:[#allocation141_spill] sm:$0xff] %v12230_v24  ;;  %v12232_v28 = vpop.permute.xlu0 %2559 }
 0x3e0   : > { %15568 = vst [vmem:[#allocation142_spill] sm:$0xff] %v12232_v28  ;;  %3958 = vrot.lane.b32.xlu1 %v11904_v23, %s10086_s24  ;;  %v12250_v28 = vpop.f32.mrb[148].mxu1  ;;  %v12254_v23 = vpop.f32.mrb[151].mxu0 }
 0x3e1   : > { %3980 = vrot.lane.b32.xlu0 %v11896_v43, %s10086_s24  ;;  %v12256_v24 = vpop.f32.mrb[149].mxu1 }
 0x3e2   : > { %v12242_v29 = vpop.permute.xlu1 %2577 }
 0x3e3   : > { %15569 = vst [vmem:[#allocation143_spill] sm:$0xff] %v12242_v29  ;;  %v12244_v45 = vpop.permute.xlu0 %2575 }
 0x3e4   : > { %15570 = vst [vmem:[#allocation144_spill] sm:$0xff] %v12244_v45  ;;  %3974 = vrot.lane.b32.xlu1 %v11910_v1, %s10086_s24  ;;  %v12264_v45 = vpop.f32.mrb[150].mxu1 }
 0x3e5   : > { %3960 = vrot.lane.b32.xlu0 %v11918_v0, %s10086_s24  ;;  %v12268_v1 = vpop.f32.mrb[151].mxu1 }
 0x3e6   : > { %v12258_v43 = vpop.permute.xlu1 %2593 }
 0x3e7   : > { %15571 = vst [vmem:[#allocation145_spill] sm:$0xff] %v12258_v43  ;;  %v12260_v26 = vpop.permute.xlu0 %2579 }
 0x3e8   : > { %15572 = vst [vmem:[#allocation146_spill] sm:$0xff] %v12260_v26  ;;  %3966 = vrot.lane.b32.xlu1 %v11908_v4, %s10086_s24 }
 0x3e9   : > { %3976 = vrot.lane.b32.xlu0 %v11920_v41, %s10086_s24  ;;  %v12284_v41 = vpop.f32.mrb[152].mxu0 }
 0x3ea   : > { %v12270_v29 = vpop.permute.xlu1 %2585 }
 0x3eb   : > { %15573 = vst [vmem:[#allocation147_spill] sm:$0xff] %v12270_v29  ;;  %v12272_v0 = vpop.permute.xlu0 %2595  ;;  %v12288_v29 = vpop.f32.mrb[153].mxu0 }
 0x3ec   : > { %15574 = vst [vmem:[#allocation148_spill] sm:$0xff] %v12272_v0  ;;  %3982 = vrot.lane.b32.xlu1 %v11914_v5, %s10086_s24 }
 0x3ed   : > { %3968 = vrot.lane.b32.xlu0 %v11924_v22, %s10086_s24  ;;  %v12296_v22 = vpop.f32.mrb[154].mxu0 }
 0x3ee   : > { %v12278_v43 = vpop.permute.xlu1 %2601 }
 0x3ef   : > { %15575 = vst [vmem:[#allocation149_spill] sm:$0xff] %v12278_v43  ;;  %v12280_v4 = vpop.permute.xlu0 %2587 }
 0x3f0   : > { %15576 = vst [vmem:[#allocation150_spill] sm:$0xff] %v12280_v4  ;;  %3986 = vrot.lane.b32.xlu1 %v11934_v13, %s10086_s24  ;;  %v12298_v4 = vpop.f32.mrb[152].mxu1  ;;  %v12302_v13 = vpop.f32.mrb[155].mxu0 }
 0x3f1   : > { %3984 = vrot.lane.b32.xlu0 %v11928_v51, %s10086_s24  ;;  %v12304_v43 = vpop.f32.mrb[153].mxu1 }
 0x3f2   : > { %v12290_v0 = vpop.permute.xlu1 %2581 }
 0x3f3   : > { %15577 = vst [vmem:[#allocation151_spill] sm:$0xff] %v12290_v0  ;;  %v12292_v5 = vpop.permute.xlu0 %2603 }
 0x3f4   : > { %15578 = vst [vmem:[#allocation152_spill] sm:$0xff] %v12292_v5  ;;  %4002 = vrot.lane.b32.xlu1 %v11936_v17, %s10086_s24  ;;  %v12312_v5 = vpop.f32.mrb[154].mxu1 }
 0x3f5   : > { %3988 = vrot.lane.b32.xlu0 %v11950_v40, %s10086_s24  ;;  %v12316_v17 = vpop.f32.mrb[155].mxu1 }
 0x3f6   : > { %v12306_v51 = vpop.permute.xlu1 %2597 }
 0x3f7   : > { %15579 = vst [vmem:[#allocation153_spill] sm:$0xff] %v12306_v51  ;;  %v12308_v26 = vpop.permute.xlu0 %2583 }
 0x3f8   : > { %15580 = vst [vmem:[#allocation154_spill] sm:$0xff] %v12308_v26  ;;  %4010 = vrot.lane.b32.xlu1 %v11944_v39, %s10086_s24 }
 0x3f9   : > { %4004 = vrot.lane.b32.xlu0 %v11952_v53, %s10086_s24  ;;  %v12332_v53 = vpop.f32.mrb[156].mxu0 }
 0x3fa   : > { %v12318_v0 = vpop.permute.xlu1 %2589 }
 0x3fb   : > { %15581 = vst [vmem:[#allocation155_spill] sm:$0xff] %v12318_v0  ;;  %v12320_v40 = vpop.permute.xlu0 %2599  ;;  %v12336_v0 = vpop.f32.mrb[157].mxu0 }
 0x3fc   : > { %15582 = vst [vmem:[#allocation156_spill] sm:$0xff] %v12320_v40  ;;  %3994 = vrot.lane.b32.xlu1 %v11940_v12, %s10086_s24 }
 0x3fd   : > { %4012 = vrot.lane.b32.xlu0 %v11960_v37, %s10086_s24  ;;  %v12344_v37 = vpop.f32.mrb[158].mxu0 }
 0x3fe   : > { %v12326_v51 = vpop.permute.xlu1 %2605 }
 0x3ff   : > { %15583 = vst [vmem:[#allocation157_spill] sm:$0xff] %v12326_v51  ;;  %v12328_v39 = vpop.permute.xlu0 %2591 }
 0x400   : > { %15584 = vst [vmem:[#allocation158_spill] sm:$0xff] %v12328_v39  ;;  %3990 = vrot.lane.b32.xlu1 %v11966_v44, %s10086_s24  ;;  %v12346_v39 = vpop.f32.mrb[156].mxu1  ;;  %v12350_v44 = vpop.f32.mrb[159].mxu0 }
 0x401   : > { %3996 = vrot.lane.b32.xlu0 %v11956_v32, %s10086_s24  ;;  %v12352_v51 = vpop.f32.mrb[157].mxu1 }
 0x402   : > { %v12338_v40 = vpop.permute.xlu1 %3063 }
 0x403   : > { %15585 = vst [vmem:[#allocation159_spill] sm:$0xff] %v12338_v40  ;;  %v12340_v12 = vpop.permute.xlu0 %2607  ;;  %v12358_v40 = vpop.f32.mrb[158].mxu1 }
 0x404   : > { %15586 = vst [vmem:[#allocation160_spill] sm:$0xff] %v12340_v12  ;;  %4006 = vrot.lane.b32.xlu1 %v11968_v14, %s10086_s24  ;;  %v12364_v14 = vpop.f32.mrb[159].mxu1 }
 0x405   : > { %3992 = vrot.lane.b32.xlu0 %v11982_v19, %s10086_s24 }
 0x406   : > { %v12354_v32 = vpop.permute.xlu1 %3047 }
 0x407   : > { %15587 = vst [vmem:[#allocation161_spill] sm:$0xff] %v12354_v32  ;;  %v12356_v26 = vpop.permute.xlu0 %3065 }
 0x408   : > { %15588 = vst [vmem:[#allocation162_spill] sm:$0xff] %v12356_v26  ;;  %4014 = vrot.lane.b32.xlu1 %v11976_v15, %s10086_s24  ;;  %v12380_v15 = vpop.f32.mrb[160].mxu0 }
 0x409   : > { %4008 = vrot.lane.b32.xlu0 %v11984_v21, %s10086_s24  ;;  %v12384_v21 = vpop.f32.mrb[161].mxu0 }
 0x40a   : > { %v12366_v12 = vpop.permute.xlu1 %3055 }
 0x40b   : > { %15589 = vst [vmem:[#allocation163_spill] sm:$0xff] %v12366_v12  ;;  %v12368_v19 = vpop.permute.xlu0 %3049 }
 0x40c   : > { %15590 = vst [vmem:[#allocation164_spill] sm:$0xff] %v12368_v19  ;;  %3998 = vrot.lane.b32.xlu1 %v11972_v18, %s10086_s24 }
 0x40d   : > { %4016 = vrot.lane.b32.xlu0 %v11992_v36, %s10086_s24 }
 0x40e   : > { %v12374_v26 = vpop.permute.xlu1 %3071 }
 0x40f   : > { %15591 = vst [vmem:[#allocation165_spill] sm:$0xff] %v12374_v26  ;;  %v12376_v32 = vpop.permute.xlu0 %3057 }
 0x410   : > { %15592 = vst [vmem:[#allocation166_spill] sm:$0xff] %v12376_v32  ;;  %4456 = vrot.lane.b32.xlu1 %v11998_v11, %s10088_s25  ;;  %v12392_v36 = vpop.f32.mrb[162].mxu0  ;;  %v12394_v32 = vpop.f32.mrb[160].mxu1 }
 0x411   : > { %4000 = vrot.lane.b32.xlu0 %v11988_v10, %s10086_s24  ;;  %v12398_v11 = vpop.f32.mrb[163].mxu0  ;;  %v12400_v26 = vpop.f32.mrb[161].mxu1 }
 0x412   : > { %v12386_v19 = vpop.permute.xlu1 %3067 }
 0x413   : > { %15593 = vst [vmem:[#allocation167_spill] sm:$0xff] %v12386_v19  ;;  %v12388_v18 = vpop.permute.xlu0 %3073  ;;  %v12406_v19 = vpop.f32.mrb[162].mxu1 }
 0x414   : > { %15594 = vst [vmem:[#allocation168_spill] sm:$0xff] %v12388_v18  ;;  %4472 = vrot.lane.b32.xlu1 %v12008_v8, %s10088_s25  ;;  %v12412_v8 = vpop.f32.mrb[163].mxu1 }
 0x415   : > { %4458 = vrot.lane.b32.xlu0 %v12012_v55, %s10088_s25 }
 0x416   : > { %v12402_v10 = vpop.permute.xlu1 %3051 }
 0x417   : > { %15595 = vst [vmem:[#allocation169_spill] sm:$0xff] %v12402_v10  ;;  %v12404_v12 = vpop.permute.xlu0 %3069 }
 0x418   : > { %15596 = vst [vmem:[#allocation170_spill] sm:$0xff] %v12404_v12  ;;  %4464 = vrot.lane.b32.xlu1 %v12002_v49, %s10088_s25 }
 0x419   : > { %4474 = vrot.lane.b32.xlu0 %v12022_v61, %s10088_s25 }
 0x41a   : > { %v12414_v18 = vpop.permute.xlu1 %3059 }
 0x41b   : > { %15597 = vst [vmem:[#allocation171_spill] sm:$0xff] %v12414_v18  ;;  %v12416_v55 = vpop.permute.xlu0 %3053 }
 0x41c   : > { %15598 = vst [vmem:[#allocation172_spill] sm:$0xff] %v12416_v55  ;;  %4480 = vrot.lane.b32.xlu1 %v12014_v3, %s10088_s25  ;;  %v12428_v61 = vpop.f32.mrb[164].mxu0 }
 0x41d   : > { %4466 = vrot.lane.b32.xlu0 %v12018_v6, %s10088_s25  ;;  %v12432_v49 = vpop.f32.mrb[165].mxu0 }
 0x41e   : > { %v12422_v12 = vpop.permute.xlu1 %3075 }
 0x41f   : > { %15599 = vst [vmem:[#allocation173_spill] sm:$0xff] %v12422_v12  ;;  %v12424_v10 = vpop.permute.xlu0 %3061 }
 0x420   : > { %15600 = vst [vmem:[#allocation174_spill] sm:$0xff] %v12424_v10  ;;  %4460 = vrot.lane.b32.xlu1 %v12044_v34, %s10088_s25  ;;  %v12442_v10 = vpop.f32.mrb[164].mxu1 }
 0x421   : > { %4482 = vrot.lane.b32.xlu0 %v12028_v60, %s10088_s25  ;;  %v12440_v6 = vpop.f32.mrb[166].mxu0  ;;  %v12448_v12 = vpop.f32.mrb[165].mxu1 }
 0x422   : > { %v12434_v55 = vpop.permute.xlu1 %3079  ;;  %v12446_v34 = vpop.f32.mrb[167].mxu0 }
 0x423   : > { %15601 = vst [vmem:[#allocation175_spill] sm:$0xff] %v12434_v55  ;;  %v12436_v3 = vpop.permute.xlu0 %3077 }
 0x424   : > { %15602 = vst [vmem:[#allocation176_spill] sm:$0xff] %v12436_v3  ;;  %4476 = vrot.lane.b32.xlu1 %v12058_v38, %s10088_s25  ;;  %v12456_v3 = vpop.f32.mrb[166].mxu1 }
 0x425   : > { %4462 = vrot.lane.b32.xlu0 %v12056_v30, %s10088_s25  ;;  %v12460_v38 = vpop.f32.mrb[167].mxu1 }
 0x426   : > { %v12450_v60 = vpop.permute.xlu1 %3095  ;;  %15605 = vst [vmem:[#allocation179_spill] sm:$0xff] %v12460_v38 }
 0x427   : > { %15603 = vst [vmem:[#allocation177_spill] sm:$0xff] %v12450_v60  ;;  %v12452_v18 = vpop.permute.xlu0 %3081 }
 0x428   : > { %15604 = vst [vmem:[#allocation178_spill] sm:$0xff] %v12452_v18  ;;  %4468 = vrot.lane.b32.xlu1 %v12048_v27, %s10088_s25  ;;  %v15611_v18 = vld [vmem:[#allocation116_spill] sm:$0xff] }
 0x429   : > { %4478 = vrot.lane.b32.xlu0 %v12072_v2, %s10088_s25  ;;  %v12476_v2 = vpop.f32.mrb[168].mxu0 }
 0x42a   : > { %v12462_v55 = vpop.permute.xlu1 %3087  ;;  %15610 = vst [vmem:[#allocation184_spill] sm:$0xff] %v12476_v2 }
 0x42b   : > { %15606 = vst [vmem:[#allocation180_spill] sm:$0xff] %v12462_v55  ;;  %v12464_v30 = vpop.permute.xlu0 %3097  ;;  %v12480_v55 = vpop.f32.mrb[169].mxu0 }
 0x42c   : > { %15607 = vst [vmem:[#allocation181_spill] sm:$0xff] %v12464_v30  ;;  %4484 = vrot.lane.b32.xlu1 %v12064_v16, %s10088_s25  ;;  %15612 = vst [vmem:[#allocation116_spill] sm:$0xff] %v12480_v55 }
 0x42d   : > { %4470 = vrot.lane.b32.xlu0 %v12062_v48, %s10088_s25  ;;  %v15615_v48 = vld [vmem:[#allocation122_spill] sm:$0xff] }
 0x42e   : > { %v12470_v60 = vpop.permute.xlu1 %3103 }
 0x42f   : > { %15608 = vst [vmem:[#allocation182_spill] sm:$0xff] %v12470_v60  ;;  %v12472_v27 = vpop.permute.xlu0 %3089  ;;  %v12488_v60 = vpop.f32.mrb[170].mxu0 }
 0x430   : > { %15609 = vst [vmem:[#allocation183_spill] sm:$0xff] %v12472_v27  ;;  %4488 = vrot.lane.b32.xlu1 %v12092_v47, %s10088_s25  ;;  %v12490_v27 = vpop.f32.mrb[168].mxu1  ;;  %v15616_v47 = vld [vmem:[#allocation30_spill] sm:$0xff]  ;;  %v12494_v38 = vpop.f32.mrb[171].mxu0 }
 0x431   : > { %4486 = vrot.lane.b32.xlu0 %v15611_v18, %s10088_s25  ;;  %15617 = vst [vmem:[#allocation122_spill] sm:$0xff] %v12494_v38  ;;  %v12496_v2 = vpop.f32.mrb[169].mxu1  ;;  %v15623_v38 = vld [vmem:[#allocation29_spill] sm:$0xff] }
 0x432   : > { %v12482_v30 = vpop.permute.xlu1 %3083 }
 0x433   : > { %15613 = vst [vmem:[#allocation185_spill] sm:$0xff] %v12482_v30  ;;  %v12484_v16 = vpop.permute.xlu0 %3105 }
 0x434   : > { %15614 = vst [vmem:[#allocation186_spill] sm:$0xff] %v12484_v16  ;;  %4504 = vrot.lane.b32.xlu1 %v15615_v48, %s10088_s25  ;;  %v12504_v16 = vpop.f32.mrb[170].mxu1 }
 0x435   : > { %4490 = vrot.lane.b32.xlu0 %v15616_v47, %s10088_s25  ;;  %v12508_v48 = vpop.f32.mrb[171].mxu1 }
 0x436   : > { %v12498_v18 = vpop.permute.xlu1 %3099  ;;  %15620 = vst [vmem:[#allocation188_spill] sm:$0xff] %v12508_v48 }
 0x437   : > { %15618 = vst [vmem:[#allocation30_spill] sm:$0xff] %v12498_v18  ;;  %v12500_v55 = vpop.permute.xlu0 %3085 }
 0x438   : > { %15619 = vst [vmem:[#allocation187_spill] sm:$0xff] %v12500_v55  ;;  %4512 = vrot.lane.b32.xlu1 %v12112_v46, %s10088_s25  ;;  %v15626_v55 = vld [vmem:[#allocation123_spill] sm:$0xff] }
 0x439   : > { %4506 = vrot.lane.b32.xlu0 %v12120_v52, %s10088_s25  ;;  %v12524_v52 = vpop.f32.mrb[172].mxu0 }
 0x43a   : > { %v12510_v30 = vpop.permute.xlu1 %3091 }
 0x43b   : > { %15621 = vst [vmem:[#allocation189_spill] sm:$0xff] %v12510_v30  ;;  %v12512_v47 = vpop.permute.xlu0 %3101  ;;  %v12528_v30 = vpop.f32.mrb[173].mxu0 }
 0x43c   : > { %15622 = vst [vmem:[#allocation190_spill] sm:$0xff] %v12512_v47  ;;  %4496 = vrot.lane.b32.xlu1 %v15623_v38, %s10088_s25  ;;  %15627 = vst [vmem:[#allocation123_spill] sm:$0xff] %v12528_v30  ;;  %v12530_v47 = vpop.f32.mrb[172].mxu1 }
 0x43d   : > { %4514 = vrot.lane.b32.xlu0 %v12124_v56, %s10088_s25  ;;  %15628 = vst [vmem:[#allocation192_spill] sm:$0xff] %v12530_v47  ;;  %v12538_v56 = vpop.f32.mrb[174].mxu0 }
 0x43e   : > { %v12518_v18 = vpop.permute.xlu1 %3107 }
 0x43f   : > { %15624 = vst [vmem:[#allocation29_spill] sm:$0xff] %v12518_v18  ;;  %v12520_v46 = vpop.permute.xlu0 %3093 }
 0x440   : > { %15625 = vst [vmem:[#allocation191_spill] sm:$0xff] %v12520_v46  ;;  %4492 = vrot.lane.b32.xlu1 %v12140_v50, %s10088_s25  ;;  %v12540_v46 = vpop.f32.mrb[173].mxu1  ;;  %v12544_v50 = vpop.f32.mrb[175].mxu0 }
 0x441   : > { %4498 = vrot.lane.b32.xlu0 %v15626_v55, %s10088_s25  ;;  %v12546_v55 = vpop.f32.mrb[174].mxu1 }
 0x442   : > { %v12532_v38 = vpop.permute.xlu1 %3954 }
 0x443   : > { %15629 = vst [vmem:[#allocation193_spill] sm:$0xff] %v12532_v38  ;;  %v12534_v48 = vpop.permute.xlu0 %3109  ;;  %v12552_v38 = vpop.f32.mrb[175].mxu1 }
 0x444   : > { %15630 = vst [vmem:[#allocation194_spill] sm:$0xff] %v12534_v48  ;;  %4508 = vrot.lane.b32.xlu1 %v12154_v62, %s10088_s25  ;;  %v15633_v62 = vld [vmem:[#allocation133_spill] sm:$0xff] }
 0x445   : > { %4494 = vrot.lane.b32.xlu0 %v12152_v25, %s10088_s25  ;;  %v15636_v25 = vld [vmem:[#allocation127_spill] sm:$0xff] }
 0x446   : > { %v12548_v18 = vpop.permute.xlu1 %3970 }
 0x447   : > { %15631 = vst [vmem:[#allocation195_spill] sm:$0xff] %v12548_v18  ;;  %v12550_v47 = vpop.permute.xlu0 %3956 }
 0x448   : > { %15632 = vst [vmem:[#allocation196_spill] sm:$0xff] %v12550_v47  ;;  %4516 = vrot.lane.b32.xlu1 %v12160_v63, %s10088_s25  ;;  %v15638_v63 = vld [vmem:[#allocation130_spill] sm:$0xff] }
 0x449   : > { %4510 = vrot.lane.b32.xlu0 %v15633_v62, %s10088_s25 }
 0x44a   : > { %v12558_v48 = vpop.permute.xlu1 %3962 }
 0x44b   : > { %15634 = vst [vmem:[#allocation133_spill] sm:$0xff] %v12558_v48  ;;  %v12560_v30 = vpop.permute.xlu0 %3972 }
 0x44c   : > { %15635 = vst [vmem:[#allocation197_spill] sm:$0xff] %v12560_v30  ;;  %4500 = vrot.lane.b32.xlu1 %v15636_v25, %s10088_s25  ;;  %v15747_v30 = vld [vmem:[#allocation119_spill] sm:$0xff] }
 0x44d   : > { %4518 = vrot.lane.b32.xlu0 %v12172_v54, %s10088_s25 }
 0x44e   : > { %v12566_v18 = vpop.permute.xlu1 %3978 }
 0x44f   : > { %v12568_v47 = vpop.permute.xlu0 %3964 }
 0x450   : > { %15637 = vst [vmem:[#allocation127_spill] sm:$0xff] %v12568_v47  ;;  %4958 = vrot.lane.b32.xlu1 %v12188_v57, %s10089_s26  ;;  %v15643_v47 = vld [vmem:[#allocation43_spill] sm:$0xff] }
 0x451   : > { %4502 = vrot.lane.b32.xlu0 %v15638_v63, %s10088_s25 }
 0x452   : > { %v12574_v62 = vpop.permute.xlu1 %3958 }
 0x453   : > { %15639 = vst [vmem:[#allocation130_spill] sm:$0xff] %v12574_v62  ;;  %v12576_v48 = vpop.permute.xlu0 %3980 }
 0x454   : > { %15640 = vst [vmem:[#allocation198_spill] sm:$0xff] %v12576_v48  ;;  %4974 = vrot.lane.b32.xlu1 %v12202_v58, %s10089_s26 }
 0x455   : > { %4960 = vrot.lane.b32.xlu0 %v12200_v31, %s10089_s26 }
 0x456   : > { %v12582_v54 = vpop.permute.xlu1 %3974 }
 0x457   : > { %15641 = vst [vmem:[#allocation199_spill] sm:$0xff] %v12582_v54  ;;  %v12584_v25 = vpop.permute.xlu0 %3960 }
 0x458   : > { %15642 = vst [vmem:[#allocation200_spill] sm:$0xff] %v12584_v25  ;;  %4966 = vrot.lane.b32.xlu1 %v15643_v47, %s10089_s26 }
 0x459   : > { %4976 = vrot.lane.b32.xlu0 %v12214_v42, %s10089_s26 }
 0x45a   : > { %v12590_v57 = vpop.permute.xlu1 %3966 }
 0x45b   : > { %15644 = vst [vmem:[#allocation43_spill] sm:$0xff] %v12590_v57  ;;  %v12592_v63 = vpop.permute.xlu0 %3976  ;;  %v15734_v57 = vld [vmem:[#allocation104_spill] sm:$0xff] }
 0x45c   : > { %15645 = vst [vmem:[#allocation201_spill] sm:$0xff] %v12592_v63  ;;  %4982 = vrot.lane.b32.xlu1 %v12208_v35, %s10089_s26  ;;  %v15731_v63 = vld [vmem:[#allocation97_spill] sm:$0xff] }
 0x45d   : > { %4968 = vrot.lane.b32.xlu0 %v12206_v59, %s10089_s26 }
 0x45e   : > { %v12598_v58 = vpop.permute.xlu1 %3982 }
 0x45f   : > { %15646 = vst [vmem:[#allocation202_spill] sm:$0xff] %v12598_v58  ;;  %v12600_v31 = vpop.permute.xlu0 %3968 }
 0x460   : > { %15647 = vst [vmem:[#allocation203_spill] sm:$0xff] %v12600_v31  ;;  %4962 = vrot.lane.b32.xlu1 %v12236_v9, %s10089_s26  ;;  %v15729_v31 = vld [vmem:[#allocation93_spill] sm:$0xff] }
 0x461   : > { %4984 = vrot.lane.b32.xlu0 %v12220_v33, %s10089_s26 }
 0x462   : > { %v12606_v42 = vpop.permute.xlu1 %3986 }
 0x463   : > { %15648 = vst [vmem:[#allocation204_spill] sm:$0xff] %v12606_v42  ;;  %v12608_v47 = vpop.permute.xlu0 %3984  ;;  %v15726_v42 = vld [vmem:[#allocation103_spill] sm:$0xff] }
 0x464   : > { %15649 = vst [vmem:[#allocation205_spill] sm:$0xff] %v12608_v47  ;;  %4978 = vrot.lane.b32.xlu1 %v12250_v28, %s10089_s26 }
 0x465   : > { %4964 = vrot.lane.b32.xlu0 %v12248_v7, %s10089_s26 }
 0x466   : > { %v12614_v35 = vpop.permute.xlu1 %4002 }
 0x467   : > { %15650 = vst [vmem:[#allocation206_spill] sm:$0xff] %v12614_v35  ;;  %v12616_v59 = vpop.permute.xlu0 %3988  ;;  %v15722_v35 = vld [vmem:[#allocation96_spill] sm:$0xff] }
 0x468   : > { %15651 = vst [vmem:[#allocation207_spill] sm:$0xff] %v12616_v59  ;;  %4970 = vrot.lane.b32.xlu1 %v12240_v20, %s10089_s26  ;;  %v15725_v59 = vld [vmem:[#allocation101_spill] sm:$0xff] }
 0x469   : > { %4980 = vrot.lane.b32.xlu0 %v12264_v45, %s10089_s26 }
 0x46a   : > { %v12622_v33 = vpop.permute.xlu1 %4010 }
 0x46b   : > { %15652 = vst [vmem:[#allocation208_spill] sm:$0xff] %v12622_v33  ;;  %v12624_v9 = vpop.permute.xlu0 %4004 }
 0x46c   : > { %15653 = vst [vmem:[#allocation209_spill] sm:$0xff] %v12624_v9  ;;  %4986 = vrot.lane.b32.xlu1 %v12256_v24, %s10089_s26  ;;  %v15720_v9 = vld [vmem:[#allocation98_spill] sm:$0xff] }
 0x46d   : > { %4972 = vrot.lane.b32.xlu0 %v12254_v23, %s10089_s26 }
 0x46e   : > { %v12630_v28 = vpop.permute.xlu1 %3994 }
 0x46f   : > { %15654 = vst [vmem:[#allocation210_spill] sm:$0xff] %v12630_v28  ;;  %v12632_v7 = vpop.permute.xlu0 %4012 }
 0x470   : > { %15655 = vst [vmem:[#allocation211_spill] sm:$0xff] %v12632_v7  ;;  %4990 = vrot.lane.b32.xlu1 %v12284_v41, %s10089_s26  ;;  %v15721_v7 = vld [vmem:[#allocation100_spill] sm:$0xff] }
 0x471   : > { %4988 = vrot.lane.b32.xlu0 %v12268_v1, %s10089_s26 }
 0x472   : > { %v12638_v20 = vpop.permute.xlu1 %3990 }
 0x473   : > { %15656 = vst [vmem:[#allocation212_spill] sm:$0xff] %v12638_v20  ;;  %v12640_v45 = vpop.permute.xlu0 %3996  ;;  %v15716_v20 = vld [vmem:[#allocation90_spill] sm:$0xff] }
 0x474   : > { %15657 = vst [vmem:[#allocation213_spill] sm:$0xff] %v12640_v45  ;;  %5006 = vrot.lane.b32.xlu1 %v12298_v4, %s10089_s26 }
 0x475   : > { %4992 = vrot.lane.b32.xlu0 %v12296_v22, %s10089_s26 }
 0x476   : > { %v12646_v24 = vpop.permute.xlu1 %4006 }
 0x477   : > { %15658 = vst [vmem:[#allocation214_spill] sm:$0xff] %v12646_v24  ;;  %v12648_v23 = vpop.permute.xlu0 %3992  ;;  %v15710_v24 = vld [vmem:[#allocation74_spill] sm:$0xff] }
 0x478   : > { %15659 = vst [vmem:[#allocation215_spill] sm:$0xff] %v12648_v23  ;;  %5014 = vrot.lane.b32.xlu1 %v12304_v43, %s10089_s26  ;;  %v15714_v23 = vld [vmem:[#allocation89_spill] sm:$0xff] }
 0x479   : > { %5008 = vrot.lane.b32.xlu0 %v12312_v5, %s10089_s26 }
 0x47a   : > { %v12654_v1 = vpop.permute.xlu1 %4014 }
 0x47b   : > { %15660 = vst [vmem:[#allocation216_spill] sm:$0xff] %v12654_v1  ;;  %v12656_v41 = vpop.permute.xlu0 %4008  ;;  %v15711_v1 = vld [vmem:[#allocation82_spill] sm:$0xff] }
 0x47c   : > { %15661 = vst [vmem:[#allocation217_spill] sm:$0xff] %v12656_v41  ;;  %4998 = vrot.lane.b32.xlu1 %v12288_v29, %s10089_s26  ;;  %v15707_v41 = vld [vmem:[#allocation72_spill] sm:$0xff] }
 0x47d   : > { %5016 = vrot.lane.b32.xlu0 %v12316_v17, %s10089_s26 }
 0x47e   : > { %v12662_v4 = vpop.permute.xlu1 %3998 }
 0x47f   : > { %15662 = vst [vmem:[#allocation218_spill] sm:$0xff] %v12662_v4  ;;  %v12664_v22 = vpop.permute.xlu0 %4016 }
 0x480   : > { %15663 = vst [vmem:[#allocation219_spill] sm:$0xff] %v12664_v22  ;;  %4994 = vrot.lane.b32.xlu1 %v12332_v53, %s10089_s26  ;;  %v15708_v22 = vld [vmem:[#allocation80_spill] sm:$0xff] }
 0x481   : > { %5000 = vrot.lane.b32.xlu0 %v12302_v13, %s10089_s26 }
 0x482   : > { %v12670_v43 = vpop.permute.xlu1 %4456 }
 0x483   : > { %15664 = vst [vmem:[#allocation220_spill] sm:$0xff] %v12670_v43  ;;  %v12672_v5 = vpop.permute.xlu0 %4000  ;;  %v15703_v43 = vld [vmem:[#allocation61_spill] sm:$0xff] }
 0x484   : > { %15665 = vst [vmem:[#allocation221_spill] sm:$0xff] %v12672_v5  ;;  %5010 = vrot.lane.b32.xlu1 %v12346_v39, %s10089_s26 }
 0x485   : > { %4996 = vrot.lane.b32.xlu0 %v12344_v37, %s10089_s26 }
 0x486   : > { %v12678_v29 = vpop.permute.xlu1 %4472 }
 0x487   : > { %15666 = vst [vmem:[#allocation222_spill] sm:$0xff] %v12678_v29  ;;  %v12680_v17 = vpop.permute.xlu0 %4458  ;;  %v15705_v29 = vld [vmem:[#allocation67_spill] sm:$0xff] }
 0x488   : > { %15667 = vst [vmem:[#allocation223_spill] sm:$0xff] %v12680_v17  ;;  %5018 = vrot.lane.b32.xlu1 %v12352_v51, %s10089_s26  ;;  %v15698_v17 = vld [vmem:[#allocation52_spill] sm:$0xff] }
 0x489   : > { %5012 = vrot.lane.b32.xlu0 %v12358_v40, %s10089_s26 }
 0x48a   : > { %v12686_v13 = vpop.permute.xlu1 %4464 }
 0x48b   : > { %15668 = vst [vmem:[#allocation224_spill] sm:$0xff] %v12686_v13  ;;  %v12688_v53 = vpop.permute.xlu0 %4474 }
 0x48c   : > { %15669 = vst [vmem:[#allocation225_spill] sm:$0xff] %v12688_v53  ;;  %5002 = vrot.lane.b32.xlu1 %v12336_v0, %s10089_s26  ;;  %v15701_v53 = vld [vmem:[#allocation41_spill] sm:$0xff] }
 0x48d   : > { %5020 = vrot.lane.b32.xlu0 %v12364_v14, %s10089_s26 }
 0x48e   : > { %v12694_v39 = vpop.permute.xlu1 %4480 }
 0x48f   : > { %15670 = vst [vmem:[#allocation226_spill] sm:$0xff] %v12694_v39  ;;  %v12696_v37 = vpop.permute.xlu0 %4466  ;;  %v15702_v39 = vld [vmem:[#allocation60_spill] sm:$0xff] }
 0x490   : > { %15671 = vst [vmem:[#allocation227_spill] sm:$0xff] %v12696_v37  ;;  %5460 = vrot.lane.b32.xlu1 %v12380_v15, %s10090_s27 }
 0x491   : > { %5004 = vrot.lane.b32.xlu0 %v12350_v44, %s10089_s26 }
 0x492   : > { %v12702_v51 = vpop.permute.xlu1 %4460 }
 0x493   : > { %15672 = vst [vmem:[#allocation228_spill] sm:$0xff] %v12702_v51  ;;  %v12704_v40 = vpop.permute.xlu0 %4482 }
 0x494   : > { %15673 = vst [vmem:[#allocation229_spill] sm:$0xff] %v12704_v40  ;;  %5476 = vrot.lane.b32.xlu1 %v12394_v32, %s10090_s27 }
 0x495   : > { %5462 = vrot.lane.b32.xlu0 %v12392_v36, %s10090_s27 }
 0x496   : > { %v12710_v0 = vpop.permute.xlu1 %4476 }
 0x497   : > { %15674 = vst [vmem:[#allocation230_spill] sm:$0xff] %v12710_v0  ;;  %v12712_v14 = vpop.permute.xlu0 %4462  ;;  %v15695_v0 = vld [vmem:[#allocation40_spill] sm:$0xff] }
 0x498   : > { %15675 = vst [vmem:[#allocation231_spill] sm:$0xff] %v12712_v14  ;;  %5468 = vrot.lane.b32.xlu1 %v12384_v21, %s10090_s27  ;;  %v15682_v14 = vlaneseq }
 0x499   : > { %5478 = vrot.lane.b32.xlu0 %v12406_v19, %s10090_s27 }
 0x49a   : > { %v12718_v44 = vpop.permute.xlu1 %4468 }
 0x49b   : > { %15676 = vst [vmem:[#allocation232_spill] sm:$0xff] %v12718_v44  ;;  %v12720_v15 = vpop.permute.xlu0 %4478  ;;  %v15697_v44 = vld [vmem:[#allocation37_spill] sm:$0xff] }
 0x49c   : > { %15677 = vst [vmem:[#allocation233_spill] sm:$0xff] %v12720_v15  ;;  %5484 = vrot.lane.b32.xlu1 %v12400_v26, %s10090_s27  ;;  %v12739_v15 = vand.u32 127, %v15682_v14 }
 0x49d   : > { %5470 = vrot.lane.b32.xlu0 %v12398_v11, %s10090_s27 }
 0x49e   : > { %v12726_v32 = vpop.permute.xlu1 %4484  ;;  %vm1637_vm10 = vcmp.lt.s32.totalorder %v12739_v15, 111  ;;  %vm2107_vm11 = vcmp.lt.s32.totalorder %v12739_v15, 112  ;;  %vm2609_vm12 = vcmp.lt.s32.totalorder %v12739_v15, 113  ;;  %vm3111_vm13 = vcmp.lt.s32.totalorder %v12739_v15, 127 }
 0x49f   : > { %15678 = vst [vmem:[#allocation234_spill] sm:$0xff] %v12726_v32  ;;  %v12728_v36 = vpop.permute.xlu0 %4470  ;;  %v15694_v32 = vld [vmem:[#allocation36_spill] sm:$0xff]  ;;  %v2128_v28 = vsel %vm2107_vm11, %v15721_v7, %v15720_v9  ;;  %v2129_v47 = vsel %vm2107_vm11, %v15726_v42, %v15725_v59  ;;  %v12961_v58 = vsel %vm1637_vm10, %v15729_v31, %v15731_v63  ;;  %vm4018_vm14 = vcmp.lt.s32.totalorder %v12739_v15, 1 }
 0x4a0   : > { %15679 = vst [vmem:[#allocation235_spill] sm:$0xff] %v12728_v36  ;;  %5464 = vrot.lane.b32.xlu1 %v12428_v61, %s10090_s27  ;;  %v15687_v61 = vld [vmem:[#allocation26_spill] sm:$0xff]  ;;  %v15693_v36 = vld [vmem:[#allocation25_spill] sm:$0xff]  ;;  %v12829_v5 = vsel %vm1637_vm10, %v15694_v32, %v15705_v29  ;;  %vm4520_vm15 = vcmp.lt.s32.totalorder %v12739_v15, 15  ;;  %vm5022_vm0 = vcmp.lt.s32.totalorder %v12739_v15, 16  ;;  %vm5524_vm1 = vcmp.lt.s32.totalorder %v12739_v15, 17 }
 0x4a1   : > { %5486 = vrot.lane.b32.xlu0 %v12412_v8, %s10090_s27 }
 0x4a2   : > { %v12734_v19 = vpop.permute.xlu1 %4488 }
 0x4a3   : > { %15680 = vst [vmem:[#allocation236_spill] sm:$0xff] %v12734_v19  ;;  %v12736_v21 = vpop.permute.xlu0 %4486  ;;  %v15692_v19 = vld [vmem:[#allocation33_spill] sm:$0xff] }
 0x4a4   : > { %15681 = vst [vmem:[#allocation237_spill] sm:$0xff] %v12736_v21  ;;  %5480 = vrot.lane.b32.xlu1 %v12442_v10, %s10090_s27  ;;  %v15686_v10 = vld [vmem:[#allocation24_spill] sm:$0xff] }
 0x4a5   : > { %5466 = vrot.lane.b32.xlu0 %v12440_v6, %s10090_s27  ;;  %v1658_v6 = vsel %vm1637_vm10, %v15687_v61, %v15686_v10 }
 0x4a6   : > { %v12745_v26 = vpop.permute.xlu1 %4504  ;;  %v12977_v62 = vadd.f32 %v2128_v28, %v1658_v6  ;;  %v15737_v6 = vld [vmem:[#allocation110_spill] sm:$0xff] }
 0x4a7   : > { %15683 = vst [vmem:[#allocation238_spill] sm:$0xff] %v12745_v26  ;;  %v12747_v11 = vpop.permute.xlu0 %4490  ;;  %v15689_v26 = vld [vmem:[#allocation23_spill] sm:$0xff] }
 0x4a8   : > { %15684 = vst [vmem:[#allocation239_spill] sm:$0xff] %v12747_v11  ;;  %5472 = vrot.lane.b32.xlu1 %v12432_v49, %s10090_s27  ;;  %v1662_v11 = vsel %vm1637_vm10, %v15689_v26, %v15687_v61  ;;  %v15690_v49 = vld [vmem:[#allocation31_spill] sm:$0xff]  ;;  %v12855_v4 = vsel %vm1637_vm10, %v15708_v22, %v15689_v26 }
 0x4a9   : > { %5482 = vrot.lane.b32.xlu0 %v12456_v3, %s10090_s27  ;;  %v1654_v3 = vsel %vm1637_vm10, %v15686_v10, %v15690_v49  ;;  %v15696_v10 = vld [vmem:[#allocation44_spill] sm:$0xff] }
 0x4aa   : > { %v12754_v8 = vpop.permute.xlu1 %4512  ;;  %v1660_v51 = vsel %vm1637_vm10, %v15696_v10, %v15695_v0  ;;  %v1664_v40 = vsel %vm1637_vm10, %v15697_v44, %v15696_v10 }
 0x4ab   : > { %15685 = vst [vmem:[#allocation240_spill] sm:$0xff] %v12754_v8  ;;  %v12761_v14 = vpop.permute.xlu0 %4506  ;;  %v15691_v8 = vld [vmem:[#allocation27_spill] sm:$0xff] }
 0x4ac   : > { %15688 = vst [vmem:[#allocation24_spill] sm:$0xff] %v12761_v14  ;;  %v1659_v21 = vsel %vm1637_vm10, %v15692_v19, %v15691_v8  ;;  %v1663_v14 = vsel %vm1637_vm10, %v15693_v36, %v15692_v19  ;;  %5488 = vrot.lane.b32.xlu1 %v12448_v12, %s10090_s27  ;;  %v1655_v61 = vsel %vm1637_vm10, %v15691_v8, %v15694_v32  ;;  %v15699_v19 = vld [vmem:[#allocation46_spill] sm:$0xff] }
 0x4ad   : > { %v12797_v12 = vsel %vm1637_vm10, %v15695_v0, %v15698_v17  ;;  %5474 = vrot.lane.b32.xlu0 %v12446_v34, %s10090_s27  ;;  %v15700_v8 = vld [vmem:[#allocation54_spill] sm:$0xff]  ;;  %v12815_v0 = vsel %vm1637_vm10, %v15699_v19, %v15702_v39  ;;  %v12821_v34 = vsel %vm1637_vm10, %v15690_v49, %v15703_v43  ;;  %v12841_v49 = vsel %vm1637_vm10, %v15703_v43, %v15707_v41 }
 0x4ae   : > { %v12805_v37 = vsel %vm1637_vm10, %v15700_v8, %v15699_v19  ;;  %v1665_v10 = vsel %vm1637_vm10, %v15701_v53, %v15700_v8  ;;  %v12823_v13 = vpop.permute.xlu1 %4496  ;;  %v15706_v8 = vld [vmem:[#allocation66_spill] sm:$0xff]  ;;  %v12867_v43 = vsel %vm1637_vm10, %v15705_v29, %v15711_v1  ;;  %v15715_v29 = vld [vmem:[#allocation91_spill] sm:$0xff]  ;;  %v12989_v48 = vadd.f32 %v2129_v47, %v1659_v21 }
 0x4af   : > { %15704 = vst [vmem:[#allocation26_spill] sm:$0xff] %v12823_v13  ;;  %v12835_v19 = vsel %vm1637_vm10, %v15707_v41, %v15706_v8  ;;  %v12847_v13 = vsel %vm1637_vm10, %v15706_v8, %v15708_v22  ;;  %v12849_v32 = vpop.permute.xlu0 %4514  ;;  %v12861_v41 = vsel %vm1637_vm10, %v15711_v1, %v15710_v24  ;;  %v15712_v8 = vld [vmem:[#allocation88_spill] sm:$0xff]  ;;  %v12887_v1 = vsel %vm1637_vm10, %v15698_v17, %v15714_v23 }
 0x4b0   : > { %15709 = vst [vmem:[#allocation23_spill] sm:$0xff] %v12849_v32  ;;  %v12873_v32 = vsel %vm1637_vm10, %v15710_v24, %v15712_v8  ;;  %v15713_v22 = vld [vmem:[#allocation184_spill] sm:$0xff]  ;;  %v12881_v26 = vsel %vm1637_vm10, %v15712_v8, %v15693_v36  ;;  %v12893_v24 = vsel %vm1637_vm10, %v15702_v39, %v15715_v29  ;;  %v15718_v36 = vld [vmem:[#allocation179_spill] sm:$0xff]  ;;  %v15719_v8 = vld [vmem:[#allocation94_spill] sm:$0xff] }
 0x4b1   : > { %5492 = vrot.lane.b32.xlu1 %v15713_v22, %s10090_s27  ;;  %v15717_v22 = vld [vmem:[#allocation92_spill] sm:$0xff]  ;;  %5490 = vrot.lane.b32.xlu0 %v15718_v36, %s10090_s27  ;;  %v12913_v39 = vsel %vm1637_vm10, %v15716_v20, %v15719_v8  ;;  %v2132_v36 = vsel %vm2107_vm11, %v15722_v35, %v15721_v7  ;;  %v15727_v7 = vld [vmem:[#allocation99_spill] sm:$0xff] }
 0x4b2   : > { %v12899_v45 = vsel %vm1637_vm10, %v15717_v22, %v15716_v20  ;;  %v12907_v17 = vsel %vm1637_vm10, %v15714_v23, %v15717_v22  ;;  %v12923_v33 = vpop.permute.xlu1 %4492  ;;  %v12929_v23 = vsel %vm1637_vm10, %v15719_v8, %v15697_v44  ;;  %v15724_v20 = vld [vmem:[#allocation102_spill] sm:$0xff]  ;;  %v15730_v44 = vld [vmem:[#allocation95_spill] sm:$0xff] }
 0x4b3   : > { %15723 = vst [vmem:[#allocation31_spill] sm:$0xff] %v12923_v33  ;;  %v2124_v22 = vsel %vm2107_vm11, %v15720_v9, %v15724_v20  ;;  %v2133_v33 = vsel %vm2107_vm11, %v15727_v7, %v15726_v42  ;;  %v12943_v25 = vpop.permute.xlu0 %4498  ;;  %v12949_v8 = vsel %vm1637_vm10, %v15730_v44, %v15729_v31  ;;  %v12955_v9 = vsel %vm1637_vm10, %v15715_v29, %v15730_v44  ;;  %v15732_v42 = vld [vmem:[#allocation105_spill] sm:$0xff]  ;;  %v15733_v31 = vld [vmem:[#allocation108_spill] sm:$0xff] }
 0x4b4   : > { %15728 = vst [vmem:[#allocation27_spill] sm:$0xff] %v12943_v25  ;;  %v2125_v25 = vsel %vm2107_vm11, %v15725_v59, %v15732_v42  ;;  %v12973_v29 = vsel %vm1637_vm10, %v15731_v63, %v15701_v53  ;;  %v12975_v44 = vadd.f32 %v2132_v36, %v1662_v11  ;;  %v2134_v54 = vsel %vm2107_vm11, %v15734_v57, %v15733_v31  ;;  %v15735_v63 = vld [vmem:[#allocation106_spill] sm:$0xff]  ;;  %v15739_v36 = vld [vmem:[#allocation111_spill] sm:$0xff] }
 0x4b5   : > { %5508 = vrot.lane.b32.xlu1 %v12490_v27, %s10090_s27  ;;  %5494 = vrot.lane.b32.xlu0 %v12488_v60, %s10090_s27  ;;  %v12985_v59 = vadd.f32 %v2124_v22, %v1654_v3  ;;  %v12987_v27 = vadd.f32 %v2133_v33, %v1663_v14  ;;  %v2130_v28 = vsel %vm2107_vm11, %v15733_v31, %v15735_v63  ;;  %v15738_v3 = vld [vmem:[#allocation109_spill] sm:$0xff]  ;;  %v15740_v33 = vld [vmem:[#allocation107_spill] sm:$0xff]  ;;  %v15743_v31 = vld [vmem:[#allocation112_spill] sm:$0xff] }
 0x4b6   : > { %v12995_v53 = vpop.permute.xlu1 %4508  ;;  %v12997_v11 = vadd.f32 %v2125_v25, %v1655_v61  ;;  %v2126_v60 = vsel %vm2107_vm11, %v15735_v63, %v15737_v6  ;;  %v2131_v47 = vsel %vm2107_vm11, %v15739_v36, %v15738_v3  ;;  %v2135_v21 = vsel %vm2107_vm11, %v15740_v33, %v15739_v36  ;;  %v15742_v61 = vld [vmem:[#allocation113_spill] sm:$0xff] }
 0x4b7   : > { %15736 = vst [vmem:[#allocation33_spill] sm:$0xff] %v12995_v53  ;;  %v13011_v14 = vpop.permute.xlu0 %4494  ;;  %v13014_v25 = vadd.f32 %v2134_v54, %v1664_v40  ;;  %v2127_v22 = vsel %vm2107_vm11, %v15738_v3, %v15742_v61  ;;  %v2120_v63 = vsel %vm2107_vm11, %v15724_v20, %v15743_v31  ;;  %v15744_v53 = vld [vmem:[#allocation115_spill] sm:$0xff]  ;;  %v13030_v54 = vadd.f32 %v2130_v28, %v1660_v51  ;;  %v15745_v40 = vld [vmem:[#allocation114_spill] sm:$0xff] }
 0x4b8   : > { %15741 = vst [vmem:[#allocation25_spill] sm:$0xff] %v13011_v14  ;;  %v2121_v36 = vsel %vm2107_vm11, %v15732_v42, %v15744_v53  ;;  %v15746_v14 = vld [vmem:[#allocation117_spill] sm:$0xff]  ;;  %v2108_v42 = vsel %vm2107_vm11, %v15745_v40, %v15747_v30  ;;  %v13049_v51 = vadd.f32 %v2135_v21, %v1665_v10  ;;  %v13052_v28 = vadd.f32 %v2131_v47, %v12805_v37  ;;  %v15748_v10 = vld [vmem:[#allocation120_spill] sm:$0xff] }
 0x4b9   : > { %5516 = vrot.lane.b32.xlu1 %v12496_v2, %s10090_s27  ;;  %v2112_v3 = vsel %vm2107_vm11, %v15746_v14, %v15745_v40  ;;  %v2116_v20 = vsel %vm2107_vm11, %v15743_v31, %v15746_v14  ;;  %5510 = vrot.lane.b32.xlu0 %v12504_v16, %s10090_s27  ;;  %v13047_v2 = vadd.f32 %v2126_v60, %v12797_v12  ;;  %v15751_v47 = vld [vmem:[#allocation116_spill] sm:$0xff]  ;;  %v15752_v21 = vld [vmem:[#allocation121_spill] sm:$0xff] }
 0x4ba   : > { %v2136_v14 = vsel %vm2107_vm11, %v15747_v30, %v15722_v35  ;;  %v13058_v31 = vpop.permute.xlu1 %4516  ;;  %v13061_v40 = vadd.f32 %v2127_v22, %v12815_v0  ;;  %v13064_v16 = vadd.f32 %v2120_v63, %v12821_v34  ;;  %v13067_v12 = vadd.f32 %v2121_v36, %v12829_v5  ;;  %v15750_v34 = vld [vmem:[#allocation118_spill] sm:$0xff]  ;;  %v15754_v63 = vld [vmem:[#allocation188_spill] sm:$0xff]  ;;  %v15755_v36 = vld [vmem:[#allocation125_spill] sm:$0xff] }
 0x4bb   : > { %v2117_v37 = vsel %vm2107_vm11, %v15744_v53, %v15748_v10  ;;  %v13073_v60 = vpop.permute.xlu0 %4510  ;;  %v13076_v30 = vadd.f32 %v2116_v20, %v12841_v49  ;;  %v13079_v35 = vadd.f32 %v2112_v3, %v12835_v19  ;;  %v13082_v0 = vadd.f32 %v2108_v42, %v12847_v13  ;;  %v15753_v49 = vld [vmem:[#allocation28_spill] sm:$0xff] }
 0x4bc   : > { %15749 = vst [vmem:[#allocation36_spill] sm:$0xff] %v13073_v60  ;;  %v2113_v5 = vsel %vm2107_vm11, %v15748_v10, %v15750_v34  ;;  %v13091_v53 = vadd.f32 %v2136_v14, %v12855_v4  ;;  %v2109_v19 = vsel %vm2107_vm11, %v15750_v34, %v15752_v21  ;;  %v2137_v13 = vsel %vm2107_vm11, %v15752_v21, %v15727_v7  ;;  %v15756_v20 = vld [vmem:[#allocation124_spill] sm:$0xff]  ;;  %v15759_v10 = vld [vmem:[#allocation34_spill] sm:$0xff] }
 0x4bd   : > { %5500 = vrot.lane.b32.xlu1 %v15751_v47, %s10090_s27  ;;  %v2122_v22 = vsel %vm2107_vm11, %v15737_v6, %v15753_v49  ;;  %5518 = vrot.lane.b32.xlu0 %v15754_v63, %s10090_s27  ;;  %v13108_v4 = vadd.f32 %v2117_v37, %v12867_v43  ;;  %v2123_v3 = vsel %vm2107_vm11, %v15742_v61, %v15755_v36  ;;  %v15757_v42 = vld [vmem:[#allocation32_spill] sm:$0xff]  ;;  %v15760_v34 = vld [vmem:[#allocation126_spill] sm:$0xff]  ;;  %v15762_v63 = vld [vmem:[#allocation35_spill] sm:$0xff] }
 0x4be   : > { %v2114_v7 = vsel %vm2107_vm11, %v15757_v42, %v15756_v20  ;;  %v2118_v6 = vsel %vm2107_vm11, %v15753_v49, %v15757_v42  ;;  %v13122_v14 = vpop.permute.xlu1 %4500  ;;  %v13125_v43 = vadd.f32 %v2113_v5, %v12861_v41  ;;  %v2110_v61 = vsel %vm2107_vm11, %v15756_v20, %v15759_v10  ;;  %v15765_v20 = vld [vmem:[#allocation131_spill] sm:$0xff]  ;;  %v15766_v42 = vld [vmem:[#allocation38_spill] sm:$0xff] }
 0x4bf   : > { %15758 = vst [vmem:[#allocation40_spill] sm:$0xff] %v13122_v14  ;;  %v2138_v37 = vsel %vm2107_vm11, %v15759_v10, %v15734_v57  ;;  %v2119_v47 = vsel %vm2107_vm11, %v15755_v36, %v15760_v34  ;;  %v13139_v21 = vpop.permute.xlu0 %4518  ;;  %v13142_v41 = vadd.f32 %v2109_v19, %v12873_v32  ;;  %v13145_v5 = vadd.f32 %v2137_v13, %v12881_v26  ;;  %v15763_v19 = vld [vmem:[#allocation129_spill] sm:$0xff]  ;;  %v15764_v13 = vld [vmem:[#allocation122_spill] sm:$0xff] }
 0x4c0   : > { %15761 = vst [vmem:[#allocation44_spill] sm:$0xff] %v13139_v21  ;;  %v13148_v49 = vadd.f32 %v2122_v22, %v12887_v1  ;;  %v2115_v57 = vsel %vm2107_vm11, %v15760_v34, %v15762_v63  ;;  %v13157_v36 = vadd.f32 %v2123_v3, %v12893_v24  ;;  %v13160_v32 = vadd.f32 %v2118_v6, %v12907_v17  ;;  %v15770_v10 = vld [vmem:[#allocation134_spill] sm:$0xff]  ;;  %v15772_v34 = vld [vmem:[#allocation132_spill] sm:$0xff] }
 0x4c1   : > { %5496 = vrot.lane.b32.xlu1 %v12524_v52, %s10090_s27  ;;  %v13163_v26 = vadd.f32 %v2114_v7, %v12899_v45  ;;  %v2111_v1 = vsel %vm2107_vm11, %v15762_v63, %v15763_v19  ;;  %5502 = vrot.lane.b32.xlu0 %v15764_v13, %s10090_s27  ;;  %v13172_v22 = vadd.f32 %v2110_v61, %v12913_v39  ;;  %v15768_v7 = vld [vmem:[#allocation39_spill] sm:$0xff]  ;;  %v15771_v61 = vld [vmem:[#allocation42_spill] sm:$0xff]  ;;  %v15773_v63 = vld [vmem:[#allocation136_spill] sm:$0xff] }
 0x4c2   : > { %v13175_v52 = vadd.f32 %v2138_v37, %v12929_v23  ;;  %v13178_v24 = vadd.f32 %v2119_v47, %v12955_v9  ;;  %v2139_v45 = vsel %vm2107_vm11, %v15763_v19, %v15740_v33  ;;  %v13184_v17 = vpop.permute.xlu1 %4958  ;;  %v13187_v3 = vadd.f32 %v2115_v57, %v12949_v8  ;;  %v15767_v23 = vld [vmem:[#allocation128_spill] sm:$0xff]  ;;  %v15774_v19 = vld [vmem:[#allocation137_spill] sm:$0xff]  ;;  %v15779_v60 = vld [vmem:[#allocation138_spill] sm:$0xff] }
 0x4c3   : > { %v2630_v39 = vsel %vm2609_vm12, %v15766_v42, %v15765_v20  ;;  %v2634_v9 = vsel %vm2609_vm12, %v15767_v23, %v15766_v42  ;;  %v2626_v33 = vsel %vm2609_vm12, %v15765_v20, %v15768_v7  ;;  %v13201_v6 = vpop.permute.xlu0 %4502  ;;  %v13205_v8 = vadd.f32 %v2111_v1, %v12961_v58  ;;  %v15775_v1 = vld [vmem:[#allocation139_spill] sm:$0xff]  ;;  %v15826_v14 = vld [vmem:[#allocation178_spill] sm:$0xff] }
 0x4c4   : > { %15769 = vst [vmem:[#allocation37_spill] sm:$0xff] %v13201_v6  ;;  %v2631_v37 = vsel %vm2609_vm12, %v15771_v61, %v15770_v10  ;;  %v2635_v47 = vsel %vm2609_vm12, %v15772_v34, %v15771_v61  ;;  %v2627_v57 = vsel %vm2609_vm12, %v15770_v10, %v15773_v63  ;;  %v13222_v58 = vadd.f32 %v2139_v45, %v12973_v29  ;;  %v15776_v20 = vld [vmem:[#allocation135_spill] sm:$0xff]  ;;  %v15777_v61 = vld [vmem:[#allocation141_spill] sm:$0xff]  ;;  %v15778_v6 = vld [vmem:[#allocation142_spill] sm:$0xff] }
 0x4c5   : > { %5520 = vrot.lane.b32.xlu1 %v12540_v46, %s10090_s27  ;;  %v2632_v13 = vsel %vm2609_vm12, %v15775_v1, %v15774_v19  ;;  %v2636_v42 = vsel %vm2609_vm12, %v15776_v20, %v15775_v1  ;;  %v2628_v10 = vsel %vm2609_vm12, %v15774_v19, %v15777_v61  ;;  %5498 = vrot.lane.b32.xlu0 %v12538_v56, %s10090_s27 }
 0x4c6   : > { %v13239_v46 = vadd.f32 %v2634_v9, %v12975_v44  ;;  %v13242_v29 = vadd.f32 %v2630_v39, %v12977_v62  ;;  %v13245_v45 = vadd.f32 %v2626_v33, %v12985_v59  ;;  %v2637_v1 = vsel %vm2609_vm12, %v15779_v60, %v15778_v6  ;;  %v13251_v21 = vpop.permute.xlu1 %4974  ;;  %v15780_v62 = vld [vmem:[#allocation140_spill] sm:$0xff] }
 0x4c7   : > { %v13254_v19 = vadd.f32 %v2635_v47, %v12987_v27  ;;  %v13257_v56 = vadd.f32 %v2631_v37, %v12989_v48  ;;  %v13260_v44 = vadd.f32 %v2627_v57, %v12997_v11  ;;  %v2633_v59 = vsel %vm2609_vm12, %v15778_v6, %v15780_v62  ;;  %v13266_v39 = vpop.permute.xlu0 %4960  ;;  %v15782_v48 = vld [vmem:[#allocation143_spill] sm:$0xff]  ;;  %v15784_v47 = vld [vmem:[#allocation144_spill] sm:$0xff] }
 0x4c8   : > { %15781 = vst [vmem:[#allocation52_spill] sm:$0xff] %v13266_v39  ;;  %v13269_v9 = vadd.f32 %v2636_v42, %v13014_v25  ;;  %v13272_v33 = vadd.f32 %v2632_v13, %v13030_v54  ;;  %v13275_v27 = vadd.f32 %v2628_v10, %v13047_v2  ;;  %v2622_v11 = vsel %vm2609_vm12, %v15768_v7, %v15782_v48  ;;  %v15783_v37 = vld [vmem:[#allocation123_spill] sm:$0xff]  ;;  %v15785_v54 = vld [vmem:[#allocation146_spill] sm:$0xff]  ;;  %v15787_v13 = vld [vmem:[#allocation145_spill] sm:$0xff] }
 0x4c9   : > { %5504 = vrot.lane.b32.xlu1 %v15783_v37, %s10090_s27  ;;  %v13284_v6 = vadd.f32 %v2637_v1, %v13049_v51  ;;  %v2629_v25 = vsel %vm2609_vm12, %v15780_v62, %v15784_v47  ;;  %v2623_v2 = vsel %vm2609_vm12, %v15773_v63, %v15785_v54  ;;  %v15786_v57 = vld [vmem:[#allocation147_spill] sm:$0xff]  ;;  %5522 = vrot.lane.b32.xlu0 %v12552_v38, %s10090_s27  ;;  %v15788_v10 = vld [vmem:[#allocation149_spill] sm:$0xff]  ;;  %v15793_v39 = vld [vmem:[#allocation152_spill] sm:$0xff] }
 0x4ca   : > { %v2618_v7 = vsel %vm2609_vm12, %v15782_v48, %v15786_v57  ;;  %v13301_v51 = vadd.f32 %v2633_v59, %v13052_v28  ;;  %v2614_v42 = vsel %vm2609_vm12, %v15786_v57, %v15787_v13  ;;  %v2610_v63 = vsel %vm2609_vm12, %v15787_v13, %v15788_v10  ;;  %v13315_v62 = vpop.permute.xlu1 %4966  ;;  %v15789_v28 = vld [vmem:[#allocation148_spill] sm:$0xff]  ;;  %v15790_v59 = vld [vmem:[#allocation150_spill] sm:$0xff]  ;;  %v15791_v57 = vld [vmem:[#allocation151_spill] sm:$0xff] }
 0x4cb   : > { %v2638_v1 = vsel %vm2609_vm12, %v15788_v10, %v15767_v23  ;;  %v13318_v38 = vadd.f32 %v2622_v11, %v13064_v16  ;;  %v2615_v48 = vsel %vm2609_vm12, %v15790_v59, %v15789_v28  ;;  %v2619_v37 = vsel %vm2609_vm12, %v15785_v54, %v15790_v59  ;;  %v13332_v13 = vpop.permute.xlu0 %4976  ;;  %v15794_v59 = vld [vmem:[#allocation192_spill] sm:$0xff] }
 0x4cc   : > { %v2624_v23 = vsel %vm2609_vm12, %v15777_v61, %v15791_v57  ;;  %15792 = vst [vmem:[#allocation46_spill] sm:$0xff] %v13332_v13  ;;  %v13335_v16 = vadd.f32 %v2629_v25, %v13061_v40  ;;  %v13338_v11 = vadd.f32 %v2623_v2, %v13067_v12  ;;  %v13341_v10 = vadd.f32 %v2618_v7, %v13076_v30  ;;  %v8609_v25 = vld [vmem:[#allocation3] sm:$0x1] }
 0x4cd   : > { %v2611_v54 = vsel %vm2609_vm12, %v15789_v28, %v15793_v39  ;;  %5512 = vrot.lane.b32.xlu1 %v15794_v59, %s10090_s27  ;;  %v13350_v61 = vadd.f32 %v2614_v42, %v13079_v35  ;;  %v13353_v40 = vadd.f32 %v2610_v63, %v13082_v0  ;;  %v13356_v12 = vadd.f32 %v2638_v1, %v13091_v53  ;;  %v15795_v53 = vld [vmem:[#allocation154_spill] sm:$0xff]  ;;  %v15800_v63 = vld [vmem:[#allocation163_spill] sm:$0xff]  ;;  %v15802_v28 = vld [vmem:[#allocation157_spill] sm:$0xff] }
 0x4ce   : > { %v2639_v30 = vsel %vm2609_vm12, %v15793_v39, %v15772_v34  ;;  %5506 = vrot.lane.b32.xlu0 %v12544_v50, %s10090_s27  ;;  %v13365_v2 = vadd.f32 %v2619_v37, %v13108_v4  ;;  %v13368_v35 = vadd.f32 %v2615_v48, %v13125_v43  ;;  %v13371_v0 = vadd.f32 %v2624_v23, %v13148_v49  ;;  %v13377_v42 = vpop.permute.xlu1 %4982  ;;  %v15797_v50 = vld [vmem:[#allocation153_spill] sm:$0xff]  ;;  %v15798_v39 = vld [vmem:[#allocation155_spill] sm:$0xff] }
 0x4cf   : > { %v2625_v7 = vsel %vm2609_vm12, %v15784_v47, %v15795_v53  ;;  %15796 = vst [vmem:[#allocation54_spill] sm:$0xff] %v13377_v42  ;;  %v13380_v34 = vadd.f32 %v2611_v54, %v13142_v41  ;;  %v2616_v4 = vsel %vm2609_vm12, %v15798_v39, %v15797_v50  ;;  %v2620_v43 = vsel %vm2609_vm12, %v15791_v57, %v15798_v39  ;;  %v15799_v49 = vld [vmem:[#allocation159_spill] sm:$0xff]  ;;  %v13394_v1 = vpop.permute.xlu0 %4968  ;;  %v15803_v57 = vld [vmem:[#allocation158_spill] sm:$0xff] }
 0x4d0   : > { %v3132_v47 = vsel %vm3111_vm13, %v15800_v63, %v15799_v49  ;;  %15801 = vst [vmem:[#allocation41_spill] sm:$0xff] %v13394_v1  ;;  %v13397_v41 = vadd.f32 %v2639_v30, %v13145_v5  ;;  %v2612_v48 = vsel %vm2609_vm12, %v15797_v50, %v15802_v28  ;;  %v2640_v37 = vsel %vm2609_vm12, %v15802_v28, %v15776_v20  ;;  %v15804_v5 = vld [vmem:[#allocation156_spill] sm:$0xff]  ;;  %v15823_v1 = vld [vmem:[#allocation175_spill] sm:$0xff] }
 0x4d1   : > { %v2621_v23 = vsel %vm2609_vm12, %v15795_v53, %v15803_v57  ;;  %8612 = vperm.xlu1 %10005, %v8609_v25   ;;  %v13412_v54 = vadd.f32 %v2625_v7, %v13157_v36  ;;  %v2617_v59 = vsel %vm2609_vm12, %v15803_v57, %v15804_v5  ;;  %v15805_v30 = vld [vmem:[#allocation160_spill] sm:$0xff]  ;;  %v13429_v36 = vadd.f32 %v2620_v43, %v13160_v32  ;;  %v15806_v53 = vld [vmem:[#allocation161_spill] sm:$0xff]  ;;  %v15814_v57 = vld [vmem:[#allocation171_spill] sm:$0xff] }
 0x4d2   : > { %v2613_v50 = vsel %vm2609_vm12, %v15804_v5, %v15805_v30  ;;  %v2641_v20 = vsel %vm2609_vm12, %v15805_v30, %v15779_v60  ;;  %5514 = vrot.lane.b32.xlu0 %v12546_v55, %s10090_s27  ;;  %v13432_v25 = vadd.f32 %v2616_v4, %v13163_v26  ;;  %v3136_v7 = vsel %vm3111_vm13, %v15806_v53, %v15800_v63  ;;  %v13439_v28 = vpop.permute.xlu1 %4962  ;;  %v15808_v26 = vld [vmem:[#allocation165_spill] sm:$0xff] }
 0x4d3   : > { %v3145_v39 = vadd.f32 %v3132_v47, %v13242_v29  ;;  %15807 = vst [vmem:[#allocation60_spill] sm:$0xff] %v13439_v28  ;;  %v13442_v60 = vadd.f32 %v2612_v48, %v13172_v22  ;;  %v13445_v55 = vadd.f32 %v2640_v37, %v13175_v52  ;;  %v13448_v32 = vadd.f32 %v2621_v23, %v13178_v24  ;;  %v13454_v43 = vpop.permute.xlu0 %4984  ;;  %v15810_v52 = vld [vmem:[#allocation162_spill] sm:$0xff]  ;;  %v15817_v30 = vld [vmem:[#allocation173_spill] sm:$0xff] }
 0x4d4   : > { %v3128_v4 = vsel %vm3111_vm13, %v15799_v49, %v15808_v26  ;;  %15809 = vst [vmem:[#allocation61_spill] sm:$0xff] %v13454_v43  ;;  %v13457_v29 = vadd.f32 %v2617_v59, %v13187_v3  ;;  %v13460_v63 = vadd.f32 %v2613_v50, %v13205_v8  ;;  %v13463_v22 = vadd.f32 %v2641_v20, %v13222_v58  ;;  %v15811_v47 = vld [vmem:[#allocation166_spill] sm:$0xff]  ;;  %v15812_v49 = vld [vmem:[#allocation164_spill] sm:$0xff]  ;;  %v15815_v58 = vld [vmem:[#allocation169_spill] sm:$0xff] }
 0x4d5   : > { %v3133_v24 = vsel %vm3111_vm13, %v15811_v47, %v15810_v52  ;;  %v3144_v48 = vadd.f32 %v3136_v7, %v13239_v46  ;;  %v3137_v37 = vsel %vm3111_vm13, %v15812_v49, %v15811_v47  ;;  %v15813_v3 = vld [vmem:[#allocation168_spill] sm:$0xff]  ;;  %v3138_v23 = vsel %vm3111_vm13, %v15815_v58, %v15814_v57  ;;  %v15816_v59 = vld [vmem:[#allocation167_spill] sm:$0xff]  ;;  %v15820_v28 = vld [vmem:[#allocation170_spill] sm:$0xff] }
 0x4d6   : > { %v3129_v8 = vsel %vm3111_vm13, %v15810_v52, %v15813_v3  ;;  %v3146_v5 = vadd.f32 %v3128_v4, %v13245_v45  ;;  %v3134_v46 = vsel %vm3111_vm13, %v15814_v57, %v15816_v59  ;;  %v3130_v50 = vsel %vm3111_vm13, %v15816_v59, %v15817_v30  ;;  %v15818_v20 = vld [vmem:[#allocation47_spill] sm:$0xff]  ;;  %v13494_v52 = vpop.permute.xlu1 %4978  ;;  %v15821_v43 = vld [vmem:[#allocation174_spill] sm:$0xff]  ;;  %v15822_v4 = vld [vmem:[#allocation172_spill] sm:$0xff] }
 0x4d7   : > { %v13492_v7 = vadd.f32 %v15818_v20, %v3145_v39  ;;  %15819 = vst [vmem:[#allocation67_spill] sm:$0xff] %v13494_v52  ;;  %v3153_v47 = vadd.f32 %v3133_v24, %v13257_v56  ;;  %v3135_v45 = vsel %vm3111_vm13, %v15821_v43, %v15820_v28  ;;  %v3139_v57 = vsel %vm3111_vm13, %v15822_v4, %v15821_v43  ;;  %v13509_v59 = vpop.permute.xlu0 %4964  ;;  %v15825_v52 = vld [vmem:[#allocation176_spill] sm:$0xff] }
 0x4d8   : > { %v3124_v39 = vsel %vm3111_vm13, %v15808_v26, %v15823_v1  ;;  %15824 = vst [vmem:[#allocation66_spill] sm:$0xff] %v13509_v59  ;;  %v3152_v20 = vadd.f32 %v3137_v37, %v13254_v19  ;;  %v3154_v56 = vadd.f32 %v3129_v8, %v13260_v44  ;;  %v3160_v24 = vadd.f32 %v3138_v23, %v13269_v9  ;;  %v15827_v59 = vld [vmem:[#allocation180_spill] sm:$0xff]  ;;  %v15828_v37 = vld [vmem:[#allocation177_spill] sm:$0xff] }
 0x4d9   : > { %v3131_v13 = vsel %vm3111_vm13, %v15820_v28, %v15825_v52  ;;  %v3161_v43 = vadd.f32 %v3134_v46, %v13272_v33  ;;  %v3162_v42 = vadd.f32 %v3130_v50, %v13275_v27  ;;  %v3125_v26 = vsel %vm3111_vm13, %v15813_v3, %v15826_v14  ;;  %v15829_v8 = vld [vmem:[#allocation48_spill] sm:$0xff]  ;;  %v15830_v46 = vld [vmem:[#allocation53_spill] sm:$0xff] }
 0x4da   : > { %v3120_v19 = vsel %vm3111_vm13, %v15823_v1, %v15827_v59  ;;  %v3168_v44 = vadd.f32 %v3139_v57, %v13284_v6  ;;  %v3169_v9 = vadd.f32 %v3135_v45, %v13301_v51  ;;  %v3147_v28 = vadd.f32 %v3124_v39, %v13318_v38  ;;  %v13535_v27 = vpop.permute.xlu1 %4970  ;;  %v15831_v6 = vld [vmem:[#allocation45_spill] sm:$0xff]  ;;  %v15833_v57 = vld [vmem:[#allocation51_spill] sm:$0xff] }
 0x4db   : > { %v3116_v33 = vsel %vm3111_vm13, %v15827_v59, %v15828_v37  ;;  %v3170_v3 = vadd.f32 %v3131_v13, %v13335_v16  ;;  %v13539_v23 = vadd.f32 %v15829_v8, %v3146_v5  ;;  %v13542_v1 = vadd.f32 %v15830_v46, %v3153_v47  ;;  %v13547_v51 = vpop.permute.xlu0 %4980  ;;  %v15834_v59 = vld [vmem:[#allocation50_spill] sm:$0xff]  ;;  %v15837_v46 = vld [vmem:[#allocation56_spill] sm:$0xff] }
 0x4dc   : > { %v13545_v50 = vadd.f32 %v15831_v6, %v3144_v48  ;;  %15832 = vst [vmem:[#allocation72_spill] sm:$0xff] %v13547_v51  ;;  %v3155_v38 = vadd.f32 %v3125_v26, %v13338_v11  ;;  %v3148_v45 = vadd.f32 %v3120_v19, %v13341_v10  ;;  %v13552_v39 = vadd.f32 %v15833_v57, %v3154_v56  ;;  %v15835_v5 = vld [vmem:[#allocation182_spill] sm:$0xff]  ;;  %v15838_v10 = vld [vmem:[#allocation49_spill] sm:$0xff] }
 0x4dd   : > { %v13555_v13 = vadd.f32 %v15834_v59, %v3152_v20  ;;  %v3149_v16 = vadd.f32 %v3116_v33, %v13350_v61  ;;  %v3140_v48 = vsel %vm3111_vm13, %v15835_v5, %v15806_v53  ;;  %v15836_v47 = vld [vmem:[#allocation58_spill] sm:$0xff]  ;;  %v13566_v11 = vadd.f32 %v15837_v46, %v3160_v24  ;;  %v15839_v56 = vld [vmem:[#allocation57_spill] sm:$0xff]  ;;  %v15840_v20 = vld [vmem:[#allocation64_spill] sm:$0xff] }
 0x4de   : > { %v13563_v8 = vadd.f32 %v15836_v47, %v3161_v43  ;;  %v13569_v26 = vadd.f32 %v15838_v10, %v3147_v28  ;;  %v13572_v19 = vadd.f32 %v15839_v56, %v3162_v42  ;;  %v13575_v6 = vadd.f32 %v15840_v20, %v3169_v9  ;;  %v15841_v61 = vld [vmem:[#allocation62_spill] sm:$0xff]  ;;  %v13580_v57 = vpop.permute.xlu1 %4986  ;;  %v15842_v24 = vld [vmem:[#allocation181_spill] sm:$0xff]  ;;  %v15843_v43 = vld [vmem:[#allocation183_spill] sm:$0xff] }
 0x4df   : > { %v13578_v33 = vadd.f32 %v15841_v61, %v3168_v44  ;;  %v3112_v53 = vsel %vm3111_vm13, %v15828_v37, %v15835_v5  ;;  %v3117_v42 = vsel %vm3111_vm13, %v15843_v43, %v15842_v24  ;;  %v3121_v44 = vsel %vm3111_vm13, %v15826_v14, %v15843_v43  ;;  %v15844_v9 = vld [vmem:[#allocation63_spill] sm:$0xff]  ;;  %v13598_v59 = vpop.permute.xlu0 %4972  ;;  %v15846_v46 = vld [vmem:[#allocation185_spill] sm:$0xff]  ;;  %v15848_v56 = vld [vmem:[#allocation68_spill] sm:$0xff] }
 0x4e0   : > { %v13596_v28 = vadd.f32 %v15844_v9, %v3170_v3  ;;  %15845 = vst [vmem:[#allocation80_spill] sm:$0xff] %v13598_v59  ;;  %v3151_v47 = vadd.f32 %v3140_v48, %v13356_v12  ;;  %v3126_v37 = vsel %vm3111_vm13, %v15817_v30, %v15846_v46  ;;  %v15847_v5 = vld [vmem:[#allocation55_spill] sm:$0xff]  ;;  %v13609_v20 = vadd.f32 %v15848_v56, %v3148_v45  ;;  %v15849_v61 = vld [vmem:[#allocation186_spill] sm:$0xff] }
 0x4e1   : > { %v13606_v10 = vadd.f32 %v15847_v5, %v3155_v38  ;;  %v3113_v14 = vsel %vm3111_vm13, %v15842_v24, %v15849_v61  ;;  %v3141_v12 = vsel %vm3111_vm13, %v15849_v61, %v15812_v49  ;;  %v15850_v3 = vld [vmem:[#allocation187_spill] sm:$0xff]  ;;  %v15851_v38 = vld [vmem:[#allocation69_spill] sm:$0xff]  ;;  %v3150_v45 = vadd.f32 %v3112_v53, %v13353_v40  ;;  %v15854_v61 = vld [vmem:[#allocation30_spill] sm:$0xff] }
 0x4e2   : > { %v3127_v30 = vsel %vm3111_vm13, %v15825_v52, %v15850_v3  ;;  %v13624_v48 = vadd.f32 %v15851_v38, %v3149_v16  ;;  %v3156_v43 = vadd.f32 %v3121_v44, %v13365_v2  ;;  %v3157_v9 = vadd.f32 %v3117_v42, %v13368_v35  ;;  %v15852_v24 = vld [vmem:[#allocation189_spill] sm:$0xff]  ;;  %v13633_v49 = vpop.permute.xlu1 %4990  ;;  %v15857_v44 = vld [vmem:[#allocation71_spill] sm:$0xff]  ;;  %v15858_v38 = vld [vmem:[#allocation190_spill] sm:$0xff] }
 0x4e3   : > { %v3122_v5 = vsel %vm3111_vm13, %v15846_v46, %v15852_v24  ;;  %15853 = vst [vmem:[#allocation74_spill] sm:$0xff] %v13633_v49  ;;  %v3163_v56 = vadd.f32 %v3126_v37, %v13371_v0  ;;  %v3118_v52 = vsel %vm3111_vm13, %v15852_v24, %v15854_v61  ;;  %v15855_v16 = vld [vmem:[#allocation29_spill] sm:$0xff]  ;;  %v13648_v35 = vpop.permute.xlu0 %4988  ;;  %v3158_v53 = vadd.f32 %v3113_v14, %v13380_v34  ;;  %v15859_v24 = vld [vmem:[#allocation191_spill] sm:$0xff]  ;;  %v15860_v34 = vld [vmem:[#allocation194_spill] sm:$0xff] }
 0x4e4   : > { %v3114_v40 = vsel %vm3111_vm13, %v15854_v61, %v15855_v16  ;;  %v3142_v2 = vsel %vm3111_vm13, %v15855_v16, %v15815_v58  ;;  %15856 = vst [vmem:[#allocation82_spill] sm:$0xff] %v13648_v35  ;;  %v3159_v0 = vadd.f32 %v3141_v12, %v13397_v41  ;;  %v3171_v42 = vadd.f32 %v3127_v30, %v13412_v54  ;;  %v15862_v30 = vld [vmem:[#allocation59_spill] sm:$0xff] }
 0x4e5   : > { %v13654_v46 = vadd.f32 %v15857_v44, %v3151_v47  ;;  %v3164_v37 = vadd.f32 %v3122_v5, %v13429_v36  ;;  %v3119_v61 = vsel %vm3111_vm13, %v15859_v24, %v15858_v38  ;;  %v3123_v58 = vsel %vm3111_vm13, %v15850_v3, %v15859_v24  ;;  %v15863_v5 = vld [vmem:[#allocation73_spill] sm:$0xff]  ;;  %v15864_v44 = vld [vmem:[#allocation70_spill] sm:$0xff] }
 0x4e6   : > { %v3143_v41 = vsel %vm3111_vm13, %v15860_v34, %v15822_v4  ;;  %v3165_v54 = vadd.f32 %v3118_v52, %v13432_v25  ;;  %v3166_v47 = vadd.f32 %v3114_v40, %v13442_v60  ;;  %v3167_v36 = vadd.f32 %v3142_v2, %v13445_v55  ;;  %v13676_v12 = vpop.permute.xlu1 %5006  ;;  %v15865_v4 = vld [vmem:[#allocation75_spill] sm:$0xff]  ;;  %v15867_v40 = vld [vmem:[#allocation77_spill] sm:$0xff] }
 0x4e7   : > { %v3115_v14 = vsel %vm3111_vm13, %v15858_v38, %v15860_v34  ;;  %15861 = vst [vmem:[#allocation88_spill] sm:$0xff] %v13676_v12  ;;  %v3568_v3 = vadd.f32 %v15862_v30, %v3163_v56  ;;  %v3561_v16 = vadd.f32 %v15863_v5, %v3156_v43  ;;  %v3555_v24 = vadd.f32 %v15864_v44, %v3150_v45  ;;  %v13684_v25 = vpop.permute.xlu0 %4992  ;;  %v15868_v56 = vld [vmem:[#allocation65_spill] sm:$0xff]  ;;  %v15869_v43 = vld [vmem:[#allocation76_spill] sm:$0xff]  ;;  %v15870_v45 = vld [vmem:[#allocation78_spill] sm:$0xff] }
 0x4e8   : > { %v13682_v35 = vadd.f32 %v15865_v4, %v3157_v9  ;;  %15866 = vst [vmem:[#allocation184_spill] sm:$0xff] %v13684_v25  ;;  %v3172_v60 = vadd.f32 %v3123_v58, %v13448_v32  ;;  %v3173_v55 = vadd.f32 %v3119_v61, %v13457_v29  ;;  %v3175_v52 = vadd.f32 %v3143_v41, %v13463_v22  ;;  %v15871_v5 = vld [vmem:[#allocation133_spill] sm:$0xff]  ;;  %v15873_v29 = vld [vmem:[#allocation83_spill] sm:$0xff]  ;;  %v15888_v25 = vld [vmem:[#allocation130_spill] sm:$0xff] }
 0x4e9   : > { %v3564_v2 = vadd.f32 %v15867_v40, %v3159_v0  ;;  %v3174_v38 = vadd.f32 %v3115_v14, %v13460_v63  ;;  %v3576_v34 = vadd.f32 %v15868_v56, %v3171_v42  ;;  %v13693_v30 = vadd.f32 %v15869_v43, %v3158_v53  ;;  %v15872_v44 = vld [vmem:[#allocation193_spill] sm:$0xff]  ;;  %v15875_v63 = vld [vmem:[#allocation79_spill] sm:$0xff]  ;;  %v15882_v56 = vld [vmem:[#allocation198_spill] sm:$0xff] }
 0x4ea   : > { %v13696_v9 = vadd.f32 %v15870_v45, %v3164_v37  ;;  %v4043_v32 = vsel %vm4018_vm14, %v15872_v44, %v15871_v5  ;;  %v13703_v61 = vadd.f32 %v15873_v29, %v3167_v36  ;;  %v15874_v22 = vld [vmem:[#allocation81_spill] sm:$0xff]  ;;  %v13709_v58 = vadd.f32 %v15875_v63, %v3166_v47  ;;  %v13711_v42 = vpop.permute.xlu1 %5014  ;;  %v15877_v53 = vld [vmem:[#allocation195_spill] sm:$0xff]  ;;  %v15880_v47 = vld [vmem:[#allocation196_spill] sm:$0xff] }
 0x4eb   : > { %v13706_v0 = vadd.f32 %v15874_v22, %v3165_v54  ;;  %15876 = vst [vmem:[#allocation89_spill] sm:$0xff] %v13711_v42  ;;  %v4039_v37 = vsel %vm4018_vm14, %v15871_v5, %v15877_v53  ;;  %v4035_v41 = vsel %vm4018_vm14, %v15877_v53, %v12566_v18  ;;  %v15878_v36 = vld [vmem:[#allocation197_spill] sm:$0xff]  ;;  %v15879_v14 = vld [vmem:[#allocation127_spill] sm:$0xff]  ;;  %v13729_v40 = vpop.permute.xlu0 %5008  ;;  %v15883_v45 = vld [vmem:[#allocation84_spill] sm:$0xff]  ;;  %v13743_v12 = vadd.f32 %v4043_v32, %v13492_v7 }
 0x4ec   : > { %v4040_v54 = vsel %vm4018_vm14, %v15879_v14, %v15878_v36  ;;  %v4044_v4 = vsel %vm4018_vm14, %v15880_v47, %v15879_v14  ;;  %15881 = vst [vmem:[#allocation91_spill] sm:$0xff] %v13729_v40  ;;  %v4036_v43 = vsel %vm4018_vm14, %v15878_v36, %v15882_v56  ;;  %v3577_v5 = vadd.f32 %v15883_v45, %v3172_v60  ;;  %v15884_v29 = vld [vmem:[#allocation87_spill] sm:$0xff]  ;;  %v15885_v63 = vld [vmem:[#allocation86_spill] sm:$0xff]  ;;  %v15889_v60 = vld [vmem:[#allocation85_spill] sm:$0xff] }
 0x4ed   : > { %v13737_v22 = vadd.f32 %v15884_v29, %v3175_v52  ;;  %v13740_v53 = vadd.f32 %v15885_v63, %v3173_v55  ;;  %v15886_v42 = vld [vmem:[#allocation199_spill] sm:$0xff]  ;;  %v13754_v45 = vadd.f32 %v15889_v60, %v3174_v38  ;;  %v13757_v52 = vadd.f32 %v4039_v37, %v13539_v23  ;;  %v15892_v38 = vld [vmem:[#allocation201_spill] sm:$0xff] }
 0x4ee   : > { %v15887_v14 = vld [vmem:[#allocation43_spill] sm:$0xff]  ;;  %v13760_v55 = vadd.f32 %v4035_v41, %v13569_v26  ;;  %v13763_v7 = vadd.f32 %v4044_v4, %v13542_v1  ;;  %v13766_v32 = vadd.f32 %v4040_v54, %v13552_v39  ;;  %v13768_v29 = vpop.permute.xlu1 %4998  ;;  %v13771_v63 = vadd.f32 %v4036_v43, %v13606_v10  ;;  %v15894_v1 = vld [vmem:[#allocation200_spill] sm:$0xff] }
 0x4ef   : > { %v4041_v40 = vsel %vm4018_vm14, %v15887_v14, %v15886_v42  ;;  %v4045_v36 = vsel %vm4018_vm14, %v15888_v25, %v15887_v14  ;;  %15890 = vst [vmem:[#allocation90_spill] sm:$0xff] %v13768_v29  ;;  %v15891_v14 = vld [vmem:[#allocation202_spill] sm:$0xff]  ;;  %v15893_v37 = vld [vmem:[#allocation203_spill] sm:$0xff]  ;;  %v13785_v41 = vpop.permute.xlu0 %5016  ;;  %v15897_v43 = vld [vmem:[#allocation204_spill] sm:$0xff] }
 0x4f0   : > { %v4037_v23 = vsel %vm4018_vm14, %v15886_v42, %v15891_v14  ;;  %v4042_v26 = vsel %vm4018_vm14, %v15893_v37, %v15892_v38  ;;  %v4046_v39 = vsel %vm4018_vm14, %v15894_v1, %v15893_v37  ;;  %15895 = vst [vmem:[#allocation92_spill] sm:$0xff] %v13785_v41  ;;  %v13789_v10 = vadd.f32 %v4045_v36, %v13563_v8  ;;  %v15896_v42 = vld [vmem:[#allocation205_spill] sm:$0xff]  ;;  %v15898_v37 = vld [vmem:[#allocation207_spill] sm:$0xff]  ;;  %v15899_v8 = vld [vmem:[#allocation208_spill] sm:$0xff] }
 0x4f1   : > { %v13792_v54 = vadd.f32 %v4041_v40, %v13572_v19  ;;  %v4038_v4 = vsel %vm4018_vm14, %v15892_v38, %v15896_v42  ;;  %v4031_v60 = vsel %vm4018_vm14, %v12566_v18, %v15897_v43  ;;  %v4032_v41 = vsel %vm4018_vm14, %v15882_v56, %v15898_v37  ;;  %v15900_v36 = vld [vmem:[#allocation206_spill] sm:$0xff] }
 0x4f2   : > { %v4019_v19 = vsel %vm4018_vm14, %v15900_v36, %v15899_v8  ;;  %v4047_v40 = vsel %vm4018_vm14, %v15899_v8, %v15872_v44  ;;  %v15901_v38 = vld [vmem:[#allocation210_spill] sm:$0xff]  ;;  %v13818_v29 = vadd.f32 %v4037_v23, %v3568_v3  ;;  %v13821_v49 = vadd.f32 %v4046_v39, %v13575_v6  ;;  %v13830_v51 = vpop.permute.xlu1 %4994  ;;  %v15903_v3 = vld [vmem:[#allocation211_spill] sm:$0xff]  ;;  %v15904_v23 = vld [vmem:[#allocation209_spill] sm:$0xff] }
 0x4f3   : > { %v4027_v18 = vsel %vm4018_vm14, %v15897_v43, %v15901_v38  ;;  %v13824_v56 = vadd.f32 %v4042_v26, %v13596_v28  ;;  %v4023_v59 = vsel %vm4018_vm14, %v15901_v38, %v15900_v36  ;;  %15902 = vst [vmem:[#allocation179_spill] sm:$0xff] %v13830_v51  ;;  %v13832_v44 = vadd.f32 %v4038_v4, %v3576_v34  ;;  %v13845_v26 = vpop.permute.xlu0 %5000  ;;  %v15909_v36 = vld [vmem:[#allocation216_spill] sm:$0xff]  ;;  %v15913_v38 = vld [vmem:[#allocation219_spill] sm:$0xff]  ;;  %v15947_v51 = vld [vmem:[#allocation26_spill] sm:$0xff] }
 0x4f4   : > { %v13835_v8 = vadd.f32 %v4031_v60, %v13609_v20  ;;  %v4020_v6 = vsel %vm4018_vm14, %v15904_v23, %v15903_v3  ;;  %v4048_v28 = vsel %vm4018_vm14, %v15903_v3, %v15880_v47  ;;  %15905 = vst [vmem:[#allocation94_spill] sm:$0xff] %v13845_v26  ;;  %v13847_v39 = vadd.f32 %v4032_v41, %v3561_v16  ;;  %v15906_v60 = vld [vmem:[#allocation213_spill] sm:$0xff]  ;;  %v15935_v26 = vld [vmem:[#allocation234_spill] sm:$0xff] }
 0x4f5   : > { %v13850_v34 = vadd.f32 %v4047_v40, %v13545_v50  ;;  %v13853_v20 = vadd.f32 %v4019_v19, %v13654_v46  ;;  %v13856_v4 = vadd.f32 %v4027_v18, %v13624_v48  ;;  %v13858_v43 = vadd.f32 %v4023_v59, %v3555_v24  ;;  %v15907_v50 = vld [vmem:[#allocation212_spill] sm:$0xff]  ;;  %v15908_v24 = vld [vmem:[#allocation215_spill] sm:$0xff]  ;;  %v15911_v40 = vld [vmem:[#allocation214_spill] sm:$0xff] }
 0x4f6   : > { %v4024_v47 = vsel %vm4018_vm14, %v15906_v60, %v15904_v23  ;;  %v4028_v16 = vsel %vm4018_vm14, %v15898_v37, %v15906_v60  ;;  %v4033_v46 = vsel %vm4018_vm14, %v15891_v14, %v15907_v50  ;;  %v13873_v48 = vadd.f32 %v4048_v28, %v13555_v13  ;;  %v13885_v19 = vpop.permute.xlu1 %5010  ;;  %v15915_v28 = vld [vmem:[#allocation217_spill] sm:$0xff] }
 0x4f7   : > { %v13875_v59 = vadd.f32 %v4020_v6, %v3564_v2  ;;  %v4034_v41 = vsel %vm4018_vm14, %v15896_v42, %v15908_v24  ;;  %v4049_v37 = vsel %vm4018_vm14, %v15909_v36, %v15888_v25  ;;  %15910 = vst [vmem:[#allocation98_spill] sm:$0xff] %v13885_v19  ;;  %v4021_v13 = vsel %vm4018_vm14, %v15911_v40, %v15909_v36  ;;  %v15912_v2 = vld [vmem:[#allocation218_spill] sm:$0xff]  ;;  %v13903_v18 = vpop.permute.xlu0 %4996  ;;  %v15916_v36 = vld [vmem:[#allocation221_spill] sm:$0xff] }
 0x4f8   : > { %v4025_v14 = vsel %vm4018_vm14, %v15912_v2, %v15911_v40  ;;  %v4029_v42 = vsel %vm4018_vm14, %v15907_v50, %v15912_v2  ;;  %v4050_v25 = vsel %vm4018_vm14, %v15913_v38, %v15894_v1  ;;  %15914 = vst [vmem:[#allocation100_spill] sm:$0xff] %v13903_v18  ;;  %v13906_v3 = vadd.f32 %v4028_v16, %v13682_v35  ;;  %v15921_v40 = vld [vmem:[#allocation226_spill] sm:$0xff] }
 0x4f9   : > { %v13909_v23 = vadd.f32 %v4024_v47, %v13693_v30  ;;  %v13912_v6 = vadd.f32 %v4033_v46, %v13696_v9  ;;  %v4022_v60 = vsel %vm4018_vm14, %v15915_v28, %v15913_v38  ;;  %v13918_v50 = vadd.f32 %v4034_v41, %v3577_v5  ;;  %v13945_v46 = vld [vmem:[#allocation4 + $0x1] ss:$4 sm:$0xff] }
 0x4fa   : > { %v13921_v1 = vadd.f32 %v4049_v37, %v13566_v11  ;;  %v4026_v35 = vsel %vm4018_vm14, %v15916_v36, %v15915_v28  ;;  %v4030_v30 = vsel %vm4018_vm14, %v15908_v24, %v15916_v36  ;;  %v13932_v9 = vadd.f32 %v4021_v13, %v13703_v61  ;;  %v13943_v16 = vpop.permute.xlu1 %5018  ;;  %v15918_v24 = vld [vmem:[#allocation222_spill] sm:$0xff]  ;;  %v15919_v37 = vld [vmem:[#allocation224_spill] sm:$0xff] }
 0x4fb   : > { %v13935_v47 = vadd.f32 %v4029_v42, %v13706_v0  ;;  %v13938_v5 = vadd.f32 %v4025_v14, %v13709_v58  ;;  %v13941_v11 = vadd.f32 %v4050_v25, %v13578_v33  ;;  %15917 = vst [vmem:[#allocation96_spill] sm:$0xff] %v13943_v16  ;;  %v13948_v41 = vadd.f32 %v4022_v60, %v13737_v22  ;;  %v15920_v0 = vld [vmem:[#allocation220_spill] sm:$0xff]  ;;  %v13962_v13 = vpop.permute.xlu0 %5012  ;;  %v15924_v14 = vld [vmem:[#allocation225_spill] sm:$0xff]  ;;  %v15925_v42 = vld [vmem:[#allocation227_spill] sm:$0xff] }
 0x4fc   : > { %v4541_v61 = vsel %vm4520_vm15, %v15919_v37, %v15918_v24  ;;  %v4545_v58 = vsel %vm4520_vm15, %v15920_v0, %v15919_v37  ;;  %v4537_v33 = vsel %vm4520_vm15, %v15918_v24, %v15921_v40  ;;  %15922 = vst [vmem:[#allocation102_spill] sm:$0xff] %v13962_v13  ;;  %v13966_v22 = vadd.f32 %v4030_v30, %v13740_v53  ;;  %v15926_v25 = vld [vmem:[#allocation223_spill] sm:$0xff]  ;;  %v15927_v60 = vld [vmem:[#allocation229_spill] sm:$0xff]  ;;  %v15928_v53 = vld [vmem:[#allocation232_spill] sm:$0xff] }
 0x4fd   : > { %v13969_v2 = vadd.f32 %v4026_v35, %v13754_v45  ;;  %v4542_v38 = vsel %vm4520_vm15, %v15925_v42, %v15924_v14  ;;  %v4546_v28 = vsel %vm4520_vm15, %v15926_v25, %v15925_v42  ;;  %v4538_v36 = vsel %vm4520_vm15, %v15924_v14, %v15927_v60  ;;  %v15929_v30 = vld [vmem:[#allocation228_spill] sm:$0xff]  ;;  %v15930_v35 = vld [vmem:[#allocation13_spill] sm:$0xff]  ;;  %v15933_v14 = vld [vmem:[#allocation230_spill] sm:$0xff] }
 0x4fe   : > { %v4547_v45 = vsel %vm4520_vm15, %v15929_v30, %v15928_v53  ;;  %v13989_v24 = vrot.slane %v13945_v46, %v15930_v35  ;;  %v15932_v37 = vld [vmem:[#allocation12_spill] sm:$0xff]  ;;  %v4554_v42 = vadd.f32 %v4545_v58, %v13743_v12  ;;  %v4555_v13 = vadd.f32 %v4541_v61, %v13757_v52  ;;  %v14004_v18 = vpop.permute.xlu1 %5002 }
 0x4ff   : > { %15923 = vst [vmem:[#allocation101_spill] sm:$0xff] %v13969_v2  ;;  %v13993_v2 = vrot.slane %v13945_v46, %v15932_v37  ;;  %v13998_v19 = vadd.f32 %v4537_v33, %v13760_v55  ;;  %v4543_v16 = vsel %vm4520_vm15, %v15928_v53, %v15933_v14  ;;  %15934 = vst [vmem:[#allocation99_spill] sm:$0xff] %v14004_v18  ;;  %v14016_v52 = vpop.permute.xlu0 %5020  ;;  %v15937_v55 = vld [vmem:[#allocation14_spill] sm:$0xff]  ;;  %v15940_v33 = vld [vmem:[#allocation235_spill] sm:$0xff] }
 0x500   : > { %15931 = vst [vmem:[#allocation103_spill] sm:$0xff] %v13989_v24  ;;  %v14007_v35 = vadd.f32 %v4546_v28, %v13763_v7  ;;  %v14010_v37 = vadd.f32 %v4542_v38, %v13766_v32  ;;  %v4539_v12 = vsel %vm4520_vm15, %v15933_v14, %v15935_v26  ;;  %15936 = vst [vmem:[#allocation93_spill] sm:$0xff] %v14016_v52  ;;  %v15939_v32 = vld [vmem:[#allocation233_spill] sm:$0xff]  ;;  %v15941_v28 = vld [vmem:[#allocation231_spill] sm:$0xff] }
 0x501   : > { %v14020_v61 = vrot.slane %v13945_v46, %v15937_v55  ;;  %v14024_v58 = vadd.f32 %v4538_v36, %v13771_v63  ;;  %v14027_v7 = vadd.f32 %v4547_v45, %v13789_v10  ;;  %v4544_v38 = vsel %vm4520_vm15, %v15940_v33, %v15939_v32  ;;  %v15942_v55 = vld [vmem:[#allocation237_spill] sm:$0xff]  ;;  %v15943_v10 = vld [vmem:[#allocation236_spill] sm:$0xff]  ;;  %v15944_v45 = vld [vmem:[#allocation239_spill] sm:$0xff] }
 0x502   : > { %v4548_v53 = vsel %vm4520_vm15, %v15941_v28, %v15940_v33  ;;  %v14038_v14 = vadd.f32 %v4543_v16, %v13792_v54  ;;  %v4540_v63 = vsel %vm4520_vm15, %v15939_v32, %v15942_v55  ;;  %v4533_v36 = vsel %vm4520_vm15, %v15921_v40, %v15943_v10  ;;  %v15945_v54 = vld [vmem:[#allocation240_spill] sm:$0xff]  ;;  %v15946_v16 = vld [vmem:[#allocation238_spill] sm:$0xff] }
 0x503   : > { %15938 = vst [vmem:[#allocation95_spill] sm:$0xff] %v14020_v61  ;;  %v4534_v52 = vsel %vm4520_vm15, %v15927_v60, %v15944_v45  ;;  %v14053_v33 = vadd.f32 %v4539_v12, %v13818_v29  ;;  %v4521_v18 = vsel %vm4520_vm15, %v15946_v16, %v15945_v54  ;;  %v4549_v32 = vsel %vm4520_vm15, %v15945_v54, %v15920_v0  ;;  %v14067_v61 = vpop.permute.xlu1 %5460  ;;  %v15948_v0 = vld [vmem:[#allocation23_spill] sm:$0xff]  ;;  %v14083_v24 = vpop.permute.xlu0 %5004 }
 0x504   : > { %v4529_v40 = vsel %vm4520_vm15, %v15943_v10, %v15947_v51  ;;  %v14070_v29 = vadd.f32 %v4548_v53, %v13821_v49  ;;  %v14073_v60 = vadd.f32 %v4544_v38, %v13824_v56  ;;  %v4525_v12 = vsel %vm4520_vm15, %v15947_v51, %v15946_v16  ;;  %15949 = vst [vmem:[#allocation97_spill] sm:$0xff] %v14083_v24  ;;  %v15950_v38 = vld [vmem:[#allocation24_spill] sm:$0xff] }
 0x505   : > { %v4550_v54 = vsel %vm4520_vm15, %v15948_v0, %v15926_v25  ;;  %v14086_v10 = vadd.f32 %v4540_v63, %v13832_v44  ;;  %v14089_v49 = vadd.f32 %v4533_v36, %v13835_v8  ;;  %v14092_v56 = vadd.f32 %v4534_v52, %v13847_v39  ;;  %v15951_v63 = vld [vmem:[#allocation15_spill] sm:$0xff] }
 0x506   : > { %v4522_v51 = vsel %vm4520_vm15, %v15950_v38, %v15948_v0  ;;  %v14099_v53 = vadd.f32 %v4549_v32, %v13850_v34  ;;  %v14102_v25 = vadd.f32 %v4521_v18, %v13853_v20  ;;  %v14105_v44 = vadd.f32 %v4529_v40, %v13856_v4  ;;  %v15952_v36 = vld [vmem:[#allocation27_spill] sm:$0xff]  ;;  %v15959_v0 = vld [vmem:[#allocation17_spill] sm:$0xff] }
 0x507   : > { %v14109_v8 = vrot.slane %v13945_v46, %v15951_v63  ;;  %v14112_v39 = vadd.f32 %v4525_v12, %v13858_v43  ;;  %v14115_v52 = vadd.f32 %v4550_v54, %v13873_v48  ;;  %v4530_v34 = vsel %vm4520_vm15, %v15944_v45, %v15952_v36  ;;  %v15953_v20 = vld [vmem:[#allocation31_spill] sm:$0xff]  ;;  %v5477_v18 = vpop.permute.xlu1 %5476  ;;  %v14136_v45 = vpop.permute.xlu0 %5462 }
 0x508   : > { %v4535_v4 = vsel %vm4520_vm15, %v15935_v26, %v15953_v20  ;;  %v14126_v16 = vadd.f32 %v4522_v51, %v13875_v59  ;;  %v5043_v43 = vsel %vm5022_vm0, %v13315_v62, %v13251_v21  ;;  %v5047_v48 = vsel %vm5022_vm0, %v13184_v17, %v13315_v62  ;;  %15954 = vst [vmem:[#allocation105_spill] sm:$0xff] %v14136_v45  ;;  %v15955_v32 = vld [vmem:[#allocation11_spill] sm:$0xff]  ;;  %v15957_v59 = vld [vmem:[#allocation18_spill] sm:$0xff]  ;;  %v15961_v62 = vld [vmem:[#allocation16_spill] sm:$0xff] }
 0x509   : > { %v14140_v40 = vrot.slane %v13945_v46, %v15955_v32  ;;  %v4526_v26 = vsel %vm4520_vm15, %v15952_v36, %v15950_v38  ;;  %v14148_v12 = vrot.slane %v13945_v46, %v15957_v59  ;;  %v14152_v54 = vrot.slane %v13945_v46, %v15959_v0  ;;  %v15964_v36 = vld [vmem:[#allocation33_spill] sm:$0xff]  ;;  %v15966_v0 = vld [vmem:[#allocation54_spill] sm:$0xff] }
 0x50a   : > { %v14156_v51 = vrot.slane %v13945_v46, %v15961_v62  ;;  %v14159_v63 = vadd.f32 %v4530_v34, %v13906_v3  ;;  %v14162_v32 = vadd.f32 %v4535_v4, %v13912_v6  ;;  %v4523_v59 = vsel %vm4520_vm15, %v15964_v36, %v13058_v31  ;;  %v15965_v3 = vld [vmem:[#allocation40_spill] sm:$0xff] }
 0x50b   : > { %15956 = vst [vmem:[#allocation108_spill] sm:$0xff] %v14140_v40  ;;  %15958 = vst [vmem:[#allocation104_spill] sm:$0xff] %v14148_v12  ;;  %v15963_v40 = vld [vmem:[#allocation25_spill] sm:$0xff]  ;;  %v4551_v46 = vsel %vm4520_vm15, %v13058_v31, %v15929_v30  ;;  %v4527_v6 = vsel %vm4520_vm15, %v15965_v3, %v15964_v36  ;;  %v5056_v34 = vadd.f32 %v5047_v48, %v4554_v42  ;;  %v5469_v62 = vpop.permute.xlu1 %5468  ;;  %v5479_v42 = vpop.permute.xlu0 %5478 }
 0x50c   : > { %15960 = vst [vmem:[#allocation106_spill] sm:$0xff] %v14152_v54  ;;  %15962 = vst [vmem:[#allocation110_spill] sm:$0xff] %v14156_v51  ;;  %v4536_v38 = vsel %vm4520_vm15, %v15942_v55, %v15963_v40  ;;  %v5057_v4 = vadd.f32 %v5043_v43, %v4555_v13  ;;  %v4531_v55 = vsel %vm4520_vm15, %v15953_v20, %v15965_v3  ;;  %v15967_v43 = vld [vmem:[#allocation46_spill] sm:$0xff]  ;;  %v15968_v48 = vld [vmem:[#allocation41_spill] sm:$0xff] }
 0x50d   : > { %v5039_v51 = vsel %vm5022_vm0, %v13251_v21, %v15966_v0  ;;  %v5545_v31 = vsel %vm5524_vm1, %v5469_v62, %v5477_v18  ;;  %v5549_v30 = vsel %vm5524_vm1, %v14067_v61, %v5469_v62  ;;  %v14194_v13 = vadd.f32 %v4526_v26, %v13909_v23  ;;  %v15969_v62 = vld [vmem:[#allocation52_spill] sm:$0xff] }
 0x50e   : > { %v5044_v20 = vsel %vm5022_vm0, %v15968_v48, %v15967_v43  ;;  %v5558_v36 = vadd.f32 %v5549_v30, %v5056_v34  ;;  %v5559_v3 = vadd.f32 %v5545_v31, %v5057_v4  ;;  %v14201_v21 = vadd.f32 %v4536_v38, %v13918_v50  ;;  %v15970_v50 = vld [vmem:[#allocation44_spill] sm:$0xff]  ;;  %v15972_v4 = vld [vmem:[#allocation19_spill] sm:$0xff] }
 0x50f   : > { %v14204_v54 = vadd.f32 %v4551_v46, %v13921_v1  ;;  %v14207_v12 = vadd.f32 %v4523_v59, %v13932_v9  ;;  %v5048_v23 = vsel %vm5022_vm0, %v15969_v62, %v15968_v48  ;;  %v14214_v26 = vadd.f32 %v4531_v55, %v13935_v47  ;;  %v14224_v9 = vpop.permute.xlu1 %5484  ;;  %v15971_v46 = vld [vmem:[#allocation61_spill] sm:$0xff]  ;;  %v15973_v31 = vld [vmem:[#allocation36_spill] sm:$0xff] }
 0x510   : > { %v14217_v34 = vadd.f32 %v4527_v6, %v13938_v5  ;;  %v4552_v1 = vsel %vm4520_vm15, %v15970_v50, %v15941_v28  ;;  %v5058_v38 = vadd.f32 %v5039_v51, %v13998_v19  ;;  %v5065_v59 = vadd.f32 %v5044_v20, %v14010_v37  ;;  %v5471_v6 = vpop.permute.xlu0 %5470 }
 0x511   : > { %v5040_v47 = vsel %vm5022_vm0, %v15967_v43, %v15971_v46  ;;  %v5615_v55 = vadd.f32 %v15972_v4, %v5559_v3  ;;  %v5541_v5 = vsel %vm5524_vm1, %v5477_v18, %v14224_v9  ;;  %v5064_v28 = vadd.f32 %v5048_v23, %v14007_v35  ;;  %v15975_v35 = vld [vmem:[#allocation37_spill] sm:$0xff]  ;;  %v15976_v3 = vld [vmem:[#allocation67_spill] sm:$0xff] }
 0x512   : > { %v5614_v19 = vadd.f32 %v15972_v4, %v5558_v36  ;;  %v5560_v51 = vadd.f32 %v5541_v5, %v5058_v38  ;;  %v5546_v37 = vsel %vm5524_vm1, %v5471_v6, %v5479_v42  ;;  %v4524_v30 = vsel %vm4520_vm15, %v15973_v31, %v15970_v50 }
 0x513   : > { %v14244_v43 = vadd.f32 %v4552_v1, %v13941_v11  ;;  %v5550_v18 = vsel %vm5524_vm1, %v14136_v45, %v5471_v6  ;;  %v5567_v48 = vadd.f32 %v5546_v37, %v5065_v59  ;;  %v4532_v20 = vsel %vm4520_vm15, %v15963_v40, %v15975_v35  ;;  %v14258_v11 = vpop.permute.xlu1 %5464  ;;  %v15978_v1 = vld [vmem:[#allocation60_spill] sm:$0xff]  ;;  %v15993_v45 = vld [vmem:[#allocation90_spill] sm:$0xff] }
 0x514   : > { %v5066_v36 = vadd.f32 %v5040_v47, %v14024_v58  ;;  %v5045_v23 = vsel %vm5022_vm0, %v13535_v27, %v15976_v3  ;;  %v5566_v50 = vadd.f32 %v5550_v18, %v5064_v28  ;;  %15977 = vst [vmem:[#allocation111_spill] sm:$0xff] %v14258_v11  ;;  %v5049_v38 = vsel %vm5022_vm0, %v15978_v1, %v13535_v27  ;;  %v15979_v6 = vld [vmem:[#allocation20_spill] sm:$0xff]  ;;  %v14266_v37 = vpop.permute.xlu0 %5486 }
 0x515   : > { %15974 = vst [vmem:[#allocation109_spill] sm:$0xff] %v14244_v43  ;;  %v5647_v59 = vmax.f32 %v5615_v55, 0.0  ;;  %v5616_v5 = vadd.f32 %v15972_v4, %v5560_v51  ;;  %v5623_v40 = vadd.f32 %v15979_v6, %v5567_v48  ;;  %v14269_v58 = vadd.f32 %v4524_v30, %v13948_v41 }
 0x516   : > { %v5646_v47 = vmax.f32 %v5614_v19, 0.0  ;;  %v5622_v28 = vadd.f32 %v15979_v6, %v5566_v50  ;;  %v5542_v18 = vsel %vm5524_vm1, %v5479_v42, %v14266_v37  ;;  %v14279_v27 = vsel %vm4520_vm15, %v15975_v35, %v15973_v31 }
 0x517   : > { %15980 = vst [vmem:[#allocation107_spill] sm:$0xff] %v14269_v58  ;;  %15981 = vst [vmem:[#allocation113_spill] sm:$0xff] %v14279_v27  ;;  %v5041_v55 = vsel %vm5022_vm0, %v15976_v3, %v13580_v57  ;;  %v5655_v41 = vmax.f32 %v5623_v40, 0.0  ;;  %v5568_v51 = vadd.f32 %v5542_v18, %v5066_v36  ;;  %v14286_v19 = vadd.f32 %v4532_v20, %v13966_v22  ;;  %v5481_v50 = vpop.permute.xlu1 %5480  ;;  %v15983_v3 = vld [vmem:[#allocation72_spill] sm:$0xff]  ;;  %v15985_v20 = vld [vmem:[#allocation103_spill] sm:$0xff] }
 0x518   : > { %v5072_v30 = vadd.f32 %v5049_v38, %v14027_v7  ;;  %v5073_v42 = vadd.f32 %v5045_v23, %v14038_v14  ;;  %v5654_v48 = vmax.f32 %v5622_v28, 0.0  ;;  %v5722_v58 = vmul.f32 %v13993_v2, %v5647_v59  ;;  %v14293_v43 = vpop.permute.xlu0 %5466  ;;  %v15984_v22 = vld [vmem:[#allocation80_spill] sm:$0xff]  ;;  %v15986_v38 = vld [vmem:[#allocation66_spill] sm:$0xff] }
 0x519   : > { %15982 = vst [vmem:[#allocation112_spill] sm:$0xff] %v14286_v19  ;;  %v5648_v31 = vmax.f32 %v5616_v5, 0.0  ;;  %v5730_v35 = vmul.f32 %v13993_v2, %v5655_v41  ;;  %v5624_v27 = vadd.f32 %v15979_v6, %v5568_v51  ;;  %v5074_v36 = vadd.f32 %v5041_v55, %v14053_v33  ;;  %v15987_v5 = vld [vmem:[#allocation74_spill] sm:$0xff]  ;;  %v15989_v55 = vld [vmem:[#allocation184_spill] sm:$0xff]  ;;  %v15990_v51 = vld [vmem:[#allocation89_spill] sm:$0xff] }
 0x51a   : > { %v5046_v7 = vsel %vm5022_vm0, %v15984_v22, %v15983_v3  ;;  %v5721_v14 = vmul.f32 %v15985_v20, %v5646_v47  ;;  %v5729_v23 = vmul.f32 %v15985_v20, %v5654_v48  ;;  %v5050_v59 = vsel %vm5022_vm0, %v15986_v38, %v15984_v22  ;;  %v15988_v18 = vld [vmem:[#allocation82_spill] sm:$0xff]  ;;  %v15992_v38 = vld [vmem:[#allocation88_spill] sm:$0xff] }
 0x51b   : > { %v5035_v40 = vsel %vm5022_vm0, %v15966_v0, %v15987_v5  ;;  %v14310_v33 = vpack.c.bf16 %v5730_v35, %v5722_v58  ;;  %v5656_v28 = vmax.f32 %v5624_v27, 0.0  ;;  %v5042_v47 = vsel %vm5022_vm0, %v15983_v3, %v15988_v18  ;;  %v5473_v0 = vpop.permute.xlu1 %5472  ;;  %v15991_v58 = vld [vmem:[#allocation95_spill] sm:$0xff] }
 0x51c   : > { %v5036_v41 = vsel %vm5022_vm0, %v15971_v46, %v15989_v55  ;;  %v5051_v48 = vsel %vm5022_vm0, %v15990_v51, %v13184_v17  ;;  %v14324_v22 = vpack.c.bf16 %v5729_v23, %v5721_v14  ;;  %v5723_v27 = vmul.f32 %v15991_v58, %v5648_v31  ;;  %v5483_v46 = vpop.permute.xlu0 %5482 }
 0x51d   : > { %v5731_v35 = vmul.f32 %v15991_v58, %v5656_v28  ;;  %v5547_v3 = vsel %vm5524_vm1, %v5473_v0, %v5481_v50  ;;  %v5551_v19 = vsel %vm5524_vm1, %v14258_v11, %v5473_v0  ;;  %v5080_v24 = vadd.f32 %v5050_v59, %v14070_v29 }
 0x51e   : > { %v5023_v17 = vsel %vm5022_vm0, %v15992_v38, %v15990_v51  ;;  %9674 = vmatprep.subr.bf16.mxu0 %v14324_v22  ;;  %v5574_v31 = vadd.f32 %v5551_v19, %v5072_v30  ;;  %v5575_v14 = vadd.f32 %v5547_v3, %v5073_v42  ;;  %v5081_v23 = vadd.f32 %v5046_v7, %v14073_v60  ;;  %v15994_v30 = vld [vmem:[#allocation92_spill] sm:$0xff]  ;;  %v15995_v42 = vld [vmem:[#allocation21_spill] sm:$0xff]  ;;  %v15998_v3 = vld [vmem:[#allocation94_spill] sm:$0xff] }
 0x51f   : > { %v5059_v28 = vadd.f32 %v5035_v40, %v14089_v49  ;;  %v5031_v0 = vsel %vm5022_vm0, %v15987_v5, %v15993_v45  ;;  %v14345_v11 = vpack.c.bf16 %v5731_v35, %v5723_v27  ;;  %v5082_v29 = vadd.f32 %v5042_v47, %v14086_v10  ;;  %v14356_v49 = vpop.permute.xlu1 %5488  ;;  %v15996_v40 = vld [vmem:[#allocation91_spill] sm:$0xff] }
 0x520   : > { %v5067_v59 = vadd.f32 %v5036_v41, %v14092_v56  ;;  %v14350_v51 = vadd.f32 %v5051_v48, %v14099_v53  ;;  %v5027_v60 = vsel %vm5022_vm0, %v15993_v45, %v15992_v38  ;;  %v14359_v19 = vadd.f32 %v5023_v17, %v14102_v25  ;;  %v5475_v7 = vpop.permute.xlu0 %5474  ;;  %v15997_v41 = vld [vmem:[#allocation179_spill] sm:$0xff] }
 0x521   : > { %v5052_v10 = vsel %vm5022_vm0, %v15994_v30, %v15969_v62  ;;  %v5631_v56 = vadd.f32 %v15995_v42, %v5575_v14  ;;  %9682 = vmatprep.subr.bf16.mxu1 %v14345_v11  ;;  %v5543_v53 = vsel %vm5524_vm1, %v5481_v50, %v14356_v49  ;;  %v14371_v45 = vadd.f32 %v5031_v0, %v14105_v44  ;;  %v15999_v14 = vld [vmem:[#allocation22_spill] sm:$0xff] }
 0x522   : > { %v5630_v25 = vadd.f32 %v15995_v42, %v5574_v31  ;;  %v5576_v38 = vadd.f32 %v5543_v53, %v5074_v36  ;;  %v5548_v5 = vsel %vm5524_vm1, %v5475_v7, %v5483_v46  ;;  %9684 = vmatpush1.bf16.msra.mxu1 %v14310_v33  ;;  %v14378_v62 = vadd.f32 %v5027_v60, %v14112_v39 }
 0x523   : > { %v5024_v50 = vsel %vm5022_vm0, %v15996_v40, %v15994_v30  ;;  %v5552_v44 = vsel %vm5524_vm1, %v14293_v43, %v5475_v7  ;;  %v5583_v47 = vadd.f32 %v5548_v5, %v5081_v23  ;;  %v14388_v36 = vadd.f32 %v5052_v10, %v14115_v52  ;;  %v5493_v35 = vpop.permute.xlu1 %5492 }
 0x524   : > { %v5037_v48 = vsel %vm5022_vm0, %v13580_v57, %v15997_v41  ;;  %v5632_v39 = vadd.f32 %v15995_v42, %v5576_v38  ;;  %v5582_v27 = vadd.f32 %v5552_v44, %v5080_v24  ;;  %v5032_v17 = vsel %vm5022_vm0, %v15989_v55, %v15998_v3  ;;  %v14400_v0 = vpop.permute.xlu0 %5490 }
 0x525   : > { %v5663_v31 = vmax.f32 %v5631_v56, 0.0  ;;  %v5639_v23 = vadd.f32 %v15999_v14, %v5583_v47  ;;  %v5537_v52 = vsel %vm5524_vm1, %v14224_v9, %v5493_v35  ;;  %v5662_v60 = vmax.f32 %v5630_v25, 0.0 }
 0x526   : > { %v5638_v57 = vadd.f32 %v15999_v14, %v5582_v27  ;;  %v5544_v24 = vsel %vm5524_vm1, %v5483_v46, %v14400_v0  ;;  %v5561_v30 = vadd.f32 %v5537_v52, %v5059_v28  ;;  %v14410_v10 = vadd.f32 %v5024_v50, %v14126_v16 }
 0x527   : > { %v5028_v55 = vsel %vm5022_vm0, %v15998_v3, %v15996_v40  ;;  %v5671_v56 = vmax.f32 %v5639_v23, 0.0  ;;  %v5584_v53 = vadd.f32 %v5544_v24, %v5082_v29  ;;  %v14417_v9 = vadd.f32 %v5037_v48, %v14162_v32  ;;  %v5509_v5 = vpop.permute.xlu1 %5508  ;;  %v16000_v29 = vld [vmem:[#allocation100_spill] sm:$0xff]  ;;  %v16002_v48 = vld [vmem:[#allocation98_spill] sm:$0xff] }
 0x528   : > { %v5664_v7 = vmax.f32 %v5632_v39, 0.0  ;;  %v5670_v25 = vmax.f32 %v5638_v57, 0.0  ;;  %v5617_v38 = vadd.f32 %v15972_v4, %v5561_v30  ;;  %v14421_v46 = vadd.f32 %v5032_v17, %v14159_v63  ;;  %v14426_v40 = vpop.permute.xlu0 %5494 }
 0x529   : > { %v5738_v16 = vmul.f32 %v13993_v2, %v5663_v31  ;;  %v5746_v28 = vmul.f32 %v13993_v2, %v5671_v56  ;;  %v5640_v50 = vadd.f32 %v15999_v14, %v5584_v53  ;;  %v5038_v32 = vsel %vm5022_vm0, %v15988_v18, %v16000_v29  ;;  %v16001_v2 = vld [vmem:[#allocation96_spill] sm:$0xff] }
 0x52a   : > { %v5737_v44 = vmul.f32 %v15985_v20, %v5662_v60  ;;  %v5745_v47 = vmul.f32 %v15985_v20, %v5670_v25  ;;  %v5538_v63 = vsel %vm5524_vm1, %v14266_v37, %v14426_v40  ;;  %v5025_v39 = vsel %vm5022_vm0, %v16002_v48, %v16001_v2 }
 0x52b   : > { %v14442_v27 = vpack.c.bf16 %v5746_v28, %v5738_v16  ;;  %v5672_v3 = vmax.f32 %v5640_v50, 0.0  ;;  %v5569_v17 = vadd.f32 %v5538_v63, %v5067_v59  ;;  %v5053_v20 = vsel %vm5022_vm0, %v16001_v2, %v15978_v1  ;;  %v5517_v23 = vpop.permute.xlu1 %5516  ;;  %v16004_v63 = vld [vmem:[#allocation93_spill] sm:$0xff] }
 0x52c   : > { %v5739_v18 = vmul.f32 %v15991_v58, %v5664_v7  ;;  %v14449_v31 = vpack.c.bf16 %v5745_v47, %v5737_v44  ;;  %v5649_v37 = vmax.f32 %v5617_v38, 0.0  ;;  %v5525_v57 = vsel %vm5524_vm1, %v5509_v5, %v5517_v23  ;;  %v5511_v24 = vpop.permute.xlu0 %5510 }
 0x52d   : > { %v5747_v52 = vmul.f32 %v15991_v58, %v5672_v3  ;;  %v5625_v60 = vadd.f32 %v15979_v6, %v5569_v17  ;;  %v5553_v59 = vsel %vm5524_vm1, %v5517_v23, %v14067_v61  ;;  %v5069_v1 = vadd.f32 %v5028_v55, %v14194_v13  ;;  %v16003_v58 = vld [vmem:[#allocation99_spill] sm:$0xff] }
 0x52e   : > { %v14460_v30 = vadd.f32 %v5038_v32, %v14201_v21  ;;  %v5557_v56 = vadd.f32 %v5553_v59, %v14350_v51  ;;  %v5564_v53 = vadd.f32 %v5525_v57, %v14359_v19  ;;  %v5029_v7 = vsel %vm5022_vm0, %v16003_v58, %v16002_v48  ;;  %v16008_v59 = vld [vmem:[#allocation97_spill] sm:$0xff] }
 0x52f   : > { %v5033_v61 = vsel %vm5022_vm0, %v15997_v41, %v16003_v58  ;;  %v14472_v25 = vpack.c.bf16 %v5747_v52, %v5739_v18  ;;  %v5657_v13 = vmax.f32 %v5625_v60, 0.0  ;;  %v5071_v21 = vadd.f32 %v5053_v20, %v14204_v54  ;;  %v5501_v38 = vpop.permute.xlu1 %5500  ;;  %v16007_v18 = vld [vmem:[#allocation66_spill] sm:$0xff] }
 0x530   : > { %v14476_v55 = vadd.f32 %v5025_v39, %v14207_v12  ;;  %v5613_v51 = vadd.f32 %v15972_v4, %v5557_v56  ;;  %v5620_v19 = vadd.f32 %v15972_v4, %v5564_v53  ;;  %v5724_v16 = vmul.f32 %v14109_v8, %v5649_v37  ;;  %v5519_v50 = vpop.permute.xlu0 %5518 }
 0x531   : > { %v5732_v28 = vmul.f32 %v14109_v8, %v5657_v13  ;;  %9686 = vmatprep.subr.bf16.mxu1 %v14472_v25  ;;  %v5529_v41 = vsel %vm5524_vm1, %v5501_v38, %v5509_v5  ;;  %v5533_v54 = vsel %vm5524_vm1, %v5493_v35, %v5501_v38  ;;  %v14488_v12 = vadd.f32 %v5033_v61, %v14214_v26  ;;  %v14499_v5 = vld [vmem:[%s15151_s4] sm:$0xff]  ;;  %v16010_v13 = vld [vmem:[#allocation108_spill] sm:$0xff] }
 0x532   : > { %v14491_v32 = vadd.f32 %v5029_v7, %v14217_v34  ;;  %v5562_v44 = vadd.f32 %v5533_v54, %v14371_v45  ;;  %v5563_v47 = vadd.f32 %v5529_v41, %v14378_v62  ;;  %9688 = vmatpush1.bf16.msra.mxu1 %v14442_v27  ;;  %v16005_v35 = vld [vmem:[#allocation102_spill] sm:$0xff]  ;;  %v5526_v34 = vsel %vm5524_vm1, %v5511_v24, %v5519_v50  ;;  %v16006_v45 = vld [vmem:[#allocation105_spill] sm:$0xff] }
 0x533   : > { %v14505_v26 = vsel %vm5022_vm0, %v16005_v35, %v16004_v63  ;;  %v14507_v2 = vpack.c.bf16 %v5732_v28, %v5724_v16  ;;  %v5554_v62 = vsel %vm5524_vm1, %v5519_v50, %v16006_v45  ;;  %v5645_v48 = vmax.f32 %v5613_v51, 0.0  ;;  %v5497_v20 = vpop.permute.xlu1 %5496 }
 0x534   : > { %v5652_v39 = vmax.f32 %v5620_v19, 0.0  ;;  %v5618_v3 = vadd.f32 %v15972_v4, %v5562_v44  ;;  %v5619_v17 = vadd.f32 %v15972_v4, %v5563_v47  ;;  %v5054_v37 = vsel %vm5022_vm0, %v16004_v63, %v16007_v18  ;;  %v5503_v60 = vpop.permute.xlu0 %5502  ;;  %v16012_v44 = vld [vmem:[#allocation106_spill] sm:$0xff] }
 0x535   : > { %v5565_v23 = vadd.f32 %v5554_v62, %v14388_v36  ;;  %v5572_v52 = vadd.f32 %v5526_v34, %v14410_v10  ;;  %v5539_v57 = vsel %vm5524_vm1, %v14356_v49, %v5497_v20  ;;  %9036 = vmatmul.mubr.msk.f32.vlgmr.msra.gmra.mrb[176].mxu1 %vm5753_vm2, %v14499_v5  ;;  %v5034_v4 = vsel %vm5022_vm0, %v16000_v29, %v16008_v59  ;;  %v16011_v29 = vld [vmem:[#allocation104_spill] sm:$0xff] }
 0x536   : > { %v5650_v56 = vmax.f32 %v5618_v3, 0.0  ;;  %v5530_v53 = vsel %vm5524_vm1, %v5503_v60, %v5511_v24  ;;  %v5534_v36 = vsel %vm5524_vm1, %v14426_v40, %v5503_v60  ;;  %v16009_v10 = vmov 0.0  }
 0x537   : > { %6034 = vmatprep.mubr.f32.mxu1 %v16009_v10  ;;  %v5621_v49 = vadd.f32 %v15979_v6, %v5565_v23  ;;  %v5628_v58 = vadd.f32 %v15979_v6, %v5572_v52  ;;  %v5570_v7 = vadd.f32 %v5534_v36, %v14421_v46  ;;  %v5571_v61 = vadd.f32 %v5530_v53, %v5069_v1  ;;  %v5521_v16 = vpop.permute.xlu1 %5520  ;;  %v16013_v1 = vld [vmem:[#allocation111_spill] sm:$0xff]  ;;  %v16015_v53 = vld [vmem:[#allocation109_spill] sm:$0xff] }
 0x538   : > { %v5720_v51 = vmul.f32 %v16010_v13, %v5645_v48  ;;  %v5727_v19 = vmul.f32 %v16011_v29, %v5652_v39  ;;  %v5651_v38 = vmax.f32 %v5619_v17, 0.0  ;;  %v5577_v24 = vadd.f32 %v5539_v57, %v14417_v9  ;;  %v5499_v50 = vpop.permute.xlu0 %5498 }
 0x539   : > { %v5653_v28 = vmax.f32 %v5621_v49, 0.0  ;;  %v5660_v41 = vmax.f32 %v5628_v58, 0.0  ;;  %v5626_v40 = vadd.f32 %v15979_v6, %v5570_v7  ;;  %v5627_v54 = vadd.f32 %v15979_v6, %v5571_v61  ;;  %v16014_v6 = vld [vmem:[#allocation110_spill] sm:$0xff] }
 0x53a   : > { %v5725_v47 = vmul.f32 %v16012_v44, %v5650_v56  ;;  %v5633_v46 = vadd.f32 %v15995_v42, %v5577_v24  ;;  %v5555_v63 = vsel %vm5524_vm1, %v5521_v16, %v16013_v1  ;;  %v5540_v9 = vsel %vm5524_vm1, %v14400_v0, %v5499_v50 }
 0x53b   : > { %v5728_v34 = vmul.f32 %v16010_v13, %v5653_v28  ;;  %v5735_v45 = vmul.f32 %v16011_v29, %v5660_v41  ;;  %v5658_v62 = vmax.f32 %v5626_v40, 0.0  ;;  %v5659_v48 = vmax.f32 %v5627_v54, 0.0  ;;  %v5505_v23 = vpop.permute.xlu1 %5504 }
 0x53c   : > { %v5726_v39 = vmul.f32 %v16014_v6, %v5651_v38  ;;  %v5665_v3 = vmax.f32 %v5633_v46, 0.0  ;;  %v5573_v17 = vadd.f32 %v5555_v63, %v5071_v21  ;;  %v5585_v18 = vadd.f32 %v5540_v9, %v14460_v30  ;;  %v5523_v56 = vpop.permute.xlu0 %5522  ;;  %v16018_v46 = vld [vmem:[#allocation113_spill] sm:$0xff] }
 0x53d   : > { %v14557_v52 = vpack.c.bf16 %v5728_v34, %v5720_v51  ;;  %v14559_v60 = vpack.c.bf16 %v5735_v45, %v5727_v19  ;;  %v5733_v57 = vmul.f32 %v16012_v44, %v5658_v62  ;;  %v5734_v0 = vmul.f32 %v16014_v6, %v5659_v48  ;;  %v16016_v51 = vld [vmem:[#allocation112_spill] sm:$0xff]  ;;  %v16019_v62 = vld [vmem:[#allocation107_spill] sm:$0xff] }
 0x53e   : > { %v5079_v36 = vadd.f32 %v5054_v37, %v16015_v53  ;;  %v5629_v49 = vadd.f32 %v15995_v42, %v5573_v17  ;;  %v5641_v58 = vadd.f32 %v15999_v14, %v5585_v18  ;;  %v5535_v21 = vsel %vm5524_vm1, %v5497_v20, %v5505_v23 }
 0x53f   : > { %v14568_v30 = vpack.c.bf16 %v5733_v57, %v5725_v47  ;;  %v14570_v7 = vpack.c.bf16 %v5734_v0, %v5726_v39  ;;  %9676 = vmatpush1.bf16.msra.mxu0 %v14557_v52  ;;  %9698 = vmatprep.subr.bf16.mxu1 %v14559_v60  ;;  %v5578_v61 = vadd.f32 %v5535_v21, %v14488_v12  ;;  %v5513_v24 = vpop.permute.xlu1 %5512  ;;  %v16017_v47 = vld [vmem:[#allocation101_spill] sm:$0xff] }
 0x540   : > { %v5030_v37 = vsel %vm5022_vm0, %v16008_v59, %v16005_v35  ;;  %v5084_v19 = vadd.f32 %v5034_v4, %v16016_v51  ;;  %v5673_v38 = vmax.f32 %v5641_v58, 0.0  ;;  %v5556_v20 = vsel %vm5524_vm1, %v5523_v56, %v14293_v43  ;;  %9678 = vmatprep.subr.bf16.mxu0 %v14449_v31  ;;  %v5507_v59 = vpop.permute.xlu0 %5506 }
 0x541   : > { %v5740_v28 = vmul.f32 %v14109_v8, %v5665_v3  ;;  %v5581_v41 = vadd.f32 %v5556_v20, %v5079_v36  ;;  %9700 = vmatpush1.bf16.msra.mxu1 %v14570_v7  ;;  %v5527_v12 = vsel %vm5524_vm1, %v5513_v24, %v5521_v16  ;;  %v5531_v35 = vsel %vm5524_vm1, %v5505_v23, %v5513_v24 }
 0x542   : > { %v5748_v4 = vmul.f32 %v14109_v8, %v5673_v38  ;;  %v5634_v40 = vadd.f32 %v15995_v42, %v5578_v61  ;;  %v5579_v43 = vadd.f32 %v5531_v35, %v14491_v32  ;;  %v5580_v54 = vadd.f32 %v5527_v12, %v14476_v55  ;;  %v9059_v12 = vld [vmem:[%s15151_s4 + $0x28] sm:$0xff]  ;;  %v9064_v35 = vld [vmem:[%s15151_s4 + $0x30] sm:$0xff] }
 0x543   : > { %v4583_v1 = vadd.f32 %v16018_v46, %v16017_v47  ;;  %v5661_v63 = vmax.f32 %v5629_v49, 0.0  ;;  %v5637_v9 = vadd.f32 %v15999_v14, %v5581_v41  ;;  %v5536_v16 = vsel %vm5524_vm1, %v5499_v50, %v5507_v59  ;;  %v9054_v41 = vld [vmem:[%s15151_s4 + $0x20] sm:$0xff] }
 0x544   : > { %v14599_v34 = vpack.c.bf16 %v5748_v4, %v5740_v28  ;;  %v5586_v45 = vadd.f32 %v5536_v16, %v5084_v19  ;;  %v5086_v8 = vadd.f32 %v14505_v26, %v16019_v62  ;;  %v5636_v32 = vadd.f32 %v15995_v42, %v5580_v54  ;;  %v5515_v55 = vpop.permute.xlu0 %5514 }
 0x545   : > { %v5085_v48 = vadd.f32 %v5030_v37, %v4583_v1  ;;  %v5669_v39 = vmax.f32 %v5637_v9, 0.0  ;;  %v5666_v3 = vmax.f32 %v5634_v40, 0.0  ;;  %v5635_v17 = vadd.f32 %v15995_v42, %v5579_v43 }
 0x546   : > { %v5642_v18 = vadd.f32 %v15999_v14, %v5586_v45  ;;  %v5528_v23 = vsel %vm5524_vm1, %v5515_v55, %v5523_v56  ;;  %v5736_v50 = vmul.f32 %v16010_v13, %v5661_v63  ;;  %v5532_v26 = vsel %vm5524_vm1, %v5507_v59, %v5515_v55  ;;  %v9069_v59 = vld [vmem:[%s15151_s4 + $0x38] sm:$0xff] }
 0x547   : > { %v5744_v57 = vmul.f32 %v16010_v13, %v5669_v39  ;;  %v5588_v0 = vadd.f32 %v5528_v23, %v5086_v8  ;;  %v5587_v36 = vadd.f32 %v5532_v26, %v5085_v48  ;;  %v5668_v58 = vmax.f32 %v5636_v32, 0.0 }
 0x548   : > { %v5674_v53 = vmax.f32 %v5642_v18, 0.0  ;;  %v5741_v21 = vmul.f32 %v16012_v44, %v5666_v3  ;;  %v5667_v61 = vmax.f32 %v5635_v17, 0.0 }
 0x549   : > { %v14612_v49 = vpack.c.bf16 %v5744_v57, %v5736_v50  ;;  %v5644_v42 = vadd.f32 %v15999_v14, %v5588_v0  ;;  %v5643_v37 = vadd.f32 %v15999_v14, %v5587_v36  ;;  %v5743_v38 = vmul.f32 %v16011_v29, %v5668_v58 }
 0x54a   : > { %v5749_v56 = vmul.f32 %v16012_v44, %v5674_v53  ;;  %v5742_v24 = vmul.f32 %v16014_v6, %v5667_v61 }
 0x54b   : > { %v5676_v51 = vmax.f32 %v5644_v42, 0.0  ;;  %9680 = vmatpush1.bf16.msra.mxu0 %v14612_v49  ;;  %v5675_v19 = vmax.f32 %v5643_v37, 0.0 }
 0x54c   : > { %v14619_v13 = vpack.c.bf16 %v5749_v56, %v5741_v21  ;;  %9690 = vmatprep.subr.bf16.mxu0 %v14568_v30 }
 0x54d   : > { %v5751_v20 = vmul.f32 %v16011_v29, %v5676_v51  ;;  %v5750_v28 = vmul.f32 %v16014_v6, %v5675_v19  ;;  %v9039_v29 = vld [vmem:[%s15151_s4 + $0x8] sm:$0xff]  ;;  %v9049_v6 = vld [vmem:[%s15151_s4 + $0x18] sm:$0xff] }
 0x54e   : > { %9035 = vmatmul.mubr.msk.f32.vlgmr.msra.gmra.mrb[176].mxu0 %vm5753_vm2, %v14499_v5 }
 0x54f   : > { %v14628_v14 = vpack.c.bf16 %v5751_v20, %v5743_v38  ;;  %9692 = vmatpush1.bf16.msra.mxu0 %v14507_v2  ;;  %5963 = vmatprep.mubr.f32.mxu0 %v16009_v10  ;;  %v14632_v44 = vpack.c.bf16 %v5750_v28, %v5742_v24 }
 0x550   : > { %9694 = vmatprep.subr.bf16.mxu0 %v14619_v13  ;;  %v14910_v56 = vpop.permute.xlu1 %8612 }
 0x551   : > { %9702 = vmatprep.subr.bf16.mxu1 %v14628_v14 }
 0x552   : > { %9704 = vmatpush1.bf16.msra.mxu1 %v14632_v44 }
 0x553   : > { %9696 = vmatpush1.bf16.msra.mxu0 %v14599_v34  ;;  %9714 = vmatprep.subr.bf16.mxu1 %v14345_v11 }
 0x554   : > { %9706 = vmatprep.subr.bf16.mxu0 %v14324_v22 }
 0x555   : > { %9038 = vmatmul.mubr.msk.f32.vlgmr.msra.gmra.mrb[178].mxu1 %vm5753_vm2, %v14499_v5 }
 0x556   : > { %9037 = vmatmul.mubr.msk.f32.vlgmr.msra.gmra.mrb[178].mxu0 %vm5753_vm2, %v14499_v5  ;;  %9716 = vmatpush1.bf16.msra.mxu1 %v14310_v33  ;;  %v9044_v5 = vld [vmem:[%s15151_s4 + $0x10] sm:$0xff] }
 0x557   : > { %9708 = vmatpush1.bf16.msra.mxu0 %v14557_v52  ;;  %9718 = vmatprep.subr.bf16.mxu1 %v14472_v25 }
 0x558   : > { %9710 = vmatprep.subr.bf16.mxu0 %v14449_v31  ;;  %6134 = vmatprep.mubr.f32.mxu0 %v16009_v10 }
 0x559   : > { %6205 = vmatprep.mubr.f32.mxu1 %v16009_v10 }
 0x55a   : > { %9720 = vmatpush1.bf16.msra.mxu1 %v14442_v27 }
 0x55b   : > { %9712 = vmatpush1.bf16.msra.mxu0 %v14612_v49  ;;  %9730 = vmatprep.subr.bf16.mxu1 %v14559_v60 }
 0x55c   : > { %9722 = vmatprep.subr.bf16.mxu0 %v14568_v30 }
 0x55d   : > { %9041 = vmatmul.mubr.msk.f32.vlgmr.msra.gmra.mrb[180].mxu1 %vm5753_vm2, %v9039_v29 }
 0x55e   : > { %9040 = vmatmul.mubr.msk.f32.vlgmr.msra.gmra.mrb[180].mxu0 %vm5753_vm2, %v9039_v29  ;;  %9732 = vmatpush1.bf16.msra.mxu1 %v14570_v7 }
 0x55f   : > { %9724 = vmatpush1.bf16.msra.mxu0 %v14507_v2  ;;  %9734 = vmatprep.subr.bf16.mxu1 %v14628_v14 }
 0x560   : > { %9726 = vmatprep.subr.bf16.mxu0 %v14619_v13  ;;  %6276 = vmatprep.mubr.f32.mxu0 %v16009_v10 }
 0x561   : > { %6347 = vmatprep.mubr.f32.mxu1 %v16009_v10 }
 0x562   : > { %9736 = vmatpush1.bf16.msra.mxu1 %v14632_v44 }
 0x563   : > { %9728 = vmatpush1.bf16.msra.mxu0 %v14599_v34  ;;  %9746 = vmatprep.subr.bf16.mxu1 %v14345_v11 }
 0x564   : > { %9738 = vmatprep.subr.bf16.mxu0 %v14324_v22 }
 0x565   : > { %9043 = vmatmul.mubr.msk.f32.vlgmr.msra.gmra.mrb[182].mxu1 %vm5753_vm2, %v9039_v29 }
 0x566   : > { %9042 = vmatmul.mubr.msk.f32.vlgmr.msra.gmra.mrb[182].mxu0 %vm5753_vm2, %v9039_v29  ;;  %9748 = vmatpush1.bf16.msra.mxu1 %v14310_v33 }
 0x567   : > { %9740 = vmatpush1.bf16.msra.mxu0 %v14557_v52  ;;  %9750 = vmatprep.subr.bf16.mxu1 %v14472_v25 }
 0x568   : > { %9742 = vmatprep.subr.bf16.mxu0 %v14449_v31  ;;  %6455 = vmatprep.mubr.f32.mxu0 %v16009_v10 }
 0x569   : > { %6526 = vmatprep.mubr.f32.mxu1 %v16009_v10 }
 0x56a   : > { %9752 = vmatpush1.bf16.msra.mxu1 %v14442_v27 }
 0x56b   : > { %9744 = vmatpush1.bf16.msra.mxu0 %v14612_v49  ;;  %9762 = vmatprep.subr.bf16.mxu1 %v14559_v60 }
 0x56c   : > { %9754 = vmatprep.subr.bf16.mxu0 %v14568_v30 }
 0x56d   : > { %9046 = vmatmul.mubr.msk.f32.vlgmr.msra.gmra.mrb[184].mxu1 %vm5753_vm2, %v9044_v5 }
 0x56e   : > { %9045 = vmatmul.mubr.msk.f32.vlgmr.msra.gmra.mrb[184].mxu0 %vm5753_vm2, %v9044_v5  ;;  %9764 = vmatpush1.bf16.msra.mxu1 %v14570_v7 }
 0x56f   : > { %9756 = vmatpush1.bf16.msra.mxu0 %v14507_v2  ;;  %9766 = vmatprep.subr.bf16.mxu1 %v14628_v14 }
 0x570   : > { %9758 = vmatprep.subr.bf16.mxu0 %v14619_v13  ;;  %6597 = vmatprep.mubr.f32.mxu0 %v16009_v10 }
 0x571   : > { %6668 = vmatprep.mubr.f32.mxu1 %v16009_v10 }
 0x572   : > { %9768 = vmatpush1.bf16.msra.mxu1 %v14632_v44 }
 0x573   : > { %9760 = vmatpush1.bf16.msra.mxu0 %v14599_v34  ;;  %9778 = vmatprep.subr.bf16.mxu1 %v14345_v11 }
 0x574   : > { %9770 = vmatprep.subr.bf16.mxu0 %v14324_v22 }
 0x575   : > { %9048 = vmatmul.mubr.msk.f32.vlgmr.msra.gmra.mrb[186].mxu1 %vm5753_vm2, %v9044_v5 }
 0x576   : > { %9047 = vmatmul.mubr.msk.f32.vlgmr.msra.gmra.mrb[186].mxu0 %vm5753_vm2, %v9044_v5  ;;  %9780 = vmatpush1.bf16.msra.mxu1 %v14310_v33 }
 0x577   : > { %9772 = vmatpush1.bf16.msra.mxu0 %v14557_v52  ;;  %9782 = vmatprep.subr.bf16.mxu1 %v14472_v25 }
 0x578   : > { %9774 = vmatprep.subr.bf16.mxu0 %v14449_v31  ;;  %6776 = vmatprep.mubr.f32.mxu0 %v16009_v10 }
 0x579   : > { %6847 = vmatprep.mubr.f32.mxu1 %v16009_v10 }
 0x57a   : > { %9784 = vmatpush1.bf16.msra.mxu1 %v14442_v27 }
 0x57b   : > { %9776 = vmatpush1.bf16.msra.mxu0 %v14612_v49  ;;  %9794 = vmatprep.subr.bf16.mxu1 %v14559_v60 }
 0x57c   : > { %9786 = vmatprep.subr.bf16.mxu0 %v14568_v30 }
 0x57d   : > { %9051 = vmatmul.mubr.msk.f32.vlgmr.msra.gmra.mrb[188].mxu1 %vm5753_vm2, %v9049_v6 }
 0x57e   : > { %9050 = vmatmul.mubr.msk.f32.vlgmr.msra.gmra.mrb[188].mxu0 %vm5753_vm2, %v9049_v6  ;;  %9796 = vmatpush1.bf16.msra.mxu1 %v14570_v7 }
 0x57f   : > { %9788 = vmatpush1.bf16.msra.mxu0 %v14507_v2  ;;  %9798 = vmatprep.subr.bf16.mxu1 %v14628_v14 }
 0x580   : > { %9790 = vmatprep.subr.bf16.mxu0 %v14619_v13  ;;  %6918 = vmatprep.mubr.f32.mxu0 %v16009_v10 }
 0x581   : > { %6989 = vmatprep.mubr.f32.mxu1 %v16009_v10 }
 0x582   : > { %9800 = vmatpush1.bf16.msra.mxu1 %v14632_v44 }
 0x583   : > { %9792 = vmatpush1.bf16.msra.mxu0 %v14599_v34  ;;  %9810 = vmatprep.subr.bf16.mxu1 %v14345_v11 }
 0x584   : > { %9802 = vmatprep.subr.bf16.mxu0 %v14324_v22 }
 0x585   : > { %9053 = vmatmul.mubr.msk.f32.vlgmr.msra.gmra.mrb[190].mxu1 %vm5753_vm2, %v9049_v6 }
 0x586   : > { %9052 = vmatmul.mubr.msk.f32.vlgmr.msra.gmra.mrb[190].mxu0 %vm5753_vm2, %v9049_v6  ;;  %9812 = vmatpush1.bf16.msra.mxu1 %v14310_v33 }
 0x587   : > { %9804 = vmatpush1.bf16.msra.mxu0 %v14557_v52  ;;  %9814 = vmatprep.subr.bf16.mxu1 %v14472_v25 }
 0x588   : > { %9806 = vmatprep.subr.bf16.mxu0 %v14449_v31  ;;  %7097 = vmatprep.mubr.f32.mxu0 %v16009_v10 }
 0x589   : > { %7168 = vmatprep.mubr.f32.mxu1 %v16009_v10 }
 0x58a   : > { %9816 = vmatpush1.bf16.msra.mxu1 %v14442_v27 }
 0x58b   : > { %9808 = vmatpush1.bf16.msra.mxu0 %v14612_v49  ;;  %9826 = vmatprep.subr.bf16.mxu1 %v14559_v60 }
 0x58c   : > { %9818 = vmatprep.subr.bf16.mxu0 %v14568_v30 }
 0x58d   : > { %9056 = vmatmul.mubr.msk.f32.vlgmr.msra.gmra.mrb[192].mxu1 %vm5753_vm2, %v9054_v41 }
 0x58e   : > { %9055 = vmatmul.mubr.msk.f32.vlgmr.msra.gmra.mrb[192].mxu0 %vm5753_vm2, %v9054_v41  ;;  %9828 = vmatpush1.bf16.msra.mxu1 %v14570_v7 }
 0x58f   : > { %9820 = vmatpush1.bf16.msra.mxu0 %v14507_v2  ;;  %9830 = vmatprep.subr.bf16.mxu1 %v14628_v14 }
 0x590   : > { %9822 = vmatprep.subr.bf16.mxu0 %v14619_v13  ;;  %7239 = vmatprep.mubr.f32.mxu0 %v16009_v10 }
 0x591   : > { %7310 = vmatprep.mubr.f32.mxu1 %v16009_v10 }
 0x592   : > { %9832 = vmatpush1.bf16.msra.mxu1 %v14632_v44 }
 0x593   : > { %9824 = vmatpush1.bf16.msra.mxu0 %v14599_v34  ;;  %9842 = vmatprep.subr.bf16.mxu1 %v14345_v11 }
 0x594   : > { %9834 = vmatprep.subr.bf16.mxu0 %v14324_v22 }
 0x595   : > { %9058 = vmatmul.mubr.msk.f32.vlgmr.msra.gmra.mrb[194].mxu1 %vm5753_vm2, %v9054_v41 }
 0x596   : > { %9057 = vmatmul.mubr.msk.f32.vlgmr.msra.gmra.mrb[194].mxu0 %vm5753_vm2, %v9054_v41  ;;  %9844 = vmatpush1.bf16.msra.mxu1 %v14310_v33 }
 0x597   : > { %9836 = vmatpush1.bf16.msra.mxu0 %v14557_v52  ;;  %9846 = vmatprep.subr.bf16.mxu1 %v14472_v25 }
 0x598   : > { %9838 = vmatprep.subr.bf16.mxu0 %v14449_v31  ;;  %7394 = vmatprep.mubr.f32.mxu0 %v16009_v10 }
 0x599   : > { %7465 = vmatprep.mubr.f32.mxu1 %v16009_v10 }
 0x59a   : > { %9848 = vmatpush1.bf16.msra.mxu1 %v14442_v27 }
 0x59b   : > { %9840 = vmatpush1.bf16.msra.mxu0 %v14612_v49  ;;  %9858 = vmatprep.subr.bf16.mxu1 %v14559_v60 }
 0x59c   : > { %9850 = vmatprep.subr.bf16.mxu0 %v14568_v30 }
 0x59d   : > { %9061 = vmatmul.mubr.msk.f32.vlgmr.msra.gmra.mrb[196].mxu1 %vm5753_vm2, %v9059_v12 }
 0x59e   : > { %9060 = vmatmul.mubr.msk.f32.vlgmr.msra.gmra.mrb[196].mxu0 %vm5753_vm2, %v9059_v12  ;;  %9860 = vmatpush1.bf16.msra.mxu1 %v14570_v7 }
 0x59f   : > { %9852 = vmatpush1.bf16.msra.mxu0 %v14507_v2  ;;  %9862 = vmatprep.subr.bf16.mxu1 %v14628_v14 }
 0x5a0   : > { %9854 = vmatprep.subr.bf16.mxu0 %v14619_v13  ;;  %7536 = vmatprep.mubr.f32.mxu0 %v16009_v10 }
 0x5a1   : > { %7607 = vmatprep.mubr.f32.mxu1 %v16009_v10 }
 0x5a2   : > { %9864 = vmatpush1.bf16.msra.mxu1 %v14632_v44 }
 0x5a3   : > { %9856 = vmatpush1.bf16.msra.mxu0 %v14599_v34  ;;  %9874 = vmatprep.subr.bf16.mxu1 %v14345_v11 }
 0x5a4   : > { %9866 = vmatprep.subr.bf16.mxu0 %v14324_v22 }
 0x5a5   : > { %9063 = vmatmul.mubr.msk.f32.vlgmr.msra.gmra.mrb[198].mxu1 %vm5753_vm2, %v9059_v12 }
 0x5a6   : > { %9062 = vmatmul.mubr.msk.f32.vlgmr.msra.gmra.mrb[198].mxu0 %vm5753_vm2, %v9059_v12  ;;  %9876 = vmatpush1.bf16.msra.mxu1 %v14310_v33 }
 0x5a7   : > { %9868 = vmatpush1.bf16.msra.mxu0 %v14557_v52  ;;  %9878 = vmatprep.subr.bf16.mxu1 %v14472_v25 }
 0x5a8   : > { %9870 = vmatprep.subr.bf16.mxu0 %v14449_v31  ;;  %7715 = vmatprep.mubr.f32.mxu0 %v16009_v10 }
 0x5a9   : > { %7786 = vmatprep.mubr.f32.mxu1 %v16009_v10 }
 0x5aa   : > { %9880 = vmatpush1.bf16.msra.mxu1 %v14442_v27 }
 0x5ab   : > { %9872 = vmatpush1.bf16.msra.mxu0 %v14612_v49  ;;  %9890 = vmatprep.subr.bf16.mxu1 %v14559_v60 }
 0x5ac   : > { %9882 = vmatprep.subr.bf16.mxu0 %v14568_v30 }
 0x5ad   : > { %9066 = vmatmul.mubr.msk.f32.vlgmr.msra.gmra.mrb[200].mxu1 %vm5753_vm2, %v9064_v35 }
 0x5ae   : > { %9065 = vmatmul.mubr.msk.f32.vlgmr.msra.gmra.mrb[200].mxu0 %vm5753_vm2, %v9064_v35  ;;  %9892 = vmatpush1.bf16.msra.mxu1 %v14570_v7 }
 0x5af   : > { %9884 = vmatpush1.bf16.msra.mxu0 %v14507_v2  ;;  %9894 = vmatprep.subr.bf16.mxu1 %v14628_v14 }
 0x5b0   : > { %9886 = vmatprep.subr.bf16.mxu0 %v14619_v13  ;;  %7857 = vmatprep.mubr.f32.mxu0 %v16009_v10 }
 0x5b1   : > { %7928 = vmatprep.mubr.f32.mxu1 %v16009_v10 }
 0x5b2   : > { %9896 = vmatpush1.bf16.msra.mxu1 %v14632_v44 }
 0x5b3   : > { %9888 = vmatpush1.bf16.msra.mxu0 %v14599_v34  ;;  %9906 = vmatprep.subr.bf16.mxu1 %v14345_v11 }
 0x5b4   : > { %9898 = vmatprep.subr.bf16.mxu0 %v14324_v22 }
 0x5b5   : > { %9068 = vmatmul.mubr.msk.f32.vlgmr.msra.gmra.mrb[202].mxu1 %vm5753_vm2, %v9064_v35 }
 0x5b6   : > { %9067 = vmatmul.mubr.msk.f32.vlgmr.msra.gmra.mrb[202].mxu0 %vm5753_vm2, %v9064_v35  ;;  %9908 = vmatpush1.bf16.msra.mxu1 %v14310_v33 }
 0x5b7   : > { %9900 = vmatpush1.bf16.msra.mxu0 %v14557_v52  ;;  %9910 = vmatprep.subr.bf16.mxu1 %v14472_v25 }
 0x5b8   : > { %9902 = vmatprep.subr.bf16.mxu0 %v14449_v31  ;;  %8036 = vmatprep.mubr.f32.mxu0 %v16009_v10 }
 0x5b9   : > { %8107 = vmatprep.mubr.f32.mxu1 %v16009_v10 }
 0x5ba   : > { %9912 = vmatpush1.bf16.msra.mxu1 %v14442_v27 }
 0x5bb   : > { %9904 = vmatpush1.bf16.msra.mxu0 %v14612_v49  ;;  %9922 = vmatprep.subr.bf16.mxu1 %v14559_v60 }
 0x5bc   : > { %9914 = vmatprep.subr.bf16.mxu0 %v14568_v30 }
 0x5bd   : > { %9071 = vmatmul.mubr.msk.f32.vlgmr.msra.gmra.mrb[204].mxu1 %vm5753_vm2, %v9069_v59 }
 0x5be   : > { %9070 = vmatmul.mubr.msk.f32.vlgmr.msra.gmra.mrb[204].mxu0 %vm5753_vm2, %v9069_v59  ;;  %9924 = vmatpush1.bf16.msra.mxu1 %v14570_v7 }
 0x5bf   : > { %9916 = vmatpush1.bf16.msra.mxu0 %v14507_v2  ;;  %9926 = vmatprep.subr.bf16.mxu1 %v14628_v14 }
 0x5c0   : > { %9918 = vmatprep.subr.bf16.mxu0 %v14619_v13  ;;  %8178 = vmatprep.mubr.f32.mxu0 %v16009_v10 }
 0x5c1   : > { %8249 = vmatprep.mubr.f32.mxu1 %v16009_v10 }
 0x5c2   : > { %9928 = vmatpush1.bf16.msra.mxu1 %v14632_v44 }
 0x5c3   : > { %9920 = vmatpush1.bf16.msra.mxu0 %v14599_v34  ;;  %9938 = vmatprep.subr.bf16.mxu1 %v14345_v11  ;;  %v9074_v11 = vld [vmem:[%s15151_s4 + $0x40] sm:$0xff] }
 0x5c4   : > { %9930 = vmatprep.subr.bf16.mxu0 %v14324_v22 }
 0x5c5   : > { %9073 = vmatmul.mubr.msk.f32.vlgmr.msra.gmra.mrb[206].mxu1 %vm5753_vm2, %v9069_v59 }
 0x5c6   : > { %9072 = vmatmul.mubr.msk.f32.vlgmr.msra.gmra.mrb[206].mxu0 %vm5753_vm2, %v9069_v59  ;;  %9940 = vmatpush1.bf16.msra.mxu1 %v14310_v33 }
 0x5c7   : > { %9932 = vmatpush1.bf16.msra.mxu0 %v14557_v52  ;;  %9942 = vmatprep.subr.bf16.mxu1 %v14472_v25 }
 0x5c8   : > { %9934 = vmatprep.subr.bf16.mxu0 %v14449_v31  ;;  %8357 = vmatprep.mubr.f32.mxu0 %v16009_v10 }
 0x5c9   : > { %8428 = vmatprep.mubr.f32.mxu1 %v16009_v10 }
 0x5ca   : > { %9944 = vmatpush1.bf16.msra.mxu1 %v14442_v27 }
 0x5cb   : > { %9936 = vmatpush1.bf16.msra.mxu0 %v14612_v49  ;;  %9954 = vmatprep.subr.bf16.mxu1 %v14559_v60 }
 0x5cc   : > { %9946 = vmatprep.subr.bf16.mxu0 %v14568_v30 }
 0x5cd   : > { %9076 = vmatmul.mubr.msk.f32.vlgmr.msra.gmra.mrb[208].mxu1 %vm5753_vm2, %v9074_v11 }
 0x5ce   : > { %9075 = vmatmul.mubr.msk.f32.vlgmr.msra.gmra.mrb[208].mxu0 %vm5753_vm2, %v9074_v11  ;;  %9956 = vmatpush1.bf16.msra.mxu1 %v14570_v7 }
 0x5cf   : > { %9948 = vmatpush1.bf16.msra.mxu0 %v14507_v2  ;;  %9958 = vmatprep.subr.bf16.mxu1 %v14628_v14 }
 0x5d0   : > { %9950 = vmatprep.subr.bf16.mxu0 %v14619_v13  ;;  %8499 = vmatprep.mubr.f32.mxu0 %v16009_v10 }
 0x5d1   : > { %8570 = vmatprep.mubr.f32.mxu1 %v16009_v10 }
 0x5d2   : > { %9960 = vmatpush1.bf16.msra.mxu1 %v14632_v44 }
 0x5d3   : > { %9952 = vmatpush1.bf16.msra.mxu0 %v14599_v34 }
 0x5d5   : > { %9078 = vmatmul.mubr.msk.f32.vlgmr.msra.gmra.mrb[210].mxu1 %vm5753_vm2, %v9074_v11 }
 0x5d6   : > { %9077 = vmatmul.mubr.msk.f32.vlgmr.msra.gmra.mrb[210].mxu0 %vm5753_vm2, %v9074_v11 }
 0x608   : > { %v5894_v33 = vpop.f32.mrb[176].mxu1 }
 0x609   : > { %v5896_v22 = vpop.f32.mrb[177].mxu1  ;;  %6045 = vrot.lane.b32.xlu1 %v5894_v33, %s10083_s21 }
 0x60a   : > { %6047 = vrot.lane.b32.xlu0 %v5896_v22, %s10083_s21 }
 0x621   : > { %v5823_v27 = vpop.f32.mrb[176].mxu0 }
 0x622   : > { %6041 = vrot.lane.b32.xlu1 %v5823_v27, %s10083_s21  ;;  %v5825_v31 = vpop.f32.mrb[177].mxu0 }
 0x623   : > { %6043 = vrot.lane.b32.xlu0 %v5825_v31, %s10083_s21 }
 0x628   : > { %v6036_v25 = vpop.f32.mrb[178].mxu1 }
 0x629   : > { %v6038_v2 = vpop.f32.mrb[179].mxu1  ;;  %6053 = vrot.lane.b32.xlu1 %v6036_v25, %s10083_s21  ;;  %v5965_v10 = vpop.f32.mrb[178].mxu0 }
 0x62a   : > { %6055 = vrot.lane.b32.xlu0 %v6038_v2, %s10083_s21  ;;  %v5967_v52 = vpop.f32.mrb[179].mxu0 }
 0x62d   : > { %6049 = vrot.lane.b32.xlu1 %v5965_v10, %s10083_s21 }
 0x62e   : > { %6051 = vrot.lane.b32.xlu0 %v5967_v52, %s10083_s21 }
 0x630   : > { %v6207_v60 = vpop.f32.mrb[180].mxu1 }
 0x631   : > { %v6209_v30 = vpop.f32.mrb[181].mxu1  ;;  %6358 = vrot.lane.b32.xlu1 %v6207_v60, %s10082_s20  ;;  %v6136_v7 = vpop.f32.mrb[180].mxu0 }
 0x632   : > { %6360 = vrot.lane.b32.xlu0 %v6209_v30, %s10082_s20  ;;  %v6138_v4 = vpop.f32.mrb[181].mxu0 }
 0x635   : > { %6354 = vrot.lane.b32.xlu1 %v6136_v7, %s10082_s20 }
 0x636   : > { %6356 = vrot.lane.b32.xlu0 %v6138_v4, %s10082_s20 }
 0x638   : > { %v6349_v40 = vpop.f32.mrb[182].mxu1 }
 0x639   : > { %v6351_v43 = vpop.f32.mrb[183].mxu1  ;;  %6366 = vrot.lane.b32.xlu1 %v6349_v40, %s10082_s20  ;;  %v6278_v54 = vpop.f32.mrb[182].mxu0 }
 0x63a   : > { %6368 = vrot.lane.b32.xlu0 %v6351_v43, %s10082_s20  ;;  %v6280_v47 = vpop.f32.mrb[183].mxu0 }
 0x63d   : > { %6362 = vrot.lane.b32.xlu1 %v6278_v54, %s10082_s20 }
 0x63e   : > { %6364 = vrot.lane.b32.xlu0 %v6280_v47, %s10082_s20  ;;  %s8826_s20 = sshll.u32 %s10147_s30, 3 }
 0x63f   : > { %p328_p5 = scmp.lt.s32.totalorder %s8826_s20, 15 }
 0x640   : > { %v6528_v46 = vpop.f32.mrb[184].mxu1 }
 0x641   : > { %v6530_v1 = vpop.f32.mrb[185].mxu1  ;;  %6679 = vrot.lane.b32.xlu1 %v6528_v46, %s10084_s22  ;;  %v6457_v63 = vpop.f32.mrb[184].mxu0  ;;  %s16030_s20 = smov (!%p328_p5, %s8826_s20), 15 }
 0x642   : > { %6681 = vrot.lane.b32.xlu0 %v6530_v1, %s10084_s22  ;;  %v6459_v9 = vpop.f32.mrb[185].mxu0 }
 0x645   : > { %6675 = vrot.lane.b32.xlu1 %v6457_v63, %s10084_s22 }
 0x646   : > { %6677 = vrot.lane.b32.xlu0 %v6459_v9, %s10084_s22 }
 0x648   : > { %v6670_v16 = vpop.f32.mrb[186].mxu1 }
 0x649   : > { %v6672_v34 = vpop.f32.mrb[187].mxu1  ;;  %6687 = vrot.lane.b32.xlu1 %v6670_v16, %s10084_s22  ;;  %v6599_v45 = vpop.f32.mrb[186].mxu0 }
 0x64a   : > { %6689 = vrot.lane.b32.xlu0 %v6672_v34, %s10084_s22  ;;  %v6601_v62 = vpop.f32.mrb[187].mxu0 }
 0x64d   : > { %6683 = vrot.lane.b32.xlu1 %v6599_v45, %s10084_s22 }
 0x64e   : > { %6685 = vrot.lane.b32.xlu0 %v6601_v62, %s10084_s22  ;;  %s330_s22 = scalar_lea.vmem %s15155_s8, %s16030_s20 }
 0x650   : > { %v6849_v8 = vpop.f32.mrb[188].mxu1 }
 0x651   : > { %v6851_v48 = vpop.f32.mrb[189].mxu1  ;;  %7000 = vrot.lane.b32.xlu1 %v6849_v8, %s10085_s23  ;;  %v6778_v39 = vpop.f32.mrb[188].mxu0 }
 0x652   : > { %7002 = vrot.lane.b32.xlu0 %v6851_v48, %s10085_s23  ;;  %v6780_v32 = vpop.f32.mrb[189].mxu0 }
 0x655   : > { %6996 = vrot.lane.b32.xlu1 %v6778_v39, %s10085_s23 }
 0x656   : > { %6998 = vrot.lane.b32.xlu0 %v6780_v32, %s10085_s23 }
 0x658   : > { %v6991_v55 = vpop.f32.mrb[190].mxu1 }
 0x659   : > { %v6993_v3 = vpop.f32.mrb[191].mxu1  ;;  %7008 = vrot.lane.b32.xlu1 %v6991_v55, %s10085_s23  ;;  %v6920_v17 = vpop.f32.mrb[190].mxu0 }
 0x65a   : > { %7010 = vrot.lane.b32.xlu0 %v6993_v3, %s10085_s23  ;;  %v6922_v18 = vpop.f32.mrb[191].mxu0 }
 0x65d   : > { %7004 = vrot.lane.b32.xlu1 %v6920_v17, %s10085_s23 }
 0x65e   : > { %7006 = vrot.lane.b32.xlu0 %v6922_v18, %s10085_s23 }
 0x660   : > { %v14890_v23 = vpop.f32.mrb[192].mxu1 }
 0x661   : > { %v14892_v50 = vpop.f32.mrb[192].mxu0  ;;  %v14894_v57 = vpop.f32.mrb[193].mxu1 }
 0x662   : > { %v14896_v26 = vpop.f32.mrb[193].mxu0 }
 0x668   : > { %v14898_v0 = vpop.f32.mrb[194].mxu1 }
 0x669   : > { %v14900_v53 = vpop.f32.mrb[194].mxu0  ;;  %v14902_v36 = vpop.f32.mrb[195].mxu1 }
 0x66a   : > { %v14904_v49 = vpop.f32.mrb[195].mxu0 }
 0x670   : > { %v7467_v58 = vpop.f32.mrb[196].mxu1 }
 0x671   : > { %v7469_v42 = vpop.f32.mrb[197].mxu1  ;;  %7618 = vrot.lane.b32.xlu1 %v7467_v58, %s10086_s24  ;;  %v7396_v21 = vpop.f32.mrb[196].mxu0 }
 0x672   : > { %7620 = vrot.lane.b32.xlu0 %v7469_v42, %s10086_s24  ;;  %v7398_v61 = vpop.f32.mrb[197].mxu0 }
 0x675   : > { %7614 = vrot.lane.b32.xlu1 %v7396_v21, %s10086_s24 }
 0x676   : > { %7616 = vrot.lane.b32.xlu0 %v7398_v61, %s10086_s24 }
 0x678   : > { %v7609_v37 = vpop.f32.mrb[198].mxu1 }
 0x679   : > { %v7611_v51 = vpop.f32.mrb[199].mxu1  ;;  %7626 = vrot.lane.b32.xlu1 %v7609_v37, %s10086_s24  ;;  %v7538_v13 = vpop.f32.mrb[198].mxu0 }
 0x67a   : > { %7628 = vrot.lane.b32.xlu0 %v7611_v51, %s10086_s24  ;;  %v7540_v19 = vpop.f32.mrb[199].mxu0 }
 0x67b   : > { %v6046_v38 = vpop.permute.xlu1 %6045 }
 0x67c   : > { %v6048_v20 = vpop.permute.xlu0 %6047 }
 0x67d   : > { %7622 = vrot.lane.b32.xlu1 %v7538_v13, %s10086_s24  ;;  %v6061_v24 = vsel %vm1637_vm10, %v6046_v38, %v6048_v20 }
 0x67e   : > { %7624 = vrot.lane.b32.xlu0 %v7540_v19, %s10086_s24 }
 0x680   : > { %v7788_v28 = vpop.f32.mrb[200].mxu1 }
 0x681   : > { %v7790_v14 = vpop.f32.mrb[201].mxu1  ;;  %v7717_v44 = vpop.f32.mrb[200].mxu0 }
 0x682   : > { %7941 = vrot.lane.b32.xlu1 %v7790_v14, %s10088_s25  ;;  %7939 = vrot.lane.b32.xlu0 %v7788_v28, %s10088_s25  ;;  %v7719_v29 = vpop.f32.mrb[201].mxu0 }
 0x686   : > { %7935 = vrot.lane.b32.xlu0 %v7717_v44, %s10088_s25  ;;  %7937 = vrot.lane.b32.xlu1 %v7719_v29, %s10088_s25 }
 0x688   : > { %v7930_v5 = vpop.f32.mrb[202].mxu1 }
 0x689   : > { %v7932_v6 = vpop.f32.mrb[203].mxu1  ;;  %v7859_v41 = vpop.f32.mrb[202].mxu0 }
 0x68a   : > { %7947 = vrot.lane.b32.xlu0 %v7930_v5, %s10088_s25  ;;  %7949 = vrot.lane.b32.xlu1 %v7932_v6, %s10088_s25  ;;  %v7861_v12 = vpop.f32.mrb[203].mxu0 }
 0x68e   : > { %7943 = vrot.lane.b32.xlu0 %v7859_v41, %s10088_s25  ;;  %7945 = vrot.lane.b32.xlu1 %v7861_v12, %s10088_s25 }
 0x690   : > { %v8109_v35 = vpop.f32.mrb[204].mxu1 }
 0x691   : > { %v8111_v59 = vpop.f32.mrb[205].mxu1  ;;  %v8038_v11 = vpop.f32.mrb[204].mxu0 }
 0x692   : > { %8260 = vrot.lane.b32.xlu0 %v8109_v35, %s10089_s26  ;;  %8262 = vrot.lane.b32.xlu1 %v8111_v59, %s10089_s26  ;;  %v8040_v33 = vpop.f32.mrb[205].mxu0 }
 0x694   : > { %v6042_v22 = vpop.permute.xlu1 %6041 }
 0x695   : > { %v6044_v27 = vpop.permute.xlu0 %6043 }
 0x696   : > { %8256 = vrot.lane.b32.xlu0 %v8038_v11, %s10089_s26  ;;  %8258 = vrot.lane.b32.xlu1 %v8040_v33, %s10089_s26  ;;  %v6062_v31 = vsel %vm1637_vm10, %v6044_v27, %v6046_v38  ;;  %v6063_v25 = vsel %vm1637_vm10, %v6042_v22, %v6044_v27 }
 0x698   : > { %v8251_v2 = vpop.f32.mrb[206].mxu1 }
 0x699   : > { %v8253_v10 = vpop.f32.mrb[207].mxu1  ;;  %v8180_v52 = vpop.f32.mrb[206].mxu0 }
 0x69a   : > { %8268 = vrot.lane.b32.xlu0 %v8251_v2, %s10089_s26  ;;  %8270 = vrot.lane.b32.xlu1 %v8253_v10, %s10089_s26  ;;  %v8182_v60 = vpop.f32.mrb[207].mxu0 }
 0x69b   : > { %v6054_v30 = vpop.permute.xlu1 %6053 }
 0x69c   : > { %v6056_v7 = vpop.permute.xlu0 %6055 }
 0x69d   : > { %v6057_v4 = vsel %vm1637_vm10, %v6054_v30, %v6056_v7  ;;  %v6064_v40 = vsel %vm1637_vm10, %v6056_v7, %v6042_v22 }
 0x69e   : > { %8264 = vrot.lane.b32.xlu0 %v8180_v52, %s10089_s26  ;;  %8266 = vrot.lane.b32.xlu1 %v8182_v60, %s10089_s26 }
 0x69f   : > { %v6050_v43 = vpop.permute.xlu1 %6049 }
 0x6a0   : > { %v6060_v54 = vsel %vm1637_vm10, %v6048_v20, %v6050_v43  ;;  %v8430_v47 = vpop.f32.mrb[208].mxu1  ;;  %v6052_v46 = vpop.permute.xlu0 %6051 }
 0x6a1   : > { %v6058_v1 = vsel %vm1637_vm10, %v6052_v46, %v6054_v30  ;;  %v6059_v63 = vsel %vm1637_vm10, %v6050_v43, %v6052_v46  ;;  %v8432_v9 = vpop.f32.mrb[209].mxu1  ;;  %v8359_v16 = vpop.f32.mrb[208].mxu0 }
 0x6a2   : > { %8581 = vrot.lane.b32.xlu0 %v8430_v47, %s10090_s27  ;;  %8583 = vrot.lane.b32.xlu1 %v8432_v9, %s10090_s27  ;;  %v8361_v34 = vpop.f32.mrb[209].mxu0 }
 0x6a3   : > { %v6359_v45 = vpop.permute.xlu1 %6358 }
 0x6a4   : > { %v6361_v62 = vpop.permute.xlu0 %6360 }
 0x6a5   : > { %v6374_v8 = vsel %vm2107_vm11, %v6359_v45, %v6361_v62 }
 0x6a6   : > { %v6380_v48 = vadd.f32 %v6374_v8, %v6061_v24  ;;  %8577 = vrot.lane.b32.xlu0 %v8359_v16, %s10090_s27  ;;  %8579 = vrot.lane.b32.xlu1 %v8361_v34, %s10090_s27 }
 0x6a7   : > { %v6355_v39 = vpop.permute.xlu1 %6354 }
 0x6a8   : > { %v6357_v32 = vpop.permute.xlu0 %6356  ;;  %v8572_v55 = vpop.f32.mrb[210].mxu1 }
 0x6a9   : > { %v6375_v3 = vsel %vm2107_vm11, %v6357_v32, %v6359_v45  ;;  %v6376_v17 = vsel %vm2107_vm11, %v6355_v39, %v6357_v32  ;;  %v8501_v18 = vpop.f32.mrb[210].mxu0  ;;  %v8574_v58 = vpop.f32.mrb[211].mxu1 }
 0x6aa   : > { %v6378_v42 = vadd.f32 %v6376_v17, %v6063_v25  ;;  %v6379_v21 = vadd.f32 %v6375_v3, %v6062_v31  ;;  %v8503_v61 = vpop.f32.mrb[211].mxu0  ;;  %8585 = vrot.lane.b32.xlu0 %v8501_v18, %s10090_s27 }
 0x6ab   : > { %8587 = vrot.lane.b32.xlu1 %v8503_v61, %s10090_s27  ;;  %v6367_v37 = vpop.permute.xlu1 %6366 }
 0x6ac   : > { %v6369_v51 = vpop.permute.xlu0 %6368 }
 0x6ad   : > { %v6370_v13 = vsel %vm2107_vm11, %v6367_v37, %v6369_v51  ;;  %v6377_v19 = vsel %vm2107_vm11, %v6369_v51, %v6355_v39 }
 0x6ae   : > { %v6384_v38 = vadd.f32 %v6370_v13, %v6057_v4  ;;  %v6385_v20 = vadd.f32 %v6377_v19, %v6064_v40  ;;  %8589 = vrot.lane.b32.xlu0 %v8572_v55, %s10090_s27 }
 0x6af   : > { %8591 = vrot.lane.b32.xlu1 %v8574_v58, %s10090_s27  ;;  %v6363_v24 = vpop.permute.xlu1 %6362 }
 0x6b0   : > { %v6373_v28 = vsel %vm2107_vm11, %v6361_v62, %v6363_v24  ;;  %v6365_v14 = vpop.permute.xlu0 %6364 }
 0x6b1   : > { %v6381_v44 = vadd.f32 %v6373_v28, %v6060_v54  ;;  %v6371_v29 = vsel %vm2107_vm11, %v6365_v14, %v6367_v37  ;;  %v6372_v5 = vsel %vm2107_vm11, %v6363_v24, %v6365_v14 }
 0x6b2   : > { %v6382_v6 = vadd.f32 %v6372_v5, %v6059_v63  ;;  %v6383_v41 = vadd.f32 %v6371_v29, %v6058_v1 }
 0x6b3   : > { %v6680_v12 = vpop.permute.xlu1 %6679 }
 0x6b4   : > { %v6682_v35 = vpop.permute.xlu0 %6681 }
 0x6b5   : > { %v6695_v59 = vsel %vm2609_vm12, %v6680_v12, %v6682_v35 }
 0x6b6   : > { %v6701_v11 = vadd.f32 %v6695_v59, %v6380_v48 }
 0x6b7   : > { %v6676_v33 = vpop.permute.xlu1 %6675 }
 0x6b8   : > { %v6678_v22 = vpop.permute.xlu0 %6677 }
 0x6b9   : > { %v6696_v27 = vsel %vm2609_vm12, %v6678_v22, %v6680_v12  ;;  %v6697_v31 = vsel %vm2609_vm12, %v6676_v33, %v6678_v22 }
 0x6ba   : > { %v6699_v25 = vadd.f32 %v6697_v31, %v6378_v42  ;;  %v6700_v2 = vadd.f32 %v6696_v27, %v6379_v21 }
 0x6bb   : > { %v6688_v10 = vpop.permute.xlu1 %6687 }
 0x6bc   : > { %v6690_v52 = vpop.permute.xlu0 %6689 }
 0x6bd   : > { %v6691_v60 = vsel %vm2609_vm12, %v6688_v10, %v6690_v52  ;;  %v6698_v30 = vsel %vm2609_vm12, %v6690_v52, %v6676_v33 }
 0x6be   : > { %v6705_v7 = vadd.f32 %v6691_v60, %v6384_v38  ;;  %v6706_v4 = vadd.f32 %v6698_v30, %v6385_v20 }
 0x6bf   : > { %v6684_v40 = vpop.permute.xlu1 %6683 }
 0x6c0   : > { %v6694_v43 = vsel %vm2609_vm12, %v6682_v35, %v6684_v40  ;;  %v6686_v54 = vpop.permute.xlu0 %6685 }
 0x6c1   : > { %v6702_v47 = vadd.f32 %v6694_v43, %v6381_v44  ;;  %v6692_v46 = vsel %vm2609_vm12, %v6686_v54, %v6688_v10  ;;  %v6693_v1 = vsel %vm2609_vm12, %v6684_v40, %v6686_v54  ;;  %v15026_v43 = vld [vmem:[#allocation4 + $0x2] ss:$4 sm:$0xff] }
 0x6c2   : > { %v6703_v63 = vadd.f32 %v6693_v1, %v6382_v6  ;;  %v6704_v9 = vadd.f32 %v6692_v46, %v6383_v41 }
 0x6c3   : > { %v7001_v16 = vpop.permute.xlu1 %7000 }
 0x6c4   : > { %v7003_v34 = vpop.permute.xlu0 %7002 }
 0x6c5   : > { %v7016_v45 = vsel %vm3111_vm13, %v7001_v16, %v7003_v34 }
 0x6c6   : > { %v7022_v62 = vadd.f32 %v7016_v45, %v6701_v11 }
 0x6c7   : > { %v6997_v8 = vpop.permute.xlu1 %6996 }
 0x6c8   : > { %v6999_v48 = vpop.permute.xlu0 %6998  ;;  %v14991_v39 = vadd.f32 %v14890_v23, %v7022_v62 }
 0x6c9   : > { %v7017_v32 = vsel %vm3111_vm13, %v6999_v48, %v7001_v16  ;;  %v7018_v55 = vsel %vm3111_vm13, %v6997_v8, %v6999_v48 }
 0x6ca   : > { %v7020_v3 = vadd.f32 %v7018_v55, %v6699_v25  ;;  %v7021_v17 = vadd.f32 %v7017_v32, %v6700_v2 }
 0x6cb   : > { %v7009_v18 = vpop.permute.xlu1 %7008 }
 0x6cc   : > { %v7011_v58 = vpop.permute.xlu0 %7010  ;;  %v7318_v42 = vadd.f32 %v14896_v26, %v7021_v17  ;;  %v14999_v21 = vadd.f32 %v14892_v50, %v7020_v3 }
 0x6cd   : > { %v7012_v61 = vsel %vm3111_vm13, %v7009_v18, %v7011_v58  ;;  %v7019_v23 = vsel %vm3111_vm13, %v7011_v58, %v6997_v8 }
 0x6ce   : > { %v7026_v37 = vadd.f32 %v7012_v61, %v6705_v7  ;;  %v7027_v51 = vadd.f32 %v7019_v23, %v6706_v4 }
 0x6cf   : > { %v7005_v13 = vpop.permute.xlu1 %7004 }
 0x6d0   : > { %v7015_v19 = vsel %vm3111_vm13, %v7003_v34, %v7005_v13  ;;  %v7007_v38 = vpop.permute.xlu0 %7006  ;;  %v7324_v20 = vadd.f32 %v14902_v36, %v7027_v51  ;;  %v15009_v26 = vadd.f32 %v14898_v0, %v7026_v37  ;;  %v16021_v34 = vld [vmem:[#allocation14_spill] sm:$0xff]  ;;  %v16023_v51 = vld [vmem:[#allocation15_spill] sm:$0xff] }
 0x6d1   : > { %v7023_v50 = vadd.f32 %v7015_v19, %v6702_v47  ;;  %v7013_v24 = vsel %vm3111_vm13, %v7007_v38, %v7009_v18  ;;  %v7014_v28 = vsel %vm3111_vm13, %v7005_v13, %v7007_v38  ;;  %v16020_v47 = vld [vmem:[#allocation11_spill] sm:$0xff]  ;;  %v8653_v45 = vrot.slane %v15026_v43, %v16021_v34 }
 0x6d2   : > { %v7024_v14 = vadd.f32 %v7014_v28, %v6703_v63  ;;  %v7025_v44 = vadd.f32 %v7013_v24, %v6704_v9  ;;  %v15032_v46 = vrot.slane %v14910_v56, %v16020_v47  ;;  %v16022_v56 = vld [vmem:[#allocation12_spill] sm:$0xff]  ;;  %v10092_v18 = vmov 1966171168  }
 0x6d3   : > { %v7320_v29 = vadd.f32 %v14894_v57, %v7023_v50  ;;  %v8649_v32 = vrot.slane %v15026_v43, %v16022_v56  ;;  %v15050_v58 = vunpack.c.l.s4 %v10092_v18  ;;  %v8657_v13 = vrot.slane %v15026_v43, %v16023_v51  ;;  %v16025_v56 = vld [vmem:[#allocation13_spill] sm:$0xff] }
 0x6d4   : > { %v7321_v5 = vadd.f32 %v14900_v53, %v7024_v14  ;;  %v7322_v6 = vadd.f32 %v14904_v49, %v7025_v44  ;;  %v8641_v51 = vrot.slane %v15026_v43, %v16020_v47 }
 0x6e3   : > { %v7619_v41 = vpop.permute.xlu1 %7618 }
 0x6e4   : > { %v7621_v36 = vpop.permute.xlu0 %7620 }
 0x6e5   : > { %v7634_v40 = vsel %vm4018_vm14, %v7619_v41, %v7621_v36 }
 0x6e6   : > { %v7641_v1 = vadd.f32 %v7634_v40, %v7320_v29 }
 0x6e7   : > { %v7615_v12 = vpop.permute.xlu1 %7614 }
 0x6e8   : > { %v7617_v0 = vpop.permute.xlu0 %7616 }
 0x6e9   : > { %v7636_v63 = vsel %vm4018_vm14, %v7615_v12, %v7617_v0  ;;  %v7635_v62 = vsel %vm4018_vm14, %v7617_v0, %v7619_v41 }
 0x6ea   : > { %v7639_v61 = vadd.f32 %v7636_v63, %v7318_v42  ;;  %v7640_v19 = vadd.f32 %v7635_v62, %v14991_v39 }
 0x6eb   : > { %v7627_v35 = vpop.permute.xlu1 %7626 }
 0x6ec   : > { %v7629_v59 = vpop.permute.xlu0 %7628 }
 0x6ed   : > { %v7637_v8 = vsel %vm4018_vm14, %v7629_v59, %v7615_v12  ;;  %v7630_v55 = vsel %vm4018_vm14, %v7627_v35, %v7629_v59 }
 0x6ee   : > { %v7638_v38 = vadd.f32 %v7637_v8, %v14999_v21  ;;  %v7645_v42 = vadd.f32 %v7630_v55, %v7324_v20 }
 0x6ef   : > { %v7623_v11 = vpop.permute.xlu1 %7622 }
 0x6f0   : > { %v7625_v33 = vpop.permute.xlu0 %7624  ;;  %v7633_v3 = vsel %vm4018_vm14, %v7621_v36, %v7623_v11 }
 0x6f1   : > { %v7632_v23 = vsel %vm4018_vm14, %v7623_v11, %v7625_v33  ;;  %v7631_v50 = vsel %vm4018_vm14, %v7625_v33, %v7627_v35  ;;  %v7642_v44 = vadd.f32 %v7633_v3, %v7321_v5 }
 0x6f2   : > { %v7643_v36 = vadd.f32 %v7632_v23, %v7322_v6  ;;  %v7644_v0 = vadd.f32 %v7631_v50, %v15009_v26  ;;  %v16024_v50 = vld [vmem:[#allocation17_spill] sm:$0xff] }
 0x6f4   : > { %v7942_v22 = vpop.permute.xlu1 %7941  ;;  %v7940_v27 = vpop.permute.xlu0 %7939 }
 0x6f5   : > { %v7955_v54 = vsel %vm4520_vm15, %v7940_v27, %v7942_v22 }
 0x6f6   : > { %v7962_v17 = vadd.f32 %v7955_v54, %v7641_v1 }
 0x6f8   : > { %v7936_v31 = vpop.permute.xlu0 %7935  ;;  %v7938_v25 = vpop.permute.xlu1 %7937 }
 0x6f9   : > { %v7956_v37 = vsel %vm4520_vm15, %v7938_v25, %v7940_v27  ;;  %v7957_v39 = vsel %vm4520_vm15, %v7936_v31, %v7938_v25 }
 0x6fa   : > { %v7961_v12 = vadd.f32 %v7956_v37, %v7640_v19  ;;  %v7960_v25 = vadd.f32 %v7957_v39, %v7639_v61 }
 0x6fc   : > { %v7948_v2 = vpop.permute.xlu0 %7947  ;;  %v7950_v10 = vpop.permute.xlu1 %7949 }
 0x6fd   : > { %v7958_v35 = vsel %vm4520_vm15, %v7950_v10, %v7936_v31  ;;  %v7951_v31 = vsel %vm4520_vm15, %v7948_v2, %v7950_v10 }
 0x6fe   : > { %v7959_v54 = vadd.f32 %v7958_v35, %v7638_v38  ;;  %v7966_v19 = vadd.f32 %v7951_v31, %v7645_v42  ;;  %v16027_v31 = vld [vmem:[#allocation18_spill] sm:$0xff] }
 0x700   : > { %v7944_v52 = vpop.permute.xlu0 %7943  ;;  %v7946_v57 = vpop.permute.xlu1 %7945 }
 0x701   : > { %v7954_v20 = vsel %vm4520_vm15, %v7942_v22, %v7944_v52  ;;  %v7952_v5 = vsel %vm4520_vm15, %v7946_v57, %v7948_v2  ;;  %v7953_v59 = vsel %vm4520_vm15, %v7944_v52, %v7946_v57 }
 0x702   : > { %v7963_v52 = vadd.f32 %v7954_v20, %v7642_v44  ;;  %v7964_v1 = vadd.f32 %v7953_v59, %v7643_v36  ;;  %v7965_v63 = vadd.f32 %v7952_v5, %v7644_v0  ;;  %v16026_v59 = vld [vmem:[#allocation16_spill] sm:$0xff] }
 0x704   : > { %v8261_v60 = vpop.permute.xlu0 %8260  ;;  %v8263_v53 = vpop.permute.xlu1 %8262 }
 0x705   : > { %v8276_v48 = vsel %vm5022_vm0, %v8261_v60, %v8263_v53 }
 0x706   : > { %v8283_v24 = vadd.f32 %v8276_v48, %v7962_v17 }
 0x708   : > { %v15018_v30 = vpop.permute.xlu0 %8256  ;;  %v8259_v49 = vpop.permute.xlu1 %8258 }
 0x709   : > { %v8277_v29 = vsel %vm5022_vm0, %v8259_v49, %v8261_v60  ;;  %v8278_v6 = vsel %vm5022_vm0, %v15018_v30, %v8259_v49 }
 0x70a   : > { %v8282_v11 = vadd.f32 %v8277_v29, %v7961_v12  ;;  %v8281_v62 = vadd.f32 %v8278_v6, %v7960_v25  ;;  %v8665_v6 = vrot.slane %v15026_v43, %v16026_v59 }
 0x70c   : > { %v15020_v7 = vpop.permute.xlu0 %8268  ;;  %v15022_v4 = vpop.permute.xlu1 %8270 }
 0x70d   : > { %v8279_v2 = vsel %vm5022_vm0, %v15022_v4, %v15018_v30  ;;  %v8272_v30 = vsel %vm5022_vm0, %v15020_v7, %v15022_v4 }
 0x70e   : > { %v8280_v38 = vadd.f32 %v8279_v2, %v7959_v54  ;;  %v8287_v29 = vadd.f32 %v8272_v30, %v7966_v19 }
 0x710   : > { %v8265_v9 = vpop.permute.xlu0 %8264  ;;  %v8267_v16 = vpop.permute.xlu1 %8266 }
 0x711   : > { %v8275_v22 = vsel %vm5022_vm0, %v8263_v53, %v8265_v9  ;;  %v8274_v57 = vsel %vm5022_vm0, %v8265_v9, %v8267_v16  ;;  %v8273_v9 = vsel %vm5022_vm0, %v8267_v16, %v15020_v7  ;;  %v8661_v16 = vrot.slane %v15026_v43, %v16024_v50 }
 0x712   : > { %v8284_v10 = vadd.f32 %v8275_v22, %v7963_v52  ;;  %v8285_v55 = vadd.f32 %v8274_v57, %v7964_v1  ;;  %v8669_v22 = vrot.slane %v15026_v43, %v16027_v31 }
 0x714   : > { %v8582_v28 = vpop.permute.xlu0 %8581  ;;  %v8584_v14 = vpop.permute.xlu1 %8583 }
 0x715   : > { %v8597_v41 = vsel %vm5524_vm1, %v8582_v28, %v8584_v14 }
 0x716   : > { %v8604_v21 = vadd.f32 %v8597_v41, %v8283_v24 }
 0x718   : > { %v8622_v33 = vadd.f32 %v15032_v46, %v8604_v21  ;;  %v8578_v26 = vpop.permute.xlu0 %8577  ;;  %v8580_v27 = vpop.permute.xlu1 %8579 }
 0x719   : > { %v8598_v60 = vsel %vm5524_vm1, %v8580_v27, %v8582_v28  ;;  %v8599_v49 = vsel %vm5524_vm1, %v8578_v26, %v8580_v27  ;;  %v8286_v28 = vadd.f32 %v8273_v9, %v7965_v63  ;;  %v8700_v27 = vunpack.c.0.s8 %v15050_v58  ;;  %v16028_v58 = vld [vmem:[#allocation10_spill] sm:$0xff] }
 0x71a   : > { %v8603_v40 = vadd.f32 %v8598_v60, %v8282_v11  ;;  %v8630_v53 = vmax.f32 %v8622_v33, 0.0  ;;  %v8602_v3 = vadd.f32 %v8599_v49, %v8281_v62 }
 0x71b   : > { %v8703_v1 = vsub.s32 %v8700_v27, %v16028_v58 }
 0x71c   : > { %v8621_v8 = vadd.f32 %v15032_v46, %v8603_v40  ;;  %v8586_v48 = vpop.permute.xlu0 %8585  ;;  %v8620_v42 = vadd.f32 %v15032_v46, %v8602_v3 }
 0x71d   : > { %v8596_v17 = vsel %vm5524_vm1, %v8584_v14, %v8586_v48  ;;  %v8588_v18 = vpop.permute.xlu1 %8587  ;;  %v8681_v14 = vmul.f32 %v8653_v45, %v8630_v53 }
 0x71e   : > { %v8629_v61 = vmax.f32 %v8621_v8, 0.0  ;;  %v8605_v23 = vadd.f32 %v8596_v17, %v8284_v10  ;;  %v8595_v37 = vsel %vm5524_vm1, %v8586_v48, %v8588_v18 }
 0x71f   : > { %v8606_v24 = vadd.f32 %v8595_v37, %v8285_v55 }
 0x720   : > { %v8680_v7 = vmul.f32 %v8649_v32, %v8629_v61  ;;  %v8623_v4 = vadd.f32 %v15032_v46, %v8605_v23  ;;  %v8590_v44 = vpop.permute.xlu0 %8589  ;;  %v8645_v32 = vrot.slane %v15026_v43, %v16025_v56 }
 0x721   : > { %v8624_v41 = vadd.f32 %v15032_v46, %v8606_v24  ;;  %v8594_v36 = vsel %vm5524_vm1, %v8588_v18, %v8590_v44  ;;  %v8592_v39 = vpop.permute.xlu1 %8591 }
 0x722   : > { %v8695_v12 = vcombine.low %v8680_v7, %v8681_v14  ;;  %v8631_v21 = vmax.f32 %v8623_v4, 0.0  ;;  %v8607_v34 = vadd.f32 %v8594_v36, %v8286_v28  ;;  %v8593_v45 = vsel %vm5524_vm1, %v8590_v44, %v8592_v39 }
 0x723   : > { %v8632_v0 = vmax.f32 %v8624_v41, 0.0  ;;  %v8600_v35 = vsel %vm5524_vm1, %v8592_v39, %v8578_v26  ;;  %v8608_v20 = vadd.f32 %v8593_v45, %v8287_v29  ;;  %v8628_v26 = vmax.f32 %v8620_v42, 0.0 }
 0x724   : > { %v8682_v5 = vmul.f32 %v8657_v13, %v8631_v21  ;;  %v8625_v11 = vadd.f32 %v15032_v46, %v8607_v34  ;;  %v8601_v33 = vadd.f32 %v8600_v35, %v8280_v38  ;;  %v8711_v48 = vrot.slane %v8695_v12, %v8703_v1 }
 0x725   : > { %v8683_v25 = vmul.f32 %v8661_v16, %v8632_v0  ;;  %v8626_v15 = vadd.f32 %v15032_v46, %v8608_v20  ;;  %v8679_v63 = vmul.f32 %v8645_v32, %v8628_v26 }
 0x726   : > { %v8633_v60 = vmax.f32 %v8625_v11, 0.0  ;;  %v8619_v13 = vadd.f32 %v15032_v46, %v8601_v33 }
 0x727   : > { %v8696_v52 = vcombine.low %v8682_v5, %v8683_v25  ;;  %v8634_v57 = vmax.f32 %v8626_v15, 0.0 }
 0x728   : > { %v8684_v49 = vmul.f32 %v8665_v6, %v8633_v60  ;;  %v8627_v40 = vmax.f32 %v8619_v13, 0.0 }
 0x729   : > { %v8685_v54 = vmul.f32 %v8669_v22, %v8634_v57  ;;  %v8718_v53 = vrot.slane %v8696_v52, %v8703_v1 }
 0x72a   : > { %v8678_v62 = vmul.f32 %v8641_v51, %v8627_v40 }
 0x72b   : > { %v8697_v2 = vcombine.low %v8684_v49, %v8685_v54 }
 0x72c   : > { %v8694_v10 = vcombine.low %v8678_v62, %v8679_v63 }
 0x72d   : > { %v8725_v8 = vrot.slane %v8697_v2, %v8703_v1 }
 0x72e   : > { %v8704_v9 = vrot.slane %v8694_v10, %v8703_v1 }
 0x72f   : > { %v8727_v43 = vcombine.low %v8718_v53, %v8725_v8 }
 0x730   : > { %v8726_v47 = vcombine.low %v8704_v9, %v8711_v48 }
 0x731   : > { %v8741_v46 = vrot.slane %v8727_v43, %v8703_v1 }
 0x732   : > { %v8734_v55 = vrot.slane %v8726_v47, %v8703_v1 }
 0x734   : > { %v8742_v3 = vcombine.low %v8734_v55, %v8741_v46 }
 0x736   : > { %8744 = vst [vmem:[%s330_s22] sm:$0xff] %v8742_v3 }
 0x737 PF: > { %s22_s29 = sadd.s32 1, %s10076_s29  }
 0x738   : > { %p19_p10 = scmp.ge.s32.totalorder %s22_s29, 4  }
 0x73a   :  { %21 = sbr.rel (!%p19_p10) target bundleno = 5 (0x5), region = 117 }
 0x741   :  { %8765 = vsyncpa [#allocation5], 1 }
 0x742   :  { %8767 = vsyncpa [#allocation5 + $0x1], 1 }
 0x743   :  { %8768 = vsyncpa [#allocation7], 1 }

</bundles_post_ra>
